<compile_context>
chip_gen: v6e
topology: v6e:2x2x1
jax: 0.10.0
libtpu: 0.0.40
codegen_flags: <defaults>
</compile_context>

<pallas_src>
import functools

import jax
import jax.numpy as jnp
from jax.experimental import pallas as pl
from jax.experimental.pallas import tpu as pltpu


def _mha_kernel(q_ref, k_ref, v_ref,
                wq_ref, wk_ref, wv_ref, wfc_ref,
                g_ref, b_ref,
                out_ref, attn_ref,
                kh_ref, vh_ref, ho_ref,
                *, n_head, d_k, d_v, eps, inv_d_model):
    qb = pl.program_id(1)

    # Project K/V for ALL heads once per batch element (full MXU width,
    # bf16 operands, f32 accumulation), carried in VMEM across q blocks.
    @pl.when(qb == 0)
    def _():
        kh_ref[...] = jnp.dot(k_ref[0], wk_ref[...],
                              preferred_element_type=jnp.float32
                              ).astype(kh_ref.dtype)
        vh_ref[...] = jnp.dot(v_ref[0], wv_ref[...],
                              preferred_element_type=jnp.float32
                              ).astype(vh_ref.dtype)

    q = q_ref[0]                                  # (TQ, d_model) f32 residual
    q_bf = q.astype(jnp.bfloat16)

    # Full-width Q projection (1/temperature already folded into Wq).
    qh_all = jnp.dot(q_bf, wq_ref[...],
                     preferred_element_type=jnp.float32)   # (TQ, H*d_k) f32

    # Per-head attention (static unroll over heads).
    for h in range(n_head):
        qh = qh_all[:, h * d_k:(h + 1) * d_k].astype(jnp.bfloat16)
        kh = kh_ref[:, h * d_k:(h + 1) * d_k]               # (S, d_k) bf16
        # Scores: contract the last dims directly -- no explicit transpose.
        s = jax.lax.dot_general(qh, kh, (((1,), (1,)), ((), ())),
                                preferred_element_type=jnp.float32)  # (TQ, S)

        # Numerically-stable softmax in f32; exact reciprocal so stored attn
        # rows sum to ~1 (EUP slot, tiny (TQ, 1) column).
        s = s - jnp.max(s, axis=-1, keepdims=True)
        e = jnp.exp(s)
        a = e * pl.reciprocal(jnp.sum(e, axis=-1, keepdims=True))
        attn_ref[0, h] = a.astype(attn_ref.dtype)

        # Per-head value aggregation; stash this head's lanes of the FC input.
        ho_ref[:, h * d_v:(h + 1) * d_v] = jnp.dot(
            a.astype(jnp.bfloat16), vh_ref[:, h * d_v:(h + 1) * d_v],
            preferred_element_type=jnp.float32).astype(ho_ref.dtype)

    # One full-contraction output FC (K = n_head*d_v), residual add in f32.
    o = jnp.dot(ho_ref[...], wfc_ref[...],
                preferred_element_type=jnp.float32) + q     # (TQ, d_model)

    # LayerNorm, two-pass (x - mean)^2 form for numerical stability.
    mean = jnp.sum(o, axis=-1, keepdims=True) * inv_d_model
    c = o - mean
    var = jnp.sum(c * c, axis=-1, keepdims=True) * inv_d_model
    normed = c * jax.lax.rsqrt(var + eps)
    out_ref[0] = (normed * g_ref[...] + b_ref[...]).astype(out_ref.dtype)


def multi_head_attention(q, k, v, wq, wk, wv, wfc, gamma, beta,
                         *, n_head, d_k, d_v, eps=1e-6, block_q=256,
                         attn_dtype=jnp.float32):
    B, S, d_model = q.shape
    temperature = d_k ** 0.5

    # bf16 weights for the MXU; fold 1/temperature into Wq.  Weights are passed
    # UNSPLIT so the projections / FC contract over the full d_model / H*d_v.
    wq_bf = (wq / temperature).astype(jnp.bfloat16)          # (d_model, H*d_k)
    wk_bf = wk.astype(jnp.bfloat16)                          # (d_model, H*d_k)
    wv_bf = wv.astype(jnp.bfloat16)                          # (d_model, H*d_v)
    wfc_bf = wfc.astype(jnp.bfloat16)                        # (H*d_v, d_model)
    # K/V activations cast at the boundary (halves their DMA bytes / VMEM
    # residency); q stays f32 so the residual + LayerNorm path is exact.
    k_bf = k.astype(jnp.bfloat16)
    v_bf = v.astype(jnp.bfloat16)

    # TODO(synk): pad/mask when S is not a multiple of block_q instead of the
    # whole-sequence fallback (VMEM/vreg blowup for large unaligned S).
    tq = block_q if (S % block_q == 0) else S
    n_qb = S // tq

    kernel = functools.partial(_mha_kernel, n_head=n_head, d_k=d_k, d_v=d_v,
                               eps=eps, inv_d_model=1.0 / d_model)

    out_shapes = (
        jax.ShapeDtypeStruct((B, S, d_model), jnp.float32),
        # attn_dtype=jnp.bfloat16 halves the dominant S^2 HBM writeback on
        # v5e/v6e if the caller tolerates bf16 probabilities.
        jax.ShapeDtypeStruct((B, n_head, S, S), attn_dtype),
    )

    grid_spec = pltpu.PrefetchScalarGridSpec(
        num_scalar_prefetch=0,
        grid=(B, n_qb),
        in_specs=[
            pl.BlockSpec((1, tq, d_model), lambda b, qb: (b, qb, 0)),      # q (+residual)
            pl.BlockSpec((1, S, d_model), lambda b, qb: (b, 0, 0)),        # k (bf16)
            pl.BlockSpec((1, S, d_model), lambda b, qb: (b, 0, 0)),        # v (bf16)
            pl.BlockSpec((d_model, n_head * d_k), lambda b, qb: (0, 0)),   # Wq
            pl.BlockSpec((d_model, n_head * d_k), lambda b, qb: (0, 0)),   # Wk
            pl.BlockSpec((d_model, n_head * d_v), lambda b, qb: (0, 0)),   # Wv
            pl.BlockSpec((n_head * d_v, d_model), lambda b, qb: (0, 0)),   # Wfc
            pl.BlockSpec((1, d_model), lambda b, qb: (0, 0)),              # ln gamma
            pl.BlockSpec((1, d_model), lambda b, qb: (0, 0)),              # ln beta
        ],
        out_specs=[
            pl.BlockSpec((1, tq, d_model), lambda b, qb: (b, qb, 0)),          # out
            pl.BlockSpec((1, n_head, tq, S), lambda b, qb: (b, 0, qb, 0)),     # attn
        ],
        scratch_shapes=[
            pltpu.VMEM((S, n_head * d_k), jnp.bfloat16),   # K projection (all heads)
            pltpu.VMEM((S, n_head * d_v), jnp.bfloat16),   # V projection (all heads)
            pltpu.VMEM((tq, n_head * d_v), jnp.bfloat16),  # concat'd head outputs
        ],
    )

    return pl.pallas_call(
        kernel,
        out_shape=out_shapes,
        grid_spec=grid_spec,
        compiler_params=pltpu.CompilerParams(
            # Batch axis parallel (feeds both v7x TCs when B >= 2); q-block
            # axis must stay sequential for the once-per-batch K/V projection
            # carried in VMEM scratch.
            dimension_semantics=("parallel", "arbitrary")),
    )(q, k_bf, v_bf, wq_bf, wk_bf, wv_bf, wfc_bf, gamma, beta)


def _reference(q, k, v, wq, wk, wv, wfc, gamma, beta, n_head, d_k, d_v, eps=1e-6):
    B, S, D = q.shape
    qp = (q @ wq).reshape(B, S, n_head, d_k).transpose(0, 2, 1, 3)
    kp = (k @ wk).reshape(B, S, n_head, d_k).transpose(0, 2, 1, 3)
    vp = (v @ wv).reshape(B, S, n_head, d_v).transpose(0, 2, 1, 3)
    s = jnp.einsum('bhqd,bhkd->bhqk', qp / (d_k ** 0.5), kp)
    a = jax.nn.softmax(s, axis=-1)
    o = jnp.einsum('bhqk,bhkd->bhqd', a, vp)
    o = o.transpose(0, 2, 1, 3).reshape(B, S, n_head * d_v)
    o = o @ wfc + q
    mean = o.mean(-1, keepdims=True)
    var = ((o - mean) ** 2).mean(-1, keepdims=True)
    return (o - mean) / jnp.sqrt(var + eps) * gamma[0] + beta[0], a


if __name__ == "__main__":
    # Small but lane-aligned shapes (multiples of 128 on the lane dim).
    B, S, d_model = 2, 256, 128
    n_head, d_k, d_v = 4, 32, 32

    key = jax.random.PRNGKey(0)
    k_q, k_k, k_v, k_wq, k_wk, k_wv, k_fc = jax.random.split(key, 7)

    q = jax.random.normal(k_q, (B, S, d_model), dtype=jnp.float32)
    k = jax.random.normal(k_k, (B, S, d_model), dtype=jnp.float32)
    v = jax.random.normal(k_v, (B, S, d_model), dtype=jnp.float32)

    scale = 1.0 / (d_model ** 0.5)
    wq = jax.random.normal(k_wq, (d_model, n_head * d_k), dtype=jnp.float32) * scale
    wk = jax.random.normal(k_wk, (d_model, n_head * d_k), dtype=jnp.float32) * scale
    wv = jax.random.normal(k_wv, (d_model, n_head * d_v), dtype=jnp.float32) * scale
    wfc = jax.random.normal(k_fc, (n_head * d_v, d_model), dtype=jnp.float32) * scale
    gamma = jnp.ones((1, d_model), dtype=jnp.float32)   # LayerNorm default weight
    beta = jnp.zeros((1, d_model), dtype=jnp.float32)   # LayerNorm default bias

    out, attn = multi_head_attention(q, k, v, wq, wk, wv, wfc, gamma, beta,
                                     n_head=n_head, d_k=d_k, d_v=d_v)
    jax.block_until_ready((out, attn))

    ref_out, ref_attn = _reference(q, k, v, wq, wk, wv, wfc, gamma, beta,
                                   n_head, d_k, d_v)
    # Tolerances reflect bf16 MXU operands (projections / scores / AV / FC)
    # against a pure-f32 reference; softmax/LayerNorm accumulation stays f32.
    assert jnp.allclose(attn, ref_attn, atol=1e-2, rtol=1e-2), (
        float(jnp.max(jnp.abs(attn - ref_attn))))
    assert jnp.allclose(out, ref_out, atol=2e-2, rtol=2e-2), (
        float(jnp.max(jnp.abs(out - ref_out))))

    print("KERNEL_OK")
</pallas_src>

<mosaic_0001>
module attributes {stable_mosaic.version = 11 : i64} {
  func.func @_mha_kernel(%arg0: i32, %arg1: i32, %arg2: memref<1x256x128xf32, #tpu.memory_space<vmem>>, %arg3: memref<1x256x128xbf16, #tpu.memory_space<vmem>>, %arg4: memref<1x256x128xbf16, #tpu.memory_space<vmem>>, %arg5: memref<128x128xbf16, #tpu.memory_space<vmem>>, %arg6: memref<128x128xbf16, #tpu.memory_space<vmem>>, %arg7: memref<128x128xbf16, #tpu.memory_space<vmem>>, %arg8: memref<128x128xbf16, #tpu.memory_space<vmem>>, %arg9: memref<1x128xf32, #tpu.memory_space<vmem>>, %arg10: memref<1x128xf32, #tpu.memory_space<vmem>>, %arg11: memref<1x256x128xf32, #tpu.memory_space<vmem>>, %arg12: memref<1x4x256x256xf32, #tpu.memory_space<vmem>>, %arg13: memref<256x128xbf16, #tpu.memory_space<vmem>>, %arg14: memref<256x128xbf16, #tpu.memory_space<vmem>>, %arg15: memref<256x128xbf16, #tpu.memory_space<vmem>>) attributes {dimension_semantics = [#tpu.dimension_semantics<parallel>, #tpu.dimension_semantics<arbitrary>], iteration_bounds = array<i64: 2, 1>, scalar_prefetch = 0 : i64, scratch_operands = 3 : i64, tpu.core_type = #tpu.core_type<tc>, window_params = [{transform_indices = @transform_0, window_bounds = array<i64: 1, 256, 128>}, {transform_indices = @transform_1, window_bounds = array<i64: 1, 256, 128>}, {transform_indices = @transform_2, window_bounds = array<i64: 1, 256, 128>}, {pipeline_mode = #tpu.pipeline_mode<synchronous>, transform_indices = @transform_3, window_bounds = array<i64: 128, 128>}, {pipeline_mode = #tpu.pipeline_mode<synchronous>, transform_indices = @transform_4, window_bounds = array<i64: 128, 128>}, {pipeline_mode = #tpu.pipeline_mode<synchronous>, transform_indices = @transform_5, window_bounds = array<i64: 128, 128>}, {pipeline_mode = #tpu.pipeline_mode<synchronous>, transform_indices = @transform_6, window_bounds = array<i64: 128, 128>}, {pipeline_mode = #tpu.pipeline_mode<synchronous>, transform_indices = @transform_7, window_bounds = array<i64: 1, 128>}, {pipeline_mode = #tpu.pipeline_mode<synchronous>, transform_indices = @transform_8, window_bounds = array<i64: 1, 128>}, {transform_indices = @transform_9, window_bounds = array<i64: 1, 256, 128>}, {transform_indices = @transform_10, window_bounds = array<i64: 1, 4, 256, 256>}]} {
    %c0_i32 = arith.constant 0 : i32
    %0 = arith.cmpi eq, %arg1, %c0_i32 : i32
    %1 = arith.extui %0 : i1 to i32
    %c0_i32_0 = arith.constant 0 : i32
    %2 = arith.cmpi ne, %1, %c0_i32_0 : i32
    scf.if %2 {
      %c0_72 = arith.constant 0 : index
      %c0_73 = arith.constant 0 : index
      %c0_74 = arith.constant 0 : index
      %125 = vector.load %arg3[%c0_72, %c0_73, %c0_74] : memref<1x256x128xbf16, #tpu.memory_space<vmem>>, vector<1x256x128xbf16>
      %126 = vector.shape_cast %125 : vector<1x256x128xbf16> to vector<256x128xbf16>
      %c0_75 = arith.constant 0 : index
      %c0_76 = arith.constant 0 : index
      %127 = vector.load %arg6[%c0_75, %c0_76] : memref<128x128xbf16, #tpu.memory_space<vmem>>, vector<128x128xbf16>
      %cst_77 = arith.constant dense<0.000000e+00> : vector<256x128xf32>
      %128 = tpu.matmul %126, %127, %cst_77 {dimension_numbers = #tpu.dot_dimension_numbers<[1], [0], [0], [1], [0, 0, 1, 1], [], []>} : vector<256x128xbf16>, vector<128x128xbf16>, vector<256x128xf32> -> vector<256x128xf32>
      %129 = arith.truncf %128 : vector<256x128xf32> to vector<256x128xbf16>
      %c0_78 = arith.constant 0 : index
      %c0_79 = arith.constant 0 : index
      %130 = vector.load %arg13[%c0_78, %c0_79] : memref<256x128xbf16, #tpu.memory_space<vmem>>, vector<256x128xbf16>
      tpu.vector_store %arg13[%c0_78, %c0_79], %129 {strides = array<i32>} : memref<256x128xbf16, #tpu.memory_space<vmem>>, vector<256x128xbf16>,
      %c0_80 = arith.constant 0 : index
      %c0_81 = arith.constant 0 : index
      %c0_82 = arith.constant 0 : index
      %131 = vector.load %arg4[%c0_80, %c0_81, %c0_82] : memref<1x256x128xbf16, #tpu.memory_space<vmem>>, vector<1x256x128xbf16>
      %132 = vector.shape_cast %131 : vector<1x256x128xbf16> to vector<256x128xbf16>
      %c0_83 = arith.constant 0 : index
      %c0_84 = arith.constant 0 : index
      %133 = vector.load %arg7[%c0_83, %c0_84] : memref<128x128xbf16, #tpu.memory_space<vmem>>, vector<128x128xbf16>
      %cst_85 = arith.constant dense<0.000000e+00> : vector<256x128xf32>
      %134 = tpu.matmul %132, %133, %cst_85 {dimension_numbers = #tpu.dot_dimension_numbers<[1], [0], [0], [1], [0, 0, 1, 1], [], []>} : vector<256x128xbf16>, vector<128x128xbf16>, vector<256x128xf32> -> vector<256x128xf32>
      %135 = arith.truncf %134 : vector<256x128xf32> to vector<256x128xbf16>
      %c0_86 = arith.constant 0 : index
      %c0_87 = arith.constant 0 : index
      %136 = vector.load %arg14[%c0_86, %c0_87] : memref<256x128xbf16, #tpu.memory_space<vmem>>, vector<256x128xbf16>
      tpu.vector_store %arg14[%c0_86, %c0_87], %135 {strides = array<i32>} : memref<256x128xbf16, #tpu.memory_space<vmem>>, vector<256x128xbf16>,
    } else {
    }
    %c0 = arith.constant 0 : index
    %c0_1 = arith.constant 0 : index
    %c0_2 = arith.constant 0 : index
    %3 = vector.load %arg2[%c0, %c0_1, %c0_2] : memref<1x256x128xf32, #tpu.memory_space<vmem>>, vector<1x256x128xf32>
    %4 = vector.shape_cast %3 : vector<1x256x128xf32> to vector<256x128xf32>
    %5 = arith.truncf %4 : vector<256x128xf32> to vector<256x128xbf16>
    %c0_3 = arith.constant 0 : index
    %c0_4 = arith.constant 0 : index
    %6 = vector.load %arg5[%c0_3, %c0_4] : memref<128x128xbf16, #tpu.memory_space<vmem>>, vector<128x128xbf16>
    %cst = arith.constant dense<0.000000e+00> : vector<256x128xf32>
    %7 = tpu.matmul %5, %6, %cst {dimension_numbers = #tpu.dot_dimension_numbers<[1], [0], [0], [1], [0, 0, 1, 1], [], []>} : vector<256x128xbf16>, vector<128x128xbf16>, vector<256x128xf32> -> vector<256x128xf32>
    %8 = vector.extract_strided_slice %7 {offsets = [0, 0], sizes = [256, 32], strides = [1, 1]} : vector<256x128xf32> to vector<256x32xf32>
    %9 = arith.truncf %8 : vector<256x32xf32> to vector<256x32xbf16>
    %c0_5 = arith.constant 0 : index
    %c0_6 = arith.constant 0 : index
    %10 = vector.load %arg13[%c0_5, %c0_6] : memref<256x128xbf16, #tpu.memory_space<vmem>>, vector<256x32xbf16>
    %cst_7 = arith.constant dense<0.000000e+00> : vector<256x256xf32>
    %11 = tpu.matmul %9, %10, %cst_7 {dimension_numbers = #tpu.dot_dimension_numbers<[1], [1], [0], [0], [0, 0, 1, 0], [], []>} : vector<256x32xbf16>, vector<256x32xbf16>, vector<256x256xf32> -> vector<256x256xf32>
    %cst_8 = arith.constant dense<0xFF800000> : vector<256xf32>
    %12 = vector.multi_reduction <maximumf>, %11, %cst_8 [1] : vector<256x256xf32> to vector<256xf32>
    %13 = vector.shape_cast %12 : vector<256xf32> to vector<256x1xf32>
    %14 = vector.broadcast %13 : vector<256x1xf32> to vector<256x256xf32>
    %15 = arith.subf %11, %14 : vector<256x256xf32>
    %16 = math.exp %15 : vector<256x256xf32>
    %cst_9 = arith.constant dense<0.000000e+00> : vector<256xf32>
    %17 = vector.multi_reduction <add>, %16, %cst_9 [1] : vector<256x256xf32> to vector<256xf32>
    %18 = vector.shape_cast %17 : vector<256xf32> to vector<256x1xf32>
    %19 = tpu.reciprocal %18 : vector<256x1xf32> -> vector<256x1xf32>
    %20 = vector.broadcast %19 : vector<256x1xf32> to vector<256x256xf32>
    %21 = arith.mulf %16, %20 : vector<256x256xf32>
    %c0_10 = arith.constant 0 : index
    %c0_11 = arith.constant 0 : index
    %c0_12 = arith.constant 0 : index
    %c0_13 = arith.constant 0 : index
    %22 = vector.load %arg12[%c0_10, %c0_11, %c0_12, %c0_13] : memref<1x4x256x256xf32, #tpu.memory_space<vmem>>, vector<1x1x256x256xf32>
    %23 = vector.shape_cast %22 : vector<1x1x256x256xf32> to vector<256x256xf32>
    %24 = vector.shape_cast %21 : vector<256x256xf32> to vector<1x1x256x256xf32>
    tpu.vector_store %arg12[%c0_10, %c0_11, %c0_12, %c0_13], %24 {strides = array<i32>} : memref<1x4x256x256xf32, #tpu.memory_space<vmem>>, vector<1x1x256x256xf32>,
    %25 = arith.truncf %21 : vector<256x256xf32> to vector<256x256xbf16>
    %c0_14 = arith.constant 0 : index
    %c0_15 = arith.constant 0 : index
    %26 = vector.load %arg14[%c0_14, %c0_15] : memref<256x128xbf16, #tpu.memory_space<vmem>>, vector<256x32xbf16>
    %cst_16 = arith.constant dense<0.000000e+00> : vector<256x32xf32>
    %27 = tpu.matmul %25, %26, %cst_16 {dimension_numbers = #tpu.dot_dimension_numbers<[1], [0], [0], [1], [0, 0, 1, 1], [], []>} : vector<256x256xbf16>, vector<256x32xbf16>, vector<256x32xf32> -> vector<256x32xf32>
    %28 = arith.truncf %27 : vector<256x32xf32> to vector<256x32xbf16>
    %c0_17 = arith.constant 0 : index
    %c0_18 = arith.constant 0 : index
    %29 = vector.load %arg15[%c0_17, %c0_18] : memref<256x128xbf16, #tpu.memory_space<vmem>>, vector<256x32xbf16>
    tpu.vector_store %arg15[%c0_17, %c0_18], %28 {strides = array<i32>} : memref<256x128xbf16, #tpu.memory_space<vmem>>, vector<256x32xbf16>,
    %30 = vector.extract_strided_slice %7 {offsets = [0, 32], sizes = [256, 32], strides = [1, 1]} : vector<256x128xf32> to vector<256x32xf32>
    %31 = arith.truncf %30 : vector<256x32xf32> to vector<256x32xbf16>
    %c0_19 = arith.constant 0 : index
    %c32 = arith.constant 32 : index
    %32 = vector.load %arg13[%c0_19, %c32] : memref<256x128xbf16, #tpu.memory_space<vmem>>, vector<256x32xbf16>
    %cst_20 = arith.constant dense<0.000000e+00> : vector<256x256xf32>
    %33 = tpu.matmul %31, %32, %cst_20 {dimension_numbers = #tpu.dot_dimension_numbers<[1], [1], [0], [0], [0, 0, 1, 0], [], []>} : vector<256x32xbf16>, vector<256x32xbf16>, vector<256x256xf32> -> vector<256x256xf32>
    %cst_21 = arith.constant dense<0xFF800000> : vector<256xf32>
    %34 = vector.multi_reduction <maximumf>, %33, %cst_21 [1] : vector<256x256xf32> to vector<256xf32>
    %35 = vector.shape_cast %34 : vector<256xf32> to vector<256x1xf32>
    %36 = vector.broadcast %35 : vector<256x1xf32> to vector<256x256xf32>
    %37 = arith.subf %33, %36 : vector<256x256xf32>
    %38 = math.exp %37 : vector<256x256xf32>
    %cst_22 = arith.constant dense<0.000000e+00> : vector<256xf32>
    %39 = vector.multi_reduction <add>, %38, %cst_22 [1] : vector<256x256xf32> to vector<256xf32>
    %40 = vector.shape_cast %39 : vector<256xf32> to vector<256x1xf32>
    %41 = tpu.reciprocal %40 : vector<256x1xf32> -> vector<256x1xf32>
    %42 = vector.broadcast %41 : vector<256x1xf32> to vector<256x256xf32>
    %43 = arith.mulf %38, %42 : vector<256x256xf32>
    %c0_23 = arith.constant 0 : index
    %c1 = arith.constant 1 : index
    %c0_24 = arith.constant 0 : index
    %c0_25 = arith.constant 0 : index
    %44 = vector.load %arg12[%c0_23, %c1, %c0_24, %c0_25] : memref<1x4x256x256xf32, #tpu.memory_space<vmem>>, vector<1x1x256x256xf32>
    %45 = vector.shape_cast %44 : vector<1x1x256x256xf32> to vector<256x256xf32>
    %46 = vector.shape_cast %43 : vector<256x256xf32> to vector<1x1x256x256xf32>
    tpu.vector_store %arg12[%c0_23, %c1, %c0_24, %c0_25], %46 {strides = array<i32>} : memref<1x4x256x256xf32, #tpu.memory_space<vmem>>, vector<1x1x256x256xf32>,
    %47 = arith.truncf %43 : vector<256x256xf32> to vector<256x256xbf16>
    %c0_26 = arith.constant 0 : index
    %c32_27 = arith.constant 32 : index
    %48 = vector.load %arg14[%c0_26, %c32_27] : memref<256x128xbf16, #tpu.memory_space<vmem>>, vector<256x32xbf16>
    %cst_28 = arith.constant dense<0.000000e+00> : vector<256x32xf32>
    %49 = tpu.matmul %47, %48, %cst_28 {dimension_numbers = #tpu.dot_dimension_numbers<[1], [0], [0], [1], [0, 0, 1, 1], [], []>} : vector<256x256xbf16>, vector<256x32xbf16>, vector<256x32xf32> -> vector<256x32xf32>
    %50 = arith.truncf %49 : vector<256x32xf32> to vector<256x32xbf16>
    %c0_29 = arith.constant 0 : index
    %c32_30 = arith.constant 32 : index
    %51 = vector.load %arg15[%c0_29, %c32_30] : memref<256x128xbf16, #tpu.memory_space<vmem>>, vector<256x32xbf16>
    tpu.vector_store %arg15[%c0_29, %c32_30], %50 {strides = array<i32>} : memref<256x128xbf16, #tpu.memory_space<vmem>>, vector<256x32xbf16>,
    %52 = vector.extract_strided_slice %7 {offsets = [0, 64], sizes = [256, 32], strides = [1, 1]} : vector<256x128xf32> to vector<256x32xf32>
    %53 = arith.truncf %52 : vector<256x32xf32> to vector<256x32xbf16>
    %c0_31 = arith.constant 0 : index
    %c64 = arith.constant 64 : index
    %54 = vector.load %arg13[%c0_31, %c64] : memref<256x128xbf16, #tpu.memory_space<vmem>>, vector<256x32xbf16>
    %cst_32 = arith.constant dense<0.000000e+00> : vector<256x256xf32>
    %55 = tpu.matmul %53, %54, %cst_32 {dimension_numbers = #tpu.dot_dimension_numbers<[1], [1], [0], [0], [0, 0, 1, 0], [], []>} : vector<256x32xbf16>, vector<256x32xbf16>, vector<256x256xf32> -> vector<256x256xf32>
    %cst_33 = arith.constant dense<0xFF800000> : vector<256xf32>
    %56 = vector.multi_reduction <maximumf>, %55, %cst_33 [1] : vector<256x256xf32> to vector<256xf32>
    %57 = vector.shape_cast %56 : vector<256xf32> to vector<256x1xf32>
    %58 = vector.broadcast %57 : vector<256x1xf32> to vector<256x256xf32>
    %59 = arith.subf %55, %58 : vector<256x256xf32>
    %60 = math.exp %59 : vector<256x256xf32>
    %cst_34 = arith.constant dense<0.000000e+00> : vector<256xf32>
    %61 = vector.multi_reduction <add>, %60, %cst_34 [1] : vector<256x256xf32> to vector<256xf32>
    %62 = vector.shape_cast %61 : vector<256xf32> to vector<256x1xf32>
    %63 = tpu.reciprocal %62 : vector<256x1xf32> -> vector<256x1xf32>
    %64 = vector.broadcast %63 : vector<256x1xf32> to vector<256x256xf32>
    %65 = arith.mulf %60, %64 : vector<256x256xf32>
    %c0_35 = arith.constant 0 : index
    %c2 = arith.constant 2 : index
    %c0_36 = arith.constant 0 : index
    %c0_37 = arith.constant 0 : index
    %66 = vector.load %arg12[%c0_35, %c2, %c0_36, %c0_37] : memref<1x4x256x256xf32, #tpu.memory_space<vmem>>, vector<1x1x256x256xf32>
    %67 = vector.shape_cast %66 : vector<1x1x256x256xf32> to vector<256x256xf32>
    %68 = vector.shape_cast %65 : vector<256x256xf32> to vector<1x1x256x256xf32>
    tpu.vector_store %arg12[%c0_35, %c2, %c0_36, %c0_37], %68 {strides = array<i32>} : memref<1x4x256x256xf32, #tpu.memory_space<vmem>>, vector<1x1x256x256xf32>,
    %69 = arith.truncf %65 : vector<256x256xf32> to vector<256x256xbf16>
    %c0_38 = arith.constant 0 : index
    %c64_39 = arith.constant 64 : index
    %70 = vector.load %arg14[%c0_38, %c64_39] : memref<256x128xbf16, #tpu.memory_space<vmem>>, vector<256x32xbf16>
    %cst_40 = arith.constant dense<0.000000e+00> : vector<256x32xf32>
    %71 = tpu.matmul %69, %70, %cst_40 {dimension_numbers = #tpu.dot_dimension_numbers<[1], [0], [0], [1], [0, 0, 1, 1], [], []>} : vector<256x256xbf16>, vector<256x32xbf16>, vector<256x32xf32> -> vector<256x32xf32>
    %72 = arith.truncf %71 : vector<256x32xf32> to vector<256x32xbf16>
    %c0_41 = arith.constant 0 : index
    %c64_42 = arith.constant 64 : index
    %73 = vector.load %arg15[%c0_41, %c64_42] : memref<256x128xbf16, #tpu.memory_space<vmem>>, vector<256x32xbf16>
    tpu.vector_store %arg15[%c0_41, %c64_42], %72 {strides = array<i32>} : memref<256x128xbf16, #tpu.memory_space<vmem>>, vector<256x32xbf16>,
    %74 = vector.extract_strided_slice %7 {offsets = [0, 96], sizes = [256, 32], strides = [1, 1]} : vector<256x128xf32> to vector<256x32xf32>
    %75 = arith.truncf %74 : vector<256x32xf32> to vector<256x32xbf16>
    %c0_43 = arith.constant 0 : index
    %c96 = arith.constant 96 : index
    %76 = vector.load %arg13[%c0_43, %c96] : memref<256x128xbf16, #tpu.memory_space<vmem>>, vector<256x32xbf16>
    %cst_44 = arith.constant dense<0.000000e+00> : vector<256x256xf32>
    %77 = tpu.matmul %75, %76, %cst_44 {dimension_numbers = #tpu.dot_dimension_numbers<[1], [1], [0], [0], [0, 0, 1, 0], [], []>} : vector<256x32xbf16>, vector<256x32xbf16>, vector<256x256xf32> -> vector<256x256xf32>
    %cst_45 = arith.constant dense<0xFF800000> : vector<256xf32>
    %78 = vector.multi_reduction <maximumf>, %77, %cst_45 [1] : vector<256x256xf32> to vector<256xf32>
    %79 = vector.shape_cast %78 : vector<256xf32> to vector<256x1xf32>
    %80 = vector.broadcast %79 : vector<256x1xf32> to vector<256x256xf32>
    %81 = arith.subf %77, %80 : vector<256x256xf32>
    %82 = math.exp %81 : vector<256x256xf32>
    %cst_46 = arith.constant dense<0.000000e+00> : vector<256xf32>
    %83 = vector.multi_reduction <add>, %82, %cst_46 [1] : vector<256x256xf32> to vector<256xf32>
    %84 = vector.shape_cast %83 : vector<256xf32> to vector<256x1xf32>
    %85 = tpu.reciprocal %84 : vector<256x1xf32> -> vector<256x1xf32>
    %86 = vector.broadcast %85 : vector<256x1xf32> to vector<256x256xf32>
    %87 = arith.mulf %82, %86 : vector<256x256xf32>
    %c0_47 = arith.constant 0 : index
    %c3 = arith.constant 3 : index
    %c0_48 = arith.constant 0 : index
    %c0_49 = arith.constant 0 : index
    %88 = vector.load %arg12[%c0_47, %c3, %c0_48, %c0_49] : memref<1x4x256x256xf32, #tpu.memory_space<vmem>>, vector<1x1x256x256xf32>
    %89 = vector.shape_cast %88 : vector<1x1x256x256xf32> to vector<256x256xf32>
    %90 = vector.shape_cast %87 : vector<256x256xf32> to vector<1x1x256x256xf32>
    tpu.vector_store %arg12[%c0_47, %c3, %c0_48, %c0_49], %90 {strides = array<i32>} : memref<1x4x256x256xf32, #tpu.memory_space<vmem>>, vector<1x1x256x256xf32>,
    %91 = arith.truncf %87 : vector<256x256xf32> to vector<256x256xbf16>
    %c0_50 = arith.constant 0 : index
    %c96_51 = arith.constant 96 : index
    %92 = vector.load %arg14[%c0_50, %c96_51] : memref<256x128xbf16, #tpu.memory_space<vmem>>, vector<256x32xbf16>
    %cst_52 = arith.constant dense<0.000000e+00> : vector<256x32xf32>
    %93 = tpu.matmul %91, %92, %cst_52 {dimension_numbers = #tpu.dot_dimension_numbers<[1], [0], [0], [1], [0, 0, 1, 1], [], []>} : vector<256x256xbf16>, vector<256x32xbf16>, vector<256x32xf32> -> vector<256x32xf32>
    %94 = arith.truncf %93 : vector<256x32xf32> to vector<256x32xbf16>
    %c0_53 = arith.constant 0 : index
    %c96_54 = arith.constant 96 : index
    %95 = vector.load %arg15[%c0_53, %c96_54] : memref<256x128xbf16, #tpu.memory_space<vmem>>, vector<256x32xbf16>
    tpu.vector_store %arg15[%c0_53, %c96_54], %94 {strides = array<i32>} : memref<256x128xbf16, #tpu.memory_space<vmem>>, vector<256x32xbf16>,
    %c0_55 = arith.constant 0 : index
    %c0_56 = arith.constant 0 : index
    %96 = vector.load %arg15[%c0_55, %c0_56] : memref<256x128xbf16, #tpu.memory_space<vmem>>, vector<256x128xbf16>
    %c0_57 = arith.constant 0 : index
    %c0_58 = arith.constant 0 : index
    %97 = vector.load %arg8[%c0_57, %c0_58] : memref<128x128xbf16, #tpu.memory_space<vmem>>, vector<128x128xbf16>
    %cst_59 = arith.constant dense<0.000000e+00> : vector<256x128xf32>
    %98 = tpu.matmul %96, %97, %cst_59 {dimension_numbers = #tpu.dot_dimension_numbers<[1], [0], [0], [1], [0, 0, 1, 1], [], []>} : vector<256x128xbf16>, vector<128x128xbf16>, vector<256x128xf32> -> vector<256x128xf32>
    %99 = arith.addf %98, %4 : vector<256x128xf32>
    %cst_60 = arith.constant dense<0.000000e+00> : vector<256xf32>
    %100 = vector.multi_reduction <add>, %99, %cst_60 [1] : vector<256x128xf32> to vector<256xf32>
    %101 = vector.shape_cast %100 : vector<256xf32> to vector<256x1xf32>
    %cst_61 = arith.constant 7.812500e-03 : f32
    %102 = vector.broadcast %cst_61 : f32 to vector<256x1xf32>
    %103 = arith.mulf %101, %102 : vector<256x1xf32>
    %104 = vector.broadcast %103 : vector<256x1xf32> to vector<256x128xf32>
    %105 = arith.subf %99, %104 : vector<256x128xf32>
    %106 = arith.mulf %105, %105 : vector<256x128xf32>
    %cst_62 = arith.constant dense<0.000000e+00> : vector<256xf32>
    %107 = vector.multi_reduction <add>, %106, %cst_62 [1] : vector<256x128xf32> to vector<256xf32>
    %108 = vector.shape_cast %107 : vector<256xf32> to vector<256x1xf32>
    %cst_63 = arith.constant 7.812500e-03 : f32
    %109 = vector.broadcast %cst_63 : f32 to vector<256x1xf32>
    %110 = arith.mulf %108, %109 : vector<256x1xf32>
    %cst_64 = arith.constant 9.99999997E-7 : f32
    %111 = vector.broadcast %cst_64 : f32 to vector<256x1xf32>
    %112 = arith.addf %110, %111 : vector<256x1xf32>
    %113 = math.rsqrt %112 : vector<256x1xf32>
    %114 = vector.broadcast %113 : vector<256x1xf32> to vector<256x128xf32>
    %115 = arith.mulf %105, %114 : vector<256x128xf32>
    %c0_65 = arith.constant 0 : index
    %c0_66 = arith.constant 0 : index
    %116 = vector.load %arg9[%c0_65, %c0_66] : memref<1x128xf32, #tpu.memory_space<vmem>>, vector<1x128xf32>
    %117 = vector.broadcast %116 : vector<1x128xf32> to vector<256x128xf32>
    %118 = arith.mulf %115, %117 : vector<256x128xf32>
    %c0_67 = arith.constant 0 : index
    %c0_68 = arith.constant 0 : index
    %119 = vector.load %arg10[%c0_67, %c0_68] : memref<1x128xf32, #tpu.memory_space<vmem>>, vector<1x128xf32>
    %120 = vector.broadcast %119 : vector<1x128xf32> to vector<256x128xf32>
    %121 = arith.addf %118, %120 : vector<256x128xf32>
    %c0_69 = arith.constant 0 : index
    %c0_70 = arith.constant 0 : index
    %c0_71 = arith.constant 0 : index
    %122 = vector.load %arg11[%c0_69, %c0_70, %c0_71] : memref<1x256x128xf32, #tpu.memory_space<vmem>>, vector<1x256x128xf32>
    %123 = vector.shape_cast %122 : vector<1x256x128xf32> to vector<256x128xf32>
    %124 = vector.shape_cast %121 : vector<256x128xf32> to vector<1x256x128xf32>
    tpu.vector_store %arg11[%c0_69, %c0_70, %c0_71], %124 {strides = array<i32>} : memref<1x256x128xf32, #tpu.memory_space<vmem>>, vector<1x256x128xf32>,
    return
  }
  func.func @transform_0(%arg0: i32, %arg1: i32) -> (i32, i32, i32) {
    %c0_i32 = arith.constant 0 : i32
    %c0_i32_0 = arith.constant 0 : i32
    return %arg0, %arg1, %c0_i32 : i32, i32, i32
  }
  func.func @transform_1(%arg0: i32, %arg1: i32) -> (i32, i32, i32) {
    %c0_i32 = arith.constant 0 : i32
    %c0_i32_0 = arith.constant 0 : i32
    %c0_i32_1 = arith.constant 0 : i32
    return %arg0, %c0_i32, %c0_i32_0 : i32, i32, i32
  }
  func.func @transform_2(%arg0: i32, %arg1: i32) -> (i32, i32, i32) {
    %c0_i32 = arith.constant 0 : i32
    %c0_i32_0 = arith.constant 0 : i32
    %c0_i32_1 = arith.constant 0 : i32
    return %arg0, %c0_i32, %c0_i32_0 : i32, i32, i32
  }
  func.func @transform_3(%arg0: i32, %arg1: i32) -> (i32, i32) {
    %c0_i32 = arith.constant 0 : i32
    %c0_i32_0 = arith.constant 0 : i32
    %c0_i32_1 = arith.constant 0 : i32
    return %c0_i32, %c0_i32_0 : i32, i32
  }
  func.func @transform_4(%arg0: i32, %arg1: i32) -> (i32, i32) {
    %c0_i32 = arith.constant 0 : i32
    %c0_i32_0 = arith.constant 0 : i32
    %c0_i32_1 = arith.constant 0 : i32
    return %c0_i32, %c0_i32_0 : i32, i32
  }
  func.func @transform_5(%arg0: i32, %arg1: i32) -> (i32, i32) {
    %c0_i32 = arith.constant 0 : i32
    %c0_i32_0 = arith.constant 0 : i32
    %c0_i32_1 = arith.constant 0 : i32
    return %c0_i32, %c0_i32_0 : i32, i32
  }
  func.func @transform_6(%arg0: i32, %arg1: i32) -> (i32, i32) {
    %c0_i32 = arith.constant 0 : i32
    %c0_i32_0 = arith.constant 0 : i32
    %c0_i32_1 = arith.constant 0 : i32
    return %c0_i32, %c0_i32_0 : i32, i32
  }
  func.func @transform_7(%arg0: i32, %arg1: i32) -> (i32, i32) {
    %c0_i32 = arith.constant 0 : i32
    %c0_i32_0 = arith.constant 0 : i32
    %c0_i32_1 = arith.constant 0 : i32
    return %c0_i32, %c0_i32_0 : i32, i32
  }
  func.func @transform_8(%arg0: i32, %arg1: i32) -> (i32, i32) {
    %c0_i32 = arith.constant 0 : i32
    %c0_i32_0 = arith.constant 0 : i32
    %c0_i32_1 = arith.constant 0 : i32
    return %c0_i32, %c0_i32_0 : i32, i32
  }
  func.func @transform_9(%arg0: i32, %arg1: i32) -> (i32, i32, i32) {
    %c0_i32 = arith.constant 0 : i32
    %c0_i32_0 = arith.constant 0 : i32
    return %arg0, %arg1, %c0_i32 : i32, i32, i32
  }
  func.func @transform_10(%arg0: i32, %arg1: i32) -> (i32, i32, i32, i32) {
    %c0_i32 = arith.constant 0 : i32
    %c0_i32_0 = arith.constant 0 : i32
    %c0_i32_1 = arith.constant 0 : i32
    return %arg0, %c0_i32, %arg1, %c0_i32_0 : i32, i32, i32, i32
  }
}

</mosaic_0001>

<bundles_post_ra>
// kernel: tpu_custom_call.1
= control target key start
LH: loop header
LB: loop body
LE: loop exit
PB: predicated region body
PF: predicated region fallthrough
CT: control target
= control target key end

     0   :  { %s17829_s0 = inlined_call_operand.hbm [shape: f32[2,256,128], index: 0, kind: input, shape index: {}]   ;;  %s17830_s1 = inlined_call_operand.hbm [shape: bf16[2,256,128], index: 1, kind: input, shape index: {}]   ;;  %s17831_s2 = inlined_call_operand.hbm [shape: bf16[2,256,128], index: 2, kind: input, shape index: {}]   ;;  %s17832_s3 = inlined_call_operand.hbm [shape: bf16[128,128], index: 3, kind: input, shape index: {}]   ;;  %s17833_s4 = inlined_call_operand.hbm [shape: bf16[128,128], index: 4, kind: input, shape index: {}]   ;;  %s17834_s5 = inlined_call_operand.hbm [shape: bf16[128,128], index: 5, kind: input, shape index: {}]   ;;  %s17835_s6 = inlined_call_operand.hbm [shape: bf16[128,128], index: 6, kind: input, shape index: {}]   ;;  %s17836_s7 = inlined_call_operand.hbm [shape: f32[1,128], index: 7, kind: input, shape index: {}]   ;;  %s17837_s8 = inlined_call_operand.hbm [shape: f32[1,128], index: 8, kind: input, shape index: {}]   ;;  %s17838_s9 = inlined_call_operand.hbm [shape: f32[2,256,128], index: 9, kind: output, shape index: {0}]   ;;  %s17839_s10 = inlined_call_operand.hbm [shape: f32[2,4,256,256], index: 10, kind: output, shape index: {1}]  }
   0x1   :  { %18104 = sst [smem:[#allocation140_spill]] %s17830_s1 }
   0x2   :  { %18105 = sst [smem:[#allocation141_spill]] %s17831_s2 }
   0x3   :  { %18106 = sst [smem:[#allocation142_spill]] %s17832_s3 }
   0x4   :  { %18107 = sst [smem:[#allocation143_spill]] %s17834_s5 }
   0x5   :  { %18108 = sst [smem:[#allocation144_spill]] %s17836_s7 }
   0x6   :  { %18109 = sst [smem:[#allocation145_spill]] %s17838_s9 }
   0x7   :  { %18110 = sst [smem:[#allocation146_spill]] %s17839_s10 }
   0x8   :  { %16 = vsyncpa [#allocation6], 0 }
   0x9   :  { %18 = vsyncpa [#allocation6 + $0x1], 0 }
   0xa   :  { %19 = vsyncpa [#allocation9], 0 }
   0xb   :  { %21 = vsyncpa [#allocation9 + $0x1], 0 }
   0xc   :  { %22 = vsyncpa [#allocation12], 0 }
   0xd   :  { %23 = vsyncpa [#allocation15], 0 }
   0xe   :  { %24 = vsyncpa [#allocation18], 0 }
   0xf   :  { %25 = vsyncpa [#allocation7], 0 }
  0x10   :  { %27 = vsyncpa [#allocation7 + $0x1], 0 }
  0x11   :  { %28 = vsyncpa [#allocation22], 0 }
  0x12   :  { %30 = vsyncpa [#allocation22 + $0x1], 0  ;;  %s12871_s13 = smov 0   ;;  %s12873_s14 = smov 0  }
  0x13   :  { %s12875_s15 = smov 0   ;;  %s12877_s16 = smov 0  }
  0x14   :  { %s12879_s17 = smov 0   ;;  %s12881_s18 = smov 0  }
  0x15 LB: > { %18111 = sst [smem:[#allocation30_spill]] %s12772_s13  ;;  %s12902_s19 = sadd.s32 4294967295, %s12792_s18   ;;  %s12792_s18 = sphi %s12881_s18, %s36_s18   ;;  %s12788_s17 = sphi %s12879_s17, %s18826_s17   ;;  %s12784_s16 = sphi %s12877_s16, %s18825_s16   ;;  %s12780_s15 = sphi %s12875_s15, %s18821_s15   ;;  %s12776_s14 = sphi %s12873_s14, %s18824_s14   ;;  %s12772_s13 = sphi %s12871_s13, %s18823_s13  }
  0x16   : > { %18112 = sst [smem:[#allocation31_spill]] %s12780_s15  ;;  %p9179_p0 = scmp.ge.s32.totalorder %s12792_s18, 1 }
  0x17   : > { %18113 = sst [smem:[#allocation32_spill]] %s12792_s18  ;;  %p17852_p1 = scmp.eq.s32.totalorder %s12902_s19, 0 }
  0x18   : > { %p315_p2 = scmp.lt.s32.totalorder %s12792_s18, 3  ;;  %s12794_s21 = smov [#allocation11]  }
  0x19   : > { %s327_s22 = sshll.u32 %s12794_s21, 4  ;;  %s12795_s24 = smov [#allocation14]   ;;  %s328_s22 = int_to_ptr.vmem [resolvable:$true] %s327_s22 }
  0x1a   : > { %p12907_p3 = pnand %p9179_p0, %p315_p2  ;;  %s353_s25 = sshll.u32 %s12795_s24, 4  ;;  %s354_s25 = int_to_ptr.vmem [resolvable:$true] %s353_s25 }
  0x1b   : > { %s12796_s26 = smov [#allocation17]   ;;  %s12437_s29 = scalar_lea.vmem %s328_s22, 1024 }
  0x1c   : > { %s18114_s20 = scalar_select %p12907_p3, 1, 0 }
  0x1d   : > { %p11255_p4 = pneg %p12907_p3  ;;  %s380_s27 = sshll.u32 %s12796_s26, 4  ;;  %s381_s27 = int_to_ptr.vmem [resolvable:$true] %s380_s27 }
  0x1e   : > { %p12438_p8 = scmp.ne.s32.totalorder %s328_s22, %s12437_s29  ;;  %p12445_p11 = scmp.lt.s32.totalorder %s328_s22, %s328_s22 }
  0x1f   : > { %p12916_p6 = pnand %p11255_p4, %p17852_p1  ;;  %p12446_p12 = scmp.lt.s32.totalorder %s12437_s29, %s12437_s29 }
  0x21   : > { %p12922_p7 = pneg %p12916_p6  ;;  %p12447_p13 = por %p12446_p12, %p12445_p11 }
  0x23   : > { %p12440_p9 = pnand %p12438_p8, %p12922_p7 }
  0x25   : > { %p12441_p10 = pneg %p12440_p9 }
  0x27   : > { %p12448_p0 = pnand %p12447_p13, %p12441_p10 }
  0x29   : > { %12451 = shalt.err (!%p12448_p0)
}
  0x2a   : > { %s17841_s30 = smov 64   ;;  %s17843_s11 = smov 4  }
  0x2b   : > { %s18117_s3 = sld [smem:[#allocation142_spill]]  ;;  %s12463_s24 = scalar_lea.vmem %s354_s25, 1024 }
  0x2c   : > { %p12464_p2 = scmp.ne.s32.totalorder %s354_s25, %s12463_s24  ;;  %p12471_p9 = scmp.lt.s32.totalorder %s354_s25, %s354_s25 }
  0x2d   : > { %p12472_p10 = scmp.lt.s32.totalorder %s12463_s24, %s12463_s24 }
  0x2e   : > { %p12466_p4 = pnand %p12464_p2, %p12922_p7 }
  0x2f   : > { %p12473_p11 = por %p12472_p10, %p12471_p9 }
  0x30   : > { %p12467_p8 = pneg %p12466_p4 }
  0x31   : > { %11258 = dma.hbm_to_vmem [thread:$0]  (!%p12916_p6), %s18117_s3, 1024, %s328_s22, [#allocation12], %s17841_s30, %s17841_s30, %s17843_s11  }
  0x32   : > { %p12474_p12 = pnand %p12473_p11, %p12467_p8 }
  0x34   : > { %12477 = shalt.err (!%p12474_p12)
}
  0x35   : > { %s18118_s5 = sld [smem:[#allocation143_spill]]  ;;  %s12489_s22 = scalar_lea.vmem %s381_s27, 16 }
  0x36   : > { %p12490_p13 = scmp.ne.s32.totalorder %s381_s27, %s12489_s22  ;;  %s12496_s12 = scalar_lea.vmem %s381_s27, 32 }
  0x37   : > { %p12497_p4 = scmp.lt.s32.totalorder %s381_s27, %s381_s27  ;;  %p12498_p8 = scmp.lt.s32.totalorder %s12496_s12, %s12489_s22 }
  0x38   : > { %p12492_p0 = pnand %p12490_p13, %p12922_p7 }
  0x39   : > { %p12499_p9 = por %p12498_p8, %p12497_p4 }
  0x3a   : > { %p12493_p2 = pneg %p12492_p0 }
  0x3b   : > { %11264 = dma.hbm_to_vmem [thread:$0]  (!%p12916_p6), %s18118_s5, 1024, %s354_s25, [#allocation15], %s17841_s30, %s17841_s30, %s17843_s11  }
  0x3c   : > { %p12500_p10 = pnand %p12499_p9, %p12493_p2 }
  0x3e   : > { %12503 = shalt.err (!%p12500_p10)
}
  0x3f   : > { %s18119_s7 = sld [smem:[#allocation144_spill]]  ;;  %s9178_s25 = sadd.s32 4294967294, %s12792_s18  }
  0x40   : > { %s48_s26 = sadd.s32 1, %s12788_s17  ;;  %s57_s29 = sadd.s32 1, %s12780_s15 }
  0x41   : > { %p50_p11 = scmp.ge.s32.totalorder %s48_s26, 2  ;;  %p64_p12 = scmp.ne.s32.totalorder %s12780_s15, %s12776_s14 }
  0x42   : > { %p65_p13 = scmp.eq.s32.totalorder %s12792_s18, 0  ;;  %p70_p0 = scmp.ne.s32.totalorder %s12776_s14, %s12772_s13 }
  0x43   : > { %s18828_s26 = smov (%p50_p11, %s48_s26), 0  ;;  %p274_p8 = scmp.eq.s32.totalorder %s12902_s19, 1 }
  0x44   : > { %18120 = sst [smem:[#allocation33_spill]] %s18828_s26  ;;  %p66_p2 = por %p65_p13, %p64_p12 }
  0x45   : > { %11270 = dma.hbm_to_vmem [thread:$0]  (!%p12916_p6), %s18119_s7, 16, %s381_s27, [#allocation18]  }
  0x46   : > { %p12965_p4 = por %p17852_p1, %p70_p0  ;;  %s52_s27 = ssub.s32 %s12788_s17, %s18828_s26 }
  0x47   : > { %p55_p9 = scmp.eq.s32.totalorder %s52_s27, 0  ;;  %p280_p10 = scmp.eq.s32.totalorder %s9178_s25, 1 }
  0x48   : > { %p12972_p5 = por %p274_p8, %p64_p12  ;;  %p11297_p3 = scmp.lt.s32.totalorder %s12792_s18, 2 }
  0x49   : > { %s12978_s21 = scalar_select %p55_p9, %s12780_s15, %s57_s29  }
  0x4a   : > { %p12980_p11 = por %p280_p10, %p70_p0  ;;  %s12985_s30 = sand.u32 1, %s12780_s15  }
  0x4b   : > { %18123 = sst [smem:[#allocation34_spill]] %s12978_s21  ;;  %p12987_p13 = pnand %p11297_p3, %p66_p2 }
  0x4c   : > { %s18124_s24 = scalar_select %p12980_p11, 1, 0 }
  0x4d   : > { %s425_s25 = sand.u32 1, %s12792_s18   ;;  %s9190_s27 = sshll.u32 %s12985_s30, 7 }
  0x4e   : > { %18125 = sst [smem:[#allocation35_spill]] %s18124_s24  ;;  %s9875_s3 = sshll.u32 %s12788_s17, 11 }
  0x4f   : > { %s429_s5 = scalar_lea.vmem [#allocation8], %s9190_s27  ;;  %s18127_s1 = sld [smem:[#allocation140_spill]] }
  0x50   : > { %s436_s7 = sshll.u32 %s429_s5, 4  ;;  %s12997_s24 = scalar_lea.sflag [#allocation9], %s425_s25  ;;  %s437_s7 = int_to_ptr.vmem [resolvable:$true] %s436_s7 }
  0x51   : > { %p17854_p12 = pneg %p12987_p13  ;;  %s12517_s15 = scalar_lea.vmem %s437_s7, 2048 }
  0x52   : > { %p12518_p3 = scmp.ne.s32.totalorder %s437_s7, %s12517_s15  ;;  %s12799_s18 = smov [#allocation8]  }
  0x53   : > { %s12522_s13 = sshll.u32 %s12799_s18, 4  ;;  %s12523_s13 = int_to_ptr.vmem [resolvable:$false] %s12522_s13 }
  0x54   : > { %p12520_p0 = pnand %p12518_p3, %p17854_p12  ;;  %s12524_s9 = scalar_lea.vmem %s12523_s13, 4096 }
  0x55   : > { %s435_s21 = scalar_lea.hbm %s18127_s1, %s9875_s3  ;;  %p12525_p8 = scmp.lt.s32.totalorder %s437_s7, %s12523_s13 }
  0x56   : > { %p12521_p2 = pneg %p12520_p0  ;;  %p12526_p9 = scmp.lt.s32.totalorder %s12524_s9, %s12517_s15 }
  0x58   : > { %p12527_p10 = por %p12526_p9, %p12525_p8 }
  0x5a   : > { %p12528_p1 = pnand %p12527_p10, %p12521_p2 }
  0x5c   : > { %12531 = shalt.err (!%p12528_p1)
}
  0x5d   : > { %s18128_s5 = smov 4   ;;  %s18129_s26 = smov 64  }
  0x5e   : > { %11280 = dma.hbm_to_vmem [thread:$0]  (!%p12987_p13), %s435_s21, 2048, %s437_s7, %s12997_s24, %s18129_s26, %s18129_s26, %s18128_s5  }
  0x5f   : > { %s18130_s2 = sld [smem:[#allocation141_spill]]  ;;  %s450_s18 = scalar_lea.vmem [#allocation10], %s9190_s27 }
  0x60   : > { %s457_s10 = sshll.u32 %s450_s18, 4  ;;  %s12800_s9 = smov [#allocation13]   ;;  %s13015_s10 = int_to_ptr.vmem [resolvable:$true] %s457_s10 }
  0x61   : > { %s340_s13 = sshll.u32 %s12800_s9, 4  ;;  %s341_s13 = int_to_ptr.vmem [resolvable:$true] %s340_s13 }
  0x62   : > { %s12543_s15 = scalar_lea.vmem %s341_s13, 1024  ;;  %p12551_p2 = scmp.lt.s32.totalorder %s341_s13, %s341_s13 }
  0x63   : > { %p12544_p1 = scmp.ne.s32.totalorder %s341_s13, %s12543_s15  ;;  %p12552_p8 = scmp.lt.s32.totalorder %s12543_s15, %s12543_s15 }
  0x65   : > { %s13013_s1 = scalar_lea.hbm %s18130_s2, %s9875_s3  ;;  %p12546_p3 = pnand %p12544_p1, %p12922_p7 }
  0x66   : > { %p12553_p9 = por %p12552_p8, %p12551_p2 }
  0x67   : > { %p12547_p0 = pneg %p12546_p3 }
  0x69   : > { %p12554_p10 = pnand %p12553_p9, %p12547_p0 }
  0x6b   : > { %12557 = shalt.err (!%p12554_p10)
}
  0x6c   : > { %11261 = dma.hbm_to_vmem [thread:$0]  (!%p12916_p6), %s17833_s4, 1024, %s341_s13, [#allocation12], %s18129_s26, %s18129_s26, %s18128_s5  }
  0x6d   : > { %s12801_s21 = smov [#allocation16]   ;;  %s12802_s25 = smov [#allocation19]  }
  0x6e   : > { %s366_s27 = sshll.u32 %s12801_s21, 4  ;;  %s391_s29 = sshll.u32 %s12802_s25, 4  ;;  %s367_s27 = int_to_ptr.vmem [resolvable:$true] %s366_s27  ;;  %s392_s29 = int_to_ptr.vmem [resolvable:$true] %s391_s29 }
  0x6f   : > { %s12569_s18 = scalar_lea.vmem %s367_s27, 1024  ;;  %p12577_p2 = scmp.lt.s32.totalorder %s367_s27, %s367_s27 }
  0x70   : > { %p12570_p1 = scmp.ne.s32.totalorder %s367_s27, %s12569_s18  ;;  %p12578_p8 = scmp.lt.s32.totalorder %s12569_s18, %s12569_s18 }
  0x72   : > { %p12572_p3 = pnand %p12570_p1, %p12922_p7  ;;  %p12579_p9 = por %p12578_p8, %p12577_p2 }
  0x74   : > { %p12573_p0 = pneg %p12572_p3 }
  0x76   : > { %p12580_p10 = pnand %p12579_p9, %p12573_p0 }
  0x78   : > { %12583 = shalt.err (!%p12580_p10)
}
  0x79   : > { %11267 = dma.hbm_to_vmem [thread:$0]  (!%p12916_p6), %s17835_s6, 1024, %s367_s27, [#allocation15], %s18129_s26, %s18129_s26, %s18128_s5  }
  0x7a   : > { %s12595_s15 = scalar_lea.vmem %s392_s29, 16  ;;  %s12602_s3 = scalar_lea.vmem %s392_s29, 32 }
  0x7b   : > { %p12596_p12 = scmp.ne.s32.totalorder %s392_s29, %s12595_s15  ;;  %p12603_p2 = scmp.lt.s32.totalorder %s392_s29, %s392_s29 }
  0x7c   : > { %p12604_p0 = scmp.lt.s32.totalorder %s12602_s3, %s12595_s15 }
  0x7d   : > { %p12598_p1 = pnand %p12596_p12, %p12922_p7 }
  0x7e   : > { %p12605_p8 = por %p12604_p0, %p12603_p2 }
  0x7f   : > { %p12599_p3 = pneg %p12598_p1 }
  0x81   : > { %p12606_p9 = pnand %p12605_p8, %p12599_p3 }
  0x83   : > { %12609 = shalt.err (!%p12606_p9)
}
  0x84   : > { %11273 = dma.hbm_to_vmem [thread:$0]  (!%p12916_p6), %s17837_s8, 16, %s392_s29, [#allocation18]  }
  0x85   : > { %s9187_s27 = sshll.u32 %s12985_s30, 8  ;;  %s9874_s28 = sshll.u32 %s12788_s17, 12 }
  0x86   : > { %s414_s9 = scalar_lea.hbm %s17829_s0, %s9874_s28  ;;  %s406_s13 = scalar_lea.vmem [#allocation5], %s9187_s27 }
  0x87   : > { %s415_s15 = sshll.u32 %s406_s13, 4  ;;  %s403_s3 = scalar_lea.sflag [#allocation6], %s12985_s30  ;;  %s416_s15 = int_to_ptr.vmem [resolvable:$true] %s415_s15 }
  0x88   : > { %s12623_s2 = scalar_lea.vmem %s416_s15, 4096  ;;  %p18131_p12 = pneg %p12987_p13 }
  0x89   : > { %p12624_p7 = scmp.ne.s32.totalorder %s416_s15, %s12623_s2  ;;  %s12803_s23 = smov [#allocation5]  }
  0x8a   : > { %s12628_s7 = sshll.u32 %s12803_s23, 4  ;;  %s12629_s7 = int_to_ptr.vmem [resolvable:$false] %s12628_s7 }
  0x8b   : > { %p12626_p10 = pnand %p12624_p7, %p18131_p12  ;;  %s12630_s29 = scalar_lea.vmem %s12629_s7, 8192 }
  0x8c   : > { %p12631_p6 = scmp.lt.s32.totalorder %s416_s15, %s12629_s7  ;;  %p12632_p3 = scmp.lt.s32.totalorder %s12630_s29, %s12623_s2 }
  0x8d   : > { %p12627_p1 = pneg %p12626_p10 }
  0x8e   : > { %p12633_p2 = por %p12632_p3, %p12631_p6 }
  0x90   : > { %p12634_p0 = pnand %p12633_p2, %p12627_p1 }
  0x92   : > { %12637 = shalt.err (!%p12634_p0)
}
  0x93   : > { %s12804_s21 = smov 128   ;;  %s12805_s30 = smov 8  }
  0x94   : > { %11277 = dma.hbm_to_vmem [thread:$0]  (!%p12987_p13), %s414_s9, 4096, %s416_s15, %s403_s3, %s12804_s21, %s12804_s21, %s12805_s30  }
  0x95   : > { %s12651_s27 = scalar_lea.vmem %s13015_s10, 2048  ;;  %p18132_p9 = pmov %p18131_p12 }
  0x96   : > { %p12652_p8 = scmp.ne.s32.totalorder %s13015_s10, %s12651_s27  ;;  %s12806_s28 = smov [#allocation10]  }
  0x97   : > { %s12656_s2 = sshll.u32 %s12806_s28, 4  ;;  %s12657_s2 = int_to_ptr.vmem [resolvable:$false] %s12656_s2 }
  0x98   : > { %p12654_p7 = pnand %p12652_p8, %p18132_p9  ;;  %s12658_s25 = scalar_lea.vmem %s12657_s2, 4096 }
  0x99   : > { %p12659_p10 = scmp.lt.s32.totalorder %s13015_s10, %s12657_s2  ;;  %p12660_p1 = scmp.lt.s32.totalorder %s12658_s25, %s12651_s27 }
  0x9a   : > { %p12655_p12 = pneg %p12654_p7 }
  0x9b   : > { %p12661_p6 = por %p12660_p1, %p12659_p10 }
  0x9d   : > { %p12662_p3 = pnand %p12661_p6, %p12655_p12 }
  0x9f   : > { %12665 = shalt.err (!%p12662_p3)
}
  0xa0   : > { %11283 = dma.hbm_to_vmem [thread:$0]  (!%p12987_p13), %s13013_s1, 2048, %s13015_s10, %s12997_s24, %s18129_s26, %s18129_s26, %s18128_s5  }
  0xa1   : > { %p18133_p2 = scmp.ne.s32.totalorder %s18114_s20, 0 }
  0xa3   : > { %469 = sbr.rel (%p18133_p2) target bundleno = 3562 (0xdea), region = 56 }
  0xa8   : > { %s13072_s18 = sand.u32 1, %s12776_s14  }
  0xa9   : > { %s9197_s9 = sshll.u32 %s13072_s18, 8  ;;  %s472_s13 = scalar_lea.sflag [#allocation6], %s13072_s18 }
  0xaa   : > { %s13078_s11 = scalar_lea.vmem [#allocation5], %s9197_s9 }
  0xab   : > { %12743 = dma.done.wait (%p12965_p4), %s472_s13, 4096  }
  0xac   : > { %12745 = vsyncadd (%p12965_p4), %s472_s13, 4294963200  ;;  %s480_s1 = sand.u32 1, %s12902_s19   ;;  %s9198_s10 = sshll.u32 %s13072_s18, 7 }
  0xad   : > { %s481_s20 = scalar_lea.sflag [#allocation9], %s480_s1  ;;  %s13086_s24 = scalar_lea.vmem [#allocation8], %s9198_s10 }
  0xae   : > { %12747 = dma.done.wait (%p12965_p4), %s481_s20, 4096  }
  0xaf   : > { %12749 = vsyncadd (%p12965_p4), %s481_s20, 4294963200  ;;  %s13092_s5 = scalar_lea.vmem [#allocation10], %s9198_s10  ;;  %p18134_p13 = scmp.eq.s32.totalorder %s12902_s19, 0 }
  0xb1   : > { %12751 = dma.done.wait (%p18134_p13), [#allocation12], 2048   ;;  %p18135_p0 = pmov %p18134_p13 }
  0xb3   : > { %12753 = vsyncadd (%p18135_p0), [#allocation12], 4294965248  ;;  %p18136_p8 = pmov %p18135_p0 }
  0xb4   : > { %p18137_p9 = pmov %p18135_p0 }
  0xb5   : > { %12755 = dma.done.wait (%p18136_p8), [#allocation15], 2048  }
  0xb6   : > { %12757 = vsyncadd (%p18137_p9), [#allocation15], 4294965248  ;;  %p18138_p7 = pmov %p18135_p0 }
  0xb7   : > { %p18139_p12 = pmov %p18135_p0 }
  0xb8   : > { %12759 = dma.done.wait (%p18138_p7), [#allocation18], 32  }
  0xb9   : > { %12761 = vsyncadd (%p18139_p12), [#allocation18], 4294967264  ;;  %v11370_v0 = vld [vmem:[#allocation13 + $0x38] sm:$0xff]   ;;  %v11371_v1 = vld [vmem:[#allocation13 + $0x30] sm:$0xff]   ;;  %s12807_s19 = smov 64   ;;  %s12808_s22 = smov 96  }
  0xba   : > { %10997 = vmatprep.subr.bf16.mxu0 %v11370_v0  ;;  %v11372_v2 = vld [vmem:[#allocation13 + $0x28] sm:$0xff]   ;;  %v11373_v3 = vld [vmem:[#allocation13 + $0x20] sm:$0xff]   ;;  %v11374_v5 = vld [vmem:[#allocation13 + $0x18] sm:$0xff]   ;;  %s12809_s26 = smov 32   ;;  %vm2004_vm0 = vcmask 261120   ;;  %s9207_s15 = sshll.u32 %s13072_s18, 11 }
  0xbb   : > { %10998 = vmatpush3.bf16.msra.mxu0 %v11370_v0  ;;  %v11378_v4 = vld [vmem:[%s13086_s24] sm:$0xff]   ;;  %v11375_v6 = vld [vmem:[#allocation13 + $0x10] sm:$0xff]   ;;  %v11376_v7 = vld [vmem:[#allocation13 + $0x8] sm:$0xff]   ;;  %s14153_s3 = scalar_lea.vmem [#allocation21], %s9207_s15  ;;  %vm3287_vm1 = vcmask 257024   ;;  %vm4891_vm2 = vcmask 519424  }
  0xbc   : > { %10999 = vmatprep.subr.bf16.mxu0 %v11371_v1  ;;  %11013 = vmatprep.mubr.bf16.mxu0 %v11378_v4  ;;  %v11377_v8 = vld [vmem:[#allocation13] sm:$0xff]   ;;  %v11392_v9 = vld [vmem:[#allocation11 + $0x38] sm:$0xff]   ;;  %v11379_v10 = vld [vmem:[%s13086_s24 + $0x8] sm:$0xff]   ;;  %vm6479_vm3 = vcmask 781824   ;;  %vm8067_vm4 = vcmask 1044224   ;;  %s17603_s23 = scalar_lea.vmem [#allocation20], %s9197_s9 }
  0xbd   : > { %v11380_v11 = vld [vmem:[%s13086_s24 + $0x10] sm:$0xff]   ;;  %v11403_v13 = vld [vmem:[#allocation14 + $0x38] sm:$0xff]   ;;  %v11396_v14 = vld [vmem:[#allocation11 + $0x28] sm:$0xff]   ;;  %s10070_s7 = sshll.u32 %s12784_s16, 15  ;;  %s8955_s29 = sshll.u32 %s14153_s3, 4  ;;  %s17669_s29 = int_to_ptr.vmem [resolvable:$true] %s8955_s29 }
  0xbe   : > { %v11393_v12 = vld [vmem:[#allocation11 + $0x30] sm:$0xff]   ;;  %v11381_v16 = vld [vmem:[%s13086_s24 + $0x18] sm:$0xff]   ;;  %11045 = vmatprep.subr.bf16.mxu1 %v11403_v13  ;;  %v11382_v17 = vld [vmem:[%s13086_s24 + $0x20] sm:$0xff]   ;;  %s18813_s27 = sld [smem:[#allocation146_spill]]  ;;  %s8921_s2 = scalar_lea.sflag [#allocation22], %s13072_s18 }
  0xbf   : > { %11000 = vmatpush3.bf16.msra.mxu0 %v11371_v1  ;;  %v11404_v15 = vld [vmem:[#allocation14 + $0x30] sm:$0xff]   ;;  %11046 = vmatpush3.bf16.msra.mxu1 %v11403_v13  ;;  %v11397_v18 = vld [vmem:[#allocation11 + $0x20] sm:$0xff]   ;;  %v11405_v19 = vld [vmem:[#allocation14 + $0x28] sm:$0xff]   ;;  %s12666_s25 = scalar_lea.vmem %s17669_s29, 32768  ;;  %s12810_s9 = smov [#allocation21]  }
  0xc0   : > { %11001 = vmatprep.subr.bf16.mxu0 %v11372_v2  ;;  %11047 = vmatprep.subr.bf16.mxu1 %v11404_v15  ;;  %v11398_v20 = vld [vmem:[#allocation11 + $0x18] sm:$0xff]   ;;  %v11406_v21 = vld [vmem:[#allocation14 + $0x20] sm:$0xff]   ;;  %v11383_v23 = vld [vmem:[%s13086_s24 + $0x28] sm:$0xff]   ;;  %p12667_p4 = scmp.ne.s32.totalorder %s17669_s29, %s12666_s25  ;;  %s12670_s13 = sshll.u32 %s12810_s9, 4  ;;  %s12671_s13 = int_to_ptr.vmem [resolvable:$false] %s12670_s13 }
  0xc1   : > { %v11411_v22 = vld [vmem:[%s13092_s5] sm:$0xff]   ;;  %v11384_v24 = vld [vmem:[%s13086_s24 + $0x30] sm:$0xff]   ;;  %v11407_v26 = vld [vmem:[#allocation14 + $0x18] sm:$0xff]   ;;  %p12673_p6 = scmp.lt.s32.totalorder %s17669_s29, %s12671_s13 }
  0xc2   : > { %11061 = vmatprep.mubr.bf16.mxu1 %v11411_v22  ;;  %v11399_v25 = vld [vmem:[#allocation11 + $0x10] sm:$0xff]   ;;  %v11400_v28 = vld [vmem:[#allocation11 + $0x8] sm:$0xff]   ;;  %v11385_v29 = vld [vmem:[%s13086_s24 + $0x38] sm:$0xff]   ;;  %p12668_p10 = pnand %p12667_p4, %p12972_p5 }
  0xc3   : > { %11002 = vmatpush3.bf16.msra.mxu0 %v11372_v2  ;;  %11048 = vmatpush3.bf16.msra.mxu1 %v11404_v15  ;;  %v11408_v27 = vld [vmem:[#allocation14 + $0x10] sm:$0xff]   ;;  %v11386_v30 = vld [vmem:[%s13086_s24 + $0x40] sm:$0xff]   ;;  %v11409_v32 = vld [vmem:[#allocation14 + $0x8] sm:$0xff]  }
  0xc4   : > { %11003 = vmatprep.subr.bf16.mxu0 %v11373_v3  ;;  %11049 = vmatprep.subr.bf16.mxu1 %v11405_v19  ;;  %v11401_v31 = vld [vmem:[#allocation11] sm:$0xff]   ;;  %v11387_v34 = vld [vmem:[%s13086_s24 + $0x48] sm:$0xff]   ;;  %v11388_v35 = vld [vmem:[%s13086_s24 + $0x50] sm:$0xff]   ;;  %s17667_s28 = scalar_lea.hbm %s18813_s27, %s10070_s7  ;;  %p12669_p1 = pneg %p12668_p10 }
  0xc5   : > { %v11410_v33 = vld [vmem:[#allocation14] sm:$0xff]   ;;  %v11412_v36 = vld [vmem:[%s13092_s5 + $0x8] sm:$0xff]   ;;  %v11413_v37 = vld [vmem:[%s13092_s5 + $0x10] sm:$0xff]  }
  0xc6   : > { %v11389_v38 = vld [vmem:[%s13086_s24 + $0x58] sm:$0xff]   ;;  %v11390_v39 = vld [vmem:[%s13086_s24 + $0x60] sm:$0xff]   ;;  %v11391_v41 = vld [vmem:[%s13086_s24 + $0x68] sm:$0xff]  }
  0xc7   : > { %11004 = vmatpush3.bf16.msra.mxu0 %v11373_v3  ;;  %11050 = vmatpush3.bf16.msra.mxu1 %v11405_v19  ;;  %v11414_v40 = vld [vmem:[%s13092_s5 + $0x18] sm:$0xff]   ;;  %v11394_v42 = vld [vmem:[%s13086_s24 + $0x70] sm:$0xff]   ;;  %v11415_v48 = vld [vmem:[%s13092_s5 + $0x20] sm:$0xff]  }
  0xc8   : > { %11005 = vmatprep.subr.bf16.mxu0 %v11374_v5  ;;  %11051 = vmatprep.subr.bf16.mxu1 %v11406_v21  ;;  %v11395_v43 = vld [vmem:[%s13086_s24 + $0x78] sm:$0xff]   ;;  %v11402_v44 = vld [vmem:[%s13092_s5 + $0x70] sm:$0xff]   ;;  %v11416_v49 = vld [vmem:[%s13092_s5 + $0x28] sm:$0xff]  }
  0xc9   : > { %v1605_v45 = vld [vmem:[%s13078_s11 + $0x10] sm:$0xff]  ;;  %v1606_v46 = vld [vmem:[%s13078_s11 + $0x18] sm:$0xff]  ;;  %v11419_v58 = vld [vmem:[%s13092_s5 + $0x40] sm:$0xff]  }
  0xca   : > { %v1636_v47 = vpack.c.bf16 %v1606_v46, %v1605_v45  ;;  %v1609_v50 = vld [vmem:[%s13078_s11 + $0x30] sm:$0xff]  ;;  %v1610_v51 = vld [vmem:[%s13078_s11 + $0x38] sm:$0xff]  ;;  %v11420_v59 = vld [vmem:[%s13092_s5 + $0x48] sm:$0xff]  }
  0xcb   : > { %11006 = vmatpush3.bf16.msra.mxu0 %v11374_v5  ;;  %11052 = vmatpush3.bf16.msra.mxu1 %v11406_v21  ;;  %v1638_v52 = vpack.c.bf16 %v1610_v51, %v1609_v50  ;;  %v11417_v53 = vld [vmem:[%s13092_s5 + $0x30] sm:$0xff]   ;;  %v11418_v54 = vld [vmem:[%s13092_s5 + $0x38] sm:$0xff]   ;;  %v11430_v4 = vld [vmem:[%s13092_s5 + $0x60] sm:$0xff]  }
  0xcc   : > { %11007 = vmatprep.subr.bf16.mxu0 %v11375_v6  ;;  %11053 = vmatprep.subr.bf16.mxu1 %v11407_v26  ;;  %v1613_v55 = vld [vmem:[%s13078_s11 + $0x50] sm:$0xff]  ;;  %v1614_v56 = vld [vmem:[%s13078_s11 + $0x58] sm:$0xff]  ;;  %v11431_v5 = vld [vmem:[%s13092_s5 + $0x68] sm:$0xff]  }
  0xcd   : > { %v1640_v57 = vpack.c.bf16 %v1614_v56, %v1613_v55  ;;  %v1617_v60 = vld [vmem:[%s13078_s11 + $0x70] sm:$0xff]  ;;  %v1618_v61 = vld [vmem:[%s13078_s11 + $0x78] sm:$0xff] }
  0xce   : > { %v1642_v62 = vpack.c.bf16 %v1618_v61, %v1617_v60  ;;  %v11424_v63 = vld [vmem:[%s13092_s5 + $0x50] sm:$0xff]   ;;  %v11425_v0 = vld [vmem:[%s13092_s5 + $0x58] sm:$0xff]  }
  0xcf   : > { %11008 = vmatpush3.bf16.msra.mxu0 %v11375_v6  ;;  %11054 = vmatpush3.bf16.msra.mxu1 %v11407_v26  ;;  %v1621_v1 = vld [vmem:[%s13078_s11 + $0x90] sm:$0xff]  ;;  %v1622_v2 = vld [vmem:[%s13078_s11 + $0x98] sm:$0xff] }
  0xd0   : > { %11009 = vmatprep.subr.bf16.mxu0 %v11376_v7  ;;  %11055 = vmatprep.subr.bf16.mxu1 %v11408_v27  ;;  %v1644_v3 = vpack.c.bf16 %v1622_v2, %v1621_v1  ;;  %v1625_v6 = vld [vmem:[%s13078_s11 + $0xb0] sm:$0xff] }
  0xd1   : > { %v1633_v13 = vld [vmem:[%s13078_s11 + $0xf0] sm:$0xff] }
  0xd3   : > { %11010 = vmatpush3.bf16.msra.mxu0 %v11376_v7  ;;  %11056 = vmatpush3.bf16.msra.mxu1 %v11408_v27  ;;  %v1626_v7 = vld [vmem:[%s13078_s11 + $0xb8] sm:$0xff] }
  0xd4   : > { %11011 = vmatprep.subr.bf16.mxu0 %v11377_v8  ;;  %11057 = vmatprep.subr.bf16.mxu1 %v11409_v32 }
  0xd7   : > { %11012 = vmatpush3.bf16.msra.mxu0 %v11377_v8  ;;  %11058 = vmatpush3.bf16.msra.mxu1 %v11409_v32  ;;  %v1646_v8 = vpack.c.bf16 %v1626_v7, %v1625_v6 }
  0xd8   : > { %11093 = vmatprep.subr.bf16.mxu0 %v11392_v9  ;;  %11059 = vmatprep.subr.bf16.mxu1 %v11410_v33 }
  0xda   : > { %11014 = vmatmul.mubr.bf16.vlgmr.msra.gmra.mxu0 %v11379_v10  ;;  %v1629_v10 = vld [vmem:[%s13078_s11 + $0xd0] sm:$0xff] }
  0xdb   : > { %11017 = vmatprep.mubr.bf16.mxu0 %v11380_v11  ;;  %11094 = vmatpush3.bf16.msra.mxu0 %v11392_v9  ;;  %v11436_v9 = vld [vmem:[%s13092_s5 + $0x78] sm:$0xff]  }
  0xdc   : > { %11095 = vmatprep.subr.bf16.mxu0 %v11393_v12  ;;  %11060 = vmatpush3.bf16.msra.mxu1 %v11410_v33  ;;  %v1630_v11 = vld [vmem:[%s13078_s11 + $0xd8] sm:$0xff] }
  0xdf   : > { %11096 = vmatpush3.bf16.msra.mxu0 %v11393_v12  ;;  %11062 = vmatmul.mubr.bf16.vlgmr.msra.gmra.mxu1 %v11412_v36  ;;  %v1648_v12 = vpack.c.bf16 %v1630_v11, %v1629_v10 }
  0xe0   : > { %11097 = vmatprep.subr.bf16.mxu0 %v11396_v14  ;;  %11065 = vmatprep.mubr.bf16.mxu1 %v11413_v37 }
  0xe2   : > { %11018 = vmatmul.mubr.bf16.gmra.mxu0 %v11381_v16 }
  0xe3   : > { %11021 = vmatprep.mubr.bf16.mxu0 %v11382_v17  ;;  %11098 = vmatpush3.bf16.msra.mxu0 %v11396_v14  ;;  %v1634_v14 = vld [vmem:[%s13078_s11 + $0xf8] sm:$0xff] }
  0xe4   : > { %11099 = vmatprep.subr.bf16.mxu0 %v11397_v18  ;;  %v1650_v15 = vpack.c.bf16 %v1634_v14, %v1633_v13 }
  0xe7   : > { %11100 = vmatpush3.bf16.msra.mxu0 %v11397_v18  ;;  %11066 = vmatmul.mubr.bf16.gmra.mxu1 %v11414_v40 }
  0xe8   : > { %11101 = vmatprep.subr.bf16.mxu0 %v11398_v20  ;;  %11069 = vmatprep.mubr.bf16.mxu1 %v11415_v48 }
  0xea   : > { %11022 = vmatmul.mubr.bf16.gmra.mxu0 %v11383_v23 }
  0xeb   : > { %11025 = vmatprep.mubr.bf16.mxu0 %v11384_v24  ;;  %11102 = vmatpush3.bf16.msra.mxu0 %v11398_v20 }
  0xec   : > { %11103 = vmatprep.subr.bf16.mxu0 %v11399_v25 }
  0xef   : > { %11104 = vmatpush3.bf16.msra.mxu0 %v11399_v25  ;;  %11070 = vmatmul.mubr.bf16.gmra.mxu1 %v11416_v49 }
  0xf0   : > { %11105 = vmatprep.subr.bf16.mxu0 %v11400_v28  ;;  %11073 = vmatprep.mubr.bf16.mxu1 %v11417_v53 }
  0xf2   : > { %11026 = vmatmul.mubr.bf16.gmra.mxu0 %v11385_v29 }
  0xf3   : > { %11029 = vmatprep.mubr.bf16.mxu0 %v11386_v30  ;;  %11106 = vmatpush3.bf16.msra.mxu0 %v11400_v28 }
  0xf4   : > { %11107 = vmatprep.subr.bf16.mxu0 %v11401_v31 }
  0xf7   : > { %11108 = vmatpush3.bf16.msra.mxu0 %v11401_v31  ;;  %11074 = vmatmul.mubr.bf16.gmra.mxu1 %v11418_v54 }
  0xf8   : > { %11077 = vmatprep.mubr.bf16.mxu1 %v11419_v58 }
  0xfa   : > { %11030 = vmatmul.mubr.bf16.gmra.mxu0 %v11387_v34 }
  0xfb   : > { %11033 = vmatprep.mubr.bf16.mxu0 %v11388_v35 }
  0xff   : > { %11078 = vmatmul.mubr.bf16.gmra.mxu1 %v11420_v59 }
 0x100   : > { %11081 = vmatprep.mubr.bf16.mxu1 %v11424_v63 }
 0x102   : > { %11034 = vmatmul.mubr.bf16.gmra.mxu0 %v11389_v38 }
 0x103   : > { %11037 = vmatprep.mubr.bf16.mxu0 %v11390_v39 }
 0x107   : > { %11082 = vmatmul.mubr.bf16.gmra.mxu1 %v11425_v0 }
 0x108   : > { %11085 = vmatprep.mubr.bf16.mxu1 %v11430_v4 }
 0x10a   : > { %11038 = vmatmul.mubr.bf16.gmra.mxu0 %v11391_v41 }
 0x10b   : > { %11041 = vmatprep.mubr.bf16.mxu0 %v11394_v42 }
 0x10f   : > { %11086 = vmatmul.mubr.bf16.gmra.mxu1 %v11431_v5 }
 0x112   : > { %11042 = vmatmul.mubr.bf16.gmra.mxu0 %v11395_v43 }
 0x113   : > { %11089 = vmatprep.mubr.bf16.mxu0 %v11402_v44 }
 0x117   : > { %11090 = vmatmul.mubr.bf16.gmra.mxu1 %v11436_v9 }
 0x11a   : > { %11110 = vmatmul.mubr.bf16.vlgmr.msra.gmra.mxu0 %v1636_v47 }
 0x122   : > { %11114 = vmatmul.mubr.bf16.gmra.mxu0 %v1638_v52 }
 0x12a   : > { %11118 = vmatmul.mubr.bf16.gmra.mxu0 %v1640_v57 }
 0x132   : > { %11122 = vmatmul.mubr.bf16.gmra.mxu0 %v1642_v62 }
 0x13a   : > { %11126 = vmatmul.mubr.bf16.gmra.mxu0 %v1644_v3 }
 0x142   : > { %11130 = vmatmul.mubr.bf16.gmra.mxu0 %v1646_v8 }
 0x14a   : > { %11134 = vmatmul.mubr.bf16.gmra.mxu0 %v1648_v12 }
 0x152   : > { %11138 = vmatmul.mubr.bf16.gmra.mxu0 %v1650_v15 }
 0x19a   : > { %v11015_v16 = vpop.f32.mrf.mxu0 }
 0x19c   : > { %v803_v17 = vpop.f32.mrf.mxu0 }
 0x19e   : > { %v11016_v18 = vpop.f32.mrf.mxu0 }
 0x19f   : > { %v10079_v19 = vpack.c.bf16 %v11016_v18, %v11015_v16  ;;  %v11063_v6 = vpop.f32.mrf.mxu1 }
 0x1a0   : > { %v806_v20 = vpop.f32.mrf.mxu0 }
 0x1a1   : > { %10231 = vst [vmem:[#allocation2 + $0x8] sm:$0xff] %v10079_v19   ;;  %v10074_v21 = vpack.c.bf16 %v806_v20, %v803_v17  ;;  %v1316_v9 = vpop.f32.mrf.mxu1 }
 0x1a2   : > { %v11019_v22 = vpop.f32.mrf.mxu0 }
 0x1a3   : > { %10075 = vst [vmem:[#allocation2] sm:$0xff] %v10074_v21   ;;  %v11064_v12 = vpop.f32.mrf.mxu1 }
 0x1a4   : > { %v819_v23 = vpop.f32.mrf.mxu0  ;;  %v10159_v14 = vpack.c.bf16 %v11064_v12, %v11063_v6 }
 0x1a5   : > { %v1319_v17 = vpop.f32.mrf.mxu1 }
 0x1a6   : > { %v11020_v24 = vpop.f32.mrf.mxu0  ;;  %10246 = vst [vmem:[#allocation3 + $0x8] sm:$0xff] %v10159_v14   ;;  %v10154_v20 = vpack.c.bf16 %v1319_v17, %v1316_v9 }
 0x1a7   : > { %v10089_v25 = vpack.c.bf16 %v11020_v24, %v11019_v22  ;;  %v11067_v22 = vpop.f32.mrf.mxu1 }
 0x1a8   : > { %v822_v26 = vpop.f32.mrf.mxu0  ;;  %v11421_v27 = vld [vmem:[#allocation2 + $0x8] sm:$0xff]   ;;  %10155 = vst [vmem:[#allocation3] sm:$0xff] %v10154_v20  }
 0x1a9   : > { %10233 = vst [vmem:[#allocation2 + $0x18] sm:$0xff] %v10089_v25   ;;  %v10084_v28 = vpack.c.bf16 %v822_v26, %v819_v23  ;;  %v11422_v29 = vld [vmem:[#allocation2 + $0x8] sm:$0xff]   ;;  %5070 = vrot.lane.b32.xlu1 %v11421_v27, %s12807_s19  ;;  %v1332_v25 = vpop.f32.mrf.mxu1 }
 0x1aa   : > { %v11023_v30 = vpop.f32.mrf.mxu0  ;;  %3482 = vrot.lane.b32.xlu0 %v11422_v29, %s12808_s22  ;;  %v11423_v32 = vld [vmem:[#allocation2 + $0x8] sm:$0xff]   ;;  %v11426_v38 = vld [vmem:[#allocation2] sm:$0xff]  }
 0x1ab   : > { %10232 = vst [vmem:[#allocation2 + $0x10] sm:$0xff] %v10084_v28   ;;  %v11428_v42 = vld [vmem:[#allocation2] sm:$0xff]   ;;  %v11068_v28 = vpop.f32.mrf.mxu1 }
 0x1ac   : > { %v835_v31 = vpop.f32.mrf.mxu0 }
 0x1ae   : > { %v11024_v33 = vpop.f32.mrf.mxu0  ;;  %6658 = vrot.lane.b32.xlu0 %v11423_v32, %s12809_s26 }
 0x1af   : > { %v10099_v34 = vpack.c.bf16 %v11024_v33, %v11023_v30  ;;  %v10169_v30 = vpack.c.bf16 %v11068_v28, %v11067_v22  ;;  %v1335_v33 = vpop.f32.mrf.mxu1 }
 0x1b0   : > { %v838_v35 = vpop.f32.mrf.mxu0  ;;  %v11427_v36 = vld [vmem:[#allocation2 + $0x18] sm:$0xff]  }
 0x1b1   : > { %10235 = vst [vmem:[#allocation2 + $0x28] sm:$0xff] %v10099_v34   ;;  %v10094_v37 = vpack.c.bf16 %v838_v35, %v835_v31  ;;  %5074 = vrot.lane.b32.xlu1 %v11427_v36, %s12807_s19  ;;  %v11432_v48 = vld [vmem:[#allocation2 + $0x18] sm:$0xff]   ;;  %10248 = vst [vmem:[#allocation3 + $0x18] sm:$0xff] %v10169_v30   ;;  %v10164_v36 = vpack.c.bf16 %v1335_v33, %v1332_v25 }
 0x1b2   : > { %v11027_v39 = vpop.f32.mrf.mxu0  ;;  %3480 = vrot.lane.b32.xlu0 %v11426_v38, %s12808_s22  ;;  %v11429_v41 = vld [vmem:[#allocation2 + $0x10] sm:$0xff]   ;;  %v11434_v52 = vld [vmem:[#allocation2 + $0x18] sm:$0xff]   ;;  %v11071_v38 = vpop.f32.mrf.mxu1 }
 0x1b3   : > { %10234 = vst [vmem:[#allocation2 + $0x20] sm:$0xff] %v10094_v37   ;;  %v11437_v58 = vld [vmem:[#allocation2 + $0x10] sm:$0xff]   ;;  %10247 = vst [vmem:[#allocation3 + $0x10] sm:$0xff] %v10164_v36  }
 0x1b4   : > { %v851_v40 = vpop.f32.mrf.mxu0  ;;  %v11439_v62 = vld [vmem:[#allocation2 + $0x10] sm:$0xff]  }
 0x1b5   : > { %6660 = vrot.lane.b32.xlu1 %v11429_v41, %s12809_s26  ;;  %v1348_v41 = vpop.f32.mrf.mxu1 }
 0x1b6   : > { %v11028_v43 = vpop.f32.mrf.mxu0  ;;  %5068 = vrot.lane.b32.xlu0 %v11428_v42, %s12807_s19 }
 0x1b7   : > { %v10109_v44 = vpack.c.bf16 %v11028_v43, %v11027_v39 }
 0x1b8   : > { %v854_v45 = vpop.f32.mrf.mxu0  ;;  %v11433_v46 = vld [vmem:[#allocation2 + $0x28] sm:$0xff]  }
 0x1b9   : > { %10237 = vst [vmem:[#allocation2 + $0x38] sm:$0xff] %v10109_v44   ;;  %v10104_v47 = vpack.c.bf16 %v854_v45, %v851_v40  ;;  %5078 = vrot.lane.b32.xlu1 %v11433_v46, %s12807_s19  ;;  %v11435_v51 = vld [vmem:[#allocation2 + $0x28] sm:$0xff]   ;;  %v11477_v45 = vld [vmem:[#allocation2 + $0x18] sm:$0xff]   ;;  %v11072_v46 = vpop.f32.mrf.mxu1 }
 0x1ba   : > { %v11031_v49 = vpop.f32.mrf.mxu0  ;;  %3486 = vrot.lane.b32.xlu0 %v11432_v48, %s12808_s22  ;;  %v11438_v56 = vld [vmem:[#allocation2 + $0x20] sm:$0xff]   ;;  %v11441_v4 = vld [vmem:[#allocation2 + $0x28] sm:$0xff]  }
 0x1bb   : > { %10236 = vst [vmem:[#allocation2 + $0x30] sm:$0xff] %v10104_v47   ;;  %v11443_v10 = vld [vmem:[#allocation2 + $0x20] sm:$0xff]   ;;  %v11467_v48 = vld [vmem:[#allocation2 + $0x28] sm:$0xff]  }
 0x1bc   : > { %v867_v50 = vpop.f32.mrf.mxu0  ;;  %v11445_v19 = vld [vmem:[#allocation2 + $0x20] sm:$0xff]  }
 0x1bd   : > { %6666 = vrot.lane.b32.xlu1 %v11435_v51, %s12809_s26 }
 0x1be   : > { %v11032_v53 = vpop.f32.mrf.mxu0  ;;  %6662 = vrot.lane.b32.xlu0 %v11434_v52, %s12809_s26  ;;  %v11472_v52 = vld [vmem:[#allocation2 + $0x20] sm:$0xff]  }
 0x1bf   : > { %v10119_v54 = vpack.c.bf16 %v11032_v53, %v11031_v49  ;;  %v10179_v49 = vpack.c.bf16 %v11072_v46, %v11071_v38  ;;  %v1351_v53 = vpop.f32.mrf.mxu1 }
 0x1c0   : > { %v870_v55 = vpop.f32.mrf.mxu0  ;;  %v11440_v61 = vld [vmem:[#allocation2 + $0x38] sm:$0xff]  }
 0x1c1   : > { %10239 = vst [vmem:[#allocation2 + $0x48] sm:$0xff] %v10119_v54   ;;  %v10114_v57 = vpack.c.bf16 %v870_v55, %v867_v50  ;;  %6664 = vrot.lane.b32.xlu1 %v11438_v56, %s12809_s26  ;;  %v11442_v2 = vld [vmem:[#allocation2 + $0x38] sm:$0xff]   ;;  %10250 = vst [vmem:[#allocation3 + $0x28] sm:$0xff] %v10179_v49   ;;  %v10174_v55 = vpack.c.bf16 %v1351_v53, %v1348_v41 }
 0x1c2   : > { %v11035_v59 = vpop.f32.mrf.mxu0  ;;  %3484 = vrot.lane.b32.xlu0 %v11437_v58, %s12808_s22  ;;  %v11444_v8 = vld [vmem:[#allocation2 + $0x30] sm:$0xff]   ;;  %v11447_v26 = vld [vmem:[#allocation2 + $0x38] sm:$0xff]  }
 0x1c3   : > { %10238 = vst [vmem:[#allocation2 + $0x40] sm:$0xff] %v10114_v57   ;;  %v11446_v16 = vld [vmem:[#allocation2 + $0x30] sm:$0xff]   ;;  %v11456_v43 = vld [vmem:[#allocation2 + $0x38] sm:$0xff]   ;;  %10249 = vst [vmem:[#allocation3 + $0x20] sm:$0xff] %v10174_v55  }
 0x1c4   : > { %v883_v60 = vpop.f32.mrf.mxu0  ;;  %v11449_v35 = vld [vmem:[#allocation2 + $0x30] sm:$0xff]   ;;  %v2075_v56 = vsel %vm2004_vm0, %v11456_v43, 0 }
 0x1c5   : > { %5082 = vrot.lane.b32.xlu1 %v11440_v61, %s12807_s19  ;;  %v11462_v61 = vld [vmem:[#allocation2 + $0x30] sm:$0xff]  }
 0x1c6   : > { %v11036_v63 = vpop.f32.mrf.mxu0  ;;  %5072 = vrot.lane.b32.xlu0 %v11439_v62, %s12807_s19 }
 0x1c7   : > { %v10129_v0 = vpack.c.bf16 %v11036_v63, %v11035_v59  ;;  %v13195_v63 = vsel %vm2004_vm0, %v11477_v45, 0 }
 0x1c8   : > { %v886_v1 = vpop.f32.mrf.mxu0  ;;  %v11448_v24 = vld [vmem:[#allocation2 + $0x48] sm:$0xff]  }
 0x1c9   : > { %10241 = vst [vmem:[#allocation2 + $0x58] sm:$0xff] %v10129_v0   ;;  %v10124_v3 = vpack.c.bf16 %v886_v1, %v883_v60  ;;  %6670 = vrot.lane.b32.xlu1 %v11442_v2, %s12809_s26  ;;  %v11450_v32 = vld [vmem:[#allocation2 + $0x48] sm:$0xff]   ;;  %v11075_v60 = vpop.f32.mrf.mxu1  ;;  %v2069_v2 = vsel %vm2004_vm0, %v11467_v48, 0 }
 0x1ca   : > { %v11039_v5 = vpop.f32.mrf.mxu0  ;;  %3490 = vrot.lane.b32.xlu0 %v11441_v4, %s12808_s22  ;;  %v11452_v39 = vld [vmem:[#allocation2 + $0x40] sm:$0xff]   ;;  %v11451_v42 = vld [vmem:[#allocation2 + $0x48] sm:$0xff]  }
 0x1cb   : > { %10240 = vst [vmem:[#allocation2 + $0x50] sm:$0xff] %v10124_v3   ;;  %v11453_v47 = vld [vmem:[#allocation2 + $0x40] sm:$0xff]   ;;  %v1364_v0 = vpop.f32.mrf.mxu1 }
 0x1cc   : > { %v899_v7 = vpop.f32.mrf.mxu0 }
 0x1cd   : > { %3492 = vrot.lane.b32.xlu1 %v11444_v8, %s12808_s22  ;;  %v11076_v6 = vpop.f32.mrf.mxu1  ;;  %v2072_v8 = vsel %vm2004_vm0, %v11462_v61, 0 }
 0x1ce   : > { %v11040_v11 = vpop.f32.mrf.mxu0  ;;  %3488 = vrot.lane.b32.xlu0 %v11443_v10, %s12808_s22  ;;  %v10189_v9 = vpack.c.bf16 %v11076_v6, %v11075_v60  ;;  %v11485_v6 = vld [vmem:[#allocation2 + $0x8] sm:$0xff]  }
 0x1cf   : > { %v10139_v13 = vpack.c.bf16 %v11040_v11, %v11039_v5  ;;  %v2066_v5 = vsel %vm2004_vm0, %v11472_v52, 0  ;;  %v1367_v11 = vpop.f32.mrf.mxu1  ;;  %v11482_v52 = vld [vmem:[#allocation2 + $0x10] sm:$0xff]  }
 0x1d0   : > { %v902_v15 = vpop.f32.mrf.mxu0  ;;  %v11454_v54 = vld [vmem:[#allocation2 + $0x58] sm:$0xff]   ;;  %10252 = vst [vmem:[#allocation3 + $0x38] sm:$0xff] %v10189_v9  }
 0x1d1   : > { %10243 = vst [vmem:[#allocation2 + $0x68] sm:$0xff] %v10139_v13   ;;  %v10134_v18 = vpack.c.bf16 %v902_v15, %v899_v7  ;;  %6668 = vrot.lane.b32.xlu1 %v11446_v16, %s12809_s26  ;;  %v11458_v62 = vld [vmem:[#allocation2 + $0x58] sm:$0xff]   ;;  %v10184_v13 = vpack.c.bf16 %v1367_v11, %v1364_v0  ;;  %v11079_v15 = vpop.f32.mrf.mxu1  ;;  %v2060_v0 = vsel %vm2004_vm0, %v11482_v52, 0 }
 0x1d2   : > { %v11043_v21 = vpop.f32.mrf.mxu0  ;;  %5076 = vrot.lane.b32.xlu0 %v11445_v19, %s12807_s19  ;;  %v11460_v4 = vld [vmem:[#allocation2 + $0x58] sm:$0xff]   ;;  %v11464_v14 = vld [vmem:[#allocation2 + $0x50] sm:$0xff]  }
 0x1d3   : > { %10242 = vst [vmem:[#allocation2 + $0x60] sm:$0xff] %v10134_v18   ;;  %10251 = vst [vmem:[#allocation3 + $0x30] sm:$0xff] %v10184_v13   ;;  %v1380_v18 = vpop.f32.mrf.mxu1  ;;  %v11466_v20 = vld [vmem:[#allocation2 + $0x50] sm:$0xff]   ;;  %v11473_v36 = vld [vmem:[#allocation2 + $0x58] sm:$0xff]  }
 0x1d4   : > { %v915_v23 = vpop.f32.mrf.mxu0  ;;  %v11469_v28 = vld [vmem:[#allocation2 + $0x50] sm:$0xff]  }
 0x1d5   : > { %3498 = vrot.lane.b32.xlu1 %v11448_v24, %s12808_s22  ;;  %v11478_v48 = vld [vmem:[#allocation2 + $0x50] sm:$0xff]  }
 0x1d6   : > { %v11044_v27 = vpop.f32.mrf.mxu0  ;;  %3494 = vrot.lane.b32.xlu0 %v11447_v26, %s12808_s22 }
 0x1d7   : > { %v10149_v29 = vpack.c.bf16 %v11044_v27, %v11043_v21  ;;  %v11080_v21 = vpop.f32.mrf.mxu1 }
 0x1d8   : > { %v918_v31 = vpop.f32.mrf.mxu0  ;;  %v11459_v1 = vld [vmem:[#allocation2 + $0x68] sm:$0xff]  }
 0x1d9   : > { %10245 = vst [vmem:[#allocation2 + $0x78] sm:$0xff] %v10149_v29   ;;  %v10144_v34 = vpack.c.bf16 %v918_v31, %v915_v23  ;;  %6674 = vrot.lane.b32.xlu1 %v11450_v32, %s12809_s26  ;;  %v11461_v7 = vld [vmem:[#allocation2 + $0x68] sm:$0xff]   ;;  %v10199_v23 = vpack.c.bf16 %v11080_v21, %v11079_v15  ;;  %v1383_v25 = vpop.f32.mrf.mxu1 }
 0x1da   : > { %v13178_v37 = vpop.f32.mrf.mxu0  ;;  %5080 = vrot.lane.b32.xlu0 %v11449_v35, %s12807_s19  ;;  %v11463_v10 = vld [vmem:[#allocation2 + $0x68] sm:$0xff]   ;;  %v11465_v16 = vld [vmem:[#allocation2 + $0x60] sm:$0xff]   ;;  %v10194_v27 = vpack.c.bf16 %v1383_v25, %v1380_v18  ;;  %v11491_v21 = vld [vmem:[#allocation3 + $0x30] sm:$0xff]  }
 0x1db   : > { %10244 = vst [vmem:[#allocation2 + $0x70] sm:$0xff] %v10144_v34   ;;  %v11468_v24 = vld [vmem:[#allocation2 + $0x60] sm:$0xff]   ;;  %10254 = vst [vmem:[#allocation3 + $0x48] sm:$0xff] %v10199_v23   ;;  %v11083_v30 = vpop.f32.mrf.mxu1  ;;  %v11471_v33 = vld [vmem:[#allocation2 + $0x68] sm:$0xff]  }
 0x1dc   : > { %v1749_v40 = vpop.f32.mrf.mxu0  ;;  %10253 = vst [vmem:[#allocation3 + $0x40] sm:$0xff] %v10194_v27   ;;  %v11476_v46 = vld [vmem:[#allocation2 + $0x60] sm:$0xff]   ;;  %v11493_v27 = vld [vmem:[#allocation3 + $0x28] sm:$0xff]  }
 0x1dd   : > { %3496 = vrot.lane.b32.xlu1 %v11452_v39, %s12808_s22  ;;  %v1396_v32 = vpop.f32.mrf.mxu1 }
 0x1de   : > { %v11112_v44 = vpop.f32.mrf.mxu0  ;;  %5086 = vrot.lane.b32.xlu0 %v11451_v42, %s12807_s19 }
 0x1df   : > { %v13216_v22 = vpack.c.bf16 %v11112_v44, %v13178_v37  ;;  %v11084_v35 = vpop.f32.mrf.mxu1 }
 0x1e0   : > { %v11455_v50 = vld [vmem:[#allocation2 + $0x78] sm:$0xff]   ;;  %v1752_v51 = vpop.f32.mrf.mxu0  ;;  %v10209_v37 = vpack.c.bf16 %v11084_v35, %v11083_v30 }
 0x1e1   : > { %5084 = vrot.lane.b32.xlu1 %v11453_v47, %s12807_s19  ;;  %11189 = vmatprep.subr.msk.bf16.mxu1 %vm2004_vm0, %v11455_v50  ;;  %v13186_v58 = vpack.c.bf16 %v1752_v51, %v1749_v40  ;;  %18141 = vst [vmem:[#allocation37_spill] sm:$0xff] %v13216_v22  ;;  %v11470_v29 = vld [vmem:[#allocation2 + $0x78] sm:$0xff]   ;;  %v1399_v39 = vpop.f32.mrf.mxu1  ;;  %v11474_v40 = vld [vmem:[#allocation2 + $0x60] sm:$0xff]  }
 0x1e2   : > { %v11457_v57 = vld [vmem:[#allocation2 + $0x70] sm:$0xff]   ;;  %v13188_v59 = vpop.f32.mrf.mxu0  ;;  %5090 = vrot.lane.b32.xlu0 %v11454_v54, %s12807_s19  ;;  %10334 = vmatpush3.bf16.xpose.msra.mxu1 %v2075_v56  ;;  %10256 = vst [vmem:[#allocation3 + $0x58] sm:$0xff] %v10209_v37   ;;  %v10204_v41 = vpack.c.bf16 %v1399_v39, %v1396_v32  ;;  %v11475_v42 = vld [vmem:[#allocation2 + $0x78] sm:$0xff]  }
 0x1e3   : > { %18140 = vst [vmem:[#allocation36_spill] sm:$0xff] %v13186_v58  ;;  %11190 = vmatprep.subr.msk.bf16.mxu1 %vm2004_vm0, %v11457_v57  ;;  %10349 = vmatprep.mubr.msk.bf16.mxu1 %vm2004_vm0, %v13186_v58  ;;  %v11087_v43 = vpop.f32.mrf.mxu1  ;;  %v11479_v54 = vld [vmem:[#allocation2 + $0x78] sm:$0xff]   ;;  %v11480_v61 = vld [vmem:[#allocation2 + $0x70] sm:$0xff]  }
 0x1e4   : > { %v13198_v3 = vpop.f32.mrf.mxu0  ;;  %10255 = vst [vmem:[#allocation3 + $0x50] sm:$0xff] %v10204_v41  }
 0x1e5   : > { %3502 = vrot.lane.b32.xlu1 %v11458_v62, %s12808_s22  ;;  %v1412_v45 = vpop.f32.mrf.mxu1  ;;  %v11481_v62 = vld [vmem:[#allocation2 + $0x70] sm:$0xff]  }
 0x1e6   : > { %5094 = vrot.lane.b32.xlu0 %v11459_v1, %s12807_s19  ;;  %v13204_v12 = vpop.f32.mrf.mxu0  ;;  %v11483_v1 = vld [vmem:[#allocation2 + $0x48] sm:$0xff]  }
 0x1e7   : > { %v11088_v47 = vpop.f32.mrf.mxu1 }
 0x1e8   : > { %v13208_v17 = vpop.f32.mrf.mxu0  ;;  %v10219_v49 = vpack.c.bf16 %v11088_v47, %v11087_v43 }
 0x1e9   : > { %6678 = vrot.lane.b32.xlu1 %v11460_v4, %s12809_s26  ;;  %v1415_v51 = vpop.f32.mrf.mxu1  ;;  %v11484_v4 = vld [vmem:[#allocation2 + $0x70] sm:$0xff]  }
 0x1ea   : > { %6682 = vrot.lane.b32.xlu0 %v11461_v7, %s12809_s26  ;;  %10336 = vmatpush3.bf16.xpose.msra.mxu1 %v2072_v8  ;;  %v13211_v19 = vpop.f32.mrf.mxu0  ;;  %10258 = vst [vmem:[#allocation3 + $0x68] sm:$0xff] %v10219_v49   ;;  %v10214_v53 = vpack.c.bf16 %v1415_v51, %v1412_v45  ;;  %v13257_v7 = vpack.c.bf16 %v13204_v12, %v13188_v59  ;;  %v2057_v59 = vsel %vm2004_vm0, %v11485_v6, 0  ;;  %v11486_v12 = vld [vmem:[#allocation2 + $0x40] sm:$0xff]   ;;  %v11500_v49 = vld [vmem:[#allocation3 + $0x48] sm:$0xff]  }
 0x1eb   : > { %11191 = vmatprep.subr.msk.bf16.mxu1 %vm2004_vm0, %v11463_v10  ;;  %v11091_v55 = vpop.f32.mrf.mxu1  ;;  %v13267_v10 = vpack.c.bf16 %v13208_v17, %v13198_v3  ;;  %v11487_v17 = vld [vmem:[#allocation2] sm:$0xff]  }
 0x1ec   : > { %v13218_v26 = vpop.f32.mrf.mxu0  ;;  %10257 = vst [vmem:[#allocation3 + $0x60] sm:$0xff] %v10214_v53   ;;  %18142 = vst [vmem:[#allocation38_spill] sm:$0xff] %v13257_v7  ;;  %v2054_v23 = vsel %vm2004_vm0, %v11487_v17, 0  ;;  %v11501_v53 = vld [vmem:[#allocation3 + $0x8] sm:$0xff]  }
 0x1ed   : > { %3500 = vrot.lane.b32.xlu1 %v11464_v14, %s12808_s22  ;;  %v1428_v57 = vpop.f32.mrf.mxu1  ;;  %18143 = vst [vmem:[#allocation39_spill] sm:$0xff] %v13267_v10 }
 0x1ee   : > { %6680 = vrot.lane.b32.xlu0 %v11465_v16, %s12809_s26  ;;  %v13224_v31 = vpop.f32.mrf.mxu0  ;;  %v11489_v16 = vld [vmem:[#allocation3 + $0x38] sm:$0xff]  }
 0x1ef   : > { %v13276_v14 = vpack.c.bf16 %v13224_v31, %v13211_v19 }
 0x1f0   : > { %v13228_v34 = vpop.f32.mrf.mxu0 }
 0x1f1   : > { %5088 = vrot.lane.b32.xlu1 %v11466_v20, %s12807_s19  ;;  %18144 = vst [vmem:[#allocation40_spill] sm:$0xff] %v13276_v14  ;;  %v13287_v19 = vpack.c.bf16 %v13228_v34, %v13218_v26  ;;  %v11495_v34 = vld [vmem:[#allocation3 + $0x20] sm:$0xff]  }
 0x1f2   : > { %4958 = vrot.lane.b32.xlu0 %v13216_v22, %s12807_s19  ;;  %10338 = vmatpush3.bf16.xpose.msra.mxu1 %v2069_v2  ;;  %v13230_v38 = vpop.f32.mrf.mxu0 }
 0x1f3   : > { %11192 = vmatprep.subr.msk.bf16.mxu1 %vm2004_vm0, %v11468_v24  ;;  %18145 = vst [vmem:[#allocation41_spill] sm:$0xff] %v13287_v19  ;;  %v11492_v24 = vld [vmem:[#allocation3 + $0x68] sm:$0xff]   ;;  %v11494_v31 = vld [vmem:[#allocation3 + $0x60] sm:$0xff]  }
 0x1f4   : > { %v13236_v44 = vpop.f32.mrf.mxu0 }
 0x1f5   : > { %6676 = vrot.lane.b32.xlu1 %v11469_v28, %s12809_s26 }
 0x1f6   : > { %3510 = vrot.lane.b32.xlu0 %v11470_v29, %s12808_s22  ;;  %v13240_v50 = vpop.f32.mrf.mxu0 }
 0x1f7   : > { %v13305_v30 = vpack.c.bf16 %v13240_v50, %v13230_v38 }
 0x1f8   : > { %v1800_v56 = vpop.f32.mrf.mxu0 }
 0x1f9   : > { %3506 = vrot.lane.b32.xlu1 %v11471_v33, %s12808_s22  ;;  %v13297_v25 = vpack.c.bf16 %v1800_v56, %v13236_v44  ;;  %18147 = vst [vmem:[#allocation43_spill] sm:$0xff] %v13305_v30  ;;  %v11502_v56 = vld [vmem:[#allocation3 + $0x40] sm:$0xff]  }
 0x1fa   : > { %3368 = vrot.lane.b32.xlu0 %v13186_v58, %s12808_s22  ;;  %10340 = vmatpush3.bf16.xpose.msra.mxu1 %v2066_v5  ;;  %v13250_v60 = vpop.f32.mrf.mxu0 }
 0x1fb   : > { %11193 = vmatprep.subr.msk.bf16.mxu1 %vm2004_vm0, %v11473_v36  ;;  %18146 = vst [vmem:[#allocation42_spill] sm:$0xff] %v13297_v25  ;;  %v11496_v36 = vld [vmem:[#allocation3 + $0x58] sm:$0xff]  }
 0x1fc   : > { %v13259_v8 = vpop.f32.mrf.mxu0 }
 0x1fd   : > { %3504 = vrot.lane.b32.xlu1 %v11474_v40, %s12808_s22  ;;  %v11497_v40 = vld [vmem:[#allocation3 + $0x18] sm:$0xff]  }
 0x1fe   : > { %5098 = vrot.lane.b32.xlu0 %v11475_v42, %s12807_s19  ;;  %v11128_v11 = vpop.f32.mrf.mxu0  ;;  %v11498_v42 = vld [vmem:[#allocation3 + $0x50] sm:$0xff]  }
 0x1ff   : > { %v13322_v37 = vpack.c.bf16 %v11128_v11, %v13250_v60 }
 0x200   : > { %v1816_v13 = vpop.f32.mrf.mxu0 }
 0x201   : > { %5092 = vrot.lane.b32.xlu1 %v11476_v46, %s12807_s19  ;;  %18148 = vst [vmem:[#allocation44_spill] sm:$0xff] %v13322_v37  ;;  %v13333_v43 = vpack.c.bf16 %v1816_v13, %v13259_v8  ;;  %v11499_v46 = vld [vmem:[#allocation3 + $0x10] sm:$0xff]  }
 0x202   : > { %4956 = vrot.lane.b32.xlu0 %v13186_v58, %s12807_s19  ;;  %10342 = vmatpush3.bf16.xpose.msra.mxu1 %v13195_v63  ;;  %v11092_v63 = vpop.f32.mrf.mxu1  ;;  %v13278_v15 = vpop.f32.mrf.mxu0 }
 0x203   : > { %11194 = vmatprep.subr.msk.bf16.mxu1 %vm2004_vm0, %v11478_v48  ;;  %v10229_v2 = vpack.c.bf16 %v11092_v63, %v11091_v55  ;;  %18149 = vst [vmem:[#allocation45_spill] sm:$0xff] %v13333_v43 }
 0x204   : > { %v1431_v5 = vpop.f32.mrf.mxu1  ;;  %v13289_v20 = vpop.f32.mrf.mxu0 }
 0x205   : > { %3370 = vrot.lane.b32.xlu1 %v13216_v22, %s12808_s22  ;;  %10260 = vst [vmem:[#allocation3 + $0x78] sm:$0xff] %v10229_v2   ;;  %v10224_v9 = vpack.c.bf16 %v1431_v5, %v1428_v57 }
 0x206   : > { %6686 = vrot.lane.b32.xlu0 %v11479_v54, %s12809_s26  ;;  %v11132_v26 = vpop.f32.mrf.mxu0 }
 0x207   : > { %10259 = vst [vmem:[#allocation3 + $0x70] sm:$0xff] %v10224_v9   ;;  %v13350_v52 = vpack.c.bf16 %v11132_v26, %v13278_v15 }
 0x208   : > { %v1832_v29 = vpop.f32.mrf.mxu0 }
 0x209   : > { %3508 = vrot.lane.b32.xlu1 %v11481_v62, %s12808_s22  ;;  %18150 = vst [vmem:[#allocation46_spill] sm:$0xff] %v13350_v52 }
 0x20a   : > { %6684 = vrot.lane.b32.xlu0 %v11480_v61, %s12809_s26  ;;  %10344 = vmatpush3.bf16.xpose.msra.mxu1 %v2060_v0  ;;  %v11135_v32 = vpop.f32.mrf.mxu0  ;;  %v11503_v61 = vld [vmem:[#allocation3] sm:$0xff]  }
 0x20b   : > { %11195 = vmatprep.subr.msk.bf16.mxu1 %vm2004_vm0, %v11483_v1  ;;  %v13375_v1 = vpack.c.bf16 %v1832_v29, %v13289_v20 }
 0x20c   : > { %v11488_v3 = vld [vmem:[#allocation3 + $0x78] sm:$0xff]   ;;  %v1845_v38 = vpop.f32.mrf.mxu0 }
 0x20d   : > { %5096 = vrot.lane.b32.xlu1 %v11484_v4, %s12807_s19  ;;  %10381 = vmatprep.subr.bf16.mxu0 %v11488_v3  ;;  %18153 = vst [vmem:[#allocation49_spill] sm:$0xff] %v13375_v1 }
 0x20e   : > { %4962 = vrot.lane.b32.xlu0 %v13257_v7, %s12807_s19  ;;  %10382 = vmatpush3.bf16.msra.mxu0 %v11489_v16  ;;  %v11490_v18 = vld [vmem:[#allocation3 + $0x70] sm:$0xff]   ;;  %v11136_v44 = vpop.f32.mrf.mxu0 }
 0x20f   : > { %10383 = vmatprep.subr.bf16.mxu0 %v11490_v18  ;;  %v13356_v55 = vpack.c.bf16 %v11136_v44, %v11135_v32 }
 0x210   : > { %v1848_v48 = vpop.f32.mrf.mxu0 }
 0x211   : > { %3374 = vrot.lane.b32.xlu1 %v13257_v7, %s12808_s22  ;;  %18151 = vst [vmem:[#allocation47_spill] sm:$0xff] %v13356_v55  ;;  %v13368_v0 = vpack.c.bf16 %v1848_v48, %v1845_v38 }
 0x212   : > { %10346 = vmatpush3.bf16.xpose.msra.mxu1 %v2057_v59  ;;  %3372 = vrot.lane.b32.xlu0 %v13267_v10, %s12808_s22  ;;  %v11139_v50 = vpop.f32.mrf.mxu0 }
 0x213   : > { %11196 = vmatprep.subr.msk.bf16.mxu1 %vm2004_vm0, %v11486_v12  ;;  %10384 = vmatpush3.bf16.msra.mxu0 %v11491_v21  ;;  %18152 = vst [vmem:[#allocation48_spill] sm:$0xff] %v13368_v0 }
 0x214   : > { %10385 = vmatprep.subr.bf16.mxu0 %v11492_v24  ;;  %v1861_v57 = vpop.f32.mrf.mxu0 }
 0x215   : > { %4960 = vrot.lane.b32.xlu1 %v13267_v10, %s12807_s19 }
 0x216   : > { %4966 = vrot.lane.b32.xlu0 %v13276_v14, %s12807_s19  ;;  %v11140_v63 = vpop.f32.mrf.mxu0 }
 0x217   : > { %10386 = vmatpush3.bf16.msra.mxu0 %v11493_v27  ;;  %v13383_v5 = vpack.c.bf16 %v11140_v63, %v11139_v50 }
 0x218   : > { %10387 = vmatprep.subr.bf16.mxu0 %v11494_v31  ;;  %v1864_v6 = vpop.f32.mrf.mxu0 }
 0x219   : > { %3378 = vrot.lane.b32.xlu1 %v13276_v14, %s12808_s22  ;;  %18154 = vst [vmem:[#allocation50_spill] sm:$0xff] %v13383_v5  ;;  %v13395_v11 = vpack.c.bf16 %v1864_v6, %v1861_v57 }
 0x21a   : > { %10348 = vmatpush3.bf16.xpose.msra.mxu1 %v2054_v23  ;;  %3376 = vrot.lane.b32.xlu0 %v13287_v19, %s12808_s22 }
 0x21b   : > { %v13309_v33 = vpop.permute.xlu1 %5070  ;;  %10388 = vmatpush3.bf16.msra.mxu0 %v11495_v34  ;;  %18155 = vst [vmem:[#allocation51_spill] sm:$0xff] %v13395_v11 }
 0x21c   : > { %v13299_v28 = vpop.permute.xlu0 %3482  ;;  %10389 = vmatprep.subr.bf16.mxu0 %v11496_v36 }
 0x21d   : > { %4964 = vrot.lane.b32.xlu1 %v13287_v19, %s12807_s19 }
 0x21e   : > { %3380 = vrot.lane.b32.xlu0 %v13297_v25, %s12808_s22 }
 0x21f   : > { %10390 = vmatpush3.bf16.msra.mxu0 %v11497_v40 }
 0x220   : > { %v13311_v35 = vpop.permute.xlu0 %6658  ;;  %10391 = vmatprep.subr.bf16.mxu0 %v11498_v42 }
 0x221   : > { %10350 = vmatmul.mubr.msk.bf16.vlgmr.msra.gmra.mxu1 %vm2004_vm0, %v13186_v58  ;;  %3382 = vrot.lane.b32.xlu1 %v13305_v30, %s12808_s22 }
 0x222   : > { %10351 = vmatprep.mubr.msk.bf16.mxu1 %vm2004_vm0, %v13216_v22  ;;  %4968 = vrot.lane.b32.xlu0 %v13297_v25, %s12807_s19 }
 0x223   : > { %v13324_v39 = vpop.permute.xlu1 %5074  ;;  %10392 = vmatpush3.bf16.msra.mxu0 %v11499_v46 }
 0x224   : > { %v13326_v41 = vpop.permute.xlu0 %3480  ;;  %10393 = vmatprep.subr.bf16.mxu0 %v11500_v49 }
 0x225   : > { %4970 = vrot.lane.b32.xlu1 %v13305_v30, %s12807_s19 }
 0x226   : > { %4974 = vrot.lane.b32.xlu0 %v13322_v37, %s12807_s19 }
 0x227   : > { %v13335_v45 = vpop.permute.xlu1 %6660  ;;  %10394 = vmatpush3.bf16.msra.mxu0 %v11501_v53 }
 0x228   : > { %v13337_v47 = vpop.permute.xlu0 %5068  ;;  %10395 = vmatprep.subr.bf16.mxu0 %v11502_v56 }
 0x229   : > { %10352 = vmatmul.mubr.msk.bf16.gmra.mxu1 %vm2004_vm0, %v13216_v22  ;;  %3386 = vrot.lane.b32.xlu1 %v13322_v37, %s12808_s22 }
 0x22a   : > { %10353 = vmatprep.mubr.msk.bf16.mxu1 %vm2004_vm0, %v13267_v10  ;;  %3384 = vrot.lane.b32.xlu0 %v13333_v43, %s12808_s22 }
 0x22b   : > { %v13347_v51 = vpop.permute.xlu1 %5078  ;;  %10396 = vmatpush3.bf16.msra.mxu0 %v11503_v61 }
 0x22c   : > { %v13352_v54 = vpop.permute.xlu0 %3486 }
 0x22d   : > { %3390 = vrot.lane.b32.xlu1 %v13350_v52, %s12808_s22 }
 0x22e   : > { %4972 = vrot.lane.b32.xlu0 %v13333_v43, %s12807_s19 }
 0x22f   : > { %v13360_v60 = vpop.permute.xlu1 %6666 }
 0x230   : > { %v13362_v62 = vpop.permute.xlu0 %6662 }
 0x231   : > { %10354 = vmatmul.mubr.msk.bf16.gmra.mxu1 %vm2004_vm0, %v13267_v10  ;;  %3394 = vrot.lane.b32.xlu1 %v13356_v55, %s12808_s22 }
 0x232   : > { %10355 = vmatprep.mubr.msk.bf16.mxu1 %vm2004_vm0, %v13257_v7  ;;  %4978 = vrot.lane.b32.xlu0 %v13350_v52, %s12807_s19 }
 0x233   : > { %v13377_v2 = vpop.permute.xlu1 %6664 }
 0x234   : > { %v13379_v4 = vpop.permute.xlu0 %3484 }
 0x235   : > { %4980 = vrot.lane.b32.xlu1 %v13368_v0, %s12807_s19 }
 0x236   : > { %3388 = vrot.lane.b32.xlu0 %v13375_v1, %s12808_s22 }
 0x237   : > { %v13387_v8 = vpop.permute.xlu1 %5082 }
 0x238   : > { %v13389_v9 = vpop.permute.xlu0 %5072 }
 0x239   : > { %10356 = vmatmul.mubr.msk.bf16.gmra.mxu1 %vm2004_vm0, %v13257_v7  ;;  %3398 = vrot.lane.b32.xlu1 %v13383_v5, %s12808_s22 }
 0x23a   : > { %10357 = vmatprep.mubr.msk.bf16.mxu1 %vm2004_vm0, %v13287_v19  ;;  %4976 = vrot.lane.b32.xlu0 %v13375_v1, %s12807_s19 }
 0x23b   : > { %v13401_v59 = vpop.permute.xlu1 %6670 }
 0x23c   : > { %v3491_v12 = vpop.permute.xlu0 %3490 }
 0x23d   : > { %4984 = vrot.lane.b32.xlu1 %v13395_v11, %s12807_s19  ;;  %v3576_v63 = vsel %vm2004_vm0, %v3491_v12, 0  ;;  %v3570_v12 = vsel %vm2004_vm0, %v13352_v54, 0  ;;  %v3564_v54 = vsel %vm2004_vm0, %v13299_v28, 0 }
 0x23e   : > { %4982 = vrot.lane.b32.xlu0 %v13356_v55, %s12807_s19 }
 0x23f   : > { %v3493_v13 = vpop.permute.xlu1 %3492 }
 0x240   : > { %v3489_v15 = vpop.permute.xlu0 %3488  ;;  %v3579_v61 = vsel %vm2004_vm0, %v3493_v13, 0 }
 0x241   : > { %10358 = vmatmul.mubr.msk.bf16.gmra.mxu1 %vm2004_vm0, %v13287_v19  ;;  %v3573_v6 = vsel %vm2004_vm0, %v3489_v15, 0  ;;  %v3567_v15 = vsel %vm2004_vm0, %v13379_v4, 0 }
 0x242   : > { %10359 = vmatprep.mubr.msk.bf16.mxu1 %vm2004_vm0, %v13276_v14  ;;  %3392 = vrot.lane.b32.xlu0 %v13368_v0, %s12808_s22 }
 0x243   : > { %v13413_v3 = vpop.permute.xlu1 %6668 }
 0x244   : > { %v13415_v16 = vpop.permute.xlu0 %5076 }
 0x246   : > { %3396 = vrot.lane.b32.xlu0 %v13395_v11, %s12808_s22 }
 0x247   : > { %v13419_v17 = vpop.permute.xlu1 %3498 }
 0x248   : > { %v3495_v18 = vpop.permute.xlu0 %3494 }
 0x249   : > { %10360 = vmatmul.mubr.msk.bf16.gmra.mxu1 %vm2004_vm0, %v13276_v14  ;;  %v3582_v48 = vsel %vm2004_vm0, %v3495_v18, 0 }
 0x24a   : > { %10361 = vmatprep.mubr.msk.bf16.mxu1 %vm2004_vm0, %v13297_v25 }
 0x24b   : > { %v13425_v20 = vpop.permute.xlu1 %6674 }
 0x24c   : > { %v13427_v21 = vpop.permute.xlu0 %5080 }
 0x24f   : > { %v13429_v23 = vpop.permute.xlu1 %3496 }
 0x250   : > { %v13431_v24 = vpop.permute.xlu0 %5086 }
 0x251   : > { %10362 = vmatmul.mubr.msk.bf16.gmra.mxu1 %vm2004_vm0, %v13297_v25 }
 0x252   : > { %10363 = vmatprep.mubr.msk.bf16.mxu1 %vm2004_vm0, %v13305_v30 }
 0x253   : > { %v13437_v26 = vpop.permute.xlu1 %5084 }
 0x254   : > { %v13439_v27 = vpop.permute.xlu0 %5090 }
 0x257   : > { %v3503_v29 = vpop.permute.xlu1 %3502 }
 0x258   : > { %v13441_v31 = vpop.permute.xlu0 %5094 }
 0x259   : > { %10364 = vmatmul.mubr.msk.bf16.gmra.mxu1 %vm2004_vm0, %v13305_v30 }
 0x25a   : > { %10365 = vmatprep.mubr.msk.bf16.mxu1 %vm2004_vm0, %v13333_v43 }
 0x25b   : > { %v13447_v32 = vpop.permute.xlu1 %6678 }
 0x25c   : > { %v13449_v34 = vpop.permute.xlu0 %6682 }
 0x25f   : > { %v3501_v36 = vpop.permute.xlu1 %3500 }
 0x260   : > { %v13451_v38 = vpop.permute.xlu0 %6680 }
 0x261   : > { %10366 = vmatmul.mubr.msk.bf16.gmra.mxu1 %vm2004_vm0, %v13333_v43 }
 0x262   : > { %10367 = vmatprep.mubr.msk.bf16.mxu1 %vm2004_vm0, %v13322_v37 }
 0x263   : > { %v13457_v40 = vpop.permute.xlu1 %5088 }
 0x264   : > { %v13459_v42 = vpop.permute.xlu0 %4958 }
 0x267   : > { %v13461_v44 = vpop.permute.xlu1 %6676 }
 0x268   : > { %v3511_v46 = vpop.permute.xlu0 %3510 }
 0x269   : > { %11197 = vmatprep.subr.msk.bf16.mxu1 %vm2004_vm0, %v3511_v46  ;;  %10368 = vmatmul.mubr.msk.bf16.gmra.mxu1 %vm2004_vm0, %v13322_v37 }
 0x26a   : > { %10494 = vmatpush3.bf16.xpose.msra.mxu1 %v3582_v48  ;;  %10369 = vmatprep.mubr.msk.bf16.mxu1 %vm2004_vm0, %v13375_v1 }
 0x26b   : > { %v3507_v49 = vpop.permute.xlu1 %3506 }
 0x26c   : > { %v3369_v13 = vpop.permute.xlu0 %3368 }
 0x26f   : > { %v3505_v50 = vpop.permute.xlu1 %3504 }
 0x270   : > { %v5099_v18 = vpop.permute.xlu0 %5098 }
 0x271   : > { %10370 = vmatmul.mubr.msk.bf16.gmra.mxu1 %vm2004_vm0, %v13375_v1 }
 0x272   : > { %10371 = vmatprep.mubr.msk.bf16.mxu1 %vm2004_vm0, %v13350_v52 }
 0x273   : > { %v5093_v53 = vpop.permute.xlu1 %5092 }
 0x277   : > { %v3371_v56 = vpop.permute.xlu1 %3370 }
 0x279   : > { %10372 = vmatmul.mubr.msk.bf16.gmra.mxu1 %vm2004_vm0, %v13350_v52 }
 0x27a   : > { %10373 = vmatprep.mubr.msk.bf16.mxu1 %vm2004_vm0, %v13368_v0 }
 0x27b   : > { %v3509_v57 = vpop.permute.xlu1 %3508 }
 0x27c   : > { %11198 = vmatprep.subr.msk.bf16.mxu1 %vm2004_vm0, %v3509_v57 }
 0x27d   : > { %10496 = vmatpush3.bf16.xpose.msra.mxu1 %v3579_v61 }
 0x27e   : > { %11199 = vmatprep.subr.msk.bf16.mxu1 %vm2004_vm0, %v3507_v49 }
 0x27f   : > { %v5097_v28 = vpop.permute.xlu1 %5096 }
 0x281   : > { %10374 = vmatmul.mubr.msk.bf16.gmra.mxu1 %vm2004_vm0, %v13368_v0 }
 0x282   : > { %10375 = vmatprep.mubr.msk.bf16.mxu1 %vm2004_vm0, %v13356_v55 }
 0x283   : > { %v3375_v49 = vpop.permute.xlu1 %3374 }
 0x285   : > { %10498 = vmatpush3.bf16.xpose.msra.mxu1 %v3576_v63 }
 0x286   : > { %11200 = vmatprep.subr.msk.bf16.mxu1 %vm2004_vm0, %v3505_v50 }
 0x289   : > { %10376 = vmatmul.mubr.msk.bf16.gmra.mxu1 %vm2004_vm0, %v13356_v55 }
 0x28a   : > { %10377 = vmatprep.mubr.msk.bf16.mxu1 %vm2004_vm0, %v13395_v11 }
 0x28d   : > { %10500 = vmatpush3.bf16.xpose.msra.mxu1 %v3573_v6 }
 0x28e   : > { %11201 = vmatprep.subr.msk.bf16.mxu1 %vm2004_vm0, %v3503_v29  ;;  %v13508_v29 = vpop.permute.xlu0 %4956 }
 0x291   : > { %10378 = vmatmul.mubr.msk.bf16.gmra.mxu1 %vm2004_vm0, %v13395_v11 }
 0x292   : > { %10379 = vmatprep.mubr.msk.bf16.mxu1 %vm2004_vm0, %v13383_v5  ;;  %v13514_v46 = vpop.permute.xlu0 %6686 }
 0x295   : > { %10502 = vmatpush3.bf16.xpose.msra.mxu1 %v3570_v12 }
 0x296   : > { %11202 = vmatprep.subr.msk.bf16.mxu1 %vm2004_vm0, %v3501_v36  ;;  %v3561_v36 = vsel %vm2004_vm0, %v13326_v41, 0  ;;  %v13517_v4 = vpop.permute.xlu0 %6684  ;;  %v5167_v41 = vsel %vm2004_vm0, %v13427_v21, 0  ;;  %v5161_v21 = vsel %vm2004_vm0, %v13415_v16, 0  ;;  %v5155_v16 = vsel %vm2004_vm0, %v13389_v9, 0 }
 0x297   : > { %v5152_v9 = vsel %vm2004_vm0, %v13309_v33, 0 }
 0x299   : > { %10380 = vmatmul.mubr.msk.bf16.gmra.mxu1 %vm2004_vm0, %v13383_v5 }
 0x29a   : > { %10509 = vmatprep.mubr.msk.bf16.mxu1 %vm2004_vm0, %v3369_v13 }
 0x29d   : > { %10504 = vmatpush3.bf16.xpose.msra.mxu1 %v3567_v15 }
 0x29e   : > { %11203 = vmatprep.subr.msk.bf16.mxu1 %vm2004_vm0, %v13419_v17  ;;  %v5170_v17 = vsel %vm2004_vm0, %v13387_v8, 0  ;;  %v5164_v8 = vsel %vm2004_vm0, %v13347_v51, 0  ;;  %v13545_v51 = vpop.permute.xlu1 %4960 }
 0x2a2   : > { %v3379_v57 = vpop.permute.xlu1 %3378 }
 0x2a5   : > { %10506 = vmatpush3.bf16.xpose.msra.mxu1 %v3564_v54  ;;  %v5149_v54 = vsel %vm2004_vm0, %v13337_v47, 0 }
 0x2a6   : > { %11204 = vmatprep.subr.msk.bf16.mxu1 %vm2004_vm0, %v13429_v23  ;;  %v13523_v23 = vpop.permute.xlu0 %4962 }
 0x2aa   : > { %v3373_v48 = vpop.permute.xlu0 %3372 }
 0x2ad   : > { %10508 = vmatpush3.bf16.xpose.msra.mxu1 %v3561_v36 }
 0x2ae   : > { %11205 = vmatprep.subr.msk.bf16.mxu1 %vm2004_vm0, %v5099_v18  ;;  %v13536_v50 = vpop.permute.xlu0 %4966 }
 0x2b4   : > { %10510 = vmatmul.mubr.msk.bf16.vlgmr.msra.gmra.mxu1 %vm2004_vm0, %v3369_v13 }
 0x2b5   : > { %10511 = vmatprep.mubr.msk.bf16.mxu1 %vm2004_vm0, %v3371_v56  ;;  %10654 = vmatpush3.bf16.xpose.msra.mxu1 %v5170_v17 }
 0x2b6   : > { %11206 = vmatprep.subr.msk.bf16.mxu1 %vm2004_vm0, %v5097_v28 }
 0x2bc   : > { %10512 = vmatmul.mubr.msk.bf16.gmra.mxu1 %vm2004_vm0, %v3371_v56  ;;  %v3377_v56 = vpop.permute.xlu0 %3376 }
 0x2bd   : > { %10513 = vmatprep.mubr.msk.bf16.mxu1 %vm2004_vm0, %v3373_v48  ;;  %10656 = vmatpush3.bf16.xpose.msra.mxu1 %v5167_v41 }
 0x2be   : > { %11207 = vmatprep.subr.msk.bf16.mxu1 %vm2004_vm0, %v13441_v31  ;;  %v5158_v31 = vsel %vm2004_vm0, %v13324_v39, 0  ;;  %v13559_v39 = vpop.permute.xlu1 %4964 }
 0x2c4   : > { %10514 = vmatmul.mubr.msk.bf16.gmra.mxu1 %vm2004_vm0, %v3373_v48 }
 0x2c5   : > { %10515 = vmatprep.mubr.msk.bf16.mxu1 %vm2004_vm0, %v3375_v49  ;;  %10658 = vmatpush3.bf16.xpose.msra.mxu1 %v5164_v8 }
 0x2c6   : > { %11208 = vmatprep.subr.msk.bf16.mxu1 %vm2004_vm0, %v5093_v53  ;;  %v3381_v53 = vpop.permute.xlu0 %3380 }
 0x2ca   : > { %v13563_v61 = vpop.permute.xlu0 %4968 }
 0x2cc   : > { %10516 = vmatmul.mubr.msk.bf16.gmra.mxu1 %vm2004_vm0, %v3375_v49 }
 0x2cd   : > { %10517 = vmatprep.mubr.msk.bf16.mxu1 %vm2004_vm0, %v3377_v56  ;;  %10660 = vmatpush3.bf16.xpose.msra.mxu1 %v5161_v21 }
 0x2ce   : > { %11209 = vmatprep.subr.msk.bf16.mxu1 %vm2004_vm0, %v13439_v27 }
 0x2d4   : > { %10518 = vmatmul.mubr.msk.bf16.gmra.mxu1 %vm2004_vm0, %v3377_v56 }
 0x2d5   : > { %10519 = vmatprep.mubr.msk.bf16.mxu1 %vm2004_vm0, %v3379_v57  ;;  %10662 = vmatpush3.bf16.xpose.msra.mxu1 %v5158_v31 }
 0x2d6   : > { %11210 = vmatprep.subr.msk.bf16.mxu1 %vm2004_vm0, %v13457_v40  ;;  %v3383_v40 = vpop.permute.xlu1 %3382 }
 0x2da   : > { %v13599_v41 = vpop.permute.xlu1 %4970 }
 0x2dc   : > { %10520 = vmatmul.mubr.msk.bf16.gmra.mxu1 %vm2004_vm0, %v3379_v57 }
 0x2dd   : > { %10521 = vmatprep.mubr.msk.bf16.mxu1 %vm2004_vm0, %v3381_v53  ;;  %10664 = vmatpush3.bf16.xpose.msra.mxu1 %v5155_v16 }
 0x2de   : > { %11211 = vmatprep.subr.msk.bf16.mxu1 %vm2004_vm0, %v13431_v24  ;;  %v13575_v24 = vpop.permute.xlu0 %4974  ;;  %v3387_v21 = vpop.permute.xlu1 %3386 }
 0x2e1   : > { %v13561_v27 = vpop.f32.mrf.mxu1 }
 0x2e2   : > { %v3385_v36 = vpop.permute.xlu0 %3384 }
 0x2e3   : > { %v13565_v63 = vpop.f32.mrf.mxu1 }
 0x2e4   : > { %10522 = vmatmul.mubr.msk.bf16.gmra.mxu1 %vm2004_vm0, %v3381_v53  ;;  %v2294_v6 = vmax.f32 %v13561_v27, %v13565_v63 }
 0x2e5   : > { %v13572_v12 = vpop.f32.mrf.mxu1  ;;  %10523 = vmatprep.mubr.msk.bf16.mxu1 %vm2004_vm0, %v3383_v40  ;;  %10666 = vmatpush3.bf16.xpose.msra.mxu1 %v5152_v9 }
 0x2e6   : > { %11212 = vmatprep.subr.msk.bf16.mxu1 %vm2004_vm0, %v13437_v26  ;;  %2295 = vmax.xlane.f32.xlu1 %v2294_v6  ;;  %v13605_v8 = vpop.permute.xlu0 %4972 }
 0x2e7   : > { %v13579_v13 = vpop.f32.mrf.mxu1 }
 0x2e8   : > { %v2297_v33 = vmax.f32 %v13572_v12, %v13579_v13 }
 0x2e9   : > { %v13583_v15 = vpop.f32.mrf.mxu1 }
 0x2ea   : > { %2298 = vmax.xlane.f32.xlu0 %v2297_v33  ;;  %v13615_v31 = vpop.permute.xlu0 %4978 }
 0x2eb   : > { %v13585_v18 = vpop.f32.mrf.mxu1 }
 0x2ec   : > { %10524 = vmatmul.mubr.msk.bf16.gmra.mxu1 %vm2004_vm0, %v3383_v40  ;;  %v2300_v26 = vmax.f32 %v13583_v15, %v13585_v18 }
 0x2ed   : > { %v13592_v17 = vpop.f32.mrf.mxu1  ;;  %10525 = vmatprep.mubr.msk.bf16.mxu1 %vm2004_vm0, %v3385_v36  ;;  %10668 = vmatpush3.bf16.xpose.msra.mxu1 %v5149_v54 }
 0x2ee   : > { %11213 = vmatprep.subr.msk.bf16.mxu1 %vm2004_vm0, %v13514_v46  ;;  %2301 = vmax.xlane.f32.xlu1 %v2300_v26  ;;  %v3389_v40 = vpop.permute.xlu0 %3388 }
 0x2ef   : > { %v13597_v28 = vpop.f32.mrf.mxu1 }
 0x2f0   : > { %v2303_v47 = vmax.f32 %v13592_v17, %v13597_v28 }
 0x2f1   : > { %v13603_v48 = vpop.f32.mrf.mxu1 }
 0x2f2   : > { %2304 = vmax.xlane.f32.xlu1 %v2303_v47  ;;  %v13637_v47 = vpop.permute.xlu0 %4976 }
 0x2f3   : > { %v13607_v49 = vpop.f32.mrf.mxu1 }
 0x2f4   : > { %10526 = vmatmul.mubr.msk.bf16.gmra.mxu1 %vm2004_vm0, %v3385_v36  ;;  %v2306_v46 = vmax.f32 %v13603_v48, %v13607_v49 }
 0x2f5   : > { %v13612_v56 = vpop.f32.mrf.mxu1  ;;  %10527 = vmatprep.mubr.msk.bf16.mxu1 %vm2004_vm0, %v3387_v21 }
 0x2f6   : > { %2307 = vmax.xlane.f32.xlu0 %v2306_v46 }
 0x2f7   : > { %v13617_v57 = vpop.f32.mrf.mxu1 }
 0x2f8   : > { %v2309_v16 = vmax.f32 %v13612_v56, %v13617_v57 }
 0x2f9   : > { %v13621_v53 = vpop.f32.mrf.mxu1 }
 0x2fa   : > { %2310 = vmax.xlane.f32.xlu1 %v2309_v16 }
 0x2fb   : > { %v13623_v9 = vpop.f32.mrf.mxu1 }
 0x2fc   : > { %10528 = vmatmul.mubr.msk.bf16.gmra.mxu1 %vm2004_vm0, %v3387_v21  ;;  %v2312_v6 = vmax.f32 %v13621_v53, %v13623_v9  ;;  %v3391_v21 = vpop.permute.xlu1 %3390 }
 0x2fd   : > { %v13628_v33 = vpop.f32.mrf.mxu1  ;;  %10529 = vmatprep.mubr.msk.bf16.mxu1 %vm2004_vm0, %v3389_v40 }
 0x2fe   : > { %2313 = vmax.xlane.f32.xlu1 %v2312_v6  ;;  %v13647_v6 = vpop.permute.xlu0 %4982 }
 0x2ff   : > { %v13631_v54 = vpop.f32.mrf.mxu1 }
 0x300   : > { %v2315_v36 = vmax.f32 %v13628_v33, %v13631_v54  ;;  %v3395_v25 = vpop.permute.xlu1 %3394 }
 0x301   : > { %v13635_v26 = vpop.f32.mrf.mxu1 }
 0x302   : > { %2316 = vmax.xlane.f32.xlu1 %v2315_v36 }
 0x303   : > { %v13639_v46 = vpop.f32.mrf.mxu1 }
 0x304   : > { %10530 = vmatmul.mubr.msk.bf16.gmra.mxu1 %vm2004_vm0, %v3389_v40  ;;  %v2318_v16 = vmax.f32 %v13635_v26, %v13639_v46  ;;  %v3393_v40 = vpop.permute.xlu0 %3392  ;;  %v13693_v58 = vpop.permute.xlu1 %4980 }
 0x305   : > { %v13644_v11 = vpop.f32.mrf.mxu1  ;;  %10531 = vmatprep.mubr.msk.bf16.mxu1 %vm2004_vm0, %v3391_v21 }
 0x306   : > { %2319 = vmax.xlane.f32.xlu0 %v2318_v16 }
 0x307   : > { %v13649_v55 = vpop.f32.mrf.mxu1 }
 0x308   : > { %v2321_v36 = vmax.f32 %v13644_v11, %v13649_v55  ;;  %v3397_v10 = vpop.permute.xlu0 %3396 }
 0x309   : > { %v13653_v0 = vpop.f32.mrf.mxu1 }
 0x30a   : > { %2322 = vmax.xlane.f32.xlu1 %v2321_v36 }
 0x30b   : > { %v13655_v52 = vpop.f32.mrf.mxu1 }
 0x30c   : > { %10532 = vmatmul.mubr.msk.bf16.gmra.mxu1 %vm2004_vm0, %v3391_v21  ;;  %v2324_v1 = vmax.f32 %v13653_v0, %v13655_v52 }
 0x30d   : > { %v13660_v37 = vpop.f32.mrf.mxu1  ;;  %10533 = vmatprep.mubr.msk.bf16.mxu1 %vm2004_vm0, %v3393_v40 }
 0x30e   : > { %2325 = vmax.xlane.f32.xlu1 %v2324_v1 }
 0x30f   : > { %v13663_v16 = vpop.f32.mrf.mxu1 }
 0x310   : > { %v2327_v43 = vmax.f32 %v13660_v37, %v13663_v16 }
 0x311   : > { %v13667_v30 = vpop.f32.mrf.mxu1 }
 0x312   : > { %2328 = vmax.xlane.f32.xlu1 %v2327_v43 }
 0x313   : > { %v13669_v36 = vpop.f32.mrf.mxu1 }
 0x314   : > { %10534 = vmatmul.mubr.msk.bf16.gmra.mxu1 %vm2004_vm0, %v3393_v40  ;;  %v2330_v21 = vmax.f32 %v13667_v30, %v13669_v36 }
 0x315   : > { %v13674_v14 = vpop.f32.mrf.mxu1  ;;  %10535 = vmatprep.mubr.msk.bf16.mxu1 %vm2004_vm0, %v3395_v25 }
 0x316   : > { %18156 = vst [vmem:[#allocation52_spill] sm:$0xff] %v13674_v14  ;;  %2331 = vmax.xlane.f32.xlu1 %v2330_v21 }
 0x317   : > { %v13677_v1 = vpop.f32.mrf.mxu1 }
 0x318   : > { %18157 = vst [vmem:[#allocation53_spill] sm:$0xff] %v13677_v1  ;;  %v2333_v19 = vmax.f32 %v13674_v14, %v13677_v1 }
 0x319   : > { %v13681_v7 = vpop.f32.mrf.mxu1 }
 0x31a   : > { %18158 = vst [vmem:[#allocation54_spill] sm:$0xff] %v13681_v7  ;;  %2334 = vmax.xlane.f32.xlu0 %v2333_v19 }
 0x31b   : > { %v13683_v43 = vpop.f32.mrf.mxu1 }
 0x31c   : > { %18159 = vst [vmem:[#allocation55_spill] sm:$0xff] %v13683_v43  ;;  %10536 = vmatmul.mubr.msk.bf16.gmra.mxu1 %vm2004_vm0, %v3395_v25  ;;  %v2336_v40 = vmax.f32 %v13681_v7, %v13683_v43  ;;  %v3399_v25 = vpop.permute.xlu1 %3398 }
 0x31d   : > { %v13688_v22 = vpop.f32.mrf.mxu1  ;;  %10537 = vmatprep.mubr.msk.bf16.mxu1 %vm2004_vm0, %v3397_v10 }
 0x31e   : > { %18160 = vst [vmem:[#allocation56_spill] sm:$0xff] %v13688_v22  ;;  %2337 = vmax.xlane.f32.xlu1 %v2336_v40 }
 0x31f   : > { %v13691_v21 = vpop.f32.mrf.mxu1 }
 0x320   : > { %18161 = vst [vmem:[#allocation57_spill] sm:$0xff] %v13691_v21  ;;  %v2339_v19 = vmax.f32 %v13688_v22, %v13691_v21 }
 0x321   : > { %v13697_v1 = vpop.f32.mrf.mxu1 }
 0x322   : > { %2340 = vmax.xlane.f32.xlu0 %v2339_v19 }
 0x323   : > { %v13699_v14 = vpop.f32.mrf.mxu1 }
 0x324   : > { %18162 = vst [vmem:[#allocation58_spill] sm:$0xff] %v13699_v14  ;;  %10538 = vmatmul.mubr.msk.bf16.gmra.mxu1 %vm2004_vm0, %v3397_v10  ;;  %v2342_v43 = vmax.f32 %v13697_v1, %v13699_v14 }
 0x325   : > { %v13704_v7 = vpop.f32.mrf.mxu1  ;;  %10539 = vmatprep.mubr.msk.bf16.mxu1 %vm2004_vm0, %v3399_v25 }
 0x326   : > { %18163 = vst [vmem:[#allocation59_spill] sm:$0xff] %v13704_v7  ;;  %2343 = vmax.xlane.f32.xlu0 %v2342_v43 }
 0x327   : > { %v13707_v40 = vpop.f32.mrf.mxu1 }
 0x328   : > { %18164 = vst [vmem:[#allocation60_spill] sm:$0xff] %v13707_v40  ;;  %v2345_v21 = vmax.f32 %v13704_v7, %v13707_v40 }
 0x329   : > { %v13711_v22 = vpop.f32.mrf.mxu1 }
 0x32a   : > { %2346 = vmax.xlane.f32.xlu1 %v2345_v21 }
 0x32b   : > { %v13713_v19 = vpop.f32.mrf.mxu1 }
 0x32c   : > { %18165 = vst [vmem:[#allocation61_spill] sm:$0xff] %v13713_v19  ;;  %10540 = vmatmul.mubr.msk.bf16.gmra.mxu1 %vm2004_vm0, %v3399_v25  ;;  %v2348_v10 = vmax.f32 %v13711_v22, %v13713_v19  ;;  %v6758_v25 = vsel %vm2004_vm0, %v13401_v59, 0 }
 0x32d   : > { %v13718_v14 = vpop.f32.mrf.mxu1  ;;  %10669 = vmatprep.mubr.msk.bf16.mxu1 %vm2004_vm0, %v13508_v29 }
 0x32e   : > { %2349 = vmax.xlane.f32.xlu0 %v2348_v10 }
 0x32f   : > { %v13722_v43 = vpop.f32.mrf.mxu1 }
 0x330   : > { %18166 = vst [vmem:[#allocation62_spill] sm:$0xff] %v13722_v43  ;;  %v2351_v40 = vmax.f32 %v13718_v14, %v13722_v43 }
 0x331   : > { %v13726_v7 = vpop.f32.mrf.mxu1 }
 0x332   : > { %2352 = vmax.xlane.f32.xlu1 %v2351_v40 }
 0x333   : > { %v13728_v21 = vpop.f32.mrf.mxu1 }
 0x334   : > { %10670 = vmatmul.mubr.msk.bf16.vlgmr.msra.gmra.mxu1 %vm2004_vm0, %v13508_v29  ;;  %v2354_v19 = vmax.f32 %v13726_v7, %v13728_v21 }
 0x335   : > { %10814 = vmatpush3.bf16.xpose.msra.mxu1 %v6758_v25  ;;  %v13736_v10 = vpop.f32.mrf.mxu1  ;;  %10671 = vmatprep.mubr.msk.bf16.mxu1 %vm2004_vm0, %v13459_v42  ;;  %v6755_v25 = vsel %vm2004_vm0, %v13413_v3, 0 }
 0x336   : > { %11214 = vmatprep.subr.msk.bf16.mxu1 %vm2004_vm0, %v13517_v4  ;;  %2355 = vmax.xlane.f32.xlu0 %v2354_v19 }
 0x337   : > { %v13742_v40 = vpop.f32.mrf.mxu1 }
 0x338   : > { %18167 = vst [vmem:[#allocation63_spill] sm:$0xff] %v13742_v40  ;;  %v2357_v59 = vmax.f32 %v13736_v10, %v13742_v40 }
 0x339   : > { %v13746_v43 = vpop.f32.mrf.mxu1 }
 0x33a   : > { %2358 = vmax.xlane.f32.xlu1 %v2357_v59 }
 0x33b   : > { %v13748_v29 = vpop.f32.mrf.mxu1 }
 0x33c   : > { %18168 = vst [vmem:[#allocation64_spill] sm:$0xff] %v13748_v29  ;;  %10672 = vmatmul.mubr.msk.bf16.gmra.mxu1 %vm2004_vm0, %v13459_v42  ;;  %v2360_v4 = vmax.f32 %v13746_v43, %v13748_v29 }
 0x33d   : > { %10816 = vmatpush3.bf16.xpose.msra.mxu1 %v6755_v25  ;;  %v13756_v19 = vpop.f32.mrf.mxu1  ;;  %10673 = vmatprep.mubr.msk.bf16.mxu1 %vm2004_vm0, %v13545_v51  ;;  %v6752_v25 = vsel %vm2004_vm0, %v13360_v60, 0 }
 0x33e   : > { %11215 = vmatprep.subr.msk.bf16.mxu1 %vm2004_vm0, %v13449_v34  ;;  %2361 = vmax.xlane.f32.xlu0 %v2360_v4 }
 0x33f   : > { %v13762_v59 = vpop.f32.mrf.mxu1 }
 0x340   : > { %v2363_v3 = vmax.f32 %v13756_v19, %v13762_v59 }
 0x341   : > { %v13766_v40 = vpop.f32.mrf.mxu1 }
 0x342   : > { %18169 = vst [vmem:[#allocation65_spill] sm:$0xff] %v13766_v40  ;;  %2364 = vmax.xlane.f32.xlu1 %v2363_v3 }
 0x343   : > { %v13768_v42 = vpop.f32.mrf.mxu1 }
 0x344   : > { %18170 = vst [vmem:[#allocation66_spill] sm:$0xff] %v13768_v42  ;;  %v2366_v29 = vmax.f32 %v13766_v40, %v13768_v42  ;;  %10674 = vmatmul.mubr.msk.bf16.gmra.mxu1 %vm2004_vm0, %v13545_v51  ;;  %v6749_v51 = vsel %vm2004_vm0, %v13377_v2, 0 }
 0x345   : > { %10818 = vmatpush3.bf16.xpose.msra.mxu1 %v6752_v25  ;;  %v13776_v34 = vpop.f32.mrf.mxu1  ;;  %10675 = vmatprep.mubr.msk.bf16.mxu1 %vm2004_vm0, %v13523_v23 }
 0x346   : > { %18171 = vst [vmem:[#allocation67_spill] sm:$0xff] %v13776_v34  ;;  %11216 = vmatprep.subr.msk.bf16.mxu1 %vm2004_vm0, %v13451_v38  ;;  %2367 = vmax.xlane.f32.xlu1 %v2366_v29 }
 0x347   : > { %v13782_v4 = vpop.f32.mrf.mxu1 }
 0x348   : > { %18172 = vst [vmem:[#allocation68_spill] sm:$0xff] %v13782_v4  ;;  %v2369_v60 = vmax.f32 %v13776_v34, %v13782_v4 }
 0x349   : > { %v13786_v3 = vpop.f32.mrf.mxu1 }
 0x34a   : > { %18173 = vst [vmem:[#allocation69_spill] sm:$0xff] %v13786_v3  ;;  %2370 = vmax.xlane.f32.xlu0 %v2369_v60 }
 0x34b   : > { %v13788_v42 = vpop.f32.mrf.mxu1 }
 0x34c   : > { %18174 = vst [vmem:[#allocation70_spill] sm:$0xff] %v13788_v42  ;;  %v2372_v25 = vmax.f32 %v13786_v3, %v13788_v42  ;;  %10676 = vmatmul.mubr.msk.bf16.gmra.mxu1 %vm2004_vm0, %v13523_v23  ;;  %v6746_v23 = vsel %vm2004_vm0, %v13362_v62, 0 }
 0x34d   : > { %10820 = vmatpush3.bf16.xpose.msra.mxu1 %v6749_v51  ;;  %v13796_v38 = vpop.f32.mrf.mxu1  ;;  %10677 = vmatprep.mubr.msk.bf16.mxu1 %vm2004_vm0, %v13559_v39 }
 0x34e   : > { %18175 = vst [vmem:[#allocation71_spill] sm:$0xff] %v13796_v38  ;;  %11217 = vmatprep.subr.msk.bf16.mxu1 %vm2004_vm0, %v13447_v32  ;;  %2373 = vmax.xlane.f32.xlu0 %v2372_v25 }
 0x34f   : > { %v13802_v29 = vpop.f32.mrf.mxu1 }
 0x350   : > { %18176 = vst [vmem:[#allocation72_spill] sm:$0xff] %v13802_v29  ;;  %v2375_v2 = vmax.f32 %v13796_v38, %v13802_v29 }
 0x351   : > { %v13806_v60 = vpop.f32.mrf.mxu1 }
 0x352   : > { %18177 = vst [vmem:[#allocation73_spill] sm:$0xff] %v13806_v60  ;;  %2376 = vmax.xlane.f32.xlu1 %v2375_v2  ;;  %v6743_v2 = vsel %vm2004_vm0, %v13335_v45, 0  ;;  %v11504_v45 = vld [vmem:[#allocation2] sm:$0xff]  }
 0x353   : > { %v13808_v42 = vpop.f32.mrf.mxu1 }
 0x354   : > { %18178 = vst [vmem:[#allocation74_spill] sm:$0xff] %v13808_v42  ;;  %v2378_v51 = vmax.f32 %v13806_v60, %v13808_v42  ;;  %10678 = vmatmul.mubr.msk.bf16.gmra.mxu1 %vm2004_vm0, %v13559_v39 }
 0x355   : > { %10822 = vmatpush3.bf16.xpose.msra.mxu1 %v6746_v23  ;;  %v13816_v32 = vpop.f32.mrf.mxu1  ;;  %10679 = vmatprep.mubr.msk.bf16.mxu1 %vm2004_vm0, %v13536_v50 }
 0x356   : > { %18179 = vst [vmem:[#allocation75_spill] sm:$0xff] %v13816_v32  ;;  %11218 = vmatprep.subr.msk.bf16.mxu1 %vm2004_vm0, %v13461_v44  ;;  %2379 = vmax.xlane.f32.xlu1 %v2378_v51  ;;  %v6740_v44 = vsel %vm2004_vm0, %v13311_v35, 0 }
 0x357   : > { %v13822_v25 = vpop.f32.mrf.mxu1 }
 0x358   : > { %18180 = vst [vmem:[#allocation76_spill] sm:$0xff] %v13822_v25  ;;  %v2381_v62 = vmax.f32 %v13816_v32, %v13822_v25 }
 0x359   : > { %v13841_v39 = vpop.f32.mrf.mxu1 }
 0x35a   : > { %2382 = vmax.xlane.f32.xlu0 %v2381_v62  ;;  %18181 = vst [vmem:[#allocation77_spill] sm:$0xff] %v13841_v39 }
 0x35b   : > { %v13850_v35 = vpop.f32.mrf.mxu1 }
 0x35c   : > { %10680 = vmatmul.mubr.msk.bf16.gmra.mxu1 %vm2004_vm0, %v13536_v50  ;;  %v11505_v50 = vld [vmem:[#allocation2 + $0x40] sm:$0xff]   ;;  %18182 = vst [vmem:[#allocation78_spill] sm:$0xff] %v13850_v35 }
 0x35d   : > { %10824 = vmatpush3.bf16.xpose.msra.mxu1 %v6743_v2  ;;  %10681 = vmatprep.mubr.msk.bf16.mxu1 %vm2004_vm0, %v13563_v61  ;;  %v13854_v23 = vpop.f32.mrf.mxu1 }
 0x35e   : > { %11219 = vmatprep.subr.msk.bf16.mxu1 %vm2004_vm0, %v13425_v20  ;;  %v13846_v20 = vpop.permute.xlu1 %4984  ;;  %18183 = vst [vmem:[#allocation79_spill] sm:$0xff] %v13854_v23 }
 0x35f   : > { %v13862_v2 = vpop.f32.mrf.mxu1 }
 0x360   : > { %18184 = vst [vmem:[#allocation80_spill] sm:$0xff] %v13862_v2 }
 0x364   : > { %10682 = vmatmul.mubr.msk.bf16.gmra.mxu1 %vm2004_vm0, %v13563_v61 }
 0x365   : > { %10826 = vmatpush3.bf16.xpose.msra.mxu1 %v6740_v44  ;;  %10683 = vmatprep.mubr.msk.bf16.mxu1 %vm2004_vm0, %v13599_v41 }
 0x367   : > { %6656 = vrot.lane.b32.xlu1 %v11504_v45, %s12809_s26 }
 0x36b   : > { %6672 = vrot.lane.b32.xlu1 %v11505_v50, %s12809_s26 }
 0x36c   : > { %10684 = vmatmul.mubr.msk.bf16.gmra.mxu1 %vm2004_vm0, %v13599_v41 }
 0x36d   : > { %10685 = vmatprep.mubr.msk.bf16.mxu1 %vm2004_vm0, %v13605_v8 }
 0x36f   : > { %v2296_v61 = vpop.xlane.xlu1 %2295 }
 0x370   : > { %4986 = vrot.lane.b32.xlu0 %v13383_v5, %s12807_s19  ;;  %v2390_v62 = vsub.f32 %v13561_v27, %v2296_v61  ;;  %v2391_v41 = vsub.f32 %v13565_v63, %v2296_v61 }
 0x372   : > { %v2454_v5 = vmul.f32 1.442695, %v2390_v62  ;;  %v2456_v32 = vmul.f32 1.442695, %v2391_v41 }
 0x373   : > { %v2299_v51 = vpop.xlane.xlu0 %2298 }
 0x374   : > { %10686 = vmatmul.mubr.msk.bf16.gmra.mxu1 %vm2004_vm0, %v13605_v8  ;;  %v2392_v44 = vsub.f32 %v13572_v12, %v2299_v51  ;;  %v2393_v45 = vsub.f32 %v13579_v13, %v2299_v51  ;;  %v13866_v25 = vpop.f32.mrf.mxu1  ;;  %11578 = vpow2.f32 %v2454_v5 }
 0x375   : > { %10687 = vmatprep.mubr.msk.bf16.mxu1 %vm2004_vm0, %v13575_v24  ;;  %18185 = vst [vmem:[#allocation81_spill] sm:$0xff] %v13866_v25  ;;  %11580 = vpow2.f32 %v2456_v32 }
 0x376   : > { %v2458_v27 = vmul.f32 1.442695, %v2392_v44  ;;  %v2460_v42 = vmul.f32 1.442695, %v2393_v45  ;;  %v13868_v8 = vpop.f32.mrf.mxu1 }
 0x377   : > { %v2302_v50 = vpop.xlane.xlu1 %2301  ;;  %18186 = vst [vmem:[#allocation82_spill] sm:$0xff] %v13868_v8 }
 0x378   : > { %v2394_v63 = vsub.f32 %v13583_v15, %v2302_v50  ;;  %v2395_v12 = vsub.f32 %v13585_v18, %v2302_v50  ;;  %11582 = vpow2.f32 %v2458_v27  ;;  %v13878_v15 = vpop.f32.mrf.mxu1 }
 0x379   : > { %11584 = vpow2.f32 %v2460_v42  ;;  %18187 = vst [vmem:[#allocation83_spill] sm:$0xff] %v13878_v15 }
 0x37a   : > { %v2462_v62 = vmul.f32 1.442695, %v2394_v63  ;;  %v13882_v18 = vpop.f32.mrf.mxu1 }
 0x37b   : > { %v2305_v60 = vpop.xlane.xlu1 %2304  ;;  %18188 = vst [vmem:[#allocation84_spill] sm:$0xff] %v13882_v18 }
 0x37c   : > { %v2396_v61 = vsub.f32 %v13592_v17, %v2305_v60  ;;  %v2397_v29 = vsub.f32 %v13597_v28, %v2305_v60  ;;  %10688 = vmatmul.mubr.msk.bf16.gmra.mxu1 %vm2004_vm0, %v13575_v24  ;;  %v2464_v28 = vmul.f32 1.442695, %v2395_v12  ;;  %v13890_v44 = vpop.f32.mrf.mxu1 }
 0x37d   : > { %10689 = vmatprep.mubr.msk.bf16.mxu1 %vm2004_vm0, %v13637_v47  ;;  %18189 = vst [vmem:[#allocation85_spill] sm:$0xff] %v13890_v44 }
 0x37e   : > { %v2466_v13 = vmul.f32 1.442695, %v2396_v61  ;;  %v2468_v5 = vmul.f32 1.442695, %v2397_v29 }
 0x37f   : > { %v2308_v51 = vpop.xlane.xlu0 %2307 }
 0x380   : > { %11586 = vpow2.f32 %v2466_v13  ;;  %v2398_v17 = vsub.f32 %v13603_v48, %v2308_v51  ;;  %v2399_v24 = vsub.f32 %v13607_v49, %v2308_v51 }
 0x381   : > { %11588 = vpow2.f32 %v2468_v5  ;;  %v13902_v5 = vpop.f32.mrf.mxu1 }
 0x382   : > { %11590 = vpow2.f32 %v2462_v62  ;;  %v2470_v32 = vmul.f32 1.442695, %v2398_v17  ;;  %v2472_v42 = vmul.f32 1.442695, %v2399_v24  ;;  %18190 = vst [vmem:[#allocation86_spill] sm:$0xff] %v13902_v5 }
 0x383   : > { %v2311_v60 = vpop.xlane.xlu1 %2310  ;;  %11592 = vpow2.f32 %v2464_v28 }
 0x384   : > { %v2400_v41 = vsub.f32 %v13612_v56, %v2311_v60  ;;  %10690 = vmatmul.mubr.msk.bf16.gmra.mxu1 %vm2004_vm0, %v13637_v47  ;;  %v2401_v29 = vsub.f32 %v13617_v57, %v2311_v60  ;;  %11594 = vpow2.f32 %v2470_v32  ;;  %v13894_v56 = vpop.eup %11578 }
 0x385   : > { %10691 = vmatprep.mubr.msk.bf16.mxu1 %vm2004_vm0, %v13615_v31  ;;  %11596 = vpow2.f32 %v2472_v42  ;;  %v13896_v27 = vpop.eup %11580 }
 0x386   : > { %v2474_v49 = vmul.f32 1.442695, %v2400_v41  ;;  %v2476_v47 = vmul.f32 1.442695, %v2401_v29  ;;  %v13898_v57 = vpop.eup %11582  ;;  %v2582_v62 = vadd.f32 %v13896_v27, %v13894_v56 }
 0x387   : > { %v2314_v48 = vpop.xlane.xlu1 %2313  ;;  %v13900_v13 = vpop.eup %11584 }
 0x388   : > { %v2402_v45 = vsub.f32 %v13621_v53, %v2314_v48  ;;  %v2403_v50 = vsub.f32 %v13623_v9, %v2314_v48  ;;  %11598 = vpow2.f32 %v2474_v49  ;;  %v2585_v42 = vadd.f32 %v13900_v13, %v13898_v57 }
 0x389   : > { %11600 = vpow2.f32 %v2476_v47 }
 0x38a   : > { %v2478_v63 = vmul.f32 1.442695, %v2402_v45  ;;  %v2480_v61 = vmul.f32 1.442695, %v2403_v50 }
 0x38b   : > { %v2317_v12 = vpop.xlane.xlu1 %2316 }
 0x38c   : > { %v2404_v53 = vsub.f32 %v13628_v33, %v2317_v12  ;;  %v2405_v9 = vsub.f32 %v13631_v54, %v2317_v12  ;;  %10692 = vmatmul.mubr.msk.bf16.gmra.mxu1 %vm2004_vm0, %v13615_v31  ;;  %11602 = vpow2.f32 %v2478_v63  ;;  %v13918_v54 = vpop.f32.mrf.mxu1 }
 0x38d   : > { %v13908_v51 = vpop.eup %11586  ;;  %10693 = vmatprep.mubr.msk.bf16.mxu1 %vm2004_vm0, %v13693_v58  ;;  %11604 = vpow2.f32 %v2480_v61  ;;  %18191 = vst [vmem:[#allocation87_spill] sm:$0xff] %v13918_v54 }
 0x38e   : > { %v13914_v17 = vpop.eup %11588  ;;  %v2482_v28 = vmul.f32 1.442695, %v2404_v53  ;;  %v2484_v24 = vmul.f32 1.442695, %v2405_v9  ;;  %v13928_v49 = vpop.f32.mrf.mxu1 }
 0x38f   : > { %v2320_v33 = vpop.xlane.xlu0 %2319  ;;  %2583 = vadd.xlane.f32.xlu0 %v2582_v62  ;;  %v2591_v31 = vadd.f32 %v13914_v17, %v13908_v51  ;;  %v13921_v32 = vpop.eup %11590  ;;  %18192 = vst [vmem:[#allocation88_spill] sm:$0xff] %v13928_v49 }
 0x390   : > { %11606 = vpow2.f32 %v2482_v28  ;;  %v2406_v60 = vsub.f32 %v13635_v26, %v2320_v33  ;;  %v2407_v41 = vsub.f32 %v13639_v46, %v2320_v33  ;;  %v13926_v29 = vpop.eup %11592  ;;  %v13942_v12 = vpop.f32.mrf.mxu1 }
 0x391   : > { %11608 = vpow2.f32 %v2484_v24  ;;  %2592 = vadd.xlane.f32.xlu1 %v2591_v31  ;;  %v13933_v26 = vpop.eup %11594  ;;  %v2588_v63 = vadd.f32 %v13926_v29, %v13921_v32 }
 0x392   : > { %v2486_v45 = vmul.f32 1.442695, %v2406_v60  ;;  %v2488_v47 = vmul.f32 1.442695, %v2407_v41  ;;  %v13940_v61 = vpop.eup %11596  ;;  %v13954_v33 = vpop.f32.mrf.mxu1 }
 0x393   : > { %v2323_v48 = vpop.xlane.xlu1 %2322  ;;  %2586 = vadd.xlane.f32.xlu0 %v2585_v42 }
 0x394   : > { %v2408_v50 = vsub.f32 %v13644_v11, %v2323_v48  ;;  %10694 = vmatmul.mubr.msk.bf16.gmra.mxu1 %vm2004_vm0, %v13693_v58  ;;  %v2409_v46 = vsub.f32 %v13649_v55, %v2323_v48  ;;  %11610 = vpow2.f32 %v2486_v45  ;;  %v2594_v55 = vadd.f32 %v13940_v61, %v13933_v26  ;;  %v13968_v48 = vpop.f32.mrf.mxu1 }
 0x395   : > { %10695 = vmatprep.mubr.msk.bf16.mxu1 %vm2004_vm0, %v13647_v6  ;;  %v13944_v53 = vpop.eup %11598  ;;  %11612 = vpow2.f32 %v2488_v47  ;;  %18193 = vst [vmem:[#allocation89_spill] sm:$0xff] %v13968_v48 }
 0x396   : > { %v2490_v11 = vmul.f32 1.442695, %v2408_v50  ;;  %v2492_v58 = vmul.f32 1.442695, %v2409_v46  ;;  %v13948_v9 = vpop.eup %11600  ;;  %v2387_v46 = vmax.f32 %v13854_v23, %v13862_v2  ;;  %v18196_v23 = vld [vmem:[#allocation53_spill] sm:$0xff] }
 0x397   : > { %2589 = vadd.xlane.f32.xlu0 %v2588_v63  ;;  %v2326_v28 = vpop.xlane.xlu1 %2325  ;;  %v2597_v60 = vadd.f32 %v13948_v9, %v13944_v53  ;;  %v13976_v63 = vpop.f32.mrf.mxu1 }
 0x398   : > { %11614 = vpow2.f32 %v2490_v11  ;;  %v2410_v45 = vsub.f32 %v13653_v0, %v2326_v28  ;;  %18194 = vst [vmem:[#allocation90_spill] sm:$0xff] %v13976_v63 }
 0x399   : > { %v13950_v62 = vpop.eup %11602  ;;  %11616 = vpow2.f32 %v2492_v58 }
 0x39a   : > { %v13952_v24 = vpop.eup %11604  ;;  %v2494_v11 = vmul.f32 1.442695, %v2410_v45 }
 0x39b   : > { %2595 = vadd.xlane.f32.xlu0 %v2594_v55  ;;  %v2329_v50 = vpop.xlane.xlu1 %2328  ;;  %v2600_v47 = vadd.f32 %v13952_v24, %v13950_v62 }
 0x39c   : > { %10696 = vmatmul.mubr.msk.bf16.gmra.mxu1 %vm2004_vm0, %v13647_v6  ;;  %v2411_v6 = vsub.f32 %v13655_v52, %v2326_v28  ;;  %v2412_v58 = vsub.f32 %v13660_v37, %v2329_v50  ;;  %v2384_v52 = vmax.f32 %v13841_v39, %v13850_v35  ;;  %v2413_v28 = vsub.f32 %v13663_v16, %v2329_v50  ;;  %v18202_v35 = vld [vmem:[#allocation56_spill] sm:$0xff] }
 0x39d   : > { %v13958_v31 = vpop.eup %11606  ;;  %10697 = vmatprep.mubr.msk.bf16.mxu1 %vm2004_vm0, %v13846_v20  ;;  %11618 = vpow2.f32 %v2494_v11 }
 0x39e   : > { %v13964_v41 = vpop.eup %11608  ;;  %v2496_v55 = vmul.f32 1.442695, %v2411_v6  ;;  %v2500_v37 = vmul.f32 1.442695, %v2413_v28 }
 0x39f   : > { %2598 = vadd.xlane.f32.xlu0 %v2597_v60  ;;  %v2603_v42 = vadd.f32 %v13964_v41, %v13958_v31 }
 0x3a0   : > { %11620 = vpow2.f32 %v2496_v55  ;;  %v3801_v55 = vmax.f32 %v13866_v25, %v13868_v8 }
 0x3a1   : > { %2604 = vadd.xlane.f32.xlu1 %v2603_v42  ;;  %v13981_v0 = vpop.eup %11610  ;;  %v2498_v42 = vmul.f32 1.442695, %v2412_v58  ;;  %v18195_v58 = vld [vmem:[#allocation52_spill] sm:$0xff] }
 0x3a2   : > { %v13986_v60 = vpop.eup %11612 }
 0x3a3   : > { %2601 = vadd.xlane.f32.xlu0 %v2600_v47  ;;  %v2332_v47 = vpop.xlane.xlu1 %2331  ;;  %11622 = vpow2.f32 %v2498_v42  ;;  %v2335_v50 = vpop.xlane.xlu0 %2334 }
 0x3a4   : > { %10698 = vmatmul.mubr.msk.bf16.gmra.mxu1 %vm2004_vm0, %v13846_v20  ;;  %v2606_v20 = vadd.f32 %v13986_v60, %v13981_v0  ;;  %v2414_v16 = vsub.f32 %v13667_v30, %v2332_v47  ;;  %11624 = vpow2.f32 %v2500_v37  ;;  %v2415_v6 = vsub.f32 %v13669_v36, %v2332_v47 }
 0x3a5   : > { %2388 = vmax.xlane.f32.xlu1 %v2387_v46  ;;  %v13988_v45 = vpop.eup %11614  ;;  %v3804_v36 = vmax.f32 %v13878_v15, %v13882_v18 }
 0x3a6   : > { %v13992_v2 = vpop.eup %11616  ;;  %v2502_v11 = vmul.f32 1.442695, %v2414_v16  ;;  %v2504_v28 = vmul.f32 1.442695, %v2415_v6  ;;  %v18197_v16 = vld [vmem:[#allocation36_spill] sm:$0xff] }
 0x3a7   : > { %2385 = vmax.xlane.f32.xlu0 %v2384_v52  ;;  %v2609_v46 = vadd.f32 %v13992_v2, %v13988_v45  ;;  %v2416_v52 = vsub.f32 %v18195_v58, %v2335_v50 }
 0x3a8   : > { %11626 = vpow2.f32 %v2502_v11 }
 0x3a9   : > { %v2506_v30 = vmul.f32 1.442695, %v2416_v52  ;;  %11628 = vpow2.f32 %v2504_v28  ;;  %v3807_v52 = vmax.f32 %v13890_v44, %v13902_v5  ;;  %v18200_v5 = vld [vmem:[#allocation54_spill] sm:$0xff] }
 0x3aa   : > { %v14002_v42 = vpop.eup %11618 }
 0x3ab   : > { %2607 = vadd.xlane.f32.xlu0 %v2606_v20  ;;  %v2417_v20 = vsub.f32 %v18196_v23, %v2335_v50  ;;  %11630 = vpow2.f32 %v2506_v30 }
 0x3ad   : > { %v2508_v37 = vmul.f32 1.442695, %v2417_v20  ;;  %v14006_v47 = vpop.eup %11620  ;;  %v2341_v20 = vpop.xlane.xlu0 %2340 }
 0x3ae   : > { %v2612_v23 = vadd.f32 %v14006_v47, %v14002_v42  ;;  %v2420_v39 = vsub.f32 %v18202_v35, %v2341_v20 }
 0x3af   : > { %2610 = vadd.xlane.f32.xlu0 %v2609_v46  ;;  %11632 = vpow2.f32 %v2508_v37  ;;  %v18198_v46 = vld [vmem:[#allocation37_spill] sm:$0xff] }
 0x3b0   : > { %v14010_v6 = vpop.eup %11622  ;;  %v2514_v40 = vmul.f32 1.442695, %v2420_v39 }
 0x3b1   : > { %v14014_v50 = vpop.eup %11624 }
 0x3b2   : > { %v2615_v11 = vadd.f32 %v14014_v50, %v14010_v6 }
 0x3b3   : > { %3802 = vmax.xlane.f32.xlu0 %v3801_v55  ;;  %v2338_v55 = vpop.xlane.xlu1 %2337 }
 0x3b4   : > { %v2418_v44 = vsub.f32 %v18200_v5, %v2338_v55 }
 0x3b5   : > { %v14020_v58 = vpop.eup %11626 }
 0x3b6   : > { %6544 = vrot.lane.b32.xlu1 %v18197_v16, %s12809_s26  ;;  %v14024_v28 = vpop.eup %11628  ;;  %v2510_v15 = vmul.f32 1.442695, %v2418_v44 }
 0x3b7   : > { %3805 = vmax.xlane.f32.xlu0 %v3804_v36  ;;  %v14028_v36 = vpop.xlane.xlu1 %2346  ;;  %v2618_v37 = vadd.f32 %v14024_v28, %v14020_v58 }
 0x3b8   : > { %v14026_v30 = vpop.eup %11630  ;;  %11634 = vpow2.f32 %v2510_v15 }
 0x3b9   : > { %18199 = vst [vmem:[#allocation52_spill] sm:$0xff] %v14026_v30 }
 0x3ba   : > { %6546 = vrot.lane.b32.xlu1 %v18198_v46, %s12809_s26 }
 0x3bb   : > { %2613 = vadd.xlane.f32.xlu0 %v2612_v23  ;;  %v2344_v23 = vpop.xlane.xlu0 %2343  ;;  %v14034_v46 = vpop.xlane.xlu1 %2352 }
 0x3bc   : > { %v14032_v16 = vpop.eup %11632 }
 0x3bf   : > { %2616 = vadd.xlane.f32.xlu0 %v2615_v11  ;;  %v2621_v11 = vadd.f32 %v14032_v16, %v14026_v30  ;;  %v14040_v25 = vpop.xlane.xlu0 %2349  ;;  %v18217_v30 = vld [vmem:[#allocation60_spill] sm:$0xff] }
 0x3c3   : > { %3808 = vmax.xlane.f32.xlu0 %v3807_v52  ;;  %v18201_v52 = vld [vmem:[#allocation55_spill] sm:$0xff]  ;;  %v14042_v18 = vpop.xlane.xlu1 %2358  ;;  %v14046_v4 = vpop.xlane.xlu0 %2355 }
 0x3c4   : > { %v2419_v8 = vsub.f32 %v18201_v52, %v2338_v55 }
 0x3c6   : > { %v2512_v38 = vmul.f32 1.442695, %v2419_v8  ;;  %v3810_v8 = vmax.f32 %v13918_v54, %v13928_v49 }
 0x3c7   : > { %2619 = vadd.xlane.f32.xlu0 %v2618_v37  ;;  %v18203_v37 = vld [vmem:[#allocation57_spill] sm:$0xff] }
 0x3c8   : > { %v2421_v3 = vsub.f32 %v18203_v37, %v2341_v20  ;;  %11636 = vpow2.f32 %v2512_v38  ;;  %v14060_v20 = vpop.f32.mrf.mxu1  ;;  %v18211_v37 = vld [vmem:[#allocation39_spill] sm:$0xff] }
 0x3c9   : > { %11638 = vpow2.f32 %v2514_v40  ;;  %v3816_v40 = vmax.f32 %v13968_v48, %v13976_v63 }
 0x3ca   : > { %v2516_v5 = vmul.f32 1.442695, %v2421_v3  ;;  %v14066_v3 = vpop.eup %11634  ;;  %v14072_v52 = vpop.f32.mrf.mxu1 }
 0x3cb   : > { %2622 = vadd.xlane.f32.xlu0 %v2621_v11  ;;  %v14048_v34 = vpop.xlane.xlu1 %2364  ;;  %v14050_v11 = vpop.xlane.xlu0 %2361  ;;  %18209 = vst [vmem:[#allocation56_spill] sm:$0xff] %v14066_v3 }
 0x3cc   : > { %11640 = vpow2.f32 %v2516_v5 }
 0x3cf   : > { %v14052_v55 = vpop.xlane.xlu1 %2367 }
 0x3d0   : > { %18204 = vst [vmem:[#allocation53_spill] sm:$0xff] %v14052_v55 }
 0x3d3   : > { %v14054_v44 = vpop.xlane.xlu0 %2370 }
 0x3d4   : > { %18205 = vst [vmem:[#allocation36_spill] sm:$0xff] %v14054_v44  ;;  %v18216_v44 = vld [vmem:[#allocation59_spill] sm:$0xff] }
 0x3d5   : > { %v14070_v39 = vpop.eup %11636  ;;  %v2424_v55 = vsub.f32 %v18216_v44, %v14028_v36 }
 0x3d6   : > { %18210 = vst [vmem:[#allocation57_spill] sm:$0xff] %v14070_v39  ;;  %v2624_v54 = vadd.f32 %v14070_v39, %v14066_v3 }
 0x3d7   : > { %v14062_v15 = vpop.xlane.xlu0 %2373 }
 0x3d8   : > { %18207 = vst [vmem:[#allocation54_spill] sm:$0xff] %v14062_v15  ;;  %v2422_v15 = vsub.f32 %v13697_v1, %v2344_v23  ;;  %v3813_v1 = vmax.f32 %v13942_v12, %v13954_v33 }
 0x3da   : > { %v2518_v39 = vmul.f32 1.442695, %v2422_v15 }
 0x3db   : > { %v14056_v35 = vpop.xlane.xlu1 %2376 }
 0x3dc   : > { %18206 = vst [vmem:[#allocation37_spill] sm:$0xff] %v14056_v35  ;;  %v14084_v35 = vpop.f32.mrf.mxu1  ;;  %11642 = vpow2.f32 %v2518_v39 }
 0x3de   : > { %3811 = vmax.xlane.f32.xlu1 %v3810_v8  ;;  %v14078_v8 = vpop.eup %11638 }
 0x3df   : > { %v14064_v38 = vpop.xlane.xlu1 %2379  ;;  %18213 = vst [vmem:[#allocation91_spill] sm:$0xff] %v14078_v8 }
 0x3e0   : > { %18208 = vst [vmem:[#allocation55_spill] sm:$0xff] %v14064_v38  ;;  %v14082_v38 = vpop.eup %11640 }
 0x3e1   : > { %6548 = vrot.lane.b32.xlu0 %v18211_v37, %s12809_s26  ;;  %18214 = vst [vmem:[#allocation92_spill] sm:$0xff] %v14082_v38  ;;  %v14090_v37 = vpop.f32.mrf.mxu1 }
 0x3e2   : > { %3817 = vmax.xlane.f32.xlu1 %v3816_v40  ;;  %v2627_v40 = vadd.f32 %v14082_v38, %v14078_v8  ;;  %v2425_v8 = vsub.f32 %v18217_v30, %v14028_v36  ;;  %v2522_v38 = vmul.f32 1.442695, %v2424_v55 }
 0x3e3   : > { %v6657_v5 = vpop.permute.xlu1 %6656  ;;  %v14076_v49 = vpop.xlane.xlu0 %2382 }
 0x3e4   : > { %18212 = vst [vmem:[#allocation39_spill] sm:$0xff] %v14076_v49  ;;  %v6737_v49 = vsel %vm2004_vm0, %v6657_v5, 0  ;;  %v2524_v5 = vmul.f32 1.442695, %v2425_v8  ;;  %v2428_v8 = vsub.f32 %v13718_v14, %v14034_v46 }
 0x3e6   : > { %2625 = vadd.xlane.f32.xlu1 %v2624_v54  ;;  %v18215_v54 = vld [vmem:[#allocation58_spill] sm:$0xff] }
 0x3e7   : > { %v6673_v63 = vpop.permute.xlu1 %6672  ;;  %v4987_v48 = vpop.permute.xlu0 %4986  ;;  %v2423_v3 = vsub.f32 %v18215_v54, %v2344_v23  ;;  %v3819_v23 = vmax.f32 %v14060_v20, %v14072_v52  ;;  %v18220_v54 = vld [vmem:[#allocation62_spill] sm:$0xff] }
 0x3e8   : > { %10699 = vmatprep.mubr.msk.bf16.mxu1 %vm2004_vm0, %v4987_v48  ;;  %11220 = vmatprep.subr.msk.bf16.mxu1 %vm2004_vm0, %v6673_v63 }
 0x3e9   : > { %10700 = vmatmul.mubr.msk.bf16.gmra.mxu1 %vm2004_vm0, %v4987_v48  ;;  %v2520_v63 = vmul.f32 1.442695, %v2423_v3  ;;  %v14104_v48 = vpop.eup %11642  ;;  %v18219_v3 = vld [vmem:[#allocation61_spill] sm:$0xff] }
 0x3ea   : > { %10828 = vmatpush3.bf16.xpose.msra.mxu1 %v6737_v49  ;;  %2628 = vadd.xlane.f32.xlu1 %v2627_v40  ;;  %v18218_v49 = vld [vmem:[#allocation38_spill] sm:$0xff]  ;;  %v2427_v39 = vsub.f32 %v18219_v3, %v14040_v25 }
 0x3eb   : > { %11644 = vpow2.f32 %v2520_v63  ;;  %v2429_v63 = vsub.f32 %v18220_v54, %v14034_v46  ;;  %v3822_v46 = vmax.f32 %v14084_v35, %v14090_v37  ;;  %v18223_v54 = vld [vmem:[#allocation41_spill] sm:$0xff] }
 0x3ec   : > { %11646 = vpow2.f32 %v2522_v38  ;;  %v2426_v38 = vsub.f32 %v13711_v22, %v14040_v25 }
 0x3ed   : > { %11648 = vpow2.f32 %v2524_v5  ;;  %v2528_v5 = vmul.f32 1.442695, %v2427_v39 }
 0x3ee   : > { %v2526_v40 = vmul.f32 1.442695, %v2426_v38 }
 0x3f0   : > { %11650 = vpow2.f32 %v2526_v40 }
 0x3f1   : > { %11652 = vpow2.f32 %v2528_v5 }
 0x3f8   : > { %v14108_v44 = vpop.eup %11644 }
 0x3f9   : > { %v14110_v30 = vpop.eup %11646  ;;  %v2630_v36 = vadd.f32 %v14108_v44, %v14104_v48 }
 0x3fa   : > { %v14114_v55 = vpop.eup %11648 }
 0x3fb   : > { %6550 = vrot.lane.b32.xlu1 %v18218_v49, %s12809_s26  ;;  %v2633_v15 = vadd.f32 %v14114_v55, %v14110_v30  ;;  %v14126_v49 = vpop.f32.mrf.mxu1 }
 0x3fd   : > { %v14136_v39 = vpop.eup %11650 }
 0x3fe   : > { %v14140_v40 = vpop.eup %11652 }
 0x400   : > { %3814 = vmax.xlane.f32.xlu0 %v3813_v1  ;;  %v2530_v1 = vmul.f32 1.442695, %v2428_v8 }
 0x402   : > { %11654 = vpow2.f32 %v2530_v1 }
 0x404   : > { %3820 = vmax.xlane.f32.xlu0 %v3819_v23  ;;  %v2532_v23 = vmul.f32 1.442695, %v2429_v63 }
 0x406   : > { %11656 = vpow2.f32 %v2532_v23  ;;  %v2636_v23 = vadd.f32 %v14140_v40, %v14136_v39 }
 0x408   : > { %2631 = vadd.xlane.f32.xlu0 %v2630_v36  ;;  %v14128_v36 = vpop.f32.mrf.mxu1 }
 0x40a   : > { %v14130_v25 = vpop.f32.mrf.mxu1 }
 0x40b   : > { %18221 = vst [vmem:[#allocation58_spill] sm:$0xff] %v14130_v25 }
 0x40c   : > { %2634 = vadd.xlane.f32.xlu0 %v2633_v15  ;;  %v14134_v38 = vpop.f32.mrf.mxu1 }
 0x40d   : > { %18222 = vst [vmem:[#allocation59_spill] sm:$0xff] %v14134_v38  ;;  %v3828_v8 = vmax.f32 %v14130_v25, %v14134_v38  ;;  %v2430_v38 = vsub.f32 %v13726_v7, %v14046_v4 }
 0x40f   : > { %v14145_v63 = vpop.eup %11654 }
 0x413   : > { %v14147_v1 = vpop.eup %11656 }
 0x418   : > { %v2584_v22 = vpop.xlane.xlu0 %2583 }
 0x419   : > { %11658 = vrcp.f32 %v2584_v22 }
 0x41a   : > { %v2593_v14 = vpop.xlane.xlu1 %2592 }
 0x41b   : > { %11660 = vrcp.f32 %v2593_v14 }
 0x41c   : > { %v2587_v15 = vpop.xlane.xlu0 %2586 }
 0x41d   : > { %11662 = vrcp.f32 %v2587_v15 }
 0x41f   : > { %3823 = vmax.xlane.f32.xlu1 %v3822_v46 }
 0x420   : > { %v2590_v3 = vpop.xlane.xlu0 %2589 }
 0x421   : > { %11664 = vrcp.f32 %v2590_v3 }
 0x422   : > { %6552 = vrot.lane.b32.xlu0 %v18223_v54, %s12809_s26 }
 0x423   : > { %3829 = vmax.xlane.f32.xlu1 %v3828_v8  ;;  %v2639_v8 = vadd.f32 %v14147_v1, %v14145_v63 }
 0x424   : > { %v2596_v5 = vpop.xlane.xlu0 %2595 }
 0x425   : > { %11666 = vrcp.f32 %v2596_v5 }
 0x426   : > { %v11659_v22 = vpop.eup %11658 }
 0x427   : > { %v2711_v14 = vmul.f32 %v11659_v22, %v13896_v27  ;;  %2637 = vadd.xlane.f32.xlu1 %v2636_v23  ;;  %v2710_v15 = vmul.f32 %v11659_v22, %v13894_v56 }
 0x428   : > { %v11661_v46 = vpop.eup %11660  ;;  %v2599_v3 = vpop.xlane.xlu0 %2598 }
 0x429   : > { %2775 = vst [vmem:[%s14153_s3 + $0x8] sm:$0xff] %v2711_v14  ;;  %11668 = vrcp.f32 %v2599_v3  ;;  %2774 = vst [vmem:[%s14153_s3] sm:$0xff] %v2710_v15  ;;  %v2717_v27 = vmul.f32 %v11661_v46, %v13914_v17  ;;  %v2716_v56 = vmul.f32 %v11661_v46, %v13908_v51 }
 0x42a   : > { %v11663_v54 = vpop.eup %11662  ;;  %v2605_v5 = vpop.xlane.xlu1 %2604 }
 0x42b   : > { %v2713_v23 = vmul.f32 %v11663_v54, %v13900_v13  ;;  %11670 = vrcp.f32 %v2605_v5  ;;  %2640 = vadd.xlane.f32.xlu1 %v2639_v8  ;;  %v2712_v22 = vmul.f32 %v11663_v54, %v13898_v57  ;;  %2781 = vst [vmem:[%s14153_s3 + $0x38] sm:$0xff] %v2717_v27  ;;  %2780 = vst [vmem:[%s14153_s3 + $0x30] sm:$0xff] %v2716_v56  ;;  %v14174_v8 = vpop.f32.mrf.mxu1  ;;  %v2534_v54 = vmul.f32 1.442695, %v2430_v38 }
 0x42c   : > { %v2602_v3 = vpop.xlane.xlu0 %2601  ;;  %v2431_v13 = vsub.f32 %v13728_v21, %v14046_v4 }
 0x42d   : > { %2777 = vst [vmem:[%s14153_s3 + $0x18] sm:$0xff] %v2713_v23  ;;  %v2839_v25 = vpack.c.bf16 %v2713_v23, %v2711_v14  ;;  %11672 = vrcp.f32 %v2602_v3  ;;  %2776 = vst [vmem:[%s14153_s3 + $0x10] sm:$0xff] %v2712_v22  ;;  %v2838_v51 = vpack.c.bf16 %v2712_v22, %v2710_v15  ;;  %v2432_v23 = vsub.f32 %v13736_v10, %v14042_v18  ;;  %v14186_v22 = vpop.f32.mrf.mxu1 }
 0x42e   : > { %v11665_v17 = vpop.eup %11664  ;;  %v14171_v46 = vpop.xlane.xlu1 %2388  ;;  %v2536_v5 = vmul.f32 1.442695, %v2431_v13  ;;  %11674 = vpow2.f32 %v2534_v54 }
 0x42f   : > { %3030 = vmatprep.mubr.bf16.mxu0 %v2839_v25  ;;  %v2715_v57 = vmul.f32 %v11665_v17, %v13926_v29  ;;  %v2714_v14 = vmul.f32 %v11665_v17, %v13921_v32  ;;  %v18224_v29 = vld [vmem:[#allocation63_spill] sm:$0xff]  ;;  %v2538_v3 = vmul.f32 1.442695, %v2432_v23 }
 0x430   : > { %3031 = vmatmul.mubr.bf16.vlgmr.msra.gmra.mxu0 %v2838_v51  ;;  %v14176_v7 = vpop.xlane.xlu0 %2385  ;;  %v2433_v25 = vsub.f32 %v18224_v29, %v14042_v18  ;;  %11676 = vpow2.f32 %v2536_v5 }
 0x431   : > { %2779 = vst [vmem:[%s14153_s3 + $0x28] sm:$0xff] %v2715_v57  ;;  %v2841_v4 = vpack.c.bf16 %v2717_v27, %v2715_v57  ;;  %2778 = vst [vmem:[%s14153_s3 + $0x20] sm:$0xff] %v2714_v14  ;;  %v2840_v18 = vpack.c.bf16 %v2716_v56, %v2714_v14  ;;  %v14196_v57 = vpop.f32.mrf.mxu1 }
 0x432   : > { %v11667_v15 = vpop.eup %11666  ;;  %v6545_v21 = vpop.permute.xlu1 %6544  ;;  %v2540_v17 = vmul.f32 1.442695, %v2433_v25 }
 0x433   : > { %10829 = vmatprep.mubr.msk.bf16.mxu1 %vm2004_vm0, %v6545_v21  ;;  %3038 = vmatprep.mubr.bf16.mxu0 %v2841_v4  ;;  %v2719_v38 = vmul.f32 %v11667_v15, %v13940_v61  ;;  %v2718_v10 = vmul.f32 %v11667_v15, %v13933_v26  ;;  %v14205_v23 = vpop.f32.mrf.mxu1 }
 0x434   : > { %10830 = vmatmul.mubr.msk.bf16.vlgmr.msra.gmra.mxu1 %vm2004_vm0, %v6545_v21  ;;  %v2608_v32 = vpop.xlane.xlu0 %2607  ;;  %18225 = vst [vmem:[#allocation60_spill] sm:$0xff] %v14205_v23  ;;  %v18226_v21 = vld [vmem:[#allocation40_spill] sm:$0xff] }
 0x435   : > { %2783 = vst [vmem:[%s14153_s3 + $0x48] sm:$0xff] %v2719_v38  ;;  %2782 = vst [vmem:[%s14153_s3 + $0x40] sm:$0xff] %v2718_v10  ;;  %11678 = vrcp.f32 %v2608_v32  ;;  %v3831_v32 = vmax.f32 %v14174_v8, %v14186_v22 }
 0x436   : > { %v11669_v27 = vpop.eup %11668  ;;  %v6547_v51 = vpop.permute.xlu1 %6546 }
 0x437   : > { %10831 = vmatprep.mubr.msk.bf16.mxu1 %vm2004_vm0, %v6547_v51  ;;  %v2721_v13 = vmul.f32 %v11669_v27, %v13948_v9  ;;  %v2720_v61 = vmul.f32 %v11669_v27, %v13944_v53 }
 0x438   : > { %v11671_v26 = vpop.eup %11670  ;;  %3039 = vmatmul.mubr.bf16.gmra.mxu0 %v2840_v18  ;;  %v2611_v54 = vpop.xlane.xlu0 %2610 }
 0x439   : > { %11680 = vrcp.f32 %v2611_v54  ;;  %2785 = vst [vmem:[%s14153_s3 + $0x58] sm:$0xff] %v2721_v13  ;;  %v2843_v56 = vpack.c.bf16 %v2721_v13, %v2719_v38  ;;  %2784 = vst [vmem:[%s14153_s3 + $0x50] sm:$0xff] %v2720_v61  ;;  %v2725_v14 = vmul.f32 %v11671_v26, %v13964_v41  ;;  %v2724_v9 = vmul.f32 %v11671_v26, %v13958_v31 }
 0x43a   : > { %v11673_v15 = vpop.eup %11672  ;;  %11682 = vpow2.f32 %v2538_v3  ;;  %v2842_v31 = vpack.c.bf16 %v2720_v61, %v2718_v10  ;;  %v3825_v41 = vmax.f32 %v14126_v49, %v14128_v36 }
 0x43b   : > { %11684 = vpow2.f32 %v2540_v17  ;;  %3046 = vmatprep.mubr.bf16.mxu0 %v2843_v56  ;;  %v2723_v53 = vmul.f32 %v11673_v15, %v13952_v24  ;;  %2789 = vst [vmem:[%s14153_s3 + $0x78] sm:$0xff] %v2725_v14  ;;  %v2722_v5 = vmul.f32 %v11673_v15, %v13950_v62  ;;  %2788 = vst [vmem:[%s14153_s3 + $0x70] sm:$0xff] %v2724_v9  ;;  %v14219_v62 = vpop.eup %11674  ;;  %v18227_v15 = vld [vmem:[#allocation64_spill] sm:$0xff] }
 0x43c   : > { %6554 = vrot.lane.b32.xlu1 %v18226_v21, %s12809_s26  ;;  %10832 = vmatmul.mubr.msk.bf16.gmra.mxu1 %vm2004_vm0, %v6547_v51  ;;  %v14210_v4 = vpop.xlane.xlu0 %3802 }
 0x43d   : > { %2787 = vst [vmem:[%s14153_s3 + $0x68] sm:$0xff] %v2723_v53  ;;  %2786 = vst [vmem:[%s14153_s3 + $0x60] sm:$0xff] %v2722_v5  ;;  %v2845_v24 = vpack.c.bf16 %v2725_v14, %v2723_v53  ;;  %v14221_v25 = vpop.eup %11676  ;;  %v2844_v18 = vpack.c.bf16 %v2724_v9, %v2722_v5  ;;  %v2435_v9 = vsub.f32 %v18227_v15, %v14050_v11  ;;  %v18230_v15 = vld [vmem:[#allocation42_spill] sm:$0xff] }
 0x43e   : > { %v2642_v13 = vadd.f32 %v14221_v25, %v14219_v62 }
 0x440   : > { %3047 = vmatmul.mubr.bf16.gmra.mxu0 %v2842_v31  ;;  %v14217_v29 = vpop.xlane.xlu0 %3805  ;;  %v2436_v31 = vsub.f32 %v13756_v19, %v14048_v34 }
 0x441   : > { %3054 = vmatprep.mubr.bf16.mxu0 %v2845_v24  ;;  %3826 = vmax.xlane.f32.xlu0 %v3825_v41  ;;  %v2544_v24 = vmul.f32 1.442695, %v2435_v9 }
 0x442   : > { %v11679_v38 = vpop.eup %11678 }
 0x443   : > { %v2727_v27 = vmul.f32 %v11679_v38, %v13986_v60  ;;  %v2726_v3 = vmul.f32 %v11679_v38, %v13981_v0 }
 0x444   : > { %v2614_v10 = vpop.xlane.xlu0 %2613 }
 0x445   : > { %3832 = vmax.xlane.f32.xlu0 %v3831_v32  ;;  %11686 = vrcp.f32 %v2614_v10  ;;  %2791 = vst [vmem:[%s14153_s3 + $0x88] sm:$0xff] %v2727_v27  ;;  %2790 = vst [vmem:[%s14153_s3 + $0x80] sm:$0xff] %v2726_v3 }
 0x446   : > { %v11681_v51 = vpop.eup %11680 }
 0x447   : > { %v14227_v17 = vpop.eup %11682  ;;  %v2729_v61 = vmul.f32 %v11681_v51, %v13992_v2  ;;  %v2728_v26 = vmul.f32 %v11681_v51, %v13988_v45  ;;  %v2434_v2 = vsub.f32 %v13746_v43, %v14050_v11  ;;  %v14245_v45 = vpop.f32.mrf.mxu1  ;;  %v2437_v43 = vsub.f32 %v13762_v59, %v14048_v34 }
 0x448   : > { %v14235_v54 = vpop.eup %11684  ;;  %3055 = vmatmul.mubr.bf16.gmra.mxu0 %v2844_v18  ;;  %v2617_v60 = vpop.xlane.xlu0 %2616  ;;  %v2546_v11 = vmul.f32 1.442695, %v2436_v31 }
 0x449   : > { %11688 = vrcp.f32 %v2617_v60  ;;  %2643 = vadd.xlane.f32.xlu0 %v2642_v13  ;;  %2793 = vst [vmem:[%s14153_s3 + $0x98] sm:$0xff] %v2729_v61  ;;  %v2847_v0 = vpack.c.bf16 %v2729_v61, %v2727_v27  ;;  %2792 = vst [vmem:[%s14153_s3 + $0x90] sm:$0xff] %v2728_v26  ;;  %v2645_v56 = vadd.f32 %v14235_v54, %v14227_v17  ;;  %v2542_v5 = vmul.f32 1.442695, %v2434_v2  ;;  %v14251_v41 = vpop.f32.mrf.mxu1 }
 0x44a   : > { %v2846_v53 = vpack.c.bf16 %v2728_v26, %v2726_v3  ;;  %v2548_v51 = vmul.f32 1.442695, %v2437_v43 }
 0x44b   : > { %3062 = vmatprep.mubr.bf16.mxu0 %v2847_v0  ;;  %v14257_v3 = vpop.f32.mrf.mxu1 }
 0x44c   : > { %v14243_v14 = vpop.xlane.xlu0 %3808  ;;  %18228 = vst [vmem:[#allocation38_spill] sm:$0xff] %v14257_v3 }
 0x44d   : > { %2646 = vadd.xlane.f32.xlu0 %v2645_v56 }
 0x450   : > { %3063 = vmatmul.mubr.bf16.gmra.mxu0 %v2846_v53  ;;  %v2620_v21 = vpop.xlane.xlu0 %2619  ;;  %v18231_v53 = vld [vmem:[#allocation52_spill] sm:$0xff] }
 0x451   : > { %11690 = vrcp.f32 %v2620_v21 }
 0x452   : > { %v11687_v32 = vpop.eup %11686  ;;  %11692 = vpow2.f32 %v2542_v5 }
 0x453   : > { %v2731_v10 = vmul.f32 %v11687_v32, %v14006_v47  ;;  %v2730_v19 = vmul.f32 %v11687_v32, %v14002_v42  ;;  %v14266_v42 = vpop.f32.mrf.mxu1 }
 0x454   : > { %v2623_v38 = vpop.xlane.xlu0 %2622  ;;  %18229 = vst [vmem:[#allocation61_spill] sm:$0xff] %v14266_v42  ;;  %v3840_v56 = vmax.f32 %v14257_v3, %v14266_v42 }
 0x455   : > { %11694 = vrcp.f32 %v2623_v38  ;;  %2795 = vst [vmem:[%s14153_s3 + $0xa8] sm:$0xff] %v2731_v10  ;;  %2794 = vst [vmem:[%s14153_s3 + $0xa0] sm:$0xff] %v2730_v19  ;;  %v14299_v38 = vpop.f32.mrf.mxu1 }
 0x456   : > { %v11689_v27 = vpop.eup %11688  ;;  %11696 = vpow2.f32 %v2544_v24  ;;  %18232 = vst [vmem:[#allocation62_spill] sm:$0xff] %v14299_v38 }
 0x457   : > { %v2733_v59 = vmul.f32 %v11689_v27, %v14014_v50  ;;  %v2732_v34 = vmul.f32 %v11689_v27, %v14010_v6  ;;  %11698 = vpow2.f32 %v2546_v11  ;;  %v3834_v6 = vmax.f32 %v14196_v57, %v14205_v23  ;;  %v18233_v11 = vld [vmem:[#allocation53_spill] sm:$0xff] }
 0x458   : > { %v6549_v18 = vpop.permute.xlu0 %6548  ;;  %11700 = vpow2.f32 %v2548_v51  ;;  %v18235_v51 = vld [vmem:[#allocation66_spill] sm:$0xff] }
 0x459   : > { %10833 = vmatprep.mubr.msk.bf16.mxu1 %vm2004_vm0, %v6549_v18  ;;  %2797 = vst [vmem:[%s14153_s3 + $0xb8] sm:$0xff] %v2733_v59  ;;  %v2849_v13 = vpack.c.bf16 %v2733_v59, %v2731_v10  ;;  %2796 = vst [vmem:[%s14153_s3 + $0xb0] sm:$0xff] %v2732_v34  ;;  %v2848_v47 = vpack.c.bf16 %v2732_v34, %v2730_v19  ;;  %v18234_v10 = vld [vmem:[#allocation65_spill] sm:$0xff]  ;;  %v2439_v59 = vsub.f32 %v18235_v51, %v18233_v11  ;;  %v14305_v34 = vpop.f32.mrf.mxu1  ;;  %v18245_v51 = vld [vmem:[#allocation92_spill] sm:$0xff] }
 0x45a   : > { %10834 = vmatmul.mubr.msk.bf16.gmra.mxu1 %vm2004_vm0, %v6549_v18  ;;  %v2438_v19 = vsub.f32 %v18234_v10, %v18233_v11  ;;  %18236 = vst [vmem:[#allocation41_spill] sm:$0xff] %v14305_v34  ;;  %v18244_v10 = vld [vmem:[#allocation56_spill] sm:$0xff] }
 0x45b   : > { %3070 = vmatprep.mubr.bf16.mxu0 %v2849_v13  ;;  %v18237_v13 = vld [vmem:[#allocation36_spill] sm:$0xff] }
 0x45c   : > { %3071 = vmatmul.mubr.bf16.gmra.mxu0 %v2848_v47  ;;  %v2550_v18 = vmul.f32 1.442695, %v2438_v19  ;;  %v18238_v47 = vld [vmem:[#allocation67_spill] sm:$0xff] }
 0x45e   : > { %v11691_v50 = vpop.eup %11690 }
 0x45f   : > { %v14271_v61 = vpop.eup %11692  ;;  %v2735_v26 = vmul.f32 %v11691_v50, %v14024_v28  ;;  %v2734_v60 = vmul.f32 %v11691_v50, %v14020_v58 }
 0x460   : > { %3835 = vmax.xlane.f32.xlu1 %v3834_v6  ;;  %v2440_v6 = vsub.f32 %v18238_v47, %v18237_v13 }
 0x461   : > { %2799 = vst [vmem:[%s14153_s3 + $0xc8] sm:$0xff] %v2735_v26  ;;  %2798 = vst [vmem:[%s14153_s3 + $0xc0] sm:$0xff] %v2734_v60 }
 0x462   : > { %v11695_v0 = vpop.eup %11694 }
 0x463   : > { %v14277_v2 = vpop.eup %11696  ;;  %6556 = vrot.lane.b32.xlu0 %v18230_v15, %s12809_s26  ;;  %v2737_v9 = vmul.f32 %v11695_v0, %v14032_v16  ;;  %v2736_v5 = vmul.f32 %v11695_v0, %v18231_v53  ;;  %v2554_v15 = vmul.f32 1.442695, %v2440_v6  ;;  %v3843_v6 = vmax.f32 %v14299_v38, %v14305_v34 }
 0x464   : > { %3841 = vmax.xlane.f32.xlu1 %v3840_v56  ;;  %v14287_v21 = vpop.eup %11698  ;;  %v2648_v31 = vadd.f32 %v14277_v2, %v14271_v61  ;;  %v14311_v56 = vpop.f32.mrf.mxu1 }
 0x465   : > { %2801 = vst [vmem:[%s14153_s3 + $0xd8] sm:$0xff] %v2737_v9  ;;  %v2851_v28 = vpack.c.bf16 %v2737_v9, %v2735_v26  ;;  %2800 = vst [vmem:[%s14153_s3 + $0xd0] sm:$0xff] %v2736_v5  ;;  %v2850_v58 = vpack.c.bf16 %v2736_v5, %v2734_v60  ;;  %v14291_v24 = vpop.eup %11700  ;;  %v2552_v26 = vmul.f32 1.442695, %v2439_v59  ;;  %v18239_v60 = vld [vmem:[#allocation68_spill] sm:$0xff] }
 0x466   : > { %v2651_v16 = vadd.f32 %v14291_v24, %v14287_v21  ;;  %v2441_v0 = vsub.f32 %v18239_v60, %v18237_v13  ;;  %18240 = vst [vmem:[#allocation63_spill] sm:$0xff] %v14311_v56  ;;  %v14314_v5 = vpop.f32.mrf.mxu1 }
 0x467   : > { %v14293_v43 = vpop.xlane.xlu1 %3811  ;;  %3078 = vmatprep.mubr.bf16.mxu0 %v2851_v28  ;;  %18241 = vst [vmem:[#allocation40_spill] sm:$0xff] %v14314_v5  ;;  %v18242_v28 = vld [vmem:[#allocation43_spill] sm:$0xff] }
 0x468   : > { %2649 = vadd.xlane.f32.xlu1 %v2648_v31  ;;  %3079 = vmatmul.mubr.bf16.gmra.mxu0 %v2850_v58  ;;  %v2556_v53 = vmul.f32 1.442695, %v2441_v0  ;;  %v3837_v31 = vmax.f32 %v14245_v45, %v14251_v41 }
 0x46b   : > { %v14297_v32 = vpop.xlane.xlu1 %3817 }
 0x46c   : > { %2652 = vadd.xlane.f32.xlu1 %v2651_v16  ;;  %v18243_v16 = vld [vmem:[#allocation57_spill] sm:$0xff] }
 0x46f   : > { %v2626_v27 = vpop.xlane.xlu1 %2625 }
 0x470   : > { %11702 = vrcp.f32 %v2626_v27 }
 0x473   : > { %v2629_v50 = vpop.xlane.xlu1 %2628 }
 0x474   : > { %11704 = vrcp.f32 %v2629_v50 }
 0x475   : > { %11706 = vpow2.f32 %v2550_v18  ;;  %v18246_v18 = vld [vmem:[#allocation91_spill] sm:$0xff] }
 0x476   : > { %11708 = vpow2.f32 %v2552_v26 }
 0x477   : > { %v6551_v9 = vpop.permute.xlu1 %6550  ;;  %11710 = vpow2.f32 %v2554_v15 }
 0x478   : > { %10835 = vmatprep.mubr.msk.bf16.mxu1 %vm2004_vm0, %v6551_v9  ;;  %11712 = vpow2.f32 %v2556_v53 }
 0x479   : > { %10836 = vmatmul.mubr.msk.bf16.gmra.mxu1 %vm2004_vm0, %v6551_v9 }
 0x47d   : > { %6558 = vrot.lane.b32.xlu1 %v18242_v28, %s12809_s26  ;;  %v11703_v58 = vpop.eup %11702 }
 0x47e   : > { %v2739_v11 = vmul.f32 %v11703_v58, %v18243_v16  ;;  %v2738_v19 = vmul.f32 %v11703_v58, %v18244_v10  ;;  %v18247_v58 = vld [vmem:[#allocation54_spill] sm:$0xff]  ;;  %v14349_v10 = vpop.f32.mrf.mxu1 }
 0x47f   : > { %18249 = vst [vmem:[#allocation64_spill] sm:$0xff] %v14349_v10 }
 0x480   : > { %2803 = vst [vmem:[%s14153_s3 + $0xe8] sm:$0xff] %v2739_v11  ;;  %2802 = vst [vmem:[%s14153_s3 + $0xe0] sm:$0xff] %v2738_v19 }
 0x481   : > { %v11705_v27 = vpop.eup %11704 }
 0x482   : > { %3838 = vmax.xlane.f32.xlu0 %v3837_v31  ;;  %v2741_v59 = vmul.f32 %v11705_v27, %v18245_v51  ;;  %v2740_v13 = vmul.f32 %v11705_v27, %v18246_v18  ;;  %v14327_v47 = vpop.eup %11706  ;;  %v18248_v31 = vld [vmem:[#allocation69_spill] sm:$0xff] }
 0x483   : > { %v14333_v60 = vpop.eup %11708  ;;  %v2442_v16 = vsub.f32 %v18248_v31, %v18247_v58  ;;  %v18251_v18 = vld [vmem:[#allocation37_spill] sm:$0xff] }
 0x484   : > { %2805 = vst [vmem:[%s14153_s3 + $0xf8] sm:$0xff] %v2741_v59  ;;  %v2853_v50 = vpack.c.bf16 %v2741_v59, %v2739_v11  ;;  %2804 = vst [vmem:[%s14153_s3 + $0xf0] sm:$0xff] %v2740_v13  ;;  %v2852_v26 = vpack.c.bf16 %v2740_v13, %v2738_v19  ;;  %v14335_v0 = vpop.eup %11710  ;;  %v2654_v15 = vadd.f32 %v14333_v60, %v14327_v47  ;;  %v18250_v19 = vld [vmem:[#allocation70_spill] sm:$0xff]  ;;  %v18252_v13 = vld [vmem:[#allocation71_spill] sm:$0xff] }
 0x485   : > { %v14339_v9 = vpop.eup %11712  ;;  %v2443_v27 = vsub.f32 %v18250_v19, %v18247_v58  ;;  %v2558_v51 = vmul.f32 1.442695, %v2442_v16 }
 0x486   : > { %3086 = vmatprep.mubr.bf16.mxu0 %v2853_v50  ;;  %3844 = vmax.xlane.f32.xlu0 %v3843_v6  ;;  %v2657_v28 = vadd.f32 %v14339_v9, %v14335_v0  ;;  %v2444_v6 = vsub.f32 %v18252_v13, %v18251_v18  ;;  %v14355_v50 = vpop.f32.mrf.mxu1 }
 0x487   : > { %3087 = vmatmul.mubr.bf16.gmra.mxu0 %v2852_v26  ;;  %18253 = vst [vmem:[#allocation42_spill] sm:$0xff] %v14355_v50  ;;  %v2560_v26 = vmul.f32 1.442695, %v2443_v27  ;;  %v3846_v27 = vmax.f32 %v14311_v56, %v14314_v5 }
 0x488   : > { %v14359_v3 = vpop.f32.mrf.mxu1 }
 0x489   : > { %v14341_v53 = vpop.xlane.xlu0 %3814  ;;  %18255 = vst [vmem:[#allocation52_spill] sm:$0xff] %v14359_v3 }
 0x48a   : > { %2655 = vadd.xlane.f32.xlu0 %v2654_v15  ;;  %v18254_v15 = vld [vmem:[#allocation72_spill] sm:$0xff]  ;;  %v14362_v19 = vpop.f32.mrf.mxu1 }
 0x48b   : > { %v2445_v42 = vsub.f32 %v18254_v15, %v18251_v18  ;;  %18256 = vst [vmem:[#allocation53_spill] sm:$0xff] %v14362_v19  ;;  %v18257_v15 = vld [vmem:[#allocation45_spill] sm:$0xff] }
 0x48d   : > { %v14347_v11 = vpop.xlane.xlu0 %3820  ;;  %v2564_v58 = vmul.f32 1.442695, %v2445_v42 }
 0x48e   : > { %2658 = vadd.xlane.f32.xlu0 %v2657_v28  ;;  %v2562_v28 = vmul.f32 1.442695, %v2444_v6  ;;  %v3852_v6 = vmax.f32 %v14359_v3, %v14362_v19 }
 0x491   : > { %v2632_v59 = vpop.xlane.xlu0 %2631 }
 0x492   : > { %11714 = vrcp.f32 %v2632_v59 }
 0x493   : > { %11716 = vpow2.f32 %v2558_v51 }
 0x495   : > { %v2635_v31 = vpop.xlane.xlu0 %2634 }
 0x496   : > { %11718 = vrcp.f32 %v2635_v31 }
 0x497   : > { %11720 = vpow2.f32 %v2560_v26 }
 0x498   : > { %11722 = vpow2.f32 %v2562_v28 }
 0x499   : > { %v6553_v16 = vpop.permute.xlu0 %6552  ;;  %11724 = vpow2.f32 %v2564_v58 }
 0x49a   : > { %10837 = vmatprep.mubr.msk.bf16.mxu1 %vm2004_vm0, %v6553_v16 }
 0x49b   : > { %10838 = vmatmul.mubr.msk.bf16.gmra.mxu1 %vm2004_vm0, %v6553_v16 }
 0x49f   : > { %v11715_v51 = vpop.eup %11714 }
 0x4a0   : > { %v14367_v59 = vpop.eup %11716  ;;  %v2743_v42 = vmul.f32 %v11715_v51, %v14108_v44  ;;  %v2742_v18 = vmul.f32 %v11715_v51, %v14104_v48 }
 0x4a1   : > { %3847 = vmax.xlane.f32.xlu1 %v3846_v27 }
 0x4a2   : > { %2807 = vst [vmem:[%s14153_s3 + $0x108] sm:$0xff] %v2743_v42  ;;  %2806 = vst [vmem:[%s14153_s3 + $0x100] sm:$0xff] %v2742_v18 }
 0x4a3   : > { %v11719_v13 = vpop.eup %11718 }
 0x4a4   : > { %v14373_v26 = vpop.eup %11720  ;;  %6560 = vrot.lane.b32.xlu0 %v18257_v15, %s12809_s26  ;;  %v2745_v31 = vmul.f32 %v11719_v13, %v14114_v55  ;;  %v2744_v28 = vmul.f32 %v11719_v13, %v14110_v30  ;;  %v18260_v13 = vld [vmem:[#allocation73_spill] sm:$0xff] }
 0x4a5   : > { %3853 = vmax.xlane.f32.xlu1 %v3852_v6  ;;  %v14383_v58 = vpop.eup %11722  ;;  %v2660_v16 = vadd.f32 %v14373_v26, %v14367_v59 }
 0x4a6   : > { %2809 = vst [vmem:[%s14153_s3 + $0x118] sm:$0xff] %v2745_v31  ;;  %v2855_v44 = vpack.c.bf16 %v2745_v31, %v2743_v42  ;;  %2808 = vst [vmem:[%s14153_s3 + $0x110] sm:$0xff] %v2744_v28  ;;  %v2854_v48 = vpack.c.bf16 %v2744_v28, %v2742_v18  ;;  %v14387_v27 = vpop.eup %11724  ;;  %v14395_v42 = vpop.f32.mrf.mxu1  ;;  %v18259_v18 = vld [vmem:[#allocation55_spill] sm:$0xff]  ;;  %v18261_v31 = vld [vmem:[#allocation74_spill] sm:$0xff] }
 0x4a7   : > { %v2663_v30 = vadd.f32 %v14387_v27, %v14383_v58  ;;  %18258 = vst [vmem:[#allocation65_spill] sm:$0xff] %v14395_v42  ;;  %v2446_v6 = vsub.f32 %v18260_v13, %v18259_v18  ;;  %v2447_v28 = vsub.f32 %v18261_v31, %v18259_v18 }
 0x4a8   : > { %v14389_v51 = vpop.xlane.xlu1 %3823  ;;  %3094 = vmatprep.mubr.bf16.mxu0 %v2855_v44  ;;  %v14401_v19 = vpop.f32.mrf.mxu1 }
 0x4a9   : > { %2661 = vadd.xlane.f32.xlu1 %v2660_v16  ;;  %3095 = vmatmul.mubr.bf16.gmra.mxu0 %v2854_v48  ;;  %18262 = vst [vmem:[#allocation66_spill] sm:$0xff] %v14401_v19  ;;  %v2566_v44 = vmul.f32 1.442695, %v2446_v6  ;;  %v18263_v48 = vld [vmem:[#allocation39_spill] sm:$0xff]  ;;  %v2568_v56 = vmul.f32 1.442695, %v2447_v28 }
 0x4aa   : > { %v18264_v16 = vld [vmem:[#allocation75_spill] sm:$0xff]  ;;  %v14407_v38 = vpop.f32.mrf.mxu1 }
 0x4ab   : > { %v2448_v3 = vsub.f32 %v18264_v16, %v18263_v48  ;;  %18266 = vst [vmem:[#allocation36_spill] sm:$0xff] %v14407_v38 }
 0x4ac   : > { %v14393_v55 = vpop.xlane.xlu1 %3829  ;;  %v14410_v6 = vpop.f32.mrf.mxu1 }
 0x4ad   : > { %2664 = vadd.xlane.f32.xlu1 %v2663_v30  ;;  %v18265_v30 = vld [vmem:[#allocation76_spill] sm:$0xff]  ;;  %v2570_v13 = vmul.f32 1.442695, %v2448_v3  ;;  %18267 = vst [vmem:[#allocation67_spill] sm:$0xff] %v14410_v6  ;;  %v3849_v3 = vmax.f32 %v14349_v10, %v14355_v50 }
 0x4ae   : > { %v2449_v34 = vsub.f32 %v18265_v30, %v18263_v48  ;;  %v3855_v48 = vmax.f32 %v14395_v42, %v14401_v19 }
 0x4b0   : > { %v2638_v15 = vpop.xlane.xlu1 %2637  ;;  %v2572_v18 = vmul.f32 1.442695, %v2449_v34 }
 0x4b1   : > { %11726 = vrcp.f32 %v2638_v15 }
 0x4b4   : > { %v2641_v5 = vpop.xlane.xlu1 %2640 }
 0x4b5   : > { %11728 = vrcp.f32 %v2641_v5  ;;  %v18268_v5 = vld [vmem:[#allocation44_spill] sm:$0xff] }
 0x4b6   : > { %11730 = vpow2.f32 %v2566_v44 }
 0x4b7   : > { %11732 = vpow2.f32 %v2568_v56 }
 0x4b8   : > { %v6555_v23 = vpop.permute.xlu1 %6554  ;;  %11734 = vpow2.f32 %v2570_v13 }
 0x4b9   : > { %10839 = vmatprep.mubr.msk.bf16.mxu1 %vm2004_vm0, %v6555_v23  ;;  %11736 = vpow2.f32 %v2572_v18 }
 0x4ba   : > { %10840 = vmatmul.mubr.msk.bf16.gmra.mxu1 %vm2004_vm0, %v6555_v23 }
 0x4be   : > { %6562 = vrot.lane.b32.xlu1 %v18268_v5, %s12809_s26  ;;  %v11727_v15 = vpop.eup %11726  ;;  %v18269_v5 = vld [vmem:[#allocation77_spill] sm:$0xff] }
 0x4bf   : > { %v2747_v34 = vmul.f32 %v11727_v15, %v14140_v40  ;;  %v2746_v56 = vmul.f32 %v11727_v15, %v14136_v39  ;;  %v2450_v15 = vsub.f32 %v18269_v5, %v14176_v7 }
 0x4c1   : > { %2811 = vst [vmem:[%s14153_s3 + $0x128] sm:$0xff] %v2747_v34  ;;  %2810 = vst [vmem:[%s14153_s3 + $0x120] sm:$0xff] %v2746_v56 }
 0x4c2   : > { %v11729_v31 = vpop.eup %11728 }
 0x4c3   : > { %3850 = vmax.xlane.f32.xlu0 %v3849_v3  ;;  %v2749_v28 = vmul.f32 %v11729_v31, %v14147_v1  ;;  %v2748_v23 = vmul.f32 %v11729_v31, %v14145_v63  ;;  %v14423_v44 = vpop.eup %11730 }
 0x4c4   : > { %v14429_v40 = vpop.eup %11732 }
 0x4c5   : > { %2813 = vst [vmem:[%s14153_s3 + $0x138] sm:$0xff] %v2749_v28  ;;  %v2857_v16 = vpack.c.bf16 %v2749_v28, %v2747_v34  ;;  %2812 = vst [vmem:[%s14153_s3 + $0x130] sm:$0xff] %v2748_v23  ;;  %v2856_v30 = vpack.c.bf16 %v2748_v23, %v2746_v56  ;;  %v14431_v39 = vpop.eup %11734  ;;  %v2666_v63 = vadd.f32 %v14429_v40, %v14423_v44  ;;  %v14445_v34 = vpop.f32.mrf.mxu1  ;;  %v18271_v56 = vld [vmem:[#allocation78_spill] sm:$0xff]  ;;  %v2574_v28 = vmul.f32 1.442695, %v2450_v15 }
 0x4c6   : > { %v14435_v1 = vpop.eup %11736  ;;  %18270 = vst [vmem:[#allocation68_spill] sm:$0xff] %v14445_v34  ;;  %v2451_v31 = vsub.f32 %v18271_v56, %v14176_v7 }
 0x4c7   : > { %3102 = vmatprep.mubr.bf16.mxu0 %v2857_v16  ;;  %3856 = vmax.xlane.f32.xlu0 %v3855_v48  ;;  %v2669_v18 = vadd.f32 %v14435_v1, %v14431_v39  ;;  %v18272_v48 = vld [vmem:[#allocation79_spill] sm:$0xff] }
 0x4c8   : > { %3103 = vmatmul.mubr.bf16.gmra.mxu0 %v2856_v30  ;;  %v2452_v16 = vsub.f32 %v18272_v48, %v14171_v46  ;;  %v14451_v30 = vpop.f32.mrf.mxu1  ;;  %v2576_v42 = vmul.f32 1.442695, %v2451_v31  ;;  %v18277_v48 = vld [vmem:[#allocation49_spill] sm:$0xff] }
 0x4c9   : > { %18273 = vst [vmem:[#allocation43_spill] sm:$0xff] %v14451_v30 }
 0x4ca   : > { %v14437_v13 = vpop.xlane.xlu0 %3826  ;;  %v14455_v50 = vpop.f32.mrf.mxu1 }
 0x4cb   : > { %2667 = vadd.xlane.f32.xlu0 %v2666_v63  ;;  %v18274_v63 = vld [vmem:[#allocation80_spill] sm:$0xff]  ;;  %18275 = vst [vmem:[#allocation57_spill] sm:$0xff] %v14455_v50 }
 0x4cc   : > { %v2453_v19 = vsub.f32 %v18274_v63, %v14171_v46  ;;  %v14458_v15 = vpop.f32.mrf.mxu1  ;;  %v3858_v46 = vmax.f32 %v14407_v38, %v14410_v6 }
 0x4cd   : > { %18276 = vst [vmem:[#allocation56_spill] sm:$0xff] %v14458_v15 }
 0x4ce   : > { %v14443_v3 = vpop.xlane.xlu0 %3832  ;;  %v2580_v10 = vmul.f32 1.442695, %v2453_v19 }
 0x4cf   : > { %2670 = vadd.xlane.f32.xlu0 %v2669_v18  ;;  %v2578_v18 = vmul.f32 1.442695, %v2452_v16 }
 0x4d2   : > { %v2644_v23 = vpop.xlane.xlu0 %2643 }
 0x4d3   : > { %11738 = vrcp.f32 %v2644_v23  ;;  %v3864_v23 = vmax.f32 %v14455_v50, %v14458_v15 }
 0x4d4   : > { %11740 = vpow2.f32 %v2574_v28 }
 0x4d6   : > { %v2647_v5 = vpop.xlane.xlu0 %2646 }
 0x4d7   : > { %11742 = vrcp.f32 %v2647_v5 }
 0x4d8   : > { %11744 = vpow2.f32 %v2576_v42 }
 0x4d9   : > { %11746 = vpow2.f32 %v2578_v18 }
 0x4da   : > { %v6557_v7 = vpop.permute.xlu0 %6556  ;;  %11748 = vpow2.f32 %v2580_v10 }
 0x4db   : > { %10841 = vmatprep.mubr.msk.bf16.mxu1 %vm2004_vm0, %v6557_v7 }
 0x4dc   : > { %10842 = vmatmul.mubr.msk.bf16.gmra.mxu1 %vm2004_vm0, %v6557_v7 }
 0x4e0   : > { %v11739_v56 = vpop.eup %11738 }
 0x4e1   : > { %v14463_v19 = vpop.eup %11740  ;;  %v2751_v42 = vmul.f32 %v11739_v56, %v14221_v25  ;;  %v2750_v31 = vmul.f32 %v11739_v56, %v14219_v62  ;;  %v14491_v56 = vpop.f32.mrf.mxu1 }
 0x4e2   : > { %3859 = vmax.xlane.f32.xlu1 %v3858_v46  ;;  %18279 = vst [vmem:[#allocation91_spill] sm:$0xff] %v14491_v56 }
 0x4e3   : > { %2815 = vst [vmem:[%s14153_s3 + $0x148] sm:$0xff] %v2751_v42  ;;  %2814 = vst [vmem:[%s14153_s3 + $0x140] sm:$0xff] %v2750_v31 }
 0x4e4   : > { %v11743_v28 = vpop.eup %11742 }
 0x4e5   : > { %v14469_v10 = vpop.eup %11744  ;;  %6564 = vrot.lane.b32.xlu0 %v18277_v48, %s12809_s26  ;;  %v2753_v16 = vmul.f32 %v11743_v28, %v14235_v54  ;;  %v2752_v63 = vmul.f32 %v11743_v28, %v14227_v17 }
 0x4e6   : > { %3865 = vmax.xlane.f32.xlu1 %v3864_v23  ;;  %v14479_v5 = vpop.eup %11746  ;;  %v2672_v18 = vadd.f32 %v14469_v10, %v14463_v19  ;;  %v14493_v23 = vpop.f32.mrf.mxu1 }
 0x4e7   : > { %2817 = vst [vmem:[%s14153_s3 + $0x158] sm:$0xff] %v2753_v16  ;;  %v2859_v25 = vpack.c.bf16 %v2753_v16, %v2751_v42  ;;  %2816 = vst [vmem:[%s14153_s3 + $0x150] sm:$0xff] %v2752_v63  ;;  %v2858_v62 = vpack.c.bf16 %v2752_v63, %v2750_v31  ;;  %v14483_v7 = vpop.eup %11748 }
 0x4e8   : > { %v2675_v17 = vadd.f32 %v14483_v7, %v14479_v5  ;;  %18280 = vst [vmem:[#allocation54_spill] sm:$0xff] %v14493_v23 }
 0x4e9   : > { %v14485_v46 = vpop.xlane.xlu1 %3835  ;;  %3110 = vmatprep.mubr.bf16.mxu0 %v2859_v25 }
 0x4ea   : > { %2673 = vadd.xlane.f32.xlu1 %v2672_v18  ;;  %3111 = vmatmul.mubr.bf16.gmra.mxu0 %v2858_v62  ;;  %v14495_v18 = vpop.f32.mrf.mxu1 }
 0x4eb   : > { %18281 = vst [vmem:[#allocation69_spill] sm:$0xff] %v14495_v18 }
 0x4ed   : > { %v14489_v54 = vpop.xlane.xlu1 %3841 }
 0x4ee   : > { %18278 = vst [vmem:[#allocation92_spill] sm:$0xff] %v14489_v54  ;;  %2676 = vadd.xlane.f32.xlu1 %v2675_v17  ;;  %v14499_v54 = vpop.f32.mrf.mxu1 }
 0x4ef   : > { %18282 = vst [vmem:[#allocation70_spill] sm:$0xff] %v14499_v54 }
 0x4f0   : > { %v10397_v42 = vpop.f32.mrf.mxu0 }
 0x4f1   : > { %v2650_v31 = vpop.xlane.xlu1 %2649 }
 0x4f2   : > { %v10398_v28 = vpop.f32.mrf.mxu0  ;;  %11750 = vrcp.f32 %v2650_v31 }
 0x4f3   : > { %v10399_v48 = vadd.f32 %v10398_v28, %v10397_v42 }
 0x4f4   : > { %v10400_v16 = vpop.f32.mrf.mxu0 }
 0x4f5   : > { %v9941_v63 = vpack.c.bf16 %v10399_v48, %v10399_v48  ;;  %v2653_v25 = vpop.xlane.xlu1 %2652 }
 0x4f6   : > { %11752 = vrcp.f32 %v2653_v25  ;;  %v10401_v62 = vpop.f32.mrf.mxu0 }
 0x4f7   : > { %3288 = vst.msk [vmem:[#allocation4] sm:$0xf] %vm3287_vm1, %v9941_v63  ;;  %v10402_v17 = vadd.f32 %v10401_v62, %v10400_v16  ;;  %v18283_v63 = vld [vmem:[#allocation46_spill] sm:$0xff] }
 0x4f8   : > { %v10403_v15 = vpop.f32.mrf.mxu0 }
 0x4f9   : > { %v9942_v50 = vpack.c.bf16 %v10402_v17, %v10402_v17  ;;  %v6559_v6 = vpop.permute.xlu1 %6558 }
 0x4fa   : > { %10843 = vmatprep.mubr.msk.bf16.mxu1 %vm2004_vm0, %v6559_v6  ;;  %v10404_v38 = vpop.f32.mrf.mxu0 }
 0x4fb   : > { %3289 = vst.msk [vmem:[#allocation4 + $0x4] sm:$0xf] %vm3287_vm1, %v9942_v50  ;;  %v10405_v42 = vadd.f32 %v10404_v38, %v10403_v15  ;;  %10844 = vmatmul.mubr.msk.bf16.gmra.mxu1 %vm2004_vm0, %v6559_v6  ;;  %v3861_v50 = vmax.f32 %v14445_v34, %v14451_v30  ;;  %v3867_v30 = vmax.f32 %v14491_v56, %v14493_v23 }
 0x4fc   : > { %v10406_v31 = vpop.f32.mrf.mxu0 }
 0x4fd   : > { %v9943_v28 = vpack.c.bf16 %v10405_v42, %v10405_v42 }
 0x4fe   : > { %v10407_v48 = vpop.f32.mrf.mxu0 }
 0x4ff   : > { %3290 = vst.msk [vmem:[#allocation4 + $0x8] sm:$0xf] %vm3287_vm1, %v9943_v28  ;;  %v10408_v16 = vadd.f32 %v10407_v48, %v10406_v31  ;;  %6566 = vrot.lane.b32.xlu1 %v18283_v63, %s12809_s26  ;;  %v11751_v62 = vpop.eup %11750 }
 0x500   : > { %v10409_v25 = vpop.f32.mrf.mxu0  ;;  %v2755_v6 = vmul.f32 %v11751_v62, %v14277_v2  ;;  %v2754_v15 = vmul.f32 %v11751_v62, %v14271_v61 }
 0x501   : > { %v9944_v17 = vpack.c.bf16 %v10408_v16, %v10408_v16 }
 0x502   : > { %v10410_v38 = vpop.f32.mrf.mxu0  ;;  %2819 = vst [vmem:[%s14153_s3 + $0x168] sm:$0xff] %v2755_v6  ;;  %2818 = vst [vmem:[%s14153_s3 + $0x160] sm:$0xff] %v2754_v15 }
 0x503   : > { %v11753_v42 = vpop.eup %11752  ;;  %3291 = vst.msk [vmem:[#allocation4 + $0xc] sm:$0xf] %vm3287_vm1, %v9944_v17  ;;  %v10411_v31 = vadd.f32 %v10410_v38, %v10409_v25  ;;  %v18284_v38 = vld [vmem:[#allocation83_spill] sm:$0xff] }
 0x504   : > { %v10412_v28 = vpop.f32.mrf.mxu0  ;;  %3862 = vmax.xlane.f32.xlu0 %v3861_v50  ;;  %v2757_v48 = vmul.f32 %v11753_v42, %v14291_v24  ;;  %v2756_v16 = vmul.f32 %v11753_v42, %v14287_v21  ;;  %v3899_v42 = vsub.f32 %v18284_v38, %v14217_v29 }
 0x505   : > { %v9945_v63 = vpack.c.bf16 %v10411_v31, %v10411_v31 }
 0x506   : > { %v10413_v2 = vpop.f32.mrf.mxu0  ;;  %2821 = vst [vmem:[%s14153_s3 + $0x178] sm:$0xff] %v2757_v48  ;;  %v2861_v34 = vpack.c.bf16 %v2757_v48, %v2755_v6  ;;  %2820 = vst [vmem:[%s14153_s3 + $0x170] sm:$0xff] %v2756_v16  ;;  %v2860_v61 = vpack.c.bf16 %v2756_v16, %v2754_v15  ;;  %v18285_v15 = vld [vmem:[#allocation84_spill] sm:$0xff]  ;;  %v3965_v16 = vmul.f32 1.442695, %v3899_v42 }
 0x507   : > { %3292 = vst.msk [vmem:[#allocation4 + $0x10] sm:$0xf] %vm3287_vm1, %v9945_v63  ;;  %v10414_v25 = vadd.f32 %v10413_v2, %v10412_v28  ;;  %v3900_v31 = vsub.f32 %v18285_v15, %v14217_v29  ;;  %v14530_v2 = vpop.f32.mrf.mxu1 }
 0x508   : > { %3118 = vmatprep.mubr.bf16.mxu0 %v2861_v34  ;;  %v10415_v62 = vpop.f32.mrf.mxu0  ;;  %3868 = vmax.xlane.f32.xlu0 %v3867_v30  ;;  %18286 = vst [vmem:[#allocation37_spill] sm:$0xff] %v14530_v2  ;;  %11754 = vpow2.f32 %v3965_v16  ;;  %v11506_v16 = vld [vmem:[#allocation3 + $0x78] sm:$0xff]  }
 0x509   : > { %v9946_v24 = vpack.c.bf16 %v10414_v25, %v10414_v25  ;;  %3119 = vmatmul.mubr.bf16.gmra.mxu0 %v2860_v61  ;;  %v3967_v61 = vmul.f32 1.442695, %v3900_v31 }
 0x50a   : > { %v10416_v17 = vpop.f32.mrf.mxu0 }
 0x50b   : > { %3293 = vst.msk [vmem:[#allocation4 + $0x14] sm:$0xf] %vm3287_vm1, %v9946_v24  ;;  %v10417_v21 = vadd.f32 %v10416_v17, %v10415_v62  ;;  %v14521_v50 = vpop.xlane.xlu0 %3838  ;;  %11756 = vpow2.f32 %v3967_v61 }
 0x50c   : > { %v10418_v6 = vpop.f32.mrf.mxu0 }
 0x50d   : > { %v9947_v48 = vpack.c.bf16 %v10417_v21, %v10417_v21  ;;  %v14533_v21 = vpop.f32.mrf.mxu1 }
 0x50e   : > { %v10419_v28 = vpop.f32.mrf.mxu0  ;;  %18287 = vst [vmem:[#allocation71_spill] sm:$0xff] %v14533_v21 }
 0x50f   : > { %3294 = vst.msk [vmem:[#allocation4 + $0x18] sm:$0xf] %vm3287_vm1, %v9947_v48  ;;  %v10420_v34 = vadd.f32 %v10419_v28, %v10418_v6  ;;  %v14528_v30 = vpop.xlane.xlu0 %3844  ;;  %v14536_v31 = vpop.f32.mrf.mxu1 }
 0x510   : > { %v10421_v63 = vpop.f32.mrf.mxu0  ;;  %18288 = vst [vmem:[#allocation72_spill] sm:$0xff] %v14536_v31 }
 0x511   : > { %v9948_v25 = vpack.c.bf16 %v10420_v34, %v10420_v34 }
 0x512   : > { %v10422_v62 = vpop.f32.mrf.mxu0 }
 0x513   : > { %3295 = vst.msk [vmem:[#allocation4 + $0x1c] sm:$0xf] %vm3287_vm1, %v9948_v25  ;;  %v10423_v24 = vadd.f32 %v10422_v62, %v10421_v63  ;;  %v2656_v17 = vpop.xlane.xlu0 %2655  ;;  %v14540_v63 = vpop.f32.mrf.mxu1 }
 0x514   : > { %v10424_v29 = vpop.f32.mrf.mxu0  ;;  %11758 = vrcp.f32 %v2656_v17  ;;  %18289 = vst [vmem:[#allocation45_spill] sm:$0xff] %v14540_v63  ;;  %v3870_v17 = vmax.f32 %v14495_v18, %v14499_v54 }
 0x515   : > { %v9949_v38 = vpack.c.bf16 %v10423_v24, %v10423_v24  ;;  %v14544_v24 = vpop.eup %11754 }
 0x516   : > { %v10425_v6 = vpop.f32.mrf.mxu0 }
 0x517   : > { %3296 = vst.msk [vmem:[#allocation4 + $0x20] sm:$0xf] %vm3287_vm1, %v9949_v38  ;;  %v10426_v42 = vadd.f32 %v10425_v6, %v10424_v29  ;;  %v2659_v15 = vpop.xlane.xlu0 %2658  ;;  %v18290_v6 = vld [vmem:[#allocation81_spill] sm:$0xff] }
 0x518   : > { %11760 = vrcp.f32 %v2659_v15  ;;  %v14548_v38 = vpop.eup %11756 }
 0x519   : > { %v9950_v48 = vpack.c.bf16 %v10426_v42, %v10426_v42  ;;  %v3897_v42 = vsub.f32 %v18290_v6, %v14210_v4  ;;  %v4092_v6 = vadd.f32 %v14548_v38, %v14544_v24 }
 0x51b   : > { %3297 = vst.msk [vmem:[#allocation4 + $0x24] sm:$0xf] %vm3287_vm1, %v9950_v48  ;;  %v6561_v28 = vpop.permute.xlu0 %6560  ;;  %v3961_v23 = vmul.f32 1.442695, %v3897_v42 }
 0x51c   : > { %v10427_v34 = vpop.f32.mrf.mxu0  ;;  %10845 = vmatprep.mubr.msk.bf16.mxu1 %vm2004_vm0, %v6561_v28 }
 0x51d   : > { %10846 = vmatmul.mubr.msk.bf16.gmra.mxu1 %vm2004_vm0, %v6561_v28  ;;  %v18291_v28 = vld [vmem:[#allocation82_spill] sm:$0xff]  ;;  %11762 = vpow2.f32 %v3961_v23 }
 0x51e   : > { %v10428_v61 = vpop.f32.mrf.mxu0  ;;  %4520 = vrot.lane.b32.xlu0 %v11506_v16, %s12808_s22  ;;  %v3898_v16 = vsub.f32 %v18291_v28, %v14210_v4  ;;  %v14571_v28 = vpop.f32.mrf.mxu1 }
 0x51f   : > { %v10429_v25 = vadd.f32 %v10428_v61, %v10427_v34 }
 0x520   : > { %v10430_v62 = vpop.f32.mrf.mxu0  ;;  %v14574_v23 = vpop.f32.mrf.mxu1 }
 0x521   : > { %v9951_v29 = vpack.c.bf16 %v10429_v25, %v10429_v25  ;;  %v11759_v48 = vpop.eup %11758 }
 0x522   : > { %v10431_v15 = vpop.f32.mrf.mxu0  ;;  %v2759_v61 = vmul.f32 %v11759_v48, %v14333_v60  ;;  %v2758_v25 = vmul.f32 %v11759_v48, %v14327_v47 }
 0x523   : > { %3298 = vst.msk [vmem:[#allocation4 + $0x28] sm:$0xf] %vm3287_vm1, %v9951_v29  ;;  %v10432_v34 = vadd.f32 %v10431_v15, %v10430_v62  ;;  %3871 = vmax.xlane.f32.xlu1 %v3870_v17  ;;  %v3963_v62 = vmul.f32 1.442695, %v3898_v16 }
 0x524   : > { %2823 = vst [vmem:[%s14153_s3 + $0x188] sm:$0xff] %v2759_v61  ;;  %2822 = vst [vmem:[%s14153_s3 + $0x180] sm:$0xff] %v2758_v25 }
 0x525   : > { %v11761_v54 = vpop.eup %11760  ;;  %v9952_v18 = vpack.c.bf16 %v10432_v34, %v10432_v34  ;;  %11764 = vpow2.f32 %v3963_v62 }
 0x526   : > { %v2761_v56 = vmul.f32 %v11761_v54, %v14339_v9  ;;  %v2760_v4 = vmul.f32 %v11761_v54, %v14335_v0 }
 0x527   : > { %3299 = vst.msk [vmem:[#allocation4 + $0x2c] sm:$0xf] %vm3287_vm1, %v9952_v18  ;;  %4093 = vadd.xlane.f32.xlu1 %v4092_v6 }
 0x528   : > { %v10433_v60 = vpop.f32.mrf.mxu0  ;;  %2825 = vst [vmem:[%s14153_s3 + $0x198] sm:$0xff] %v2761_v56  ;;  %v2863_v17 = vpack.c.bf16 %v2761_v56, %v2759_v61  ;;  %2824 = vst [vmem:[%s14153_s3 + $0x190] sm:$0xff] %v2760_v4  ;;  %v2862_v47 = vpack.c.bf16 %v2760_v4, %v2758_v25  ;;  %v11507_v61 = vld [vmem:[#allocation3 + $0x38] sm:$0xff]   ;;  %v14580_v4 = vpop.f32.mrf.mxu1 }
 0x529   : > { %18293 = vst [vmem:[#allocation73_spill] sm:$0xff] %v14580_v4 }
 0x52a   : > { %v14566_v29 = vpop.xlane.xlu1 %3847  ;;  %v10434_v15 = vpop.f32.mrf.mxu0  ;;  %3126 = vmatprep.mubr.bf16.mxu0 %v2863_v17 }
 0x52b   : > { %v10435_v9 = vadd.f32 %v10434_v15, %v10433_v60  ;;  %3127 = vmatmul.mubr.bf16.gmra.mxu0 %v2862_v47  ;;  %v14576_v25 = vpop.eup %11762  ;;  %v11508_v60 = vld [vmem:[#allocation3 + $0x70] sm:$0xff]   ;;  %v14586_v47 = vpop.f32.mrf.mxu1 }
 0x52c   : > { %v10436_v42 = vpop.f32.mrf.mxu0  ;;  %18294 = vst [vmem:[#allocation74_spill] sm:$0xff] %v14586_v47  ;;  %v11509_v15 = vld [vmem:[#allocation3 + $0x30] sm:$0xff]  }
 0x52d   : > { %v9953_v0 = vpack.c.bf16 %v10435_v9, %v10435_v9 }
 0x52e   : > { %v14568_v54 = vpop.xlane.xlu1 %3853  ;;  %v10437_v48 = vpop.f32.mrf.mxu0 }
 0x52f   : > { %18292 = vst [vmem:[#allocation55_spill] sm:$0xff] %v14568_v54  ;;  %3300 = vst.msk [vmem:[#allocation4 + $0x30] sm:$0xf] %vm3287_vm1, %v9953_v0  ;;  %v10438_v18 = vadd.f32 %v10437_v48, %v10436_v42 }
 0x531   : > { %v9954_v56 = vpack.c.bf16 %v10438_v18, %v10438_v18 }
 0x532   : > { %v2662_v16 = vpop.xlane.xlu1 %2661  ;;  %v14578_v6 = vpop.eup %11764 }
 0x533   : > { %3301 = vst.msk [vmem:[#allocation4 + $0x34] sm:$0xf] %vm3287_vm1, %v9954_v56  ;;  %11766 = vrcp.f32 %v2662_v16  ;;  %v4089_v17 = vadd.f32 %v14578_v6, %v14576_v25 }
 0x536   : > { %v2665_v34 = vpop.xlane.xlu1 %2664 }
 0x537   : > { %11768 = vrcp.f32 %v2665_v34 }
 0x538   : > { %4504 = vrot.lane.b32.xlu1 %v11507_v61, %s12808_s22 }
 0x53a   : > { %v6563_v62 = vpop.permute.xlu1 %6562 }
 0x53b   : > { %10847 = vmatprep.mubr.msk.bf16.mxu1 %vm2004_vm0, %v6563_v62 }
 0x53c   : > { %4518 = vrot.lane.b32.xlu1 %v11508_v60, %s12808_s22  ;;  %10848 = vmatmul.mubr.msk.bf16.gmra.mxu1 %vm2004_vm0, %v6563_v62 }
 0x53d   : > { %4090 = vadd.xlane.f32.xlu0 %v4089_v17 }
 0x540   : > { %4502 = vrot.lane.b32.xlu1 %v11509_v15, %s12808_s22  ;;  %v11767_v9 = vpop.eup %11766 }
 0x541   : > { %v2763_v42 = vmul.f32 %v11767_v9, %v14373_v26  ;;  %v2762_v0 = vmul.f32 %v11767_v9, %v14367_v59 }
 0x543   : > { %2827 = vst [vmem:[%s14153_s3 + $0x1a8] sm:$0xff] %v2763_v42  ;;  %2826 = vst [vmem:[%s14153_s3 + $0x1a0] sm:$0xff] %v2762_v0 }
 0x544   : > { %v11769_v48 = vpop.eup %11768 }
 0x545   : > { %v2765_v18 = vmul.f32 %v11769_v48, %v14387_v27  ;;  %v2764_v56 = vmul.f32 %v11769_v48, %v14383_v58  ;;  %v14604_v48 = vpop.f32.mrf.mxu1 }
 0x547   : > { %v10439_v16 = vpop.f32.mrf.mxu0  ;;  %2829 = vst [vmem:[%s14153_s3 + $0x1b8] sm:$0xff] %v2765_v18  ;;  %v2865_v34 = vpack.c.bf16 %v2765_v18, %v2763_v42  ;;  %2828 = vst [vmem:[%s14153_s3 + $0x1b0] sm:$0xff] %v2764_v56  ;;  %v2864_v61 = vpack.c.bf16 %v2764_v56, %v2762_v0  ;;  %v18295_v42 = vld [vmem:[#allocation48_spill] sm:$0xff]  ;;  %v14609_v18 = vpop.f32.mrf.mxu1 }
 0x549   : > { %v10440_v62 = vpop.f32.mrf.mxu0  ;;  %3134 = vmatprep.mubr.bf16.mxu0 %v2865_v34  ;;  %v18297_v34 = vld [vmem:[#allocation85_spill] sm:$0xff] }
 0x54a   : > { %v10441_v60 = vadd.f32 %v10440_v62, %v10439_v16  ;;  %3135 = vmatmul.mubr.bf16.gmra.mxu0 %v2864_v61  ;;  %v14611_v16 = vpop.f32.mrf.mxu1  ;;  %v3901_v61 = vsub.f32 %v18297_v34, %v14243_v14  ;;  %v18298_v62 = vld [vmem:[#allocation86_spill] sm:$0xff] }
 0x54b   : > { %v10442_v17 = vpop.f32.mrf.mxu0  ;;  %18296 = vst [vmem:[#allocation39_spill] sm:$0xff] %v14611_v16 }
 0x54c   : > { %v9955_v26 = vpack.c.bf16 %v10441_v60, %v10441_v60  ;;  %v14599_v15 = vpop.xlane.xlu0 %3850  ;;  %v3902_v60 = vsub.f32 %v18298_v62, %v14243_v14  ;;  %v3873_v14 = vmax.f32 %v14530_v2, %v14533_v21 }
 0x54d   : > { %v10443_v59 = vpop.f32.mrf.mxu0 }
 0x54e   : > { %3302 = vst.msk [vmem:[#allocation4 + $0x38] sm:$0xf] %vm3287_vm1, %v9955_v26  ;;  %v10444_v27 = vadd.f32 %v10443_v59, %v10442_v17  ;;  %v14618_v26 = vpop.f32.mrf.mxu1  ;;  %v3969_v59 = vmul.f32 1.442695, %v3901_v61 }
 0x54f   : > { %18299 = vst [vmem:[#allocation75_spill] sm:$0xff] %v14618_v26 }
 0x550   : > { %v9956_v9 = vpack.c.bf16 %v10444_v27, %v10444_v27  ;;  %v14602_v58 = vpop.xlane.xlu0 %3856  ;;  %v18300_v27 = vld [vmem:[#allocation87_spill] sm:$0xff] }
 0x552   : > { %3303 = vst.msk [vmem:[#allocation4 + $0x3c] sm:$0xf] %vm3287_vm1, %v9956_v9  ;;  %v3903_v9 = vsub.f32 %v18300_v27, %v14293_v43 }
 0x553   : > { %6568 = vrot.lane.b32.xlu0 %v18295_v42, %s12809_s26  ;;  %v3971_v42 = vmul.f32 1.442695, %v3902_v60 }
 0x554   : > { %v2668_v0 = vpop.xlane.xlu0 %2667  ;;  %v3973_v34 = vmul.f32 1.442695, %v3903_v9 }
 0x555   : > { %11770 = vrcp.f32 %v2668_v0  ;;  %v18301_v0 = vld [vmem:[#allocation88_spill] sm:$0xff] }
 0x558   : > { %v2671_v56 = vpop.xlane.xlu0 %2670 }
 0x559   : > { %11772 = vrcp.f32 %v2671_v56  ;;  %v3904_v56 = vsub.f32 %v18301_v0, %v14293_v43 }
 0x55a   : > { %11774 = vpow2.f32 %v3969_v59 }
 0x55b   : > { %11776 = vpow2.f32 %v3971_v42 }
 0x55c   : > { %v6565_v17 = vpop.permute.xlu0 %6564  ;;  %11778 = vpow2.f32 %v3973_v34 }
 0x55d   : > { %10849 = vmatprep.mubr.msk.bf16.mxu1 %vm2004_vm0, %v6565_v17 }
 0x55e   : > { %10850 = vmatmul.mubr.msk.bf16.gmra.mxu1 %vm2004_vm0, %v6565_v17  ;;  %v3975_v17 = vmul.f32 1.442695, %v3904_v56 }
 0x560   : > { %11780 = vpow2.f32 %v3975_v17 }
 0x562   : > { %v11771_v62 = vpop.eup %11770 }
 0x563   : > { %v2767_v61 = vmul.f32 %v11771_v62, %v14429_v40  ;;  %v2766_v27 = vmul.f32 %v11771_v62, %v14423_v44 }
 0x564   : > { %3874 = vmax.xlane.f32.xlu1 %v3873_v14 }
 0x565   : > { %2831 = vst [vmem:[%s14153_s3 + $0x1c8] sm:$0xff] %v2767_v61  ;;  %2830 = vst [vmem:[%s14153_s3 + $0x1c0] sm:$0xff] %v2766_v27 }
 0x566   : > { %v11773_v60 = vpop.eup %11772 }
 0x567   : > { %v2769_v54 = vmul.f32 %v11773_v60, %v14435_v1  ;;  %v2768_v43 = vmul.f32 %v11773_v60, %v14431_v39  ;;  %v14639_v62 = vpop.eup %11774  ;;  %v3876_v39 = vmax.f32 %v14536_v31, %v14540_v63 }
 0x568   : > { %v14644_v17 = vpop.eup %11776 }
 0x569   : > { %v10445_v59 = vpop.f32.mrf.mxu0  ;;  %2833 = vst [vmem:[%s14153_s3 + $0x1d8] sm:$0xff] %v2769_v54  ;;  %v2867_v9 = vpack.c.bf16 %v2769_v54, %v2767_v61  ;;  %2832 = vst [vmem:[%s14153_s3 + $0x1d0] sm:$0xff] %v2768_v43  ;;  %v2866_v42 = vpack.c.bf16 %v2768_v43, %v2766_v27  ;;  %v14646_v61 = vpop.f32.mrf.mxu1  ;;  %v11510_v43 = vld [vmem:[#allocation3 + $0x68] sm:$0xff]  }
 0x56b   : > { %v14635_v0 = vpop.xlane.xlu1 %3859  ;;  %v10446_v56 = vpop.f32.mrf.mxu0  ;;  %3142 = vmatprep.mubr.bf16.mxu0 %v2867_v9  ;;  %v4095_v9 = vadd.f32 %v14644_v17, %v14639_v62 }
 0x56c   : > { %v10447_v40 = vadd.f32 %v10446_v56, %v10445_v59  ;;  %3143 = vmatmul.mubr.bf16.gmra.mxu0 %v2866_v42  ;;  %v14648_v59 = vpop.eup %11778  ;;  %v14655_v56 = vpop.f32.mrf.mxu1 }
 0x56d   : > { %v10448_v44 = vpop.f32.mrf.mxu0  ;;  %v14653_v42 = vpop.eup %11780 }
 0x56e   : > { %v9957_v14 = vpack.c.bf16 %v10447_v40, %v10447_v40 }
 0x56f   : > { %v14637_v34 = vpop.xlane.xlu1 %3865  ;;  %v10449_v1 = vpop.f32.mrf.mxu0 }
 0x570   : > { %18302 = vst [vmem:[#allocation76_spill] sm:$0xff] %v14637_v34  ;;  %3304 = vst.msk [vmem:[#allocation4 + $0x40] sm:$0xf] %vm3287_vm1, %v9957_v14  ;;  %v10450_v54 = vadd.f32 %v10449_v1, %v10448_v44  ;;  %v4098_v44 = vadd.f32 %v14653_v42, %v14648_v59  ;;  %v14660_v14 = vpop.f32.mrf.mxu1  ;;  %v18303_v1 = vld [vmem:[#allocation47_spill] sm:$0xff] }
 0x572   : > { %v9958_v27 = vpack.c.bf16 %v10450_v54, %v10450_v54  ;;  %3877 = vmax.xlane.f32.xlu0 %v3876_v39  ;;  %v11511_v54 = vld [vmem:[#allocation3 + $0x60] sm:$0xff]  }
 0x573   : > { %v2674_v60 = vpop.xlane.xlu1 %2673 }
 0x574   : > { %3305 = vst.msk [vmem:[#allocation4 + $0x44] sm:$0xf] %vm3287_vm1, %v9958_v27  ;;  %11782 = vrcp.f32 %v2674_v60  ;;  %v14665_v27 = vpop.f32.mrf.mxu1  ;;  %v11512_v60 = vld [vmem:[#allocation3 + $0x20] sm:$0xff]  }
 0x575   : > { %4516 = vrot.lane.b32.xlu1 %v11510_v43, %s12808_s22 }
 0x576   : > { %4096 = vadd.xlane.f32.xlu0 %v4095_v9 }
 0x577   : > { %v2677_v40 = vpop.xlane.xlu1 %2676 }
 0x578   : > { %11784 = vrcp.f32 %v2677_v40 }
 0x579   : > { %6570 = vrot.lane.b32.xlu1 %v18303_v1, %s12809_s26 }
 0x57a   : > { %4099 = vadd.xlane.f32.xlu0 %v4098_v44 }
 0x57b   : > { %v6567_v39 = vpop.permute.xlu1 %6566 }
 0x57c   : > { %10851 = vmatprep.mubr.msk.bf16.mxu1 %vm2004_vm0, %v6567_v39 }
 0x57d   : > { %4514 = vrot.lane.b32.xlu1 %v11511_v54, %s12808_s22  ;;  %10852 = vmatmul.mubr.msk.bf16.gmra.mxu1 %vm2004_vm0, %v6567_v39 }
 0x581   : > { %4498 = vrot.lane.b32.xlu1 %v11512_v60, %s12808_s22  ;;  %v11783_v43 = vpop.eup %11782 }
 0x582   : > { %v2771_v9 = vmul.f32 %v11783_v43, %v14469_v10  ;;  %v2770_v40 = vmul.f32 %v11783_v43, %v14463_v19  ;;  %v11513_v43 = vld [vmem:[#allocation3 + $0x28] sm:$0xff]  }
 0x584   : > { %2835 = vst [vmem:[%s14153_s3 + $0x1e8] sm:$0xff] %v2771_v9  ;;  %2834 = vst [vmem:[%s14153_s3 + $0x1e0] sm:$0xff] %v2770_v40 }
 0x585   : > { %v11785_v44 = vpop.eup %11784 }
 0x586   : > { %v2773_v1 = vmul.f32 %v11785_v44, %v14483_v7  ;;  %v2772_v63 = vmul.f32 %v11785_v44, %v14479_v5 }
 0x588   : > { %v10451_v31 = vpop.f32.mrf.mxu0  ;;  %2837 = vst [vmem:[%s14153_s3 + $0x1f8] sm:$0xff] %v2773_v1  ;;  %v2869_v54 = vpack.c.bf16 %v2773_v1, %v2771_v9  ;;  %2836 = vst [vmem:[%s14153_s3 + $0x1f0] sm:$0xff] %v2772_v63  ;;  %v2868_v39 = vpack.c.bf16 %v2772_v63, %v2770_v40  ;;  %v18304_v9 = vld [vmem:[#allocation89_spill] sm:$0xff] }
 0x589   : > { %v3907_v40 = vsub.f32 %v18304_v9, %v14297_v32 }
 0x58a   : > { %v10452_v21 = vpop.f32.mrf.mxu0  ;;  %3150 = vmatprep.mubr.bf16.mxu0 %v2869_v54 }
 0x58b   : > { %v10453_v60 = vadd.f32 %v10452_v21, %v10451_v31  ;;  %3151 = vmatmul.mubr.bf16.gmra.mxu0 %v2868_v39  ;;  %v3905_v21 = vsub.f32 %v13942_v12, %v14341_v53  ;;  %v3906_v31 = vsub.f32 %v13954_v33, %v14341_v53 }
 0x58c   : > { %v10454_v2 = vpop.f32.mrf.mxu0 }
 0x58d   : > { %v9959_v10 = vpack.c.bf16 %v10453_v60, %v10453_v60  ;;  %v14678_v34 = vpop.xlane.xlu0 %3862  ;;  %v3977_v1 = vmul.f32 1.442695, %v3905_v21  ;;  %v3979_v39 = vmul.f32 1.442695, %v3906_v31  ;;  %v3981_v60 = vmul.f32 1.442695, %v3907_v40 }
 0x58e   : > { %v10455_v19 = vpop.f32.mrf.mxu0 }
 0x58f   : > { %3306 = vst.msk [vmem:[#allocation4 + $0x48] sm:$0xf] %vm3287_vm1, %v9959_v10  ;;  %v10456_v7 = vadd.f32 %v10455_v19, %v10454_v2  ;;  %v18305_v2 = vld [vmem:[#allocation90_spill] sm:$0xff]  ;;  %11786 = vpow2.f32 %v3977_v1  ;;  %v3879_v19 = vmax.f32 %v14571_v28, %v14574_v23 }
 0x590   : > { %4500 = vrot.lane.b32.xlu0 %v11513_v43, %s12808_s22  ;;  %v3908_v54 = vsub.f32 %v18305_v2, %v14297_v32  ;;  %11788 = vpow2.f32 %v3979_v39  ;;  %v3882_v32 = vmax.f32 %v14580_v4, %v14586_v47 }
 0x591   : > { %v9960_v5 = vpack.c.bf16 %v10456_v7, %v10456_v7  ;;  %v14682_v44 = vpop.xlane.xlu0 %3868  ;;  %11790 = vpow2.f32 %v3981_v60 }
 0x592   : > { %v3983_v10 = vmul.f32 1.442695, %v3908_v54 }
 0x593   : > { %3307 = vst.msk [vmem:[#allocation4 + $0x4c] sm:$0xf] %vm3287_vm1, %v9960_v5 }
 0x594   : > { %11792 = vpow2.f32 %v3983_v10  ;;  %v11514_v10 = vld [vmem:[#allocation3 + $0x58] sm:$0xff]  }
 0x595   : > { %v4521_v63 = vpop.permute.xlu0 %4520 }
 0x596   : > { %10541 = vmatprep.subr.bf16.mxu0 %v4521_v63 }
 0x59c   : > { %v14697_v43 = vpop.eup %11786 }
 0x59d   : > { %v14701_v5 = vpop.eup %11788 }
 0x59e   : > { %v14703_v40 = vpop.eup %11790  ;;  %v4101_v2 = vadd.f32 %v14701_v5, %v14697_v43 }
 0x5a1   : > { %v14708_v54 = vpop.eup %11792 }
 0x5a5   : > { %3880 = vmax.xlane.f32.xlu1 %v3879_v19  ;;  %v4104_v19 = vadd.f32 %v14708_v54, %v14703_v40 }
 0x5aa   : > { %v10457_v12 = vpop.f32.mrf.mxu0 }
 0x5ac   : > { %v14695_v33 = vpop.xlane.xlu1 %3871  ;;  %v10458_v53 = vpop.f32.mrf.mxu0 }
 0x5ad   : > { %v10459_v7 = vadd.f32 %v10458_v53, %v10457_v12  ;;  %v18306_v53 = vld [vmem:[#allocation51_spill] sm:$0xff] }
 0x5ae   : > { %v10460_v63 = vpop.f32.mrf.mxu0 }
 0x5af   : > { %v9961_v21 = vpack.c.bf16 %v10459_v7, %v10459_v7  ;;  %3883 = vmax.xlane.f32.xlu0 %v3882_v32  ;;  %v11515_v7 = vld [vmem:[#allocation3 + $0x50] sm:$0xff]  }
 0x5b0   : > { %v4094_v31 = vpop.xlane.xlu1 %4093  ;;  %v10461_v9 = vpop.f32.mrf.mxu0 }
 0x5b1   : > { %3308 = vst.msk [vmem:[#allocation4 + $0x50] sm:$0xf] %vm3287_vm1, %v9961_v21  ;;  %v10462_v1 = vadd.f32 %v10461_v9, %v10460_v63  ;;  %11794 = vrcp.f32 %v4094_v31  ;;  %v14717_v21 = vpop.f32.mrf.mxu1  ;;  %v11516_v31 = vld [vmem:[#allocation3 + $0x10] sm:$0xff]  }
 0x5b2   : > { %18307 = vst [vmem:[#allocation44_spill] sm:$0xff] %v14717_v21 }
 0x5b3   : > { %v9962_v39 = vpack.c.bf16 %v10462_v1, %v10462_v1  ;;  %4102 = vadd.xlane.f32.xlu0 %v4101_v2  ;;  %v14727_v2 = vpop.f32.mrf.mxu1 }
 0x5b4   : > { %v4505_v60 = vpop.permute.xlu1 %4504  ;;  %18309 = vst [vmem:[#allocation78_spill] sm:$0xff] %v14727_v2 }
 0x5b5   : > { %3309 = vst.msk [vmem:[#allocation4 + $0x54] sm:$0xf] %vm3287_vm1, %v9962_v39  ;;  %10542 = vmatpush3.bf16.msra.mxu0 %v4505_v60  ;;  %v14729_v60 = vpop.f32.mrf.mxu1 }
 0x5b6   : > { %4512 = vrot.lane.b32.xlu1 %v11514_v10, %s12808_s22 }
 0x5b7   : > { %4105 = vadd.xlane.f32.xlu0 %v4104_v19 }
 0x5b8   : > { %v4519_v12 = vpop.permute.xlu1 %4518 }
 0x5b9   : > { %10543 = vmatprep.subr.bf16.mxu0 %v4519_v12 }
 0x5ba   : > { %6572 = vrot.lane.b32.xlu1 %v18306_v53, %s12809_s26  ;;  %v14732_v53 = vpop.f32.mrf.mxu1 }
 0x5bb   : > { %18310 = vst [vmem:[#allocation79_spill] sm:$0xff] %v14732_v53 }
 0x5bc   : > { %v4503_v32 = vpop.permute.xlu1 %4502 }
 0x5bd   : > { %10544 = vmatpush3.bf16.msra.mxu0 %v4503_v32 }
 0x5be   : > { %4510 = vrot.lane.b32.xlu1 %v11515_v7, %s12808_s22  ;;  %v11795_v63 = vpop.eup %11794 }
 0x5bf   : > { %v14720_v9 = vmul.f32 %v11795_v63, %v14544_v24  ;;  %v4220_v1 = vmul.f32 %v11795_v63, %v14548_v38  ;;  %v11517_v24 = vld [vmem:[#allocation3 + $0x18] sm:$0xff]   ;;  %v3909_v63 = vsub.f32 %v14060_v20, %v14347_v11 }
 0x5c1   : > { %18308 = vst [vmem:[#allocation77_spill] sm:$0xff] %v14720_v9  ;;  %9442 = vst [vmem:[%s14153_s3 + $0x210] sm:$0xff] %v14720_v9 }
 0x5c2   : > { %4494 = vrot.lane.b32.xlu1 %v11516_v31, %s12808_s22  ;;  %9443 = vst [vmem:[%s14153_s3 + $0x218] sm:$0xff] %v4220_v1 }
 0x5c6   : > { %v4091_v39 = vpop.xlane.xlu0 %4090 }
 0x5c7   : > { %11796 = vrcp.f32 %v4091_v39  ;;  %v3910_v39 = vsub.f32 %v14072_v52, %v14347_v11 }
 0x5c9   : > { %v10463_v10 = vpop.f32.mrf.mxu0 }
 0x5ca   : > { %v6569_v19 = vpop.permute.xlu0 %6568 }
 0x5cb   : > { %v10464_v12 = vpop.f32.mrf.mxu0  ;;  %10853 = vmatprep.mubr.msk.bf16.mxu1 %vm2004_vm0, %v6569_v19 }
 0x5cc   : > { %v10465_v38 = vadd.f32 %v10464_v12, %v10463_v10  ;;  %10854 = vmatmul.mubr.msk.bf16.gmra.mxu1 %vm2004_vm0, %v6569_v19  ;;  %v3985_v10 = vmul.f32 1.442695, %v3909_v63  ;;  %v3911_v19 = vsub.f32 %v14084_v35, %v14389_v51  ;;  %v3888_v63 = vmax.f32 %v14611_v16, %v14618_v26 }
 0x5cd   : > { %v10466_v32 = vpop.f32.mrf.mxu0  ;;  %4496 = vrot.lane.b32.xlu0 %v11517_v24, %s12808_s22  ;;  %v3987_v24 = vmul.f32 1.442695, %v3910_v39 }
 0x5ce   : > { %v9963_v7 = vpack.c.bf16 %v10465_v38, %v10465_v38  ;;  %v3912_v38 = vsub.f32 %v14090_v37, %v14389_v51  ;;  %11798 = vpow2.f32 %v3985_v10  ;;  %v3989_v11 = vmul.f32 1.442695, %v3911_v19 }
 0x5cf   : > { %v10467_v31 = vpop.f32.mrf.mxu0  ;;  %11800 = vpow2.f32 %v3987_v24  ;;  %v3885_v51 = vmax.f32 %v14604_v48, %v14609_v18 }
 0x5d0   : > { %3310 = vst.msk [vmem:[#allocation4 + $0x58] sm:$0xf] %vm3287_vm1, %v9963_v7  ;;  %v10468_v47 = vadd.f32 %v10467_v31, %v10466_v32  ;;  %v3991_v32 = vmul.f32 1.442695, %v3912_v38  ;;  %11802 = vpow2.f32 %v3989_v11 }
 0x5d2   : > { %v9964_v4 = vpack.c.bf16 %v10468_v47, %v10468_v47  ;;  %11804 = vpow2.f32 %v3991_v32 }
 0x5d4   : > { %v11797_v12 = vpop.eup %11796  ;;  %3311 = vst.msk [vmem:[#allocation4 + $0x5c] sm:$0xf] %vm3287_vm1, %v9964_v4  ;;  %v14763_v4 = vpop.f32.mrf.mxu1 }
 0x5d5   : > { %v14747_v20 = vmul.f32 %v11797_v12, %v14576_v25  ;;  %v4218_v52 = vmul.f32 %v11797_v12, %v14578_v6  ;;  %18315 = vst [vmem:[#allocation84_spill] sm:$0xff] %v14763_v4 }
 0x5d6   : > { %v14771_v39 = vpop.f32.mrf.mxu1 }
 0x5d7   : > { %18311 = vst [vmem:[#allocation80_spill] sm:$0xff] %v14747_v20  ;;  %9440 = vst [vmem:[%s14153_s3 + $0x200] sm:$0xff] %v14747_v20  ;;  %v4347_v47 = vpack.c.bf16 %v4220_v1, %v4218_v52 }
 0x5d8   : > { %9441 = vst [vmem:[%s14153_s3 + $0x208] sm:$0xff] %v4218_v52  ;;  %18317 = vst [vmem:[#allocation82_spill] sm:$0xff] %v14771_v39  ;;  %v14777_v52 = vpop.f32.mrf.mxu1 }
 0x5d9   : > { %4570 = vmatprep.mubr.bf16.mxu0 %v4347_v47  ;;  %18318 = vst [vmem:[#allocation48_spill] sm:$0xff] %v14777_v52 }
 0x5db   : > { %v14755_v37 = vpop.eup %11798 }
 0x5dc   : > { %18312 = vst [vmem:[#allocation49_spill] sm:$0xff] %v14755_v37  ;;  %v14759_v25 = vpop.eup %11800 }
 0x5dd   : > { %18313 = vst [vmem:[#allocation46_spill] sm:$0xff] %v14759_v25  ;;  %v14761_v6 = vpop.eup %11802  ;;  %v4107_v1 = vadd.f32 %v14759_v25, %v14755_v37 }
 0x5de   : > { %18314 = vst [vmem:[#allocation83_spill] sm:$0xff] %v14761_v6 }
 0x5df   : > { %v14767_v7 = vpop.eup %11804 }
 0x5e0   : > { %18316 = vst [vmem:[#allocation81_spill] sm:$0xff] %v14767_v7  ;;  %v4110_v10 = vadd.f32 %v14767_v7, %v14761_v6  ;;  %v18324_v6 = vld [vmem:[#allocation50_spill] sm:$0xff] }
 0x5e6   : > { %3886 = vmax.xlane.f32.xlu1 %v3885_v51 }
 0x5ea   : > { %4108 = vadd.xlane.f32.xlu1 %v4107_v1 }
 0x5eb   : > { %v10469_v31 = vpop.f32.mrf.mxu0 }
 0x5ec   : > { %3889 = vmax.xlane.f32.xlu0 %v3888_v63  ;;  %v14780_v63 = vpop.f32.mrf.mxu1 }
 0x5ed   : > { %v14775_v19 = vpop.xlane.xlu1 %3874  ;;  %v10470_v12 = vpop.f32.mrf.mxu0  ;;  %18319 = vst [vmem:[#allocation85_spill] sm:$0xff] %v14780_v63 }
 0x5ee   : > { %4111 = vadd.xlane.f32.xlu1 %v4110_v10  ;;  %v10471_v24 = vadd.f32 %v10470_v12, %v10469_v31  ;;  %v14785_v31 = vpop.f32.mrf.mxu1 }
 0x5ef   : > { %v10472_v38 = vpop.f32.mrf.mxu0  ;;  %18320 = vst [vmem:[#allocation86_spill] sm:$0xff] %v14785_v31 }
 0x5f0   : > { %v9965_v11 = vpack.c.bf16 %v10471_v24, %v10471_v24  ;;  %v14789_v12 = vpop.f32.mrf.mxu1  ;;  %v11518_v24 = vld [vmem:[#allocation3 + $0x8] sm:$0xff]  }
 0x5f1   : > { %v4517_v47 = vpop.permute.xlu1 %4516  ;;  %v10473_v32 = vpop.f32.mrf.mxu0  ;;  %18321 = vst [vmem:[#allocation87_spill] sm:$0xff] %v14789_v12 }
 0x5f2   : > { %3312 = vst.msk [vmem:[#allocation4 + $0x60] sm:$0xf] %vm3287_vm1, %v9965_v11  ;;  %v10474_v51 = vadd.f32 %v10473_v32, %v10472_v38  ;;  %10545 = vmatprep.subr.bf16.mxu0 %v4517_v47  ;;  %v11519_v11 = vld [vmem:[#allocation3 + $0x48] sm:$0xff]   ;;  %v14792_v47 = vpop.f32.mrf.mxu1  ;;  %v11520_v32 = vld [vmem:[#allocation3] sm:$0xff]  }
 0x5f3   : > { %18322 = vst [vmem:[#allocation88_spill] sm:$0xff] %v14792_v47 }
 0x5f4   : > { %v9966_v1 = vpack.c.bf16 %v10474_v51, %v10474_v51  ;;  %v14796_v51 = vpop.f32.mrf.mxu1 }
 0x5f5   : > { %v6571_v35 = vpop.permute.xlu1 %6570  ;;  %18323 = vst [vmem:[#allocation47_spill] sm:$0xff] %v14796_v51 }
 0x5f6   : > { %3313 = vst.msk [vmem:[#allocation4 + $0x64] sm:$0xf] %vm3287_vm1, %v9966_v1  ;;  %10855 = vmatprep.mubr.msk.bf16.mxu1 %vm2004_vm0, %v6571_v35  ;;  %v14800_v20 = vpop.f32.mrf.mxu1 }
 0x5f7   : > { %10856 = vmatmul.mubr.msk.bf16.gmra.mxu1 %vm2004_vm0, %v6571_v35  ;;  %18325 = vst [vmem:[#allocation89_spill] sm:$0xff] %v14800_v20 }
 0x5f9   : > { %v4515_v1 = vpop.permute.xlu1 %4514 }
 0x5fb   : > { %v14787_v10 = vpop.xlane.xlu0 %3877 }
 0x5ff   : > { %4492 = vrot.lane.b32.xlu1 %v11518_v24, %s12808_s22  ;;  %v4097_v38 = vpop.xlane.xlu0 %4096  ;;  %v11521_v24 = vld [vmem:[#allocation3 + $0x40] sm:$0xff]  }
 0x600   : > { %11806 = vrcp.f32 %v4097_v38  ;;  %v4499_v38 = vpop.permute.xlu1 %4498 }
 0x602   : > { %4508 = vrot.lane.b32.xlu0 %v11519_v11, %s12808_s22 }
 0x603   : > { %4490 = vrot.lane.b32.xlu1 %v11520_v32, %s12808_s22  ;;  %v4100_v35 = vpop.xlane.xlu0 %4099  ;;  %v14803_v32 = vpop.f32.mrf.mxu1 }
 0x604   : > { %11808 = vrcp.f32 %v4100_v35  ;;  %18326 = vst [vmem:[#allocation90_spill] sm:$0xff] %v14803_v32 }
 0x605   : > { %v14811_v16 = vpop.f32.mrf.mxu1 }
 0x606   : > { %6574 = vrot.lane.b32.xlu0 %v18324_v6, %s12809_s26  ;;  %18329 = vst [vmem:[#allocation93_spill] sm:$0xff] %v14811_v16 }
 0x607   : > { %v4501_v7 = vpop.permute.xlu0 %4500 }
 0x608   : > { %10546 = vmatpush3.bf16.msra.mxu0 %v4501_v7 }
 0x609   : > { %10547 = vmatprep.subr.bf16.mxu0 %v4515_v1 }
 0x60a   : > { %v10475_v9 = vpop.f32.mrf.mxu0  ;;  %4506 = vrot.lane.b32.xlu0 %v11521_v24, %s12808_s22 }
 0x60c   : > { %v10476_v11 = vpop.f32.mrf.mxu0  ;;  %10548 = vmatpush3.bf16.msra.mxu0 %v4499_v38 }
 0x60d   : > { %v10477_v35 = vadd.f32 %v10476_v11, %v10475_v9  ;;  %v11807_v25 = vpop.eup %11806  ;;  %v3913_v9 = vsub.f32 %v14126_v49, %v14437_v13 }
 0x60e   : > { %v10478_v37 = vpop.f32.mrf.mxu0  ;;  %v14806_v26 = vmul.f32 %v11807_v25, %v14644_v17  ;;  %v14809_v1 = vmul.f32 %v11807_v25, %v14639_v62  ;;  %v3914_v62 = vsub.f32 %v14128_v36, %v14437_v13  ;;  %v18331_v36 = vld [vmem:[#allocation58_spill] sm:$0xff] }
 0x60f   : > { %v9967_v6 = vpack.c.bf16 %v10477_v35, %v10477_v35  ;;  %v3918_v35 = vsub.f32 %v14186_v22, %v14443_v3  ;;  %v3993_v13 = vmul.f32 1.442695, %v3913_v9  ;;  %v3921_v22 = vsub.f32 %v14245_v45, %v14521_v50 }
 0x610   : > { %v10479_v7 = vpop.f32.mrf.mxu0  ;;  %18327 = vst [vmem:[#allocation51_spill] sm:$0xff] %v14806_v26  ;;  %18328 = vst [vmem:[#allocation50_spill] sm:$0xff] %v14809_v1  ;;  %v3922_v9 = vsub.f32 %v14251_v41, %v14521_v50  ;;  %v3894_v41 = vmax.f32 %v14660_v14, %v14665_v27 }
 0x611   : > { %v11809_v24 = vpop.eup %11808  ;;  %3314 = vst.msk [vmem:[#allocation4 + $0x68] sm:$0xf] %vm3287_vm1, %v9967_v6  ;;  %v10480_v38 = vadd.f32 %v10479_v7, %v10478_v37  ;;  %9445 = vst [vmem:[%s14153_s3 + $0x228] sm:$0xff] %v14806_v26  ;;  %v3917_v37 = vsub.f32 %v14174_v8, %v14443_v3  ;;  %v3915_v8 = vsub.f32 %v18331_v36, %v14393_v55  ;;  %v18332_v6 = vld [vmem:[#allocation59_spill] sm:$0xff]  ;;  %v4003_v26 = vmul.f32 1.442695, %v3918_v35 }
 0x612   : > { %v14817_v11 = vmul.f32 %v11809_v24, %v14653_v42  ;;  %v14822_v17 = vmul.f32 %v11809_v24, %v14648_v59  ;;  %9444 = vst [vmem:[%s14153_s3 + $0x220] sm:$0xff] %v14809_v1  ;;  %v14838_v42 = vpop.f32.mrf.mxu1  ;;  %v3916_v7 = vsub.f32 %v18332_v6, %v14393_v55  ;;  %v3995_v24 = vmul.f32 1.442695, %v3914_v62  ;;  %v18335_v62 = vld [vmem:[#allocation60_spill] sm:$0xff] }
 0x613   : > { %v9968_v25 = vpack.c.bf16 %v10480_v38, %v10480_v38  ;;  %18330 = vst [vmem:[#allocation94_spill] sm:$0xff] %v14838_v42  ;;  %v4001_v38 = vmul.f32 1.442695, %v3917_v37  ;;  %v3997_v59 = vmul.f32 1.442695, %v3915_v8  ;;  %11810 = vpow2.f32 %v3993_v13 }
 0x614   : > { %9447 = vst [vmem:[%s14153_s3 + $0x238] sm:$0xff] %v14817_v11  ;;  %9446 = vst [vmem:[%s14153_s3 + $0x230] sm:$0xff] %v14822_v17  ;;  %v14847_v49 = vpop.f32.mrf.mxu1  ;;  %v3999_v1 = vmul.f32 1.442695, %v3916_v7  ;;  %11812 = vpow2.f32 %v3995_v24  ;;  %v3919_v55 = vsub.f32 %v14196_v57, %v14485_v46  ;;  %v4009_v37 = vmul.f32 1.442695, %v3921_v22 }
 0x615   : > { %3315 = vst.msk [vmem:[#allocation4 + $0x6c] sm:$0xf] %vm3287_vm1, %v9968_v25  ;;  %18333 = vst [vmem:[#allocation58_spill] sm:$0xff] %v14847_v49  ;;  %11814 = vpow2.f32 %v4001_v38  ;;  %v3920_v25 = vsub.f32 %v18335_v62, %v14485_v46  ;;  %v4011_v36 = vmul.f32 1.442695, %v3922_v9  ;;  %v18339_v57 = vld [vmem:[#allocation41_spill] sm:$0xff]  ;;  %v3891_v24 = vmax.f32 %v14646_v61, %v14655_v56 }
 0x616   : > { %v14851_v3 = vpop.f32.mrf.mxu1  ;;  %11816 = vpow2.f32 %v4003_v26  ;;  %v4005_v8 = vmul.f32 1.442695, %v3919_v55  ;;  %v18337_v26 = vld [vmem:[#allocation62_spill] sm:$0xff]  ;;  %v18340_v46 = vld [vmem:[#allocation92_spill] sm:$0xff]  ;;  %v18343_v38 = vld [vmem:[#allocation61_spill] sm:$0xff] }
 0x617   : > { %18334 = vst [vmem:[#allocation59_spill] sm:$0xff] %v14851_v3  ;;  %11818 = vpow2.f32 %v3997_v59  ;;  %v4007_v45 = vmul.f32 1.442695, %v3920_v25  ;;  %v3925_v13 = vsub.f32 %v18337_v26, %v14528_v30  ;;  %v18341_v59 = vld [vmem:[#allocation38_spill] sm:$0xff]  ;;  %v3924_v22 = vsub.f32 %v18343_v38, %v18340_v46 }
 0x618   : > { %11820 = vpow2.f32 %v3999_v1  ;;  %v14859_v35 = vpop.f32.mrf.mxu1  ;;  %v3926_v1 = vsub.f32 %v18339_v57, %v14528_v30  ;;  %v3923_v6 = vsub.f32 %v18341_v59, %v18340_v46  ;;  %v5389_v30 = vmax.f32 %v14717_v21, %v14727_v2  ;;  %v18350_v57 = vld [vmem:[#allocation64_spill] sm:$0xff] }
 0x619   : > { %18336 = vst [vmem:[#allocation60_spill] sm:$0xff] %v14859_v35  ;;  %11822 = vpow2.f32 %v4009_v37  ;;  %v4017_v55 = vmul.f32 1.442695, %v3925_v13  ;;  %v4015_v26 = vmul.f32 1.442695, %v3924_v22  ;;  %v3929_v46 = vsub.f32 %v18350_v57, %v14599_v15  ;;  %v18353_v22 = vld [vmem:[#allocation63_spill] sm:$0xff] }
 0x61a   : > { %v14865_v50 = vpop.f32.mrf.mxu1  ;;  %11824 = vpow2.f32 %v4011_v36  ;;  %v4019_v37 = vmul.f32 1.442695, %v3926_v1  ;;  %v18352_v1 = vld [vmem:[#allocation42_spill] sm:$0xff]  ;;  %v18354_v57 = vld [vmem:[#allocation40_spill] sm:$0xff] }
 0x61b   : > { %18338 = vst [vmem:[#allocation62_spill] sm:$0xff] %v14865_v50  ;;  %11826 = vpow2.f32 %v4005_v8  ;;  %v4013_v8 = vmul.f32 1.442695, %v3923_v6  ;;  %v3930_v6 = vsub.f32 %v18352_v1, %v14599_v15 }
 0x61c   : > { %11828 = vpow2.f32 %v4007_v45  ;;  %v14883_v25 = vpop.f32.mrf.mxu1 }
 0x61d   : > { %18346 = vst [vmem:[#allocation61_spill] sm:$0xff] %v14883_v25  ;;  %11830 = vpow2.f32 %v4017_v55 }
 0x61e   : > { %v14895_v38 = vpop.f32.mrf.mxu1  ;;  %11832 = vpow2.f32 %v4019_v37 }
 0x61f   : > { %18351 = vst [vmem:[#allocation64_spill] sm:$0xff] %v14895_v38  ;;  %11834 = vpow2.f32 %v4013_v8  ;;  %v5395_v8 = vmax.f32 %v14763_v4, %v14771_v39  ;;  %v18358_v39 = vld [vmem:[#allocation55_spill] sm:$0xff]  ;;  %v18359_v4 = vld [vmem:[#allocation52_spill] sm:$0xff] }
 0x620   : > { %v14871_v7 = vpop.eup %11810  ;;  %11836 = vpow2.f32 %v4015_v26  ;;  %v3931_v21 = vsub.f32 %v18359_v4, %v18358_v39 }
 0x621   : > { %18342 = vst [vmem:[#allocation41_spill] sm:$0xff] %v14871_v7  ;;  %v14877_v9 = vpop.eup %11812 }
 0x622   : > { %18344 = vst [vmem:[#allocation92_spill] sm:$0xff] %v14877_v9  ;;  %v14879_v62 = vpop.eup %11814 }
 0x623   : > { %18345 = vst [vmem:[#allocation38_spill] sm:$0xff] %v14879_v62  ;;  %v14885_v36 = vpop.eup %11816 }
 0x624   : > { %18347 = vst [vmem:[#allocation95_spill] sm:$0xff] %v14885_v36  ;;  %v14887_v45 = vpop.eup %11818 }
 0x625   : > { %18348 = vst [vmem:[#allocation96_spill] sm:$0xff] %v14887_v45  ;;  %v14891_v13 = vpop.eup %11820 }
 0x626   : > { %18349 = vst [vmem:[#allocation97_spill] sm:$0xff] %v14891_v13  ;;  %v4116_v15 = vadd.f32 %v14891_v13, %v14887_v45  ;;  %v14909_v2 = vpop.eup %11822  ;;  %v18356_v45 = vld [vmem:[#allocation65_spill] sm:$0xff] }
 0x627   : > { %3895 = vmax.xlane.f32.xlu1 %v3894_v41  ;;  %v4113_v41 = vadd.f32 %v14877_v9, %v14871_v7  ;;  %v3928_v9 = vsub.f32 %v18354_v57, %v14566_v29  ;;  %v14915_v26 = vpop.eup %11824  ;;  %v3933_v13 = vsub.f32 %v18356_v45, %v14602_v58 }
 0x629   : > { %3892 = vmax.xlane.f32.xlu0 %v3891_v24  ;;  %v4119_v24 = vadd.f32 %v14885_v36, %v14879_v62  ;;  %v4027_v62 = vmul.f32 1.442695, %v3930_v6  ;;  %v4023_v57 = vmul.f32 1.442695, %v3928_v9  ;;  %v4125_v9 = vadd.f32 %v14915_v26, %v14909_v2 }
 0x62b   : > { %5390 = vmax.xlane.f32.xlu1 %v5389_v30  ;;  %v3927_v30 = vsub.f32 %v18353_v22, %v14566_v29  ;;  %v14913_v22 = vpop.f32.mrf.mxu1 }
 0x62c   : > { %v10481_v59 = vpop.f32.mrf.mxu0  ;;  %18355 = vst [vmem:[#allocation42_spill] sm:$0xff] %v14913_v22 }
 0x62d   : > { %4114 = vadd.xlane.f32.xlu0 %v4113_v41  ;;  %v4025_v41 = vmul.f32 1.442695, %v3929_v46  ;;  %v4021_v29 = vmul.f32 1.442695, %v3927_v30  ;;  %v5392_v46 = vmax.f32 %v14729_v60, %v14732_v53  ;;  %v18357_v30 = vld [vmem:[#allocation66_spill] sm:$0xff]  ;;  %v14932_v45 = vpop.f32.mrf.mxu1 }
 0x62e   : > { %v14903_v7 = vpop.xlane.xlu1 %3880  ;;  %v10482_v55 = vpop.f32.mrf.mxu0  ;;  %18360 = vst [vmem:[#allocation63_spill] sm:$0xff] %v14932_v45 }
 0x62f   : > { %4120 = vadd.xlane.f32.xlu1 %v4119_v24  ;;  %v10483_v37 = vadd.f32 %v10482_v55, %v10481_v59  ;;  %v14917_v55 = vpop.eup %11826  ;;  %11838 = vpow2.f32 %v4025_v41  ;;  %v4033_v41 = vmul.f32 1.442695, %v3933_v13 }
 0x630   : > { %v10484_v1 = vpop.f32.mrf.mxu0  ;;  %11840 = vpow2.f32 %v4027_v62 }
 0x631   : > { %v9969_v36 = vpack.c.bf16 %v10483_v37, %v10483_v37  ;;  %4117 = vadd.xlane.f32.xlu0 %v4116_v15  ;;  %v14924_v37 = vpop.eup %11828  ;;  %v3934_v15 = vsub.f32 %v18357_v30, %v14602_v58  ;;  %11842 = vpow2.f32 %v4021_v29  ;;  %v18363_v30 = vld [vmem:[#allocation68_spill] sm:$0xff] }
 0x632   : > { %v4513_v24 = vpop.permute.xlu1 %4512  ;;  %v10485_v59 = vpop.f32.mrf.mxu0  ;;  %11844 = vpow2.f32 %v4023_v57  ;;  %v4122_v58 = vadd.f32 %v14924_v37, %v14917_v55  ;;  %v5398_v57 = vmax.f32 %v14777_v52, %v14780_v63 }
 0x633   : > { %3316 = vst.msk [vmem:[#allocation4 + $0x70] sm:$0xf] %vm3287_vm1, %v9969_v36  ;;  %5396 = vmax.xlane.f32.xlu1 %v5395_v8  ;;  %v10486_v6 = vadd.f32 %v10485_v59, %v10484_v1  ;;  %10549 = vmatprep.subr.bf16.mxu0 %v4513_v24  ;;  %v18361_v36 = vld [vmem:[#allocation53_spill] sm:$0xff]  ;;  %v4035_v4 = vmul.f32 1.442695, %v3934_v15  ;;  %v14943_v29 = vpop.eup %11830  ;;  %11846 = vpow2.f32 %v4033_v41  ;;  %v3937_v15 = vsub.f32 %v18363_v30, %v14678_v34  ;;  %v18366_v41 = vld [vmem:[#allocation36_spill] sm:$0xff] }
 0x634   : > { %v3932_v1 = vsub.f32 %v18361_v36, %v18358_v39  ;;  %v5401_v39 = vmax.f32 %v14785_v31, %v14789_v12  ;;  %v4029_v24 = vmul.f32 1.442695, %v3931_v21  ;;  %v14947_v13 = vpop.eup %11832 }
 0x635   : > { %v9970_v53 = vpack.c.bf16 %v10486_v6, %v10486_v6  ;;  %5393 = vmax.xlane.f32.xlu0 %v5392_v46  ;;  %v14951_v46 = vpop.eup %11834  ;;  %11848 = vpow2.f32 %v4035_v4  ;;  %v18367_v4 = vld [vmem:[#allocation67_spill] sm:$0xff]  ;;  %v4041_v30 = vmul.f32 1.442695, %v3937_v15  ;;  %v5404_v15 = vmax.f32 %v14792_v47, %v14796_v51 }
 0x636   : > { %v6573_v8 = vpop.permute.xlu1 %6572  ;;  %v4031_v59 = vmul.f32 1.442695, %v3932_v1  ;;  %v14955_v6 = vpop.eup %11836  ;;  %11850 = vpow2.f32 %v4029_v24  ;;  %v4131_v1 = vadd.f32 %v14947_v13, %v14943_v29 }
 0x637   : > { %3317 = vst.msk [vmem:[#allocation4 + $0x74] sm:$0xf] %vm3287_vm1, %v9970_v53  ;;  %4126 = vadd.xlane.f32.xlu1 %v4125_v9  ;;  %10857 = vmatprep.mubr.msk.bf16.mxu1 %vm2004_vm0, %v6573_v8  ;;  %v14949_v53 = vpop.f32.mrf.mxu1  ;;  %v18364_v9 = vld [vmem:[#allocation43_spill] sm:$0xff]  ;;  %v4128_v24 = vadd.f32 %v14955_v6, %v14951_v46 }
 0x638   : > { %10858 = vmatmul.mubr.msk.bf16.gmra.mxu1 %vm2004_vm0, %v6573_v8  ;;  %v14941_v62 = vpop.xlane.xlu0 %3883  ;;  %18362 = vst [vmem:[#allocation40_spill] sm:$0xff] %v14949_v53  ;;  %v3938_v36 = vsub.f32 %v18364_v9, %v14678_v34  ;;  %11852 = vpow2.f32 %v4031_v59  ;;  %v5407_v9 = vmax.f32 %v14800_v20, %v14803_v32  ;;  %v18370_v32 = vld [vmem:[#allocation54_spill] sm:$0xff] }
 0x639   : > { %4123 = vadd.xlane.f32.xlu0 %v4122_v58  ;;  %v14963_v8 = vpop.f32.mrf.mxu1  ;;  %v3935_v58 = vsub.f32 %v18366_v41, %v14635_v0  ;;  %v3942_v20 = vsub.f32 %v18370_v32, %v14682_v44 }
 0x63a   : > { %18365 = vst [vmem:[#allocation65_spill] sm:$0xff] %v14963_v8  ;;  %v4043_v12 = vmul.f32 1.442695, %v3938_v36  ;;  %v18369_v36 = vld [vmem:[#allocation91_spill] sm:$0xff] }
 0x63b   : > { %5402 = vmax.xlane.f32.xlu1 %v5401_v39  ;;  %v3936_v39 = vsub.f32 %v18367_v4, %v14635_v0  ;;  %v14977_v41 = vpop.f32.mrf.mxu1  ;;  %v4037_v0 = vmul.f32 1.442695, %v3935_v58  ;;  %v4051_v47 = vmul.f32 1.442695, %v3942_v20 }
 0x63c   : > { %v4103_v21 = vpop.xlane.xlu0 %4102  ;;  %18368 = vst [vmem:[#allocation66_spill] sm:$0xff] %v14977_v41 }
 0x63d   : > { %5399 = vmax.xlane.f32.xlu0 %v5398_v57  ;;  %11854 = vrcp.f32 %v4103_v21  ;;  %v14971_v57 = vpop.eup %11838  ;;  %v4511_v21 = vpop.permute.xlu1 %4510  ;;  %v4039_v4 = vmul.f32 1.442695, %v3936_v39  ;;  %v18372_v39 = vld [vmem:[#allocation76_spill] sm:$0xff] }
 0x63e   : > { %v14975_v59 = vpop.eup %11840  ;;  %v14991_v63 = vpop.f32.mrf.mxu1 }
 0x63f   : > { %4132 = vadd.xlane.f32.xlu1 %v4131_v1  ;;  %v14979_v1 = vpop.eup %11842  ;;  %v4137_v58 = vadd.f32 %v14975_v59, %v14971_v57  ;;  %18371 = vst [vmem:[#allocation55_spill] sm:$0xff] %v14991_v63 }
 0x640   : > { %v4106_v34 = vpop.xlane.xlu0 %4105  ;;  %v14983_v31 = vpop.eup %11844 }
 0x641   : > { %11856 = vrcp.f32 %v4106_v34  ;;  %4129 = vadd.xlane.f32.xlu0 %v4128_v24  ;;  %v3941_v34 = vsub.f32 %v18369_v36, %v14682_v44  ;;  %v4134_v44 = vadd.f32 %v14983_v31, %v14979_v1 }
 0x642   : > { %11858 = vpow2.f32 %v4041_v30  ;;  %v18374_v30 = vld [vmem:[#allocation56_spill] sm:$0xff] }
 0x643   : > { %5408 = vmax.xlane.f32.xlu1 %v5407_v9  ;;  %11860 = vpow2.f32 %v4043_v12  ;;  %v18373_v9 = vld [vmem:[#allocation57_spill] sm:$0xff]  ;;  %v3940_v36 = vsub.f32 %v18374_v30, %v18372_v39  ;;  %v14999_v12 = vpop.eup %11846  ;;  %v4049_v32 = vmul.f32 1.442695, %v3941_v34 }
 0x644   : > { %v4497_v24 = vpop.permute.xlu0 %4496  ;;  %11862 = vpow2.f32 %v4037_v0  ;;  %v3939_v51 = vsub.f32 %v18373_v9, %v18372_v39  ;;  %v5413_v0 = vmax.f32 %v14847_v49, %v14851_v3  ;;  %v5410_v9 = vmax.f32 %v14811_v16, %v14838_v42  ;;  %v18376_v3 = vld [vmem:[#allocation37_spill] sm:$0xff] }
 0x645   : > { %5405 = vmax.xlane.f32.xlu0 %v5404_v15  ;;  %10550 = vmatpush3.bf16.msra.mxu0 %v4497_v24  ;;  %11864 = vpow2.f32 %v4039_v4  ;;  %v4495_v15 = vpop.permute.xlu1 %4494  ;;  %v15001_v24 = vpop.eup %11848  ;;  %v4047_v34 = vmul.f32 1.442695, %v3940_v36  ;;  %v3945_v20 = vsub.f32 %v18376_v3, %v14775_v19  ;;  %v18379_v3 = vld [vmem:[#allocation69_spill] sm:$0xff] }
 0x646   : > { %10551 = vmatprep.subr.bf16.mxu0 %v4511_v21  ;;  %v15005_v21 = vpop.eup %11850  ;;  %v15007_v4 = vpop.f32.mrf.mxu1  ;;  %11866 = vpow2.f32 %v4049_v32 }
 0x647   : > { %4138 = vadd.xlane.f32.xlu1 %v4137_v58  ;;  %18375 = vst [vmem:[#allocation52_spill] sm:$0xff] %v15007_v4  ;;  %v4045_v58 = vmul.f32 1.442695, %v3939_v51  ;;  %v15009_v39 = vpop.eup %11852  ;;  %11868 = vpow2.f32 %v4051_v47  ;;  %v3943_v47 = vsub.f32 %v18379_v3, %v14695_v33 }
 0x648   : > { %v15025_v42 = vpop.f32.mrf.mxu1 }
 0x649   : > { %4135 = vadd.xlane.f32.xlu0 %v4134_v44  ;;  %10552 = vmatpush3.bf16.msra.mxu0 %v4495_v15  ;;  %v4143_v44 = vadd.f32 %v15001_v24, %v14999_v12  ;;  %v18377_v15 = vld [vmem:[#allocation71_spill] sm:$0xff]  ;;  %18378 = vst [vmem:[#allocation53_spill] sm:$0xff] %v15025_v42  ;;  %11870 = vpow2.f32 %v4045_v58 }
 0x64a   : > { %v11855_v52 = vpop.eup %11854  ;;  %v3946_v51 = vsub.f32 %v18377_v15, %v14775_v19  ;;  %v4140_v19 = vadd.f32 %v15009_v39, %v15005_v21  ;;  %11872 = vpow2.f32 %v4047_v34  ;;  %v5419_v34 = vmax.f32 %v14883_v25, %v14895_v38 }
 0x64b   : > { %5414 = vmax.xlane.f32.xlu1 %v5413_v0  ;;  %v10487_v30 = vpop.f32.mrf.mxu0  ;;  %v15020_v36 = vmul.f32 %v11855_v52, %v14701_v5  ;;  %v15023_v0 = vmul.f32 %v11855_v52, %v14697_v43 }
 0x64d   : > { %v10488_v49 = vpop.f32.mrf.mxu0  ;;  %5411 = vmax.xlane.f32.xlu0 %v5410_v9  ;;  %v18380_v9 = vld [vmem:[#allocation70_spill] sm:$0xff]  ;;  %9449 = vst [vmem:[%s14153_s3 + $0x248] sm:$0xff] %v15020_v36  ;;  %9448 = vst [vmem:[%s14153_s3 + $0x240] sm:$0xff] %v15023_v0 }
 0x64e   : > { %v11857_v32 = vpop.eup %11856  ;;  %v10489_v16 = vadd.f32 %v10488_v49, %v10487_v30  ;;  %v3944_v5 = vsub.f32 %v18380_v9, %v14695_v33  ;;  %v4057_v49 = vmul.f32 1.442695, %v3945_v20  ;;  %v4059_v33 = vmul.f32 1.442695, %v3946_v51 }
 0x64f   : > { %4144 = vadd.xlane.f32.xlu1 %v4143_v44  ;;  %v10490_v43 = vpop.f32.mrf.mxu0  ;;  %v15034_v52 = vmul.f32 %v11857_v32, %v14708_v54  ;;  %v15039_v58 = vmul.f32 %v11857_v32, %v14703_v40  ;;  %v15043_v15 = vpop.eup %11858  ;;  %v5416_v51 = vmax.f32 %v14859_v35, %v14865_v50  ;;  %v3949_v40 = vsub.f32 %v14571_v28, %v14903_v7  ;;  %v18384_v28 = vld [vmem:[#allocation45_spill] sm:$0xff]  ;;  %v18407_v35 = vld [vmem:[#allocation83_spill] sm:$0xff] }
 0x650   : > { %v9971_v30 = vpack.c.bf16 %v10489_v16, %v10489_v16  ;;  %v15053_v54 = vpop.eup %11860  ;;  %v15055_v32 = vpop.f32.mrf.mxu1  ;;  %v4053_v16 = vmul.f32 1.442695, %v3943_v47  ;;  %11874 = vpow2.f32 %v4057_v49  ;;  %v3950_v47 = vsub.f32 %v14574_v23, %v14903_v7 }
 0x651   : > { %v10491_v44 = vpop.f32.mrf.mxu0  ;;  %4141 = vadd.xlane.f32.xlu0 %v4140_v19  ;;  %9451 = vst [vmem:[%s14153_s3 + $0x258] sm:$0xff] %v15034_v52  ;;  %9450 = vst [vmem:[%s14153_s3 + $0x250] sm:$0xff] %v15039_v58  ;;  %v15058_v3 = vpop.eup %11862  ;;  %v4055_v19 = vmul.f32 1.442695, %v3944_v5  ;;  %11876 = vpow2.f32 %v4059_v33  ;;  %v18383_v5 = vld [vmem:[#allocation72_spill] sm:$0xff]  ;;  %v3948_v49 = vsub.f32 %v18384_v28, %v14787_v10 }
 0x652   : > { %18381 = vst [vmem:[#allocation68_spill] sm:$0xff] %v15055_v32  ;;  %3318 = vst.msk [vmem:[#allocation4 + $0x78] sm:$0xf] %vm3287_vm1, %v9971_v30  ;;  %v10492_v20 = vadd.f32 %v10491_v44, %v10490_v43  ;;  %v15062_v9 = vpop.eup %11864  ;;  %v4149_v43 = vadd.f32 %v15053_v54, %v15043_v15  ;;  %v15070_v30 = vpop.f32.mrf.mxu1  ;;  %11878 = vpow2.f32 %v4053_v16  ;;  %v4065_v7 = vmul.f32 1.442695, %v3949_v40 }
 0x653   : > { %5420 = vmax.xlane.f32.xlu1 %v5419_v34  ;;  %18382 = vst [vmem:[#allocation43_spill] sm:$0xff] %v15070_v30  ;;  %v3947_v34 = vsub.f32 %v18383_v5, %v14787_v10  ;;  %11880 = vpow2.f32 %v4055_v19  ;;  %v4146_v23 = vadd.f32 %v15062_v9, %v15058_v3  ;;  %v15079_v33 = vpop.eup %11866  ;;  %v5425_v44 = vmax.f32 %v14949_v53, %v14963_v8 }
 0x654   : > { %v9972_v38 = vpack.c.bf16 %v10492_v20, %v10492_v20  ;;  %v4067_v16 = vmul.f32 1.442695, %v3950_v47  ;;  %v15083_v20 = vpop.eup %11868  ;;  %v5422_v10 = vmax.f32 %v14913_v22, %v14932_v45  ;;  %11882 = vpow2.f32 %v4065_v7 }
 0x655   : > { %5417 = vmax.xlane.f32.xlu0 %v5416_v51  ;;  %v15085_v51 = vpop.f32.mrf.mxu1  ;;  %v4155_v47 = vadd.f32 %v15083_v20, %v15079_v33 }
 0x656   : > { %3319 = vst.msk [vmem:[#allocation4 + $0x7c] sm:$0xf] %vm3287_vm1, %v9972_v38  ;;  %18385 = vst [vmem:[#allocation36_spill] sm:$0xff] %v15085_v51  ;;  %v4061_v38 = vmul.f32 1.442695, %v3947_v34  ;;  %v15087_v19 = vpop.eup %11870  ;;  %11884 = vpow2.f32 %v4067_v16  ;;  %v18387_v34 = vld [vmem:[#allocation73_spill] sm:$0xff] }
 0x657   : > { %4150 = vadd.xlane.f32.xlu1 %v4149_v43  ;;  %v4063_v43 = vmul.f32 1.442695, %v3948_v49  ;;  %v15091_v40 = vpop.eup %11872  ;;  %v15095_v5 = vpop.f32.mrf.mxu1  ;;  %v3951_v28 = vsub.f32 %v18387_v34, %v14941_v62 }
 0x658   : > { %18386 = vst [vmem:[#allocation67_spill] sm:$0xff] %v15095_v5  ;;  %11886 = vpow2.f32 %v4061_v38  ;;  %v4152_v49 = vadd.f32 %v15091_v40, %v15087_v19 }
 0x659   : > { %4147 = vadd.xlane.f32.xlu0 %v4146_v23  ;;  %11888 = vpow2.f32 %v4063_v43  ;;  %v18388_v23 = vld [vmem:[#allocation74_spill] sm:$0xff]  ;;  %v15109_v38 = vpop.f32.mrf.mxu1 }
 0x65a   : > { %v3952_v8 = vsub.f32 %v18388_v23, %v14941_v62  ;;  %18389 = vst [vmem:[#allocation91_spill] sm:$0xff] %v15109_v38  ;;  %v5428_v62 = vmax.f32 %v14977_v41, %v14991_v63 }
 0x65b   : > { %5426 = vmax.xlane.f32.xlu1 %v5425_v44  ;;  %v5431_v44 = vmax.f32 %v15007_v4, %v15025_v42  ;;  %v15119_v42 = vpop.f32.mrf.mxu1 }
 0x65c   : > { %v4071_v43 = vmul.f32 1.442695, %v3952_v8  ;;  %18390 = vst [vmem:[#allocation54_spill] sm:$0xff] %v15119_v42  ;;  %v5437_v8 = vmax.f32 %v15085_v51, %v15095_v5  ;;  %v5440_v53 = vmax.f32 %v15109_v38, %v15119_v42 }
 0x65d   : > { %5423 = vmax.xlane.f32.xlu0 %v5422_v10  ;;  %v15103_v7 = vpop.eup %11874  ;;  %v4069_v10 = vmul.f32 1.442695, %v3951_v28 }
 0x65e   : > { %v15107_v16 = vpop.eup %11876 }
 0x65f   : > { %4156 = vadd.xlane.f32.xlu1 %v4155_v47  ;;  %v15111_v34 = vpop.eup %11878  ;;  %v4161_v23 = vadd.f32 %v15107_v16, %v15103_v7  ;;  %11890 = vpow2.f32 %v4069_v10  ;;  %v5434_v10 = vmax.f32 %v15055_v32, %v15070_v30 }
 0x660   : > { %v15115_v47 = vpop.eup %11880  ;;  %11892 = vpow2.f32 %v4071_v43 }
 0x661   : > { %4153 = vadd.xlane.f32.xlu0 %v4152_v49  ;;  %v4158_v28 = vadd.f32 %v15115_v47, %v15111_v34  ;;  %v15123_v49 = vpop.eup %11882 }
 0x663   : > { %5432 = vmax.xlane.f32.xlu1 %v5431_v44  ;;  %v15127_v44 = vpop.eup %11884 }
 0x665   : > { %5429 = vmax.xlane.f32.xlu0 %v5428_v62  ;;  %v15129_v62 = vpop.f32.mrf.mxu1  ;;  %v15131_v4 = vpop.eup %11886 }
 0x666   : > { %18391 = vst [vmem:[#allocation76_spill] sm:$0xff] %v15129_v62  ;;  %v15135_v43 = vpop.eup %11888 }
 0x667   : > { %4162 = vadd.xlane.f32.xlu1 %v4161_v23  ;;  %v4167_v23 = vadd.f32 %v15127_v44, %v15123_v49  ;;  %v15139_v63 = vpop.f32.mrf.mxu1  ;;  %v4164_v5 = vadd.f32 %v15135_v43, %v15131_v4 }
 0x668   : > { %18392 = vst [vmem:[#allocation57_spill] sm:$0xff] %v15139_v63 }
 0x669   : > { %4159 = vadd.xlane.f32.xlu0 %v4158_v28  ;;  %v15153_v22 = vpop.f32.mrf.mxu1 }
 0x66a   : > { %18393 = vst [vmem:[#allocation56_spill] sm:$0xff] %v15153_v22 }
 0x66b   : > { %5438 = vmax.xlane.f32.xlu1 %v5437_v8  ;;  %v5443_v8 = vmax.f32 %v15129_v62, %v15139_v63  ;;  %v15159_v62 = vpop.f32.mrf.mxu1 }
 0x66c   : > { %v15147_v32 = vpop.eup %11890  ;;  %18396 = vst [vmem:[#allocation37_spill] sm:$0xff] %v15159_v62 }
 0x66d   : > { %5435 = vmax.xlane.f32.xlu0 %v5434_v10  ;;  %v15151_v45 = vpop.eup %11892 }
 0x66e   : > { %v4170_v63 = vadd.f32 %v15151_v45, %v15147_v32 }
 0x66f   : > { %4168 = vadd.xlane.f32.xlu1 %v4167_v23  ;;  %v3887_v28 = vpop.xlane.xlu1 %3886 }
 0x670   : > { %v3953_v51 = vsub.f32 %v14604_v48, %v3887_v28  ;;  %v3954_v41 = vsub.f32 %v14609_v18, %v3887_v28  ;;  %v18394_v18 = vld [vmem:[#allocation39_spill] sm:$0xff] }
 0x671   : > { %4165 = vadd.xlane.f32.xlu0 %v4164_v5 }
 0x672   : > { %v4073_v30 = vmul.f32 1.442695, %v3953_v51  ;;  %v4075_v10 = vmul.f32 1.442695, %v3954_v41  ;;  %v18395_v51 = vld [vmem:[#allocation75_spill] sm:$0xff] }
 0x673   : > { %5444 = vmax.xlane.f32.xlu1 %v5443_v8  ;;  %v4109_v23 = vpop.xlane.xlu1 %4108 }
 0x674   : > { %11894 = vpow2.f32 %v4073_v30 }
 0x675   : > { %11896 = vpow2.f32 %v4075_v10  ;;  %v3890_v48 = vpop.xlane.xlu0 %3889  ;;  %5441 = vmax.xlane.f32.xlu0 %v5440_v53  ;;  %v5446_v53 = vmax.f32 %v15153_v22, %v15159_v62  ;;  %v18403_v62 = vld [vmem:[#allocation77_spill] sm:$0xff]  ;;  %v18404_v22 = vld [vmem:[#allocation80_spill] sm:$0xff] }
 0x676   : > { %11898 = vrcp.f32 %v4109_v23  ;;  %v3955_v5 = vsub.f32 %v18394_v18, %v3890_v48  ;;  %v3956_v41 = vsub.f32 %v18395_v51, %v3890_v48  ;;  %v15163_v23 = vpop.f32.mrf.mxu1  ;;  %v18405_v25 = vpack.c.bf16 %v18403_v62, %v18404_v22 }
 0x677   : > { %v4112_v28 = vpop.xlane.xlu1 %4111  ;;  %18397 = vst [vmem:[#allocation71_spill] sm:$0xff] %v15163_v23  ;;  %v4351_v62 = vpack.c.bf16 %v15034_v52, %v15020_v36 }
 0x678   : > { %v4077_v8 = vmul.f32 1.442695, %v3955_v5  ;;  %v4079_v42 = vmul.f32 1.442695, %v3956_v41  ;;  %11900 = vrcp.f32 %v4112_v28  ;;  %v18400_v41 = vld [vmem:[#allocation46_spill] sm:$0xff] }
 0x679   : > { %v4509_v38 = vpop.permute.xlu0 %4508  ;;  %4171 = vadd.xlane.f32.xlu0 %v4170_v63 }
 0x67a   : > { %11902 = vpow2.f32 %v4077_v8  ;;  %10553 = vmatprep.subr.bf16.mxu0 %v4509_v38  ;;  %v15171_v38 = vpop.f32.mrf.mxu1  ;;  %v18401_v8 = vld [vmem:[#allocation49_spill] sm:$0xff] }
 0x67b   : > { %11904 = vpow2.f32 %v4079_v42  ;;  %v4493_v30 = vpop.permute.xlu1 %4492  ;;  %18399 = vst [vmem:[#allocation70_spill] sm:$0xff] %v15171_v38 }
 0x67c   : > { %10554 = vmatpush3.bf16.msra.mxu0 %v4493_v30 }
 0x67d   : > { %v6575_v10 = vpop.permute.xlu0 %6574  ;;  %5447 = vmax.xlane.f32.xlu0 %v5446_v53 }
 0x67e   : > { %10859 = vmatprep.mubr.msk.bf16.mxu1 %vm2004_vm0, %v6575_v10 }
 0x67f   : > { %10860 = vmatmul.mubr.msk.bf16.gmra.mxu1 %vm2004_vm0, %v6575_v10  ;;  %v4491_v42 = vpop.permute.xlu1 %4490  ;;  %v15177_v10 = vpop.f32.mrf.mxu1 }
 0x680   : > { %18402 = vst [vmem:[#allocation72_spill] sm:$0xff] %v15177_v10 }
 0x681   : > { %v15167_v48 = vpop.eup %11894  ;;  %v4507_v63 = vpop.permute.xlu0 %4506 }
 0x682   : > { %18398 = vst [vmem:[#allocation69_spill] sm:$0xff] %v15167_v48  ;;  %v15169_v18 = vpop.eup %11896  ;;  %10555 = vmatprep.subr.bf16.mxu0 %v4507_v63  ;;  %v18406_v63 = vld [vmem:[#allocation81_spill] sm:$0xff]  ;;  %v15199_v22 = vpop.f32.mrf.mxu1 }
 0x683   : > { %v11899_v5 = vpop.eup %11898  ;;  %v4173_v51 = vadd.f32 %v15169_v18, %v15167_v48  ;;  %10556 = vmatpush3.bf16.msra.mxu0 %v4491_v42  ;;  %18410 = vst [vmem:[#allocation45_spill] sm:$0xff] %v15199_v22 }
 0x684   : > { %v4230_v28 = vmul.f32 %v11899_v5, %v18400_v41  ;;  %v4229_v53 = vmul.f32 %v11899_v5, %v18401_v8  ;;  %v5449_v41 = vmax.f32 %v15163_v23, %v15171_v38  ;;  %v18408_v5 = vld [vmem:[#allocation51_spill] sm:$0xff]  ;;  %v18427_v23 = vld [vmem:[#allocation97_spill] sm:$0xff] }
 0x685   : > { %v11901_v30 = vpop.eup %11900  ;;  %4174 = vadd.xlane.f32.xlu1 %v4173_v51  ;;  %v18409_v51 = vpack.c.bf16 %v14817_v11, %v18408_v5  ;;  %v18411_v11 = vld [vmem:[#allocation50_spill] sm:$0xff]  ;;  %v18425_v38 = vld [vmem:[#allocation95_spill] sm:$0xff] }
 0x686   : > { %4571 = vmatmul.mubr.bf16.vlgmr.msra.gmra.mxu0 %v18405_v25  ;;  %v4232_v50 = vmul.f32 %v11901_v30, %v18406_v63  ;;  %9453 = vst [vmem:[%s14153_s3 + $0x268] sm:$0xff] %v4230_v28  ;;  %v4231_v48 = vmul.f32 %v11901_v30, %v18407_v35  ;;  %9452 = vst [vmem:[%s14153_s3 + $0x260] sm:$0xff] %v4229_v53  ;;  %v5452_v35 = vmax.f32 %v15177_v10, %v15199_v22 }
 0x687   : > { %v15186_v42 = vpop.eup %11902  ;;  %4578 = vmatprep.mubr.bf16.mxu0 %v18409_v51  ;;  %v18412_v30 = vpack.c.bf16 %v14822_v17, %v18411_v11 }
 0x688   : > { %v15193_v8 = vpop.eup %11904  ;;  %9455 = vst [vmem:[%s14153_s3 + $0x278] sm:$0xff] %v4232_v50  ;;  %9454 = vst [vmem:[%s14153_s3 + $0x270] sm:$0xff] %v4231_v48  ;;  %v4353_v63 = vpack.c.bf16 %v4232_v50, %v4230_v28  ;;  %v4352_v5 = vpack.c.bf16 %v4231_v48, %v4229_v53  ;;  %v18415_v48 = vld [vmem:[#allocation78_spill] sm:$0xff] }
 0x689   : > { %5450 = vmax.xlane.f32.xlu1 %v5449_v41  ;;  %v4176_v25 = vadd.f32 %v15193_v8, %v15186_v42  ;;  %v18413_v41 = vpack.c.bf16 %v15039_v58, %v15023_v0  ;;  %v18414_v58 = vld [vmem:[#allocation44_spill] sm:$0xff] }
 0x68b   : > { %4177 = vadd.xlane.f32.xlu0 %v4176_v25 }
 0x68e   : > { %4579 = vmatmul.mubr.bf16.gmra.mxu0 %v18412_v30 }
 0x68f   : > { %5453 = vmax.xlane.f32.xlu0 %v5452_v35  ;;  %4586 = vmatprep.mubr.bf16.mxu0 %v4351_v62 }
 0x696   : > { %4587 = vmatmul.mubr.bf16.gmra.mxu0 %v18413_v41 }
 0x697   : > { %4594 = vmatprep.mubr.bf16.mxu0 %v4353_v63 }
 0x69e   : > { %4595 = vmatmul.mubr.bf16.gmra.mxu0 %v4352_v5  ;;  %v18417_v5 = vld [vmem:[#allocation79_spill] sm:$0xff] }
 0x6b0   : > { %v3896_v51 = vpop.xlane.xlu1 %3895 }
 0x6b1   : > { %v3959_v25 = vsub.f32 %v14660_v14, %v3896_v51  ;;  %v3960_v22 = vsub.f32 %v14665_v27, %v3896_v51 }
 0x6b2   : > { %v3893_v36 = vpop.xlane.xlu0 %3892 }
 0x6b3   : > { %v4085_v52 = vmul.f32 1.442695, %v3959_v25  ;;  %v4087_v10 = vmul.f32 1.442695, %v3960_v22  ;;  %v3957_v17 = vsub.f32 %v14646_v61, %v3893_v36  ;;  %v3958_v35 = vsub.f32 %v14655_v56, %v3893_v36  ;;  %v15217_v22 = vpop.f32.mrf.mxu1 }
 0x6b4   : > { %v5391_v50 = vpop.xlane.xlu1 %5390 }
 0x6b5   : > { %11906 = vpow2.f32 %v4085_v52  ;;  %v4081_v28 = vmul.f32 1.442695, %v3957_v17  ;;  %v4083_v0 = vmul.f32 1.442695, %v3958_v35  ;;  %v5485_v62 = vsub.f32 %v18414_v58, %v5391_v50  ;;  %v15221_v63 = vpop.f32.mrf.mxu1 }
 0x6b6   : > { %11908 = vpow2.f32 %v4087_v10  ;;  %v5486_v53 = vsub.f32 %v18415_v48, %v5391_v50  ;;  %v4115_v11 = vpop.xlane.xlu0 %4114  ;;  %18416 = vst [vmem:[#allocation73_spill] sm:$0xff] %v15221_v63 }
 0x6b7   : > { %11910 = vpow2.f32 %v4081_v28  ;;  %v5549_v14 = vmul.f32 1.442695, %v5485_v62  ;;  %v15225_v36 = vpop.f32.mrf.mxu1 }
 0x6b8   : > { %11912 = vpow2.f32 %v4083_v0  ;;  %v5551_v27 = vmul.f32 1.442695, %v5486_v53  ;;  %v4121_v30 = vpop.xlane.xlu1 %4120  ;;  %18418 = vst [vmem:[#allocation74_spill] sm:$0xff] %v15225_v36 }
 0x6b9   : > { %11914 = vpow2.f32 %v5549_v14  ;;  %v15239_v48 = vpop.f32.mrf.mxu1 }
 0x6ba   : > { %11916 = vpow2.f32 %v5551_v27  ;;  %v4118_v61 = vpop.xlane.xlu0 %4117  ;;  %18422 = vst [vmem:[#allocation49_spill] sm:$0xff] %v15239_v48 }
 0x6bb   : > { %11918 = vrcp.f32 %v4115_v11 }
 0x6bc   : > { %11920 = vrcp.f32 %v4121_v30  ;;  %v15219_v56 = vpop.xlane.xlu1 %5396 }
 0x6bd   : > { %11922 = vrcp.f32 %v4118_v61  ;;  %v5458_v61 = vmax.f32 %v15225_v36, %v15239_v48 }
 0x6be   : > { %v5394_v10 = vpop.xlane.xlu0 %5393 }
 0x6bf   : > { %v5487_v41 = vsub.f32 %v14729_v60, %v5394_v10  ;;  %v5488_v51 = vsub.f32 %v18417_v5, %v5394_v10  ;;  %v18423_v5 = vld [vmem:[#allocation92_spill] sm:$0xff] }
 0x6c0   : > { %v4127_v25 = vpop.xlane.xlu1 %4126 }
 0x6c1   : > { %v5553_v52 = vmul.f32 1.442695, %v5487_v41  ;;  %v5555_v17 = vmul.f32 1.442695, %v5488_v51 }
 0x6c2   : > { %v15227_v35 = vpop.eup %11906  ;;  %v4124_v50 = vpop.xlane.xlu0 %4123 }
 0x6c3   : > { %18419 = vst [vmem:[#allocation39_spill] sm:$0xff] %v15227_v35  ;;  %v15229_v28 = vpop.eup %11908  ;;  %11924 = vpow2.f32 %v5553_v52  ;;  %v5455_v52 = vmax.f32 %v15217_v22, %v15221_v63 }
 0x6c4   : > { %v15231_v0 = vpop.eup %11910  ;;  %11926 = vpow2.f32 %v5555_v17  ;;  %v15233_v58 = vpop.xlane.xlu1 %5402  ;;  %v4182_v60 = vadd.f32 %v15229_v28, %v15227_v35 }
 0x6c5   : > { %18420 = vst [vmem:[#allocation75_spill] sm:$0xff] %v15231_v0  ;;  %v15237_v62 = vpop.eup %11912  ;;  %11928 = vrcp.f32 %v4127_v25 }
 0x6c6   : > { %18421 = vst [vmem:[#allocation46_spill] sm:$0xff] %v15237_v62  ;;  %v15241_v53 = vpop.eup %11914  ;;  %11930 = vrcp.f32 %v4124_v50  ;;  %4183 = vadd.xlane.f32.xlu0 %v4182_v60  ;;  %v15243_v11 = vpop.xlane.xlu0 %5399  ;;  %v4179_v14 = vadd.f32 %v15237_v62, %v15231_v0  ;;  %v18424_v50 = vld [vmem:[#allocation41_spill] sm:$0xff]  ;;  %v18428_v62 = vld [vmem:[#allocation96_spill] sm:$0xff] }
 0x6c7   : > { %v15247_v27 = vpop.eup %11916 }
 0x6c8   : > { %v11919_v30 = vpop.eup %11918  ;;  %4180 = vadd.xlane.f32.xlu1 %v4179_v14  ;;  %v4133_v10 = vpop.xlane.xlu1 %4132  ;;  %v18426_v14 = vld [vmem:[#allocation38_spill] sm:$0xff]  ;;  %v5677_v63 = vadd.f32 %v15247_v27, %v15241_v53 }
 0x6c9   : > { %v11921_v41 = vpop.eup %11920  ;;  %v4234_v51 = vmul.f32 %v11919_v30, %v18423_v5  ;;  %v4233_v60 = vmul.f32 %v11919_v30, %v18424_v50  ;;  %11932 = vrcp.f32 %v4133_v10 }
 0x6ca   : > { %v11923_v25 = vpop.eup %11922  ;;  %5459 = vmax.xlane.f32.xlu0 %v5458_v61  ;;  %v4130_v17 = vpop.xlane.xlu0 %4129  ;;  %v4238_v48 = vmul.f32 %v11921_v41, %v18425_v38  ;;  %v4237_v36 = vmul.f32 %v11921_v41, %v18426_v14 }
 0x6cb   : > { %v4236_v0 = vmul.f32 %v11923_v25, %v18427_v23  ;;  %9457 = vst [vmem:[%s14153_s3 + $0x288] sm:$0xff] %v4234_v51  ;;  %v4235_v5 = vmul.f32 %v11923_v25, %v18428_v62  ;;  %9456 = vst [vmem:[%s14153_s3 + $0x280] sm:$0xff] %v4233_v60  ;;  %11934 = vrcp.f32 %v4130_v17 }
 0x6cc   : > { %5456 = vmax.xlane.f32.xlu1 %v5455_v52  ;;  %v15260_v35 = vpop.xlane.xlu1 %5408  ;;  %9461 = vst [vmem:[%s14153_s3 + $0x2a8] sm:$0xff] %v4238_v48  ;;  %9460 = vst [vmem:[%s14153_s3 + $0x2a0] sm:$0xff] %v4237_v36 }
 0x6cd   : > { %9459 = vst [vmem:[%s14153_s3 + $0x298] sm:$0xff] %v4236_v0  ;;  %v4355_v30 = vpack.c.bf16 %v4236_v0, %v4234_v51  ;;  %9458 = vst [vmem:[%s14153_s3 + $0x290] sm:$0xff] %v4235_v5  ;;  %v4354_v23 = vpack.c.bf16 %v4235_v5, %v4233_v60 }
 0x6ce   : > { %5678 = vadd.xlane.f32.xlu0 %v5677_v63  ;;  %v15269_v38 = vpop.xlane.xlu0 %5405 }
 0x6cf   : > { %4602 = vmatprep.mubr.bf16.mxu0 %v4355_v30 }
 0x6d0   : > { %v15271_v62 = vpop.eup %11924  ;;  %4603 = vmatmul.mubr.bf16.gmra.mxu0 %v4354_v23  ;;  %v4139_v61 = vpop.xlane.xlu1 %4138  ;;  %v11522_v23 = vld [vmem:[#allocation3 + $0x78] sm:$0xff]  }
 0x6d1   : > { %v15273_v41 = vpop.eup %11926  ;;  %11936 = vrcp.f32 %v4139_v61 }
 0x6d2   : > { %v11929_v25 = vpop.eup %11928  ;;  %v4136_v10 = vpop.xlane.xlu0 %4135  ;;  %v5680_v0 = vadd.f32 %v15273_v41, %v15271_v62 }
 0x6d3   : > { %v11931_v63 = vpop.eup %11930  ;;  %v4242_v51 = vmul.f32 %v11929_v25, %v14915_v26  ;;  %v4241_v52 = vmul.f32 %v11929_v25, %v14909_v2  ;;  %11938 = vrcp.f32 %v4136_v10 }
 0x6d4   : > { %5681 = vadd.xlane.f32.xlu0 %v5680_v0  ;;  %v15279_v17 = vpop.xlane.xlu1 %5414  ;;  %v4240_v50 = vmul.f32 %v11931_v63, %v14924_v37  ;;  %v4239_v60 = vmul.f32 %v11931_v63, %v14917_v55 }
 0x6d5   : > { %9465 = vst [vmem:[%s14153_s3 + $0x2c8] sm:$0xff] %v4242_v51  ;;  %9464 = vst [vmem:[%s14153_s3 + $0x2c0] sm:$0xff] %v4241_v52 }
 0x6d6   : > { %9463 = vst [vmem:[%s14153_s3 + $0x2b8] sm:$0xff] %v4240_v50  ;;  %v4357_v14 = vpack.c.bf16 %v4240_v50, %v4238_v48  ;;  %v15286_v5 = vpop.xlane.xlu0 %5411  ;;  %9462 = vst [vmem:[%s14153_s3 + $0x2b0] sm:$0xff] %v4239_v60  ;;  %v4356_v26 = vpack.c.bf16 %v4239_v60, %v4237_v36  ;;  %v11933_v30 = vpop.eup %11932  ;;  %v11523_v50 = vld [vmem:[#allocation3 + $0x70] sm:$0xff]  }
 0x6d7   : > { %v4246_v61 = vmul.f32 %v11933_v30, %v14947_v13  ;;  %v4245_v25 = vmul.f32 %v11933_v30, %v14943_v29 }
 0x6d8   : > { %4610 = vmatprep.mubr.bf16.mxu0 %v4357_v14  ;;  %v4145_v2 = vpop.xlane.xlu1 %4144  ;;  %v11935_v55 = vpop.eup %11934  ;;  %v11524_v14 = vld [vmem:[#allocation3 + $0x30] sm:$0xff]  }
 0x6d9   : > { %4611 = vmatmul.mubr.bf16.gmra.mxu0 %v4356_v26  ;;  %v4244_v10 = vmul.f32 %v11935_v55, %v14955_v6  ;;  %v4243_v36 = vmul.f32 %v11935_v55, %v14951_v46  ;;  %11940 = vrcp.f32 %v4145_v2  ;;  %9469 = vst [vmem:[%s14153_s3 + $0x2e8] sm:$0xff] %v4246_v61  ;;  %9468 = vst [vmem:[%s14153_s3 + $0x2e0] sm:$0xff] %v4245_v25 }
 0x6da   : > { %v4142_v37 = vpop.xlane.xlu0 %4141 }
 0x6db   : > { %11942 = vrcp.f32 %v4142_v37  ;;  %9467 = vst [vmem:[%s14153_s3 + $0x2d8] sm:$0xff] %v4244_v10  ;;  %v4359_v0 = vpack.c.bf16 %v4244_v10, %v4242_v51  ;;  %9466 = vst [vmem:[%s14153_s3 + $0x2d0] sm:$0xff] %v4243_v36  ;;  %v4358_v13 = vpack.c.bf16 %v4243_v36, %v4241_v52 }
 0x6dc   : > { %v15291_v48 = vpop.xlane.xlu1 %5420 }
 0x6dd   : > { %6108 = vrot.lane.b32.xlu1 %v11522_v23, %s12807_s19  ;;  %4618 = vmatprep.mubr.bf16.mxu0 %v4359_v0 }
 0x6de   : > { %v15299_v63 = vpop.xlane.xlu0 %5417  ;;  %v11937_v46 = vpop.eup %11936 }
 0x6df   : > { %v4250_v51 = vmul.f32 %v11937_v46, %v14975_v59  ;;  %v4249_v26 = vmul.f32 %v11937_v46, %v14971_v57 }
 0x6e0   : > { %v4151_v29 = vpop.xlane.xlu1 %4150  ;;  %v11939_v60 = vpop.eup %11938 }
 0x6e1   : > { %4619 = vmatmul.mubr.bf16.gmra.mxu0 %v4358_v13  ;;  %6106 = vrot.lane.b32.xlu1 %v11523_v50, %s12807_s19  ;;  %v4248_v52 = vmul.f32 %v11939_v60, %v14983_v31  ;;  %v4247_v30 = vmul.f32 %v11939_v60, %v14979_v1  ;;  %11944 = vrcp.f32 %v4151_v29  ;;  %9473 = vst [vmem:[%s14153_s3 + $0x308] sm:$0xff] %v4250_v51  ;;  %9472 = vst [vmem:[%s14153_s3 + $0x300] sm:$0xff] %v4249_v26  ;;  %v11525_v31 = vld [vmem:[#allocation3 + $0x38] sm:$0xff]  }
 0x6e2   : > { %v4148_v6 = vpop.xlane.xlu0 %4147 }
 0x6e3   : > { %11946 = vrcp.f32 %v4148_v6  ;;  %9471 = vst [vmem:[%s14153_s3 + $0x2f8] sm:$0xff] %v4248_v52  ;;  %v4361_v37 = vpack.c.bf16 %v4248_v52, %v4246_v61  ;;  %9470 = vst [vmem:[%s14153_s3 + $0x2f0] sm:$0xff] %v4247_v30  ;;  %v4360_v59 = vpack.c.bf16 %v4247_v30, %v4245_v25  ;;  %v18429_v6 = vld [vmem:[#allocation84_spill] sm:$0xff]  ;;  %v18430_v52 = vld [vmem:[#allocation82_spill] sm:$0xff] }
 0x6e4   : > { %v15305_v2 = vpop.xlane.xlu1 %5426  ;;  %v5489_v60 = vsub.f32 %v18429_v6, %v15219_v56  ;;  %v5490_v30 = vsub.f32 %v18430_v52, %v15219_v56 }
 0x6e5   : > { %6090 = vrot.lane.b32.xlu1 %v11524_v14, %s12807_s19  ;;  %4626 = vmatprep.mubr.bf16.mxu0 %v4361_v37 }
 0x6e6   : > { %v15313_v55 = vpop.xlane.xlu0 %5423  ;;  %v11941_v1 = vpop.eup %11940 }
 0x6e7   : > { %v4254_v36 = vmul.f32 %v11941_v1, %v15001_v24  ;;  %v4253_v61 = vmul.f32 %v11941_v1, %v14999_v12  ;;  %v18431_v1 = vld [vmem:[#allocation48_spill] sm:$0xff] }
 0x6e8   : > { %v4157_v57 = vpop.xlane.xlu1 %4156  ;;  %v11943_v10 = vpop.eup %11942  ;;  %v5491_v56 = vsub.f32 %v18431_v1, %v15243_v11 }
 0x6e9   : > { %4627 = vmatmul.mubr.bf16.gmra.mxu0 %v4360_v59  ;;  %v4252_v25 = vmul.f32 %v11943_v10, %v15009_v39  ;;  %v4251_v13 = vmul.f32 %v11943_v10, %v15005_v21  ;;  %11948 = vrcp.f32 %v4157_v57  ;;  %9477 = vst [vmem:[%s14153_s3 + $0x328] sm:$0xff] %v4254_v36  ;;  %9476 = vst [vmem:[%s14153_s3 + $0x320] sm:$0xff] %v4253_v61  ;;  %v18432_v10 = vld [vmem:[#allocation85_spill] sm:$0xff] }
 0x6ea   : > { %6092 = vrot.lane.b32.xlu0 %v11525_v31, %s12807_s19  ;;  %v4154_v23 = vpop.xlane.xlu0 %4153 }
 0x6eb   : > { %11950 = vrcp.f32 %v4154_v23  ;;  %9475 = vst [vmem:[%s14153_s3 + $0x318] sm:$0xff] %v4252_v25  ;;  %v4363_v50 = vpack.c.bf16 %v4252_v25, %v4250_v51  ;;  %9474 = vst [vmem:[%s14153_s3 + $0x310] sm:$0xff] %v4251_v13  ;;  %v4362_v46 = vpack.c.bf16 %v4251_v13, %v4249_v26  ;;  %v5559_v23 = vmul.f32 1.442695, %v5490_v30 }
 0x6ec   : > { %v15319_v0 = vpop.xlane.xlu1 %5432 }
 0x6ed   : > { %4634 = vmatprep.mubr.bf16.mxu0 %v4363_v50 }
 0x6ee   : > { %v15326_v29 = vpop.xlane.xlu0 %5429  ;;  %v11945_v24 = vpop.eup %11944 }
 0x6ef   : > { %v4258_v14 = vmul.f32 %v11945_v24, %v15053_v54  ;;  %v4257_v51 = vmul.f32 %v11945_v24, %v15043_v15  ;;  %v5557_v15 = vmul.f32 1.442695, %v5489_v60 }
 0x6f0   : > { %v4163_v12 = vpop.xlane.xlu1 %4162  ;;  %v11947_v21 = vpop.eup %11946 }
 0x6f1   : > { %4635 = vmatmul.mubr.bf16.gmra.mxu0 %v4362_v46  ;;  %v4256_v37 = vmul.f32 %v11947_v21, %v15062_v9  ;;  %v4255_v59 = vmul.f32 %v11947_v21, %v15058_v3  ;;  %11952 = vrcp.f32 %v4163_v12  ;;  %9481 = vst [vmem:[%s14153_s3 + $0x348] sm:$0xff] %v4258_v14  ;;  %9480 = vst [vmem:[%s14153_s3 + $0x340] sm:$0xff] %v4257_v51  ;;  %v15349_v3 = vpop.f32.mrf.mxu1 }
 0x6f2   : > { %v4160_v39 = vpop.xlane.xlu0 %4159  ;;  %v5492_v9 = vsub.f32 %v18432_v10, %v15243_v11 }
 0x6f3   : > { %11954 = vrcp.f32 %v4160_v39  ;;  %9479 = vst [vmem:[%s14153_s3 + $0x338] sm:$0xff] %v4256_v37  ;;  %v4365_v57 = vpack.c.bf16 %v4256_v37, %v4254_v36  ;;  %9478 = vst [vmem:[%s14153_s3 + $0x330] sm:$0xff] %v4255_v59  ;;  %v4364_v54 = vpack.c.bf16 %v4255_v59, %v4253_v61  ;;  %v5561_v61 = vmul.f32 1.442695, %v5491_v56  ;;  %v15355_v21 = vpop.f32.mrf.mxu1 }
 0x6f4   : > { %v15335_v26 = vpop.xlane.xlu1 %5438  ;;  %11956 = vpow2.f32 %v5557_v15  ;;  %v5563_v11 = vmul.f32 1.442695, %v5492_v9  ;;  %v5461_v15 = vmax.f32 %v15349_v3, %v15355_v21 }
 0x6f5   : > { %4642 = vmatprep.mubr.bf16.mxu0 %v4365_v57  ;;  %11958 = vpow2.f32 %v5559_v23 }
 0x6f6   : > { %v15342_v31 = vpop.xlane.xlu0 %5435  ;;  %v11949_v25 = vpop.eup %11948 }
 0x6f7   : > { %v4262_v46 = vmul.f32 %v11949_v25, %v15083_v20  ;;  %v4261_v12 = vmul.f32 %v11949_v25, %v15079_v33  ;;  %v15363_v33 = vpop.f32.mrf.mxu1 }
 0x6f8   : > { %v4169_v36 = vpop.xlane.xlu1 %4168  ;;  %v11951_v50 = vpop.eup %11950 }
 0x6f9   : > { %4643 = vmatmul.mubr.bf16.gmra.mxu0 %v4364_v54  ;;  %v4260_v24 = vmul.f32 %v11951_v50, %v15091_v40  ;;  %v4259_v39 = vmul.f32 %v11951_v50, %v15087_v19  ;;  %11960 = vrcp.f32 %v4169_v36  ;;  %9485 = vst [vmem:[%s14153_s3 + $0x368] sm:$0xff] %v4262_v46  ;;  %9484 = vst [vmem:[%s14153_s3 + $0x360] sm:$0xff] %v4261_v12  ;;  %v15369_v59 = vpop.f32.mrf.mxu1 }
 0x6fa   : > { %v4166_v13 = vpop.xlane.xlu0 %4165 }
 0x6fb   : > { %11962 = vrcp.f32 %v4166_v13  ;;  %9483 = vst [vmem:[%s14153_s3 + $0x358] sm:$0xff] %v4260_v24  ;;  %v4367_v6 = vpack.c.bf16 %v4260_v24, %v4258_v14  ;;  %9482 = vst [vmem:[%s14153_s3 + $0x350] sm:$0xff] %v4259_v39  ;;  %v4366_v20 = vpack.c.bf16 %v4259_v39, %v4257_v51 }
 0x6fc   : > { %11964 = vpow2.f32 %v5561_v61 }
 0x6fd   : > { %11966 = vpow2.f32 %v5563_v11  ;;  %4650 = vmatprep.mubr.bf16.mxu0 %v4367_v6 }
 0x6fe   : > { %v15360_v60 = vpop.xlane.xlu0 %5441  ;;  %v11953_v19 = vpop.eup %11952 }
 0x6ff   : > { %v4266_v30 = vmul.f32 %v11953_v19, %v15107_v16  ;;  %v4265_v14 = vmul.f32 %v11953_v19, %v15103_v7  ;;  %v5464_v7 = vmax.f32 %v15363_v33, %v15369_v59 }
 0x700   : > { %v11955_v52 = vpop.eup %11954 }
 0x701   : > { %4651 = vmatmul.mubr.bf16.gmra.mxu0 %v4366_v20  ;;  %v4264_v37 = vmul.f32 %v11955_v52, %v15115_v47  ;;  %v4263_v51 = vmul.f32 %v11955_v52, %v15111_v34  ;;  %9489 = vst [vmem:[%s14153_s3 + $0x388] sm:$0xff] %v4266_v30  ;;  %9488 = vst [vmem:[%s14153_s3 + $0x380] sm:$0xff] %v4265_v14  ;;  %v15377_v1 = vpop.eup %11956  ;;  %v15383_v47 = vpop.xlane.xlu1 %5444  ;;  %v11526_v20 = vld [vmem:[#allocation3 + $0x68] sm:$0xff]  }
 0x702   : > { %v4172_v40 = vpop.xlane.xlu0 %4171  ;;  %v15381_v16 = vpop.eup %11958 }
 0x703   : > { %11968 = vrcp.f32 %v4172_v40  ;;  %9487 = vst [vmem:[%s14153_s3 + $0x378] sm:$0xff] %v4264_v37  ;;  %v4369_v57 = vpack.c.bf16 %v4264_v37, %v4262_v46  ;;  %9486 = vst [vmem:[%s14153_s3 + $0x370] sm:$0xff] %v4263_v51  ;;  %v4368_v54 = vpack.c.bf16 %v4263_v51, %v4261_v12  ;;  %v5683_v25 = vadd.f32 %v15381_v16, %v15377_v1  ;;  %v11527_v40 = vld [vmem:[#allocation3 + $0x60] sm:$0xff]  }
 0x705   : > { %4658 = vmatprep.mubr.bf16.mxu0 %v4369_v57 }
 0x706   : > { %v11961_v34 = vpop.eup %11960  ;;  %v15399_v46 = vpop.xlane.xlu0 %5447 }
 0x707   : > { %v4270_v23 = vmul.f32 %v11961_v34, %v15127_v44  ;;  %v4269_v10 = vmul.f32 %v11961_v34, %v15123_v49  ;;  %v18435_v34 = vld [vmem:[#allocation87_spill] sm:$0xff] }
 0x708   : > { %v11963_v56 = vpop.eup %11962 }
 0x709   : > { %4659 = vmatmul.mubr.bf16.gmra.mxu0 %v4368_v54  ;;  %5462 = vmax.xlane.f32.xlu1 %v5461_v15  ;;  %v15387_v9 = vpop.eup %11964  ;;  %v4268_v36 = vmul.f32 %v11963_v56, %v15135_v43  ;;  %v4267_v13 = vmul.f32 %v11963_v56, %v15131_v4  ;;  %9493 = vst [vmem:[%s14153_s3 + $0x3a8] sm:$0xff] %v4270_v23  ;;  %9492 = vst [vmem:[%s14153_s3 + $0x3a0] sm:$0xff] %v4269_v10  ;;  %v11529_v15 = vld [vmem:[#allocation3 + $0x28] sm:$0xff]  }
 0x70a   : > { %5465 = vmax.xlane.f32.xlu0 %v5464_v7  ;;  %v15393_v50 = vpop.eup %11966  ;;  %v5494_v56 = vsub.f32 %v18435_v34, %v15233_v58 }
 0x70b   : > { %9491 = vst [vmem:[%s14153_s3 + $0x398] sm:$0xff] %v4268_v36  ;;  %v4371_v44 = vpack.c.bf16 %v4268_v36, %v4266_v30  ;;  %9490 = vst [vmem:[%s14153_s3 + $0x390] sm:$0xff] %v4267_v13  ;;  %v4370_v49 = vpack.c.bf16 %v4267_v13, %v4265_v14  ;;  %v5686_v43 = vadd.f32 %v15393_v50, %v15387_v9  ;;  %v11528_v30 = vld [vmem:[#allocation3 + $0x20] sm:$0xff]   ;;  %v15427_v13 = vpop.f32.mrf.mxu1 }
 0x70d   : > { %4666 = vmatprep.mubr.bf16.mxu0 %v4371_v44 }
 0x70e   : > { %5684 = vadd.xlane.f32.xlu0 %v5683_v25  ;;  %v4175_v61 = vpop.xlane.xlu1 %4174  ;;  %v18437_v25 = vld [vmem:[#allocation47_spill] sm:$0xff] }
 0x70f   : > { %11970 = vrcp.f32 %v4175_v61  ;;  %v5496_v36 = vsub.f32 %v18437_v25, %v15269_v38 }
 0x710   : > { %v11969_v4 = vpop.eup %11968 }
 0x711   : > { %4667 = vmatmul.mubr.bf16.gmra.mxu0 %v4370_v49  ;;  %v4272_v12 = vmul.f32 %v11969_v4, %v15151_v45  ;;  %v4271_v11 = vmul.f32 %v11969_v4, %v15147_v32  ;;  %v18433_v32 = vld [vmem:[#allocation69_spill] sm:$0xff]  ;;  %v5571_v44 = vmul.f32 1.442695, %v5496_v36  ;;  %v15429_v49 = vpop.f32.mrf.mxu1 }
 0x712   : > { %5687 = vadd.xlane.f32.xlu0 %v5686_v43  ;;  %v5467_v4 = vmax.f32 %v15427_v13, %v15429_v49 }
 0x713   : > { %9495 = vst [vmem:[%s14153_s3 + $0x3b8] sm:$0xff] %v4272_v12  ;;  %v4373_v39 = vpack.c.bf16 %v4272_v12, %v4270_v23  ;;  %9494 = vst [vmem:[%s14153_s3 + $0x3b0] sm:$0xff] %v4271_v11  ;;  %v4372_v6 = vpack.c.bf16 %v4271_v11, %v4269_v10  ;;  %v15431_v43 = vpop.f32.mrf.mxu1 }
 0x714   : > { %v4178_v24 = vpop.xlane.xlu0 %4177 }
 0x715   : > { %11972 = vrcp.f32 %v4178_v24  ;;  %4674 = vmatprep.mubr.bf16.mxu0 %v4373_v39 }
 0x719   : > { %4675 = vmatmul.mubr.bf16.gmra.mxu0 %v4372_v6 }
 0x71a   : > { %6104 = vrot.lane.b32.xlu1 %v11526_v20, %s12807_s19 }
 0x71c   : > { %v11971_v19 = vpop.eup %11970 }
 0x71d   : > { %v4274_v45 = vmul.f32 %v11971_v19, %v15169_v18  ;;  %v4273_v52 = vmul.f32 %v11971_v19, %v18433_v32  ;;  %v18434_v18 = vld [vmem:[#allocation86_spill] sm:$0xff]  ;;  %v15453_v32 = vpop.xlane.xlu0 %5453 }
 0x71e   : > { %6102 = vrot.lane.b32.xlu1 %v11527_v40, %s12807_s19  ;;  %v5493_v7 = vsub.f32 %v18434_v18, %v15233_v58  ;;  %v15433_v58 = vpop.f32.mrf.mxu1 }
 0x71f   : > { %9497 = vst [vmem:[%s14153_s3 + $0x3c8] sm:$0xff] %v4274_v45  ;;  %9496 = vst [vmem:[%s14153_s3 + $0x3c0] sm:$0xff] %v4273_v52 }
 0x720   : > { %v5565_v23 = vmul.f32 1.442695, %v5493_v7  ;;  %18438 = vst [vmem:[#allocation77_spill] sm:$0xff] %v15433_v58 }
 0x722   : > { %v11973_v14 = vpop.eup %11972  ;;  %6086 = vrot.lane.b32.xlu1 %v11528_v30, %s12807_s19  ;;  %11974 = vpow2.f32 %v5565_v23  ;;  %v15457_v30 = vpop.xlane.xlu1 %5450  ;;  %v11530_v23 = vld [vmem:[#allocation3 + $0x58] sm:$0xff]  }
 0x723   : > { %v4276_v37 = vmul.f32 %v11973_v14, %v15193_v8  ;;  %v4275_v51 = vmul.f32 %v11973_v14, %v15186_v42  ;;  %v18436_v8 = vld [vmem:[#allocation88_spill] sm:$0xff]  ;;  %v5567_v42 = vmul.f32 1.442695, %v5494_v56 }
 0x724   : > { %v5495_v10 = vsub.f32 %v18436_v8, %v15269_v38  ;;  %v5470_v38 = vmax.f32 %v15431_v43, %v15433_v58 }
 0x725   : > { %9499 = vst [vmem:[%s14153_s3 + $0x3d8] sm:$0xff] %v4276_v37  ;;  %v4375_v57 = vpack.c.bf16 %v4276_v37, %v4274_v45  ;;  %9498 = vst [vmem:[%s14153_s3 + $0x3d0] sm:$0xff] %v4275_v51  ;;  %v4374_v54 = vpack.c.bf16 %v4275_v51, %v4273_v52  ;;  %11976 = vpow2.f32 %v5567_v42 }
 0x726   : > { %v5569_v61 = vmul.f32 1.442695, %v5495_v10 }
 0x727   : > { %4682 = vmatprep.mubr.bf16.mxu0 %v4375_v57 }
 0x728   : > { %6088 = vrot.lane.b32.xlu0 %v11529_v15, %s12807_s19  ;;  %4683 = vmatmul.mubr.bf16.gmra.mxu0 %v4374_v54  ;;  %11978 = vpow2.f32 %v5569_v61  ;;  %v11531_v61 = vld [vmem:[#allocation3 + $0x50] sm:$0xff]  }
 0x729   : > { %11980 = vpow2.f32 %v5571_v44 }
 0x72f   : > { %v15437_v12 = vpop.eup %11974 }
 0x732   : > { %v15441_v11 = vpop.eup %11976 }
 0x733   : > { %v5689_v19 = vadd.f32 %v15441_v11, %v15437_v12 }
 0x735   : > { %v15443_v6 = vpop.eup %11978 }
 0x736   : > { %v15449_v40 = vpop.eup %11980 }
 0x737   : > { %v5692_v14 = vadd.f32 %v15449_v40, %v15443_v6 }
 0x746   : > { %5468 = vmax.xlane.f32.xlu1 %v5467_v4  ;;  %v10557_v24 = vpop.f32.mrf.mxu0 }
 0x747   : > { %5471 = vmax.xlane.f32.xlu0 %v5470_v38 }
 0x748   : > { %v10558_v39 = vpop.f32.mrf.mxu0 }
 0x749   : > { %v15445_v20 = vadd.f32 %v10558_v39, %v10557_v24  ;;  %v11532_v39 = vld [vmem:[#allocation3 + $0x10] sm:$0xff]  }
 0x74a   : > { %v15451_v45 = vpop.f32.mrf.mxu0 }
 0x74b   : > { %18439 = vst [vmem:[#allocation80_spill] sm:$0xff] %v15445_v20  ;;  %18440 = vst [vmem:[#allocation81_spill] sm:$0xff] %v15451_v45  ;;  %5690 = vadd.xlane.f32.xlu0 %v5689_v19 }
 0x74c   : > { %v15455_v52 = vpop.f32.mrf.mxu0 }
 0x74d   : > { %18441 = vst [vmem:[#allocation83_spill] sm:$0xff] %v15455_v52  ;;  %v11535_v52 = vld [vmem:[#allocation3 + $0x40] sm:$0xff]  }
 0x74e   : > { %v10563_v37 = vpop.f32.mrf.mxu0 }
 0x74f   : > { %v4184_v51 = vpop.xlane.xlu0 %4183  ;;  %5693 = vadd.xlane.f32.xlu0 %v5692_v14 }
 0x750   : > { %11982 = vrcp.f32 %v4184_v51  ;;  %v10564_v57 = vpop.f32.mrf.mxu0 }
 0x751   : > { %v15461_v54 = vadd.f32 %v10564_v57, %v10563_v37  ;;  %v4181_v15 = vpop.xlane.xlu1 %4180  ;;  %v18448_v37 = vld [vmem:[#allocation39_spill] sm:$0xff] }
 0x752   : > { %11984 = vrcp.f32 %v4181_v15  ;;  %v15463_v18 = vpop.f32.mrf.mxu0 }
 0x753   : > { %18442 = vst [vmem:[#allocation51_spill] sm:$0xff] %v15461_v54  ;;  %18443 = vst [vmem:[#allocation50_spill] sm:$0xff] %v15463_v18  ;;  %v15465_v7 = vpop.xlane.xlu0 %5459  ;;  %v11534_v18 = vld [vmem:[#allocation3 + $0x48] sm:$0xff]  }
 0x754   : > { %v15467_v34 = vpop.f32.mrf.mxu0 }
 0x755   : > { %18444 = vst [vmem:[#allocation44_spill] sm:$0xff] %v15467_v34  ;;  %v15469_v56 = vpop.xlane.xlu1 %5456 }
 0x756   : > { %v10569_v8 = vpop.f32.mrf.mxu0 }
 0x757   : > { %6100 = vrot.lane.b32.xlu1 %v11530_v23, %s12807_s19  ;;  %v5679_v42 = vpop.xlane.xlu0 %5678 }
 0x758   : > { %v10570_v10 = vpop.f32.mrf.mxu0  ;;  %11986 = vrcp.f32 %v5679_v42  ;;  %v18450_v42 = vld [vmem:[#allocation75_spill] sm:$0xff] }
 0x759   : > { %v15472_v25 = vadd.f32 %v10570_v10, %v10569_v8  ;;  %v6109_v36 = vpop.permute.xlu1 %6108  ;;  %v18449_v8 = vld [vmem:[#allocation46_spill] sm:$0xff] }
 0x75a   : > { %10701 = vmatprep.subr.bf16.mxu0 %v6109_v36  ;;  %v15474_v44 = vpop.f32.mrf.mxu0 }
 0x75b   : > { %18445 = vst [vmem:[#allocation78_spill] sm:$0xff] %v15472_v25  ;;  %18446 = vst [vmem:[#allocation79_spill] sm:$0xff] %v15474_v44  ;;  %6098 = vrot.lane.b32.xlu1 %v11531_v61, %s12807_s19 }
 0x75c   : > { %v15477_v4 = vpop.f32.mrf.mxu0 }
 0x75d   : > { %18447 = vst [vmem:[#allocation92_spill] sm:$0xff] %v15477_v4  ;;  %v11983_v38 = vpop.eup %11982  ;;  %v5682_v24 = vpop.xlane.xlu0 %5681 }
 0x75e   : > { %11988 = vrcp.f32 %v5682_v24  ;;  %v10575_v19 = vpop.f32.mrf.mxu0  ;;  %v4280_v14 = vmul.f32 %v11983_v38, %v15229_v28  ;;  %v4279_v51 = vmul.f32 %v11983_v38, %v18448_v37  ;;  %v6107_v15 = vpop.permute.xlu1 %6106  ;;  %v11533_v38 = vld [vmem:[#allocation3 + $0x18] sm:$0xff]  }
 0x75f   : > { %v11985_v57 = vpop.eup %11984  ;;  %6082 = vrot.lane.b32.xlu1 %v11532_v39, %s12807_s19  ;;  %v15490_v39 = vpop.f32.mrf.mxu1 }
 0x760   : > { %v10576_v23 = vpop.f32.mrf.mxu0  ;;  %v4278_v10 = vmul.f32 %v11985_v57, %v18449_v8  ;;  %9503 = vst [vmem:[%s14153_s3 + $0x3f8] sm:$0xff] %v4280_v14  ;;  %v4277_v36 = vmul.f32 %v11985_v57, %v18450_v42  ;;  %9502 = vst [vmem:[%s14153_s3 + $0x3f0] sm:$0xff] %v4279_v51 }
 0x761   : > { %v15486_v61 = vadd.f32 %v10576_v23, %v10575_v19  ;;  %v6093_v24 = vpop.permute.xlu0 %6092  ;;  %18452 = vst [vmem:[#allocation95_spill] sm:$0xff] %v15490_v39  ;;  %v15493_v19 = vpop.f32.mrf.mxu1 }
 0x762   : > { %10702 = vmatpush3.bf16.msra.mxu0 %v6093_v24  ;;  %9501 = vst [vmem:[%s14153_s3 + $0x3e8] sm:$0xff] %v4278_v10  ;;  %v4377_v4 = vpack.c.bf16 %v4280_v14, %v4278_v10  ;;  %9500 = vst [vmem:[%s14153_s3 + $0x3e0] sm:$0xff] %v4277_v36  ;;  %v4376_v28 = vpack.c.bf16 %v4279_v51, %v4277_v36  ;;  %v6091_v37 = vpop.permute.xlu1 %6090  ;;  %v18457_v10 = vld [vmem:[#allocation89_spill] sm:$0xff]  ;;  %v18458_v36 = vld [vmem:[#allocation90_spill] sm:$0xff] }
 0x763   : > { %18451 = vst [vmem:[#allocation41_spill] sm:$0xff] %v15486_v61  ;;  %10703 = vmatprep.subr.bf16.mxu0 %v6107_v15  ;;  %18453 = vst [vmem:[#allocation38_spill] sm:$0xff] %v15493_v19  ;;  %v15499_v23 = vpop.f32.mrf.mxu1  ;;  %v5497_v42 = vsub.f32 %v18457_v10, %v15260_v35 }
 0x764   : > { %4690 = vmatprep.mubr.bf16.mxu0 %v4377_v4  ;;  %18455 = vst [vmem:[#allocation96_spill] sm:$0xff] %v15499_v23 }
 0x765   : > { %6084 = vrot.lane.b32.xlu0 %v11533_v38, %s12807_s19  ;;  %4691 = vmatmul.mubr.bf16.gmra.mxu0 %v4376_v28  ;;  %v11987_v57 = vpop.eup %11986  ;;  %v15517_v28 = vpop.f32.mrf.mxu1 }
 0x766   : > { %10704 = vmatpush3.bf16.msra.mxu0 %v6091_v37  ;;  %v15496_v14 = vmul.f32 %v11987_v57, %v15241_v53  ;;  %v5806_v51 = vmul.f32 %v11987_v57, %v15247_v27  ;;  %v5498_v53 = vsub.f32 %v18458_v36, %v15260_v35  ;;  %18459 = vst [vmem:[#allocation82_spill] sm:$0xff] %v15517_v28 }
 0x767   : > { %v15521_v37 = vpop.f32.mrf.mxu1 }
 0x768   : > { %18454 = vst [vmem:[#allocation97_spill] sm:$0xff] %v15496_v14  ;;  %9584 = vst [vmem:[%s14153_s3 + $0x400] sm:$0xff] %v15496_v14  ;;  %v5575_v57 = vmul.f32 1.442695, %v5498_v53  ;;  %v5473_v53 = vmax.f32 %v15490_v39, %v15493_v19  ;;  %v11537_v14 = vld [vmem:[#allocation3 + $0x8] sm:$0xff]  }
 0x769   : > { %9585 = vst [vmem:[%s14153_s3 + $0x408] sm:$0xff] %v5806_v51  ;;  %v15525_v36 = vpop.f32.mrf.mxu1 }
 0x76a   : > { %18462 = vst [vmem:[#allocation48_spill] sm:$0xff] %v15525_v36 }
 0x76b   : > { %v11989_v15 = vpop.eup %11988 }
 0x76c   : > { %v15504_v4 = vmul.f32 %v11989_v15, %v15271_v62  ;;  %v5808_v8 = vmul.f32 %v11989_v15, %v15273_v41  ;;  %v5573_v62 = vmul.f32 1.442695, %v5497_v42  ;;  %v18460_v41 = vld [vmem:[#allocation93_spill] sm:$0xff]  ;;  %v18461_v15 = vld [vmem:[#allocation94_spill] sm:$0xff] }
 0x76d   : > { %v5499_v38 = vsub.f32 %v18460_v41, %v15286_v5  ;;  %v5500_v35 = vsub.f32 %v18461_v15, %v15286_v5  ;;  %v5476_v5 = vmax.f32 %v15499_v23, %v15517_v28 }
 0x76e   : > { %18456 = vst [vmem:[#allocation84_spill] sm:$0xff] %v15504_v4  ;;  %9586 = vst [vmem:[%s14153_s3 + $0x410] sm:$0xff] %v15504_v4  ;;  %v5935_v27 = vpack.c.bf16 %v5808_v8, %v5806_v51  ;;  %11990 = vpow2.f32 %v5573_v62 }
 0x76f   : > { %9587 = vst [vmem:[%s14153_s3 + $0x418] sm:$0xff] %v5808_v8  ;;  %v5577_v10 = vmul.f32 1.442695, %v5499_v38  ;;  %11992 = vpow2.f32 %v5575_v57  ;;  %v5579_v51 = vmul.f32 1.442695, %v5500_v35  ;;  %v15527_v8 = vpop.f32.mrf.mxu1 }
 0x770   : > { %6158 = vmatprep.mubr.bf16.mxu0 %v5935_v27  ;;  %18463 = vst [vmem:[#allocation85_spill] sm:$0xff] %v15527_v8 }
 0x771   : > { %11994 = vpow2.f32 %v5577_v10  ;;  %v15529_v42 = vpop.f32.mrf.mxu1 }
 0x772   : > { %11996 = vpow2.f32 %v5579_v51  ;;  %18464 = vst [vmem:[#allocation69_spill] sm:$0xff] %v15529_v42  ;;  %v15551_v51 = vpop.f32.mrf.mxu0 }
 0x773   : > { %v15531_v27 = vpop.f32.mrf.mxu1  ;;  %18469 = vst [vmem:[#allocation39_spill] sm:$0xff] %v15551_v51 }
 0x775   : > { %v15541_v38 = vpop.f32.mrf.mxu1 }
 0x777   : > { %v15549_v10 = vpop.f32.mrf.mxu1 }
 0x779   : > { %v15555_v61 = vpop.f32.mrf.mxu1 }
 0x77a   : > { %18470 = vst [vmem:[#allocation46_spill] sm:$0xff] %v15555_v61 }
 0x77b   : > { %v15535_v41 = vpop.eup %11990 }
 0x77c   : > { %18465 = vst [vmem:[#allocation86_spill] sm:$0xff] %v15535_v41  ;;  %v15539_v62 = vpop.eup %11992 }
 0x77d   : > { %18466 = vst [vmem:[#allocation87_spill] sm:$0xff] %v15539_v62  ;;  %v5695_v15 = vadd.f32 %v15539_v62, %v15535_v41 }
 0x77e   : > { %v15543_v57 = vpop.eup %11994 }
 0x77f   : > { %18467 = vst [vmem:[#allocation88_spill] sm:$0xff] %v15543_v57  ;;  %v15547_v35 = vpop.eup %11996 }
 0x780   : > { %18468 = vst [vmem:[#allocation47_spill] sm:$0xff] %v15547_v35  ;;  %v5698_v24 = vadd.f32 %v15547_v35, %v15543_v57 }
 0x783   : > { %5474 = vmax.xlane.f32.xlu1 %v5473_v53  ;;  %v15557_v53 = vpop.f32.mrf.mxu0 }
 0x784   : > { %5477 = vmax.xlane.f32.xlu0 %v5476_v5  ;;  %18471 = vst [vmem:[#allocation75_spill] sm:$0xff] %v15557_v53  ;;  %v15559_v5 = vpop.f32.mrf.mxu1 }
 0x785   : > { %18472 = vst [vmem:[#allocation89_spill] sm:$0xff] %v15559_v5 }
 0x786   : > { %v15567_v51 = vpop.f32.mrf.mxu1 }
 0x787   : > { %18474 = vst [vmem:[#allocation93_spill] sm:$0xff] %v15567_v51 }
 0x788   : > { %5696 = vadd.xlane.f32.xlu0 %v5695_v15  ;;  %v15574_v57 = vpop.f32.mrf.mxu1 }
 0x789   : > { %18477 = vst [vmem:[#allocation99_spill] sm:$0xff] %v15574_v57 }
 0x78a   : > { %v15577_v41 = vpop.f32.mrf.mxu1 }
 0x78b   : > { %18478 = vst [vmem:[#allocation100_spill] sm:$0xff] %v15577_v41 }
 0x78c   : > { %5699 = vadd.xlane.f32.xlu0 %v5698_v24 }
 0x790   : > { %v10581_v44 = vpop.f32.mrf.mxu0 }
 0x792   : > { %v10582_v25 = vpop.f32.mrf.mxu0  ;;  %v15561_v34 = vpop.xlane.xlu1 %5462 }
 0x793   : > { %v15563_v54 = vadd.f32 %v10582_v25, %v10581_v44  ;;  %v15565_v15 = vpop.xlane.xlu0 %5465  ;;  %v11536_v44 = vld [vmem:[#allocation3] sm:$0xff]  }
 0x794   : > { %v15569_v20 = vpop.f32.mrf.mxu0  ;;  %6096 = vrot.lane.b32.xlu1 %v11534_v18, %s12807_s19 }
 0x795   : > { %18473 = vst [vmem:[#allocation90_spill] sm:$0xff] %v15563_v54  ;;  %18475 = vst [vmem:[#allocation94_spill] sm:$0xff] %v15569_v20 }
 0x796   : > { %v15572_v24 = vpop.f32.mrf.mxu0  ;;  %v6105_v53 = vpop.permute.xlu1 %6104 }
 0x797   : > { %18476 = vst [vmem:[#allocation98_spill] sm:$0xff] %v15572_v24  ;;  %v5685_v45 = vpop.xlane.xlu0 %5684  ;;  %10705 = vmatprep.subr.bf16.mxu0 %v6105_v53  ;;  %v15584_v53 = vpop.f32.mrf.mxu1 }
 0x798   : > { %6094 = vrot.lane.b32.xlu1 %v11535_v52, %s12807_s19  ;;  %11998 = vrcp.f32 %v5685_v45  ;;  %18481 = vst [vmem:[#allocation103_spill] sm:$0xff] %v15584_v53 }
 0x799   : > { %v10587_v25 = vpop.f32.mrf.mxu0  ;;  %v15588_v4 = vpop.f32.mrf.mxu1 }
 0x79a   : > { %v6103_v18 = vpop.permute.xlu1 %6102  ;;  %18483 = vst [vmem:[#allocation105_spill] sm:$0xff] %v15588_v4 }
 0x79b   : > { %v10588_v54 = vpop.f32.mrf.mxu0  ;;  %v5688_v35 = vpop.xlane.xlu0 %5687 }
 0x79c   : > { %v15579_v20 = vadd.f32 %v10588_v54, %v10587_v25  ;;  %12000 = vrcp.f32 %v5688_v35  ;;  %6078 = vrot.lane.b32.xlu1 %v11536_v44, %s12807_s19 }
 0x79d   : > { %v15582_v24 = vpop.f32.mrf.mxu0 }
 0x79e   : > { %18479 = vst [vmem:[#allocation101_spill] sm:$0xff] %v15579_v20  ;;  %18480 = vst [vmem:[#allocation102_spill] sm:$0xff] %v15582_v24  ;;  %v6087_v54 = vpop.permute.xlu1 %6086  ;;  %v15595_v24 = vpop.f32.mrf.mxu1 }
 0x79f   : > { %v15586_v62 = vpop.f32.mrf.mxu0  ;;  %v6089_v52 = vpop.permute.xlu0 %6088  ;;  %18486 = vst [vmem:[#allocation108_spill] sm:$0xff] %v15595_v24 }
 0x7a0   : > { %18482 = vst [vmem:[#allocation104_spill] sm:$0xff] %v15586_v62  ;;  %10706 = vmatpush3.bf16.msra.mxu0 %v6089_v52 }
 0x7a1   : > { %v10593_v45 = vpop.f32.mrf.mxu0  ;;  %10707 = vmatprep.subr.bf16.mxu0 %v6103_v18  ;;  %v18488_v18 = vld [vmem:[#allocation58_spill] sm:$0xff] }
 0x7a2   : > { %6080 = vrot.lane.b32.xlu0 %v11537_v14, %s12807_s19  ;;  %v5501_v20 = vsub.f32 %v18488_v18, %v15279_v17  ;;  %v18489_v14 = vld [vmem:[#allocation59_spill] sm:$0xff] }
 0x7a3   : > { %v10594_v35 = vpop.f32.mrf.mxu0  ;;  %v5502_v23 = vsub.f32 %v18489_v14, %v15279_v17  ;;  %v18495_v17 = vld [vmem:[#allocation62_spill] sm:$0xff] }
 0x7a4   : > { %v15591_v25 = vadd.f32 %v10594_v35, %v10593_v45  ;;  %10708 = vmatpush3.bf16.msra.mxu0 %v6087_v54  ;;  %v5504_v14 = vsub.f32 %v18495_v17, %v15299_v63 }
 0x7a5   : > { %v15593_v44 = vpop.f32.mrf.mxu0  ;;  %v11999_v52 = vpop.eup %11998 }
 0x7a6   : > { %18484 = vst [vmem:[#allocation106_spill] sm:$0xff] %v15591_v25  ;;  %18485 = vst [vmem:[#allocation107_spill] sm:$0xff] %v15593_v44  ;;  %v15604_v54 = vmul.f32 %v11999_v52, %v15381_v16  ;;  %v15607_v35 = vmul.f32 %v11999_v52, %v15377_v1  ;;  %v15609_v44 = vpop.f32.mrf.mxu1  ;;  %v5581_v16 = vmul.f32 1.442695, %v5501_v20  ;;  %v5587_v17 = vmul.f32 1.442695, %v5504_v14 }
 0x7a7   : > { %v15597_v62 = vpop.f32.mrf.mxu0  ;;  %18492 = vst [vmem:[#allocation110_spill] sm:$0xff] %v15609_v44 }
 0x7a8   : > { %18487 = vst [vmem:[#allocation109_spill] sm:$0xff] %v15597_v62  ;;  %18490 = vst [vmem:[#allocation58_spill] sm:$0xff] %v15604_v54  ;;  %v18493_v62 = vld [vmem:[#allocation60_spill] sm:$0xff]  ;;  %v15625_v1 = vpop.f32.mrf.mxu1  ;;  %12002 = vpow2.f32 %v5581_v16 }
 0x7a9   : > { %v12001_v28 = vpop.eup %12000  ;;  %v10599_v45 = vpop.f32.mrf.mxu0  ;;  %18491 = vst [vmem:[#allocation59_spill] sm:$0xff] %v15607_v35  ;;  %v5503_v25 = vsub.f32 %v18493_v62, %v15299_v63  ;;  %9589 = vst [vmem:[%s14153_s3 + $0x428] sm:$0xff] %v15604_v54 }
 0x7aa   : > { %v15614_v18 = vmul.f32 %v12001_v28, %v15393_v50  ;;  %v15617_v19 = vmul.f32 %v12001_v28, %v15387_v9  ;;  %9588 = vst [vmem:[%s14153_s3 + $0x420] sm:$0xff] %v15607_v35  ;;  %18496 = vst [vmem:[#allocation62_spill] sm:$0xff] %v15625_v1  ;;  %v5583_v9 = vmul.f32 1.442695, %v5502_v23  ;;  %v15641_v20 = vpop.f32.mrf.mxu1  ;;  %v18502_v50 = vld [vmem:[#allocation64_spill] sm:$0xff]  ;;  %v18503_v23 = vld [vmem:[#allocation42_spill] sm:$0xff] }
 0x7ab   : > { %v10600_v39 = vpop.f32.mrf.mxu0  ;;  %v5585_v62 = vmul.f32 1.442695, %v5503_v25  ;;  %18500 = vst [vmem:[#allocation114_spill] sm:$0xff] %v15641_v20  ;;  %v5507_v63 = vsub.f32 %v18503_v23, %v15313_v55  ;;  %v18504_v25 = vld [vmem:[#allocation63_spill] sm:$0xff] }
 0x7ac   : > { %18494 = vst [vmem:[#allocation60_spill] sm:$0xff] %v15617_v19  ;;  %v15627_v52 = vadd.f32 %v10600_v39, %v10599_v45  ;;  %9591 = vst [vmem:[%s14153_s3 + $0x438] sm:$0xff] %v15614_v18  ;;  %v18501_v39 = vld [vmem:[#allocation61_spill] sm:$0xff]  ;;  %12004 = vpow2.f32 %v5583_v9  ;;  %v5508_v14 = vsub.f32 %v18504_v25, %v15313_v55 }
 0x7ad   : > { %9590 = vst [vmem:[%s14153_s3 + $0x430] sm:$0xff] %v15617_v19  ;;  %v15637_v28 = vpop.f32.mrf.mxu0  ;;  %v5505_v45 = vsub.f32 %v18501_v39, %v15291_v48  ;;  %12006 = vpow2.f32 %v5585_v62  ;;  %v5593_v19 = vmul.f32 1.442695, %v5507_v63  ;;  %v18511_v55 = vld [vmem:[#allocation65_spill] sm:$0xff]  ;;  %v18514_v63 = vld [vmem:[#allocation55_spill] sm:$0xff] }
 0x7ae   : > { %18497 = vst [vmem:[#allocation111_spill] sm:$0xff] %v15627_v52  ;;  %18498 = vst [vmem:[#allocation112_spill] sm:$0xff] %v15637_v28  ;;  %v5506_v52 = vsub.f32 %v18502_v50, %v15291_v48  ;;  %12008 = vpow2.f32 %v5587_v17  ;;  %v15651_v28 = vpop.f32.mrf.mxu1  ;;  %v5595_v48 = vmul.f32 1.442695, %v5508_v14  ;;  %v18510_v17 = vld [vmem:[#allocation40_spill] sm:$0xff]  ;;  %v5510_v25 = vsub.f32 %v18511_v55, %v15305_v2 }
 0x7af   : > { %v15639_v58 = vpop.f32.mrf.mxu0  ;;  %18505 = vst [vmem:[#allocation61_spill] sm:$0xff] %v15651_v28  ;;  %v5589_v16 = vmul.f32 1.442695, %v5505_v45  ;;  %v5509_v23 = vsub.f32 %v18510_v17, %v15305_v2  ;;  %v5512_v14 = vsub.f32 %v18514_v63, %v15326_v29 }
 0x7b0   : > { %18499 = vst [vmem:[#allocation113_spill] sm:$0xff] %v15639_v58  ;;  %v5591_v39 = vmul.f32 1.442695, %v5506_v52  ;;  %v15659_v62 = vpop.f32.mrf.mxu1 }
 0x7b1   : > { %v10605_v54 = vpop.f32.mrf.mxu0  ;;  %18509 = vst [vmem:[#allocation115_spill] sm:$0xff] %v15659_v62  ;;  %12010 = vpow2.f32 %v5589_v16  ;;  %v5597_v16 = vmul.f32 1.442695, %v5509_v23 }
 0x7b2   : > { %12012 = vpow2.f32 %v5591_v39  ;;  %v5599_v39 = vmul.f32 1.442695, %v5510_v25  ;;  %v18523_v25 = vld [vmem:[#allocation52_spill] sm:$0xff] }
 0x7b3   : > { %v10606_v58 = vpop.f32.mrf.mxu0  ;;  %12014 = vpow2.f32 %v5593_v19  ;;  %v5479_v19 = vmax.f32 %v15521_v37, %v15525_v36  ;;  %v5513_v63 = vsub.f32 %v18523_v25, %v15319_v0 }
 0x7b4   : > { %v15653_v35 = vadd.f32 %v10606_v58, %v10605_v54  ;;  %v15665_v58 = vpop.f32.mrf.mxu1  ;;  %v18513_v54 = vld [vmem:[#allocation66_spill] sm:$0xff]  ;;  %12016 = vpow2.f32 %v5595_v48 }
 0x7b5   : > { %v15655_v9 = vpop.f32.mrf.mxu0  ;;  %18512 = vst [vmem:[#allocation40_spill] sm:$0xff] %v15665_v58  ;;  %v5511_v52 = vsub.f32 %v18513_v54, %v15326_v29  ;;  %v15673_v17 = vpop.eup %12002  ;;  %v5482_v29 = vmax.f32 %v15527_v8, %v15529_v42  ;;  %12018 = vpow2.f32 %v5597_v16  ;;  %v18527_v16 = vld [vmem:[#allocation43_spill] sm:$0xff] }
 0x7b6   : > { %18506 = vst [vmem:[#allocation64_spill] sm:$0xff] %v15653_v35  ;;  %18507 = vst [vmem:[#allocation42_spill] sm:$0xff] %v15655_v9  ;;  %v15681_v55 = vpop.f32.mrf.mxu1  ;;  %12020 = vpow2.f32 %v5599_v39  ;;  %v5516_v25 = vsub.f32 %v18527_v16, %v15342_v31 }
 0x7b7   : > { %v15657_v50 = vpop.f32.mrf.mxu0  ;;  %18516 = vst [vmem:[#allocation66_spill] sm:$0xff] %v15673_v17  ;;  %18519 = vst [vmem:[#allocation117_spill] sm:$0xff] %v15681_v55  ;;  %v5601_v48 = vmul.f32 1.442695, %v5511_v52 }
 0x7b8   : > { %18508 = vst [vmem:[#allocation63_spill] sm:$0xff] %v15657_v50  ;;  %v15695_v36 = vpop.f32.mrf.mxu1 }
 0x7b9   : > { %v10611_v45 = vpop.f32.mrf.mxu0  ;;  %v15677_v2 = vpop.eup %12004  ;;  %18525 = vst [vmem:[#allocation52_spill] sm:$0xff] %v15695_v36  ;;  %12022 = vpow2.f32 %v5601_v48 }
 0x7ba   : > { %18518 = vst [vmem:[#allocation116_spill] sm:$0xff] %v15677_v2  ;;  %v15683_v54 = vpop.eup %12006 }
 0x7bb   : > { %v10612_v50 = vpop.f32.mrf.mxu0  ;;  %18520 = vst [vmem:[#allocation118_spill] sm:$0xff] %v15683_v54 }
 0x7bc   : > { %v15671_v9 = vadd.f32 %v10612_v50, %v10611_v45  ;;  %v5603_v50 = vmul.f32 1.442695, %v5512_v14  ;;  %v15689_v45 = vpop.eup %12008  ;;  %v18526_v14 = vld [vmem:[#allocation68_spill] sm:$0xff] }
 0x7bd   : > { %v15675_v35 = vpop.f32.mrf.mxu0  ;;  %18522 = vst [vmem:[#allocation120_spill] sm:$0xff] %v15689_v45  ;;  %v5515_v42 = vsub.f32 %v18526_v14, %v15342_v31  ;;  %v5704_v39 = vadd.f32 %v15689_v45, %v15683_v54  ;;  %v15715_v31 = vpop.f32.mrf.mxu1 }
 0x7be   : > { %18515 = vst [vmem:[#allocation65_spill] sm:$0xff] %v15671_v9  ;;  %18517 = vst [vmem:[#allocation55_spill] sm:$0xff] %v15675_v35  ;;  %v18524_v35 = vld [vmem:[#allocation53_spill] sm:$0xff]  ;;  %12024 = vpow2.f32 %v5603_v50  ;;  %v6977_v50 = vmax.f32 %v15531_v27, %v15541_v38 }
 0x7bf   : > { %v15687_v23 = vpop.f32.mrf.mxu0  ;;  %v5514_v9 = vsub.f32 %v18524_v35, %v15319_v0  ;;  %v5605_v0 = vmul.f32 1.442695, %v5513_v63  ;;  %18532 = vst [vmem:[#allocation122_spill] sm:$0xff] %v15715_v31  ;;  %v5609_v16 = vmul.f32 1.442695, %v5515_v42  ;;  %v6980_v63 = vmax.f32 %v15549_v10, %v15555_v61  ;;  %v18536_v42 = vld [vmem:[#allocation67_spill] sm:$0xff] }
 0x7c0   : > { %18521 = vst [vmem:[#allocation119_spill] sm:$0xff] %v15687_v23  ;;  %5480 = vmax.xlane.f32.xlu1 %v5479_v19  ;;  %v5701_v23 = vadd.f32 %v15677_v2, %v15673_v17 }
 0x7c1   : > { %v10617_v52 = vpop.f32.mrf.mxu0  ;;  %5483 = vmax.xlane.f32.xlu0 %v5482_v29  ;;  %v15707_v29 = vpop.eup %12010  ;;  %v5607_v48 = vmul.f32 1.442695, %v5514_v9  ;;  %12026 = vpow2.f32 %v5605_v0  ;;  %v18538_v0 = vld [vmem:[#allocation54_spill] sm:$0xff] }
 0x7c2   : > { %18529 = vst [vmem:[#allocation68_spill] sm:$0xff] %v15707_v29  ;;  %v15711_v14 = vpop.eup %12012  ;;  %v5520_v45 = vsub.f32 %v18538_v0, %v15360_v60 }
 0x7c3   : > { %v10618_v19 = vpop.f32.mrf.mxu0  ;;  %18531 = vst [vmem:[#allocation121_spill] sm:$0xff] %v15711_v14  ;;  %v15717_v17 = vpop.eup %12014  ;;  %12028 = vpow2.f32 %v5607_v48 }
 0x7c4   : > { %v15705_v35 = vadd.f32 %v10618_v19, %v10617_v52  ;;  %5702 = vadd.xlane.f32.xlu1 %v5701_v23  ;;  %v5611_v23 = vmul.f32 1.442695, %v5516_v25  ;;  %v15723_v9 = vpop.eup %12016  ;;  %v15725_v19 = vpop.f32.mrf.mxu1  ;;  %12030 = vpow2.f32 %v5609_v16  ;;  %v18537_v25 = vld [vmem:[#allocation91_spill] sm:$0xff] }
 0x7c5   : > { %v15709_v8 = vpop.f32.mrf.mxu0  ;;  %5705 = vadd.xlane.f32.xlu0 %v5704_v39  ;;  %18534 = vst [vmem:[#allocation124_spill] sm:$0xff] %v15725_v19  ;;  %v18535_v39 = vld [vmem:[#allocation36_spill] sm:$0xff]  ;;  %v5519_v54 = vsub.f32 %v18537_v25, %v15360_v60  ;;  %v5710_v48 = vadd.f32 %v15723_v9, %v15717_v17  ;;  %v15743_v16 = vpop.eup %12018  ;;  %v6983_v60 = vmax.f32 %v15559_v5, %v15567_v51 }
 0x7c6   : > { %18528 = vst [vmem:[#allocation53_spill] sm:$0xff] %v15705_v35  ;;  %18530 = vst [vmem:[#allocation43_spill] sm:$0xff] %v15709_v8  ;;  %v5517_v8 = vsub.f32 %v18535_v39, %v15335_v26  ;;  %v5518_v35 = vsub.f32 %v18536_v42, %v15335_v26  ;;  %12032 = vpow2.f32 %v5611_v23  ;;  %v15747_v23 = vpop.eup %12020  ;;  %v18543_v25 = vld [vmem:[#allocation76_spill] sm:$0xff] }
 0x7c7   : > { %v15721_v52 = vpop.f32.mrf.mxu0  ;;  %18541 = vst [vmem:[#allocation91_spill] sm:$0xff] %v15743_v16  ;;  %v5521_v0 = vsub.f32 %v18543_v25, %v15383_v47 }
 0x7c8   : > { %18533 = vst [vmem:[#allocation123_spill] sm:$0xff] %v15721_v52  ;;  %6978 = vmax.xlane.f32.xlu1 %v6977_v50  ;;  %v5707_v52 = vadd.f32 %v15711_v14, %v15707_v29  ;;  %v15739_v50 = vpop.f32.mrf.mxu1  ;;  %v5613_v26 = vmul.f32 1.442695, %v5517_v8  ;;  %v5617_v29 = vmul.f32 1.442695, %v5519_v54  ;;  %v15753_v14 = vpop.eup %12022  ;;  %v18544_v8 = vld [vmem:[#allocation57_spill] sm:$0xff] }
 0x7c9   : > { %v10623_v2 = vpop.f32.mrf.mxu0  ;;  %6981 = vmax.xlane.f32.xlu0 %v6980_v63  ;;  %18539 = vst [vmem:[#allocation36_spill] sm:$0xff] %v15739_v50  ;;  %v5615_v63 = vmul.f32 1.442695, %v5518_v35  ;;  %v5619_v35 = vmul.f32 1.442695, %v5520_v45 }
 0x7ca   : > { %12034 = vpow2.f32 %v5613_v26 }
 0x7cb   : > { %v10624_v61 = vpop.f32.mrf.mxu0  ;;  %12036 = vpow2.f32 %v5615_v63 }
 0x7cc   : > { %v15741_v39 = vadd.f32 %v10624_v61, %v10623_v2  ;;  %5708 = vadd.xlane.f32.xlu1 %v5707_v52  ;;  %v6986_v61 = vmax.f32 %v15574_v57, %v15577_v41  ;;  %v5522_v2 = vsub.f32 %v18544_v8, %v15383_v47  ;;  %v5621_v41 = vmul.f32 1.442695, %v5521_v0  ;;  %v18547_v47 = vld [vmem:[#allocation56_spill] sm:$0xff]  ;;  %v18548_v57 = vld [vmem:[#allocation37_spill] sm:$0xff] }
 0x7cd   : > { %v15745_v42 = vpop.f32.mrf.mxu0  ;;  %5711 = vadd.xlane.f32.xlu0 %v5710_v48  ;;  %12038 = vpow2.f32 %v5617_v29  ;;  %v5523_v45 = vsub.f32 %v18547_v47, %v15399_v46  ;;  %v5713_v8 = vadd.f32 %v15747_v23, %v15743_v16  ;;  %v5524_v51 = vsub.f32 %v18548_v57, %v15399_v46 }
 0x7ce   : > { %18540 = vst [vmem:[#allocation67_spill] sm:$0xff] %v15741_v39  ;;  %18542 = vst [vmem:[#allocation54_spill] sm:$0xff] %v15745_v42  ;;  %v15763_v42 = vpop.eup %12024  ;;  %v15765_v39 = vpop.f32.mrf.mxu1  ;;  %12040 = vpow2.f32 %v5619_v35  ;;  %v6989_v46 = vmax.f32 %v15584_v53, %v15588_v4 }
 0x7cf   : > { %v15759_v52 = vpop.f32.mrf.mxu0  ;;  %v15761_v48 = vpop.xlane.xlu1 %5468  ;;  %18546 = vst [vmem:[#allocation57_spill] sm:$0xff] %v15765_v39  ;;  %v5716_v63 = vadd.f32 %v15763_v42, %v15753_v14  ;;  %12042 = vpow2.f32 %v5621_v41  ;;  %v5625_v35 = vmul.f32 1.442695, %v5523_v45  ;;  %v18556_v41 = vld [vmem:[#allocation70_spill] sm:$0xff] }
 0x7d0   : > { %18545 = vst [vmem:[#allocation76_spill] sm:$0xff] %v15759_v52  ;;  %v15767_v25 = vpop.xlane.xlu0 %5471  ;;  %6984 = vmax.xlane.f32.xlu1 %v6983_v60  ;;  %v5623_v52 = vmul.f32 1.442695, %v5522_v2  ;;  %v15777_v60 = vpop.f32.mrf.mxu1  ;;  %v5526_v45 = vsub.f32 %v18556_v41, %v15457_v30 }
 0x7d1   : > { %v10629_v54 = vpop.f32.mrf.mxu0  ;;  %6987 = vmax.xlane.f32.xlu0 %v6986_v61  ;;  %18549 = vst [vmem:[#allocation56_spill] sm:$0xff] %v15777_v60  ;;  %v15781_v61 = vpop.eup %12026 }
 0x7d2   : > { %18551 = vst [vmem:[#allocation125_spill] sm:$0xff] %v15781_v61  ;;  %v15785_v2 = vpop.eup %12028  ;;  %v15789_v57 = vpop.f32.mrf.mxu1  ;;  %12044 = vpow2.f32 %v5623_v52 }
 0x7d3   : > { %v10630_v26 = vpop.f32.mrf.mxu0  ;;  %v6101_v5 = vpop.permute.xlu1 %6100  ;;  %18553 = vst [vmem:[#allocation127_spill] sm:$0xff] %v15789_v57 }
 0x7d4   : > { %v15779_v0 = vadd.f32 %v10630_v26, %v10629_v54  ;;  %v5691_v29 = vpop.xlane.xlu0 %5690  ;;  %5714 = vadd.xlane.f32.xlu1 %v5713_v8  ;;  %10709 = vmatprep.subr.bf16.mxu0 %v6101_v5  ;;  %v15791_v16 = vpop.eup %12030  ;;  %v6992_v54 = vmax.f32 %v15595_v24, %v15609_v44  ;;  %v5627_v5 = vmul.f32 1.442695, %v5524_v51  ;;  %v18558_v51 = vld [vmem:[#allocation72_spill] sm:$0xff]  ;;  %v5719_v44 = vadd.f32 %v15785_v2, %v15781_v61 }
 0x7d5   : > { %v15783_v47 = vpop.f32.mrf.mxu0  ;;  %5717 = vadd.xlane.f32.xlu0 %v5716_v63  ;;  %v15797_v26 = vpop.eup %12032  ;;  %v18555_v63 = vld [vmem:[#allocation71_spill] sm:$0xff]  ;;  %12046 = vrcp.f32 %v5691_v29  ;;  %v5527_v52 = vsub.f32 %v18558_v51, %v15453_v32  ;;  %v18559_v29 = vld [vmem:[#allocation45_spill] sm:$0xff]  ;;  %v5631_v51 = vmul.f32 1.442695, %v5526_v45  ;;  %v18562_v45 = vld [vmem:[#allocation74_spill] sm:$0xff] }
 0x7d6   : > { %18550 = vst [vmem:[#allocation37_spill] sm:$0xff] %v15779_v0  ;;  %18552 = vst [vmem:[#allocation126_spill] sm:$0xff] %v15783_v47  ;;  %v5525_v47 = vsub.f32 %v18555_v63, %v15457_v30  ;;  %v15803_v53 = vpop.f32.mrf.mxu1  ;;  %v5722_v30 = vadd.f32 %v15797_v26, %v15791_v16 }
 0x7d7   : > { %v15795_v8 = vpop.f32.mrf.mxu0  ;;  %18557 = vst [vmem:[#allocation71_spill] sm:$0xff] %v15803_v53 }
 0x7d8   : > { %18554 = vst [vmem:[#allocation128_spill] sm:$0xff] %v15795_v8  ;;  %v5694_v0 = vpop.xlane.xlu0 %5693  ;;  %6990 = vmax.xlane.f32.xlu1 %v6989_v46  ;;  %v6099_v8 = vpop.permute.xlu1 %6098  ;;  %v5528_v46 = vsub.f32 %v18559_v29, %v15453_v32  ;;  %v5633_v29 = vmul.f32 1.442695, %v5527_v52  ;;  %v18564_v52 = vld [vmem:[#allocation73_spill] sm:$0xff] }
 0x7d9   : > { %12048 = vrcp.f32 %v5694_v0  ;;  %v10635_v4 = vpop.f32.mrf.mxu0  ;;  %6993 = vmax.xlane.f32.xlu0 %v6992_v54  ;;  %v5629_v0 = vmul.f32 1.442695, %v5525_v47  ;;  %v15821_v32 = vpop.f32.mrf.mxu1 }
 0x7da   : > { %12050 = vpow2.f32 %v5625_v35  ;;  %v15815_v35 = vpop.eup %12034  ;;  %18561 = vst [vmem:[#allocation72_spill] sm:$0xff] %v15821_v32 }
 0x7db   : > { %12052 = vpow2.f32 %v5627_v5  ;;  %v10636_v63 = vpop.f32.mrf.mxu0  ;;  %v15817_v24 = vpop.eup %12036  ;;  %v6995_v5 = vmax.f32 %v15625_v1, %v15641_v20  ;;  %v18599_v20 = vld [vmem:[#allocation88_spill] sm:$0xff] }
 0x7dc   : > { %v15813_v54 = vadd.f32 %v10636_v63, %v10635_v4  ;;  %v6085_v41 = vpop.permute.xlu0 %6084  ;;  %5720 = vadd.xlane.f32.xlu1 %v5719_v44  ;;  %v15823_v61 = vpop.eup %12038  ;;  %v6998_v4 = vmax.f32 %v15651_v28, %v15659_v62  ;;  %v5635_v44 = vmul.f32 1.442695, %v5528_v46  ;;  %12054 = vpow2.f32 %v5629_v0 }
 0x7dd   : > { %5723 = vadd.xlane.f32.xlu0 %v5722_v30  ;;  %10710 = vmatpush3.bf16.msra.mxu0 %v6085_v41  ;;  %v15827_v47 = vpop.eup %12040  ;;  %v5531_v63 = vsub.f32 %v18562_v45, %v15465_v7  ;;  %v6083_v30 = vpop.permute.xlu1 %6082  ;;  %12056 = vpow2.f32 %v5631_v51  ;;  %v5529_v41 = vsub.f32 %v15217_v22, %v15469_v56  ;;  %v5530_v46 = vsub.f32 %v18564_v52, %v15469_v56  ;;  %v18566_v51 = vld [vmem:[#allocation49_spill] sm:$0xff] }
 0x7de   : > { %18560 = vst [vmem:[#allocation70_spill] sm:$0xff] %v15813_v54  ;;  %10711 = vmatprep.subr.bf16.mxu0 %v6099_v8  ;;  %v15833_v8 = vpop.f32.mrf.mxu1  ;;  %12058 = vpow2.f32 %v5633_v29  ;;  %v15837_v54 = vpop.f32.mrf.mxu0  ;;  %v5725_v0 = vadd.f32 %v15817_v24, %v15815_v35  ;;  %v5728_v22 = vadd.f32 %v15827_v47, %v15823_v61  ;;  %v7001_v62 = vmax.f32 %v15665_v58, %v15681_v55 }
 0x7df   : > { %18563 = vst [vmem:[#allocation45_spill] sm:$0xff] %v15833_v8  ;;  %18565 = vst [vmem:[#allocation74_spill] sm:$0xff] %v15837_v54  ;;  %v15841_v45 = vpop.eup %12042  ;;  %12060 = vpow2.f32 %v5635_v44  ;;  %v5637_v52 = vmul.f32 1.442695, %v5529_v41  ;;  %v5639_v44 = vmul.f32 1.442695, %v5530_v46  ;;  %v7004_v41 = vmax.f32 %v15695_v36, %v15715_v31 }
 0x7e0   : > { %6996 = vmax.xlane.f32.xlu1 %v6995_v5  ;;  %v5532_v5 = vsub.f32 %v18566_v51, %v15465_v7  ;;  %v15849_v29 = vpop.f32.mrf.mxu1  ;;  %v15853_v7 = vpop.f32.mrf.mxu0 }
 0x7e1   : > { %6999 = vmax.xlane.f32.xlu0 %v6998_v4  ;;  %10712 = vmatpush3.bf16.msra.mxu0 %v6083_v30  ;;  %v15847_v4 = vpop.eup %12044  ;;  %18567 = vst [vmem:[#allocation73_spill] sm:$0xff] %v15849_v29  ;;  %v5641_v30 = vmul.f32 1.442695, %v5531_v63  ;;  %18568 = vst [vmem:[#allocation49_spill] sm:$0xff] %v15853_v7 }
 0x7e2   : > { %v12047_v56 = vpop.eup %12046 }
 0x7e3   : > { %v15856_v51 = vmul.f32 %v12047_v56, %v15441_v11  ;;  %v15859_v28 = vmul.f32 %v12047_v56, %v15437_v12  ;;  %v15873_v11 = vpop.f32.mrf.mxu1  ;;  %12062 = vpow2.f32 %v5641_v30  ;;  %v5533_v12 = vsub.f32 %v15349_v3, %v15561_v34 }
 0x7e4   : > { %5726 = vadd.xlane.f32.xlu1 %v5725_v0  ;;  %v5643_v0 = vmul.f32 1.442695, %v5532_v5  ;;  %18569 = vst [vmem:[#allocation129_spill] sm:$0xff] %v15873_v11  ;;  %12064 = vpow2.f32 %v5637_v52  ;;  %v5731_v5 = vadd.f32 %v15847_v4, %v15841_v45 }
 0x7e5   : > { %5729 = vadd.xlane.f32.xlu0 %v5728_v22  ;;  %9593 = vst [vmem:[%s14153_s3 + $0x448] sm:$0xff] %v15856_v51  ;;  %9592 = vst [vmem:[%s14153_s3 + $0x440] sm:$0xff] %v15859_v28  ;;  %12066 = vpow2.f32 %v5639_v44  ;;  %v5645_v3 = vmul.f32 1.442695, %v5533_v12 }
 0x7e6   : > { %v12049_v54 = vpop.eup %12048  ;;  %12068 = vpow2.f32 %v5643_v0  ;;  %v7007_v0 = vmax.f32 %v15725_v19, %v15739_v50 }
 0x7e7   : > { %v15861_v63 = vpop.eup %12050  ;;  %v15866_v22 = vmul.f32 %v12049_v54, %v15449_v40  ;;  %v15869_v46 = vmul.f32 %v12049_v54, %v15443_v6  ;;  %v5535_v40 = vsub.f32 %v15363_v33, %v15565_v15  ;;  %v5536_v33 = vsub.f32 %v15369_v59, %v15565_v15 }
 0x7e8   : > { %v15871_v7 = vpop.eup %12052  ;;  %7002 = vmax.xlane.f32.xlu1 %v7001_v62  ;;  %v10641_v56 = vpop.f32.mrf.mxu0  ;;  %v5534_v62 = vsub.f32 %v15355_v21, %v15561_v34  ;;  %v7010_v15 = vmax.f32 %v15765_v39, %v15777_v60  ;;  %12070 = vpow2.f32 %v5645_v3  ;;  %v18574_v3 = vld [vmem:[#allocation77_spill] sm:$0xff]  ;;  %v18585_v39 = vld [vmem:[#allocation82_spill] sm:$0xff] }
 0x7e9   : > { %7005 = vmax.xlane.f32.xlu0 %v7004_v41  ;;  %9595 = vst [vmem:[%s14153_s3 + $0x458] sm:$0xff] %v15866_v22  ;;  %9594 = vst [vmem:[%s14153_s3 + $0x450] sm:$0xff] %v15869_v46  ;;  %v5734_v52 = vadd.f32 %v15871_v7, %v15861_v63  ;;  %v15901_v41 = vpop.f32.mrf.mxu1  ;;  %v15903_v44 = vpop.eup %12054  ;;  %v5649_v21 = vmul.f32 1.442695, %v5535_v40  ;;  %v5537_v40 = vsub.f32 %v15427_v13, %v15761_v48 }
 0x7ea   : > { %v10642_v54 = vpop.f32.mrf.mxu0  ;;  %18571 = vst [vmem:[#allocation131_spill] sm:$0xff] %v15901_v41  ;;  %v15905_v34 = vpop.eup %12056  ;;  %v5647_v6 = vmul.f32 1.442695, %v5534_v62 }
 0x7eb   : > { %v15897_v30 = vadd.f32 %v10642_v54, %v10641_v56  ;;  %v15909_v59 = vpop.eup %12058  ;;  %v5651_v56 = vmul.f32 1.442695, %v5536_v33  ;;  %v15915_v12 = vpop.f32.mrf.mxu1  ;;  %12072 = vpow2.f32 %v5649_v21  ;;  %v5538_v33 = vsub.f32 %v15429_v49, %v15761_v48 }
 0x7ec   : > { %5732 = vadd.xlane.f32.xlu1 %v5731_v5  ;;  %v15913_v54 = vpop.eup %12060  ;;  %18572 = vst [vmem:[#allocation132_spill] sm:$0xff] %v15915_v12  ;;  %v5539_v5 = vsub.f32 %v15431_v43, %v15767_v25  ;;  %12074 = vpow2.f32 %v5647_v6  ;;  %v5653_v21 = vmul.f32 1.442695, %v5537_v40  ;;  %v7013_v49 = vmax.f32 %v15789_v57, %v15803_v53  ;;  %v18582_v57 = vld [vmem:[#allocation95_spill] sm:$0xff] }
 0x7ed   : > { %18570 = vst [vmem:[#allocation130_spill] sm:$0xff] %v15897_v30  ;;  %5735 = vadd.xlane.f32.xlu0 %v5734_v52  ;;  %v15921_v62 = vpop.f32.mrf.mxu1  ;;  %v5737_v52 = vadd.f32 %v15905_v34, %v15903_v44  ;;  %12076 = vpow2.f32 %v5651_v56  ;;  %v5540_v30 = vsub.f32 %v18574_v3, %v15767_v25  ;;  %v5740_v13 = vadd.f32 %v15913_v54, %v15909_v59 }
 0x7ee   : > { %18573 = vst [vmem:[#allocation133_spill] sm:$0xff] %v15921_v62  ;;  %v7016_v25 = vmax.f32 %v15821_v32, %v15833_v8  ;;  %12078 = vpow2.f32 %v5653_v21  ;;  %v7019_v21 = vmax.f32 %v15849_v29, %v15873_v11 }
 0x7ef   : > { %v15937_v48 = vpop.f32.mrf.mxu1  ;;  %v5659_v3 = vmul.f32 1.442695, %v5540_v30 }
 0x7f0   : > { %7008 = vmax.xlane.f32.xlu1 %v7007_v0  ;;  %v15931_v43 = vpop.eup %12062  ;;  %v5657_v0 = vmul.f32 1.442695, %v5539_v5  ;;  %18575 = vst [vmem:[#allocation77_spill] sm:$0xff] %v15937_v48 }
 0x7f1   : > { %7011 = vmax.xlane.f32.xlu0 %v7010_v15  ;;  %v15933_v6 = vpop.eup %12064  ;;  %v5655_v15 = vmul.f32 1.442695, %v5538_v33  ;;  %v15945_v5 = vpop.f32.mrf.mxu1 }
 0x7f2   : > { %v15939_v56 = vpop.eup %12066  ;;  %12080 = vpow2.f32 %v5657_v0  ;;  %18576 = vst [vmem:[#allocation134_spill] sm:$0xff] %v15945_v5 }
 0x7f3   : > { %v15943_v40 = vpop.eup %12068  ;;  %12082 = vpow2.f32 %v5655_v15  ;;  %v15957_v0 = vpop.f32.mrf.mxu1  ;;  %v7022_v15 = vmax.f32 %v15901_v41, %v15915_v12  ;;  %v7025_v12 = vmax.f32 %v15921_v62, %v15937_v48 }
 0x7f4   : > { %5738 = vadd.xlane.f32.xlu1 %v5737_v52  ;;  %v5743_v52 = vadd.f32 %v15939_v56, %v15933_v6  ;;  %12084 = vpow2.f32 %v5659_v3  ;;  %v5746_v33 = vadd.f32 %v15943_v40, %v15931_v43  ;;  %18577 = vst [vmem:[#allocation135_spill] sm:$0xff] %v15957_v0 }
 0x7f5   : > { %5741 = vadd.xlane.f32.xlu0 %v5740_v13  ;;  %v15951_v13 = vpop.eup %12070  ;;  %v15965_v3 = vpop.f32.mrf.mxu1 }
 0x7f6   : > { %18578 = vst [vmem:[#allocation136_spill] sm:$0xff] %v15965_v3 }
 0x7f7   : > { %v15971_v11 = vpop.f32.mrf.mxu1 }
 0x7f8   : > { %7014 = vmax.xlane.f32.xlu1 %v7013_v49  ;;  %v15953_v30 = vpop.eup %12072  ;;  %18579 = vst [vmem:[#allocation137_spill] sm:$0xff] %v15971_v11 }
 0x7f9   : > { %7017 = vmax.xlane.f32.xlu0 %v7016_v25  ;;  %v15959_v49 = vpop.eup %12074  ;;  %v15985_v8 = vpop.f32.mrf.mxu1 }
 0x7fa   : > { %v15963_v25 = vpop.eup %12076  ;;  %18580 = vst [vmem:[#allocation138_spill] sm:$0xff] %v15985_v8 }
 0x7fb   : > { %v15973_v29 = vpop.eup %12078  ;;  %v15991_v32 = vpop.f32.mrf.mxu1 }
 0x7fc   : > { %5744 = vadd.xlane.f32.xlu1 %v5743_v52  ;;  %v5749_v52 = vadd.f32 %v15959_v49, %v15951_v13  ;;  %18581 = vst [vmem:[#allocation139_spill] sm:$0xff] %v15991_v32  ;;  %v7034_v55 = vmax.f32 %v15985_v8, %v15991_v32  ;;  %v18598_v8 = vld [vmem:[#allocation47_spill] sm:$0xff] }
 0x7fd   : > { %5747 = vadd.xlane.f32.xlu0 %v5746_v33  ;;  %v5752_v33 = vadd.f32 %v15963_v25, %v15953_v30 }
 0x7ff   : > { %v15975_v53 = vpop.eup %12080 }
 0x800   : > { %7020 = vmax.xlane.f32.xlu1 %v7019_v21  ;;  %v15979_v41 = vpop.eup %12082  ;;  %v7028_v21 = vmax.f32 %v15945_v5, %v15957_v0  ;;  %v18583_v5 = vld [vmem:[#allocation38_spill] sm:$0xff] }
 0x801   : > { %7023 = vmax.xlane.f32.xlu0 %v7022_v15  ;;  %v15983_v15 = vpop.eup %12084 }
 0x804   : > { %5750 = vadd.xlane.f32.xlu1 %v5749_v52  ;;  %v5755_v52 = vadd.f32 %v15979_v41, %v15973_v29 }
 0x805   : > { %5753 = vadd.xlane.f32.xlu0 %v5752_v33  ;;  %v5758_v33 = vadd.f32 %v15983_v15, %v15975_v53 }
 0x808   : > { %7026 = vmax.xlane.f32.xlu1 %v7025_v12  ;;  %v7031_v12 = vmax.f32 %v15965_v3, %v15971_v11  ;;  %v18597_v11 = vld [vmem:[#allocation86_spill] sm:$0xff] }
 0x809   : > { %7029 = vmax.xlane.f32.xlu0 %v7028_v21  ;;  %v18584_v21 = vld [vmem:[#allocation96_spill] sm:$0xff] }
 0x80c   : > { %5756 = vadd.xlane.f32.xlu1 %v5755_v52  ;;  %v5475_v48 = vpop.xlane.xlu1 %5474 }
 0x80d   : > { %v5478_v62 = vpop.xlane.xlu0 %5477  ;;  %5759 = vadd.xlane.f32.xlu0 %v5758_v33  ;;  %v5541_v0 = vsub.f32 %v18582_v57, %v5475_v48  ;;  %v5542_v50 = vsub.f32 %v18583_v5, %v5475_v48  ;;  %v16001_v5 = vpop.f32.mrf.mxu1 }
 0x80e   : > { %v5543_v60 = vsub.f32 %v18584_v21, %v5478_v62  ;;  %v5544_v19 = vsub.f32 %v18585_v39, %v5478_v62  ;;  %v18591_v21 = vld [vmem:[#allocation97_spill] sm:$0xff] }
 0x80f   : > { %v5661_v31 = vmul.f32 1.442695, %v5541_v0  ;;  %v5663_v36 = vmul.f32 1.442695, %v5542_v50  ;;  %v16003_v0 = vpop.f32.mrf.mxu1 }
 0x810   : > { %v5665_v58 = vmul.f32 1.442695, %v5543_v60  ;;  %v5667_v52 = vmul.f32 1.442695, %v5544_v19  ;;  %7032 = vmax.xlane.f32.xlu1 %v7031_v12  ;;  %v6097_v33 = vpop.permute.xlu1 %6096  ;;  %18586 = vst [vmem:[#allocation95_spill] sm:$0xff] %v16003_v0  ;;  %v18590_v12 = vld [vmem:[#allocation84_spill] sm:$0xff] }
 0x811   : > { %12086 = vpow2.f32 %v5661_v31  ;;  %7035 = vmax.xlane.f32.xlu0 %v7034_v55  ;;  %v5697_v57 = vpop.xlane.xlu0 %5696  ;;  %10713 = vmatprep.subr.bf16.mxu0 %v6097_v33  ;;  %v16007_v55 = vpop.f32.mrf.mxu1 }
 0x812   : > { %12088 = vpow2.f32 %v5665_v58 }
 0x813   : > { %12090 = vpow2.f32 %v5667_v52  ;;  %v18592_v52 = vpack.c.bf16 %v18590_v12, %v18591_v21  ;;  %v18596_v21 = vld [vmem:[#allocation87_spill] sm:$0xff] }
 0x814   : > { %12092 = vpow2.f32 %v5663_v36  ;;  %v6095_v39 = vpop.permute.xlu1 %6094  ;;  %v16011_v36 = vpop.f32.mrf.mxu0 }
 0x815   : > { %12094 = vrcp.f32 %v5697_v57  ;;  %v5700_v48 = vpop.xlane.xlu0 %5699  ;;  %18588 = vst [vmem:[#allocation96_spill] sm:$0xff] %v16011_v36 }
 0x816   : > { %12096 = vrcp.f32 %v5700_v48  ;;  %v16022_v48 = vpop.f32.mrf.mxu1  ;;  %v16029_v12 = vpop.f32.mrf.mxu0 }
 0x817   : > { %18595 = vst [vmem:[#allocation84_spill] sm:$0xff] %v16029_v12 }
 0x818   : > { %v6079_v19 = vpop.permute.xlu1 %6078 }
 0x819   : > { %v6081_v62 = vpop.permute.xlu0 %6080 }
 0x81a   : > { %10714 = vmatpush3.bf16.msra.mxu0 %v6081_v62  ;;  %v18593_v62 = vld [vmem:[#allocation58_spill] sm:$0xff] }
 0x81b   : > { %10715 = vmatprep.subr.bf16.mxu0 %v6095_v39 }
 0x81e   : > { %v16005_v50 = vpop.eup %12086  ;;  %10716 = vmatpush3.bf16.msra.mxu0 %v6079_v19  ;;  %v18594_v19 = vpack.c.bf16 %v15614_v18, %v18593_v62  ;;  %v7037_v18 = vmax.f32 %v16001_v5, %v16003_v0  ;;  %v18605_v62 = vpack.c.bf16 %v15869_v46, %v15859_v28 }
 0x81f   : > { %18587 = vst [vmem:[#allocation38_spill] sm:$0xff] %v16005_v50  ;;  %v16009_v58 = vpop.eup %12088 }
 0x820   : > { %v16013_v31 = vpop.eup %12090 }
 0x821   : > { %v16015_v60 = vpop.eup %12092  ;;  %6159 = vmatmul.mubr.bf16.vlgmr.msra.gmra.mxu0 %v18592_v52  ;;  %v5764_v33 = vadd.f32 %v16013_v31, %v16009_v58 }
 0x822   : > { %18589 = vst [vmem:[#allocation82_spill] sm:$0xff] %v16015_v60  ;;  %v12095_v57 = vpop.eup %12094  ;;  %v5761_v39 = vadd.f32 %v16015_v60, %v16005_v50  ;;  %6166 = vmatprep.mubr.bf16.mxu0 %v18594_v19  ;;  %v7040_v50 = vmax.f32 %v16007_v55, %v16022_v48 }
 0x823   : > { %v12097_v36 = vpop.eup %12096  ;;  %5765 = vadd.xlane.f32.xlu0 %v5764_v33  ;;  %v5818_v52 = vmul.f32 %v12095_v57, %v18596_v21  ;;  %v5817_v32 = vmul.f32 %v12095_v57, %v18597_v11  ;;  %v18601_v57 = vld [vmem:[#allocation60_spill] sm:$0xff] }
 0x824   : > { %5762 = vadd.xlane.f32.xlu1 %v5761_v39  ;;  %v5820_v3 = vmul.f32 %v12097_v36, %v18598_v8  ;;  %v5819_v1 = vmul.f32 %v12097_v36, %v18599_v20  ;;  %v18602_v8 = vld [vmem:[#allocation59_spill] sm:$0xff]  ;;  %v18604_v20 = vpack.c.bf16 %v15866_v22, %v15856_v51 }
 0x825   : > { %v10647_v60 = vpop.f32.mrf.mxu0  ;;  %9597 = vst [vmem:[%s14153_s3 + $0x468] sm:$0xff] %v5818_v52  ;;  %9596 = vst [vmem:[%s14153_s3 + $0x460] sm:$0xff] %v5817_v32  ;;  %v18603_v39 = vpack.c.bf16 %v18601_v57, %v18602_v8  ;;  %v18607_v57 = vld [vmem:[#allocation85_spill] sm:$0xff] }
 0x826   : > { %9599 = vst [vmem:[%s14153_s3 + $0x478] sm:$0xff] %v5820_v3  ;;  %9598 = vst [vmem:[%s14153_s3 + $0x470] sm:$0xff] %v5819_v1  ;;  %v5941_v36 = vpack.c.bf16 %v5820_v3, %v5818_v52  ;;  %v5940_v19 = vpack.c.bf16 %v5819_v1, %v5817_v32 }
 0x827   : > { %7041 = vmax.xlane.f32.xlu0 %v7040_v50  ;;  %v10648_v33 = vpop.f32.mrf.mxu0 }
 0x828   : > { %7038 = vmax.xlane.f32.xlu1 %v7037_v18  ;;  %v16043_v11 = vadd.f32 %v10648_v33, %v10647_v60  ;;  %v18606_v18 = vld [vmem:[#allocation48_spill] sm:$0xff] }
 0x829   : > { %6167 = vmatmul.mubr.bf16.gmra.mxu0 %v18603_v39  ;;  %v18608_v39 = vld [vmem:[#allocation69_spill] sm:$0xff] }
 0x82a   : > { %18600 = vst [vmem:[#allocation97_spill] sm:$0xff] %v16043_v11  ;;  %6174 = vmatprep.mubr.bf16.mxu0 %v18604_v20 }
 0x831   : > { %6175 = vmatmul.mubr.bf16.gmra.mxu0 %v18605_v62 }
 0x832   : > { %6182 = vmatprep.mubr.bf16.mxu0 %v5941_v36  ;;  %v16060_v36 = vpop.f32.mrf.mxu1 }
 0x833   : > { %18609 = vst [vmem:[#allocation58_spill] sm:$0xff] %v16060_v36 }
 0x839   : > { %6183 = vmatmul.mubr.bf16.gmra.mxu0 %v5940_v19 }
 0x849   : > { %v5481_v50 = vpop.xlane.xlu1 %5480 }
 0x84a   : > { %v5484_v21 = vpop.xlane.xlu0 %5483  ;;  %v5545_v60 = vsub.f32 %v15521_v37, %v5481_v50  ;;  %v5546_v33 = vsub.f32 %v18606_v18, %v5481_v50 }
 0x84b   : > { %v5547_v8 = vsub.f32 %v18607_v57, %v5484_v21  ;;  %v5548_v11 = vsub.f32 %v18608_v39, %v5484_v21 }
 0x84c   : > { %v5669_v51 = vmul.f32 1.442695, %v5545_v60  ;;  %v5671_v52 = vmul.f32 1.442695, %v5546_v33 }
 0x84d   : > { %v5673_v22 = vmul.f32 1.442695, %v5547_v8  ;;  %v5675_v3 = vmul.f32 1.442695, %v5548_v11  ;;  %v5703_v20 = vpop.xlane.xlu1 %5702  ;;  %v18610_v11 = vld [vmem:[#allocation46_spill] sm:$0xff]  ;;  %v16064_v8 = vpop.f32.mrf.mxu1 }
 0x84e   : > { %12098 = vpow2.f32 %v5669_v51  ;;  %v5706_v28 = vpop.xlane.xlu0 %5705  ;;  %18611 = vst [vmem:[#allocation87_spill] sm:$0xff] %v16064_v8 }
 0x84f   : > { %12100 = vpow2.f32 %v5673_v22  ;;  %v16072_v39 = vpop.f32.mrf.mxu1 }
 0x850   : > { %12102 = vpow2.f32 %v5675_v3  ;;  %18612 = vst [vmem:[#allocation86_spill] sm:$0xff] %v16072_v39 }
 0x851   : > { %12104 = vpow2.f32 %v5671_v52  ;;  %v6979_v1 = vpop.xlane.xlu1 %6978 }
 0x852   : > { %12106 = vrcp.f32 %v5706_v28  ;;  %v6982_v32 = vpop.xlane.xlu0 %6981  ;;  %v7073_v37 = vsub.f32 %v15531_v27, %v6979_v1  ;;  %v7074_v46 = vsub.f32 %v15541_v38, %v6979_v1 }
 0x853   : > { %12108 = vrcp.f32 %v5703_v20  ;;  %v7075_v62 = vsub.f32 %v15549_v10, %v6982_v32  ;;  %v7076_v19 = vsub.f32 %v18610_v11, %v6982_v32  ;;  %v16082_v32 = vpop.f32.mrf.mxu1 }
 0x854   : > { %v7137_v50 = vmul.f32 1.442695, %v7073_v37  ;;  %v7139_v18 = vmul.f32 1.442695, %v7074_v46  ;;  %18613 = vst [vmem:[#allocation47_spill] sm:$0xff] %v16082_v32  ;;  %v7046_v12 = vmax.f32 %v16072_v39, %v16082_v32 }
 0x855   : > { %v7141_v21 = vmul.f32 1.442695, %v7075_v62  ;;  %v7143_v60 = vmul.f32 1.442695, %v7076_v19  ;;  %v5709_v33 = vpop.xlane.xlu1 %5708  ;;  %v18614_v62 = vld [vmem:[#allocation120_spill] sm:$0xff]  ;;  %v18615_v19 = vld [vmem:[#allocation118_spill] sm:$0xff] }
 0x856   : > { %12110 = vpow2.f32 %v7137_v50  ;;  %v5712_v57 = vpop.xlane.xlu0 %5711 }
 0x857   : > { %12112 = vpow2.f32 %v7141_v21  ;;  %v18616_v21 = vld [vmem:[#allocation116_spill] sm:$0xff] }
 0x858   : > { %12114 = vpow2.f32 %v7143_v60 }
 0x859   : > { %12116 = vpow2.f32 %v7139_v18  ;;  %v16066_v27 = vpop.xlane.xlu1 %6984  ;;  %v18617_v18 = vld [vmem:[#allocation66_spill] sm:$0xff] }
 0x85a   : > { %12118 = vrcp.f32 %v5712_v57  ;;  %v16068_v38 = vpop.xlane.xlu0 %6987 }
 0x85b   : > { %v16070_v10 = vpop.eup %12098  ;;  %12120 = vrcp.f32 %v5709_v33 }
 0x85c   : > { %v16074_v51 = vpop.eup %12100 }
 0x85d   : > { %v16076_v22 = vpop.eup %12102  ;;  %v5715_v3 = vpop.xlane.xlu1 %5714 }
 0x85e   : > { %v16078_v52 = vpop.eup %12104  ;;  %v5718_v20 = vpop.xlane.xlu0 %5717  ;;  %v5770_v28 = vadd.f32 %v16076_v22, %v16074_v51 }
 0x85f   : > { %v12107_v1 = vpop.eup %12106  ;;  %v5767_v37 = vadd.f32 %v16078_v52, %v16070_v10  ;;  %12122 = vrcp.f32 %v5718_v20 }
 0x860   : > { %v12109_v46 = vpop.eup %12108  ;;  %5771 = vadd.xlane.f32.xlu0 %v5770_v28  ;;  %v5824_v11 = vmul.f32 %v12107_v1, %v18614_v62  ;;  %v5823_v50 = vmul.f32 %v12107_v1, %v18615_v19  ;;  %v7043_v1 = vmax.f32 %v16060_v36, %v16064_v8  ;;  %12124 = vrcp.f32 %v5715_v3 }
 0x861   : > { %5768 = vadd.xlane.f32.xlu1 %v5767_v37  ;;  %v5822_v60 = vmul.f32 %v12109_v46, %v18616_v21  ;;  %v5821_v33 = vmul.f32 %v12109_v46, %v18617_v18  ;;  %v16090_v57 = vpop.xlane.xlu1 %6990 }
 0x862   : > { %9603 = vst [vmem:[%s14153_s3 + $0x498] sm:$0xff] %v5824_v11  ;;  %v16095_v0 = vpop.xlane.xlu0 %6993  ;;  %9602 = vst [vmem:[%s14153_s3 + $0x490] sm:$0xff] %v5823_v50 }
 0x863   : > { %v16098_v28 = vpop.eup %12110  ;;  %9601 = vst [vmem:[%s14153_s3 + $0x488] sm:$0xff] %v5822_v60  ;;  %v5943_v37 = vpack.c.bf16 %v5824_v11, %v5822_v60  ;;  %9600 = vst [vmem:[%s14153_s3 + $0x480] sm:$0xff] %v5821_v33  ;;  %v5942_v62 = vpack.c.bf16 %v5823_v50, %v5821_v33  ;;  %v18618_v33 = vld [vmem:[#allocation121_spill] sm:$0xff] }
 0x864   : > { %v16104_v46 = vpop.eup %12112  ;;  %7047 = vmax.xlane.f32.xlu0 %v7046_v12 }
 0x865   : > { %v16106_v19 = vpop.eup %12114  ;;  %6190 = vmatprep.mubr.bf16.mxu0 %v5943_v37  ;;  %7044 = vmax.xlane.f32.xlu1 %v7043_v1  ;;  %v5721_v20 = vpop.xlane.xlu1 %5720  ;;  %v18619_v37 = vld [vmem:[#allocation68_spill] sm:$0xff] }
 0x866   : > { %v16108_v21 = vpop.eup %12116  ;;  %6191 = vmatmul.mubr.bf16.gmra.mxu0 %v5942_v62  ;;  %v5724_v18 = vpop.xlane.xlu0 %5723 }
 0x867   : > { %v12119_v3 = vpop.eup %12118  ;;  %v7265_v11 = vadd.f32 %v16108_v21, %v16098_v28  ;;  %12126 = vrcp.f32 %v5724_v18 }
 0x868   : > { %v12121_v60 = vpop.eup %12120  ;;  %v5828_v12 = vmul.f32 %v12119_v3, %v15723_v9  ;;  %v5827_v50 = vmul.f32 %v12119_v3, %v15717_v17  ;;  %12128 = vrcp.f32 %v5721_v20  ;;  %v7268_v17 = vadd.f32 %v16106_v19, %v16104_v46 }
 0x869   : > { %7266 = vadd.xlane.f32.xlu0 %v7265_v11  ;;  %v5826_v1 = vmul.f32 %v12121_v60, %v18618_v33  ;;  %v5825_v8 = vmul.f32 %v12121_v60, %v18619_v37  ;;  %v16116_v36 = vpop.xlane.xlu1 %6996 }
 0x86a   : > { %9607 = vst [vmem:[%s14153_s3 + $0x4b8] sm:$0xff] %v5828_v12  ;;  %v16119_v62 = vpop.xlane.xlu0 %6999  ;;  %9606 = vst [vmem:[%s14153_s3 + $0x4b0] sm:$0xff] %v5827_v50 }
 0x86b   : > { %9605 = vst [vmem:[%s14153_s3 + $0x4a8] sm:$0xff] %v5826_v1  ;;  %v5945_v32 = vpack.c.bf16 %v5828_v12, %v5826_v1  ;;  %9604 = vst [vmem:[%s14153_s3 + $0x4a0] sm:$0xff] %v5825_v8  ;;  %v5944_v9 = vpack.c.bf16 %v5827_v50, %v5825_v8  ;;  %v18620_v1 = vld [vmem:[#allocation91_spill] sm:$0xff] }
 0x86c   : > { %v12123_v11 = vpop.eup %12122 }
 0x86d   : > { %6198 = vmatprep.mubr.bf16.mxu0 %v5945_v32  ;;  %7269 = vadd.xlane.f32.xlu0 %v7268_v17  ;;  %v5727_v3 = vpop.xlane.xlu1 %5726  ;;  %v12125_v60 = vpop.eup %12124  ;;  %v5832_v20 = vmul.f32 %v12123_v11, %v15763_v42  ;;  %v5831_v12 = vmul.f32 %v12123_v11, %v15753_v14  ;;  %v11538_v17 = vld [vmem:[#allocation3 + $0x78] sm:$0xff]  }
 0x86e   : > { %6199 = vmatmul.mubr.bf16.gmra.mxu0 %v5944_v9  ;;  %v5730_v18 = vpop.xlane.xlu0 %5729  ;;  %v5830_v33 = vmul.f32 %v12125_v60, %v15747_v23  ;;  %v5829_v37 = vmul.f32 %v12125_v60, %v18620_v1 }
 0x86f   : > { %12130 = vrcp.f32 %v5730_v18  ;;  %9611 = vst [vmem:[%s14153_s3 + $0x4d8] sm:$0xff] %v5832_v20  ;;  %9610 = vst [vmem:[%s14153_s3 + $0x4d0] sm:$0xff] %v5831_v12  ;;  %v11539_v18 = vld [vmem:[#allocation3 + $0x70] sm:$0xff]  }
 0x870   : > { %12132 = vrcp.f32 %v5727_v3  ;;  %9609 = vst [vmem:[%s14153_s3 + $0x4c8] sm:$0xff] %v5830_v33  ;;  %v5947_v32 = vpack.c.bf16 %v5832_v20, %v5830_v33  ;;  %9608 = vst [vmem:[%s14153_s3 + $0x4c0] sm:$0xff] %v5829_v37  ;;  %v5946_v50 = vpack.c.bf16 %v5831_v12, %v5829_v37  ;;  %v18621_v20 = vld [vmem:[#allocation125_spill] sm:$0xff] }
 0x871   : > { %v16130_v39 = vpop.xlane.xlu1 %7002 }
 0x872   : > { %v16133_v8 = vpop.xlane.xlu0 %7005  ;;  %6206 = vmatprep.mubr.bf16.mxu0 %v5947_v32 }
 0x874   : > { %v12127_v23 = vpop.eup %12126 }
 0x875   : > { %v5733_v14 = vpop.xlane.xlu1 %5732  ;;  %v12129_v9 = vpop.eup %12128  ;;  %v5836_v3 = vmul.f32 %v12127_v23, %v15797_v26  ;;  %v5835_v11 = vmul.f32 %v12127_v23, %v15791_v16  ;;  %v11540_v16 = vld [vmem:[#allocation3 + $0x30] sm:$0xff]   ;;  %v11541_v23 = vld [vmem:[#allocation3 + $0x38] sm:$0xff]  }
 0x876   : > { %6207 = vmatmul.mubr.bf16.gmra.mxu0 %v5946_v50  ;;  %7696 = vrot.lane.b32.xlu1 %v11538_v17, %s12809_s26  ;;  %v5736_v42 = vpop.xlane.xlu0 %5735  ;;  %v5834_v60 = vmul.f32 %v12129_v9, %v15785_v2  ;;  %v5833_v12 = vmul.f32 %v12129_v9, %v18621_v20 }
 0x877   : > { %12134 = vrcp.f32 %v5736_v42  ;;  %9615 = vst [vmem:[%s14153_s3 + $0x4f8] sm:$0xff] %v5836_v3  ;;  %9614 = vst [vmem:[%s14153_s3 + $0x4f0] sm:$0xff] %v5835_v11 }
 0x878   : > { %12136 = vrcp.f32 %v5733_v14  ;;  %9613 = vst [vmem:[%s14153_s3 + $0x4e8] sm:$0xff] %v5834_v60  ;;  %v5949_v37 = vpack.c.bf16 %v5836_v3, %v5834_v60  ;;  %9612 = vst [vmem:[%s14153_s3 + $0x4e0] sm:$0xff] %v5833_v12  ;;  %v5948_v26 = vpack.c.bf16 %v5835_v11, %v5833_v12 }
 0x879   : > { %v16143_v33 = vpop.xlane.xlu1 %7008 }
 0x87a   : > { %7694 = vrot.lane.b32.xlu1 %v11539_v18, %s12809_s26  ;;  %v16147_v1 = vpop.xlane.xlu0 %7011  ;;  %6214 = vmatprep.mubr.bf16.mxu0 %v5949_v37 }
 0x87c   : > { %v12131_v50 = vpop.eup %12130 }
 0x87d   : > { %v5739_v2 = vpop.xlane.xlu1 %5738  ;;  %v12133_v17 = vpop.eup %12132  ;;  %v5840_v42 = vmul.f32 %v12131_v50, %v15827_v47  ;;  %v5839_v14 = vmul.f32 %v12131_v50, %v15823_v61 }
 0x87e   : > { %6215 = vmatmul.mubr.bf16.gmra.mxu0 %v5948_v26  ;;  %7678 = vrot.lane.b32.xlu1 %v11540_v16, %s12809_s26  ;;  %v5742_v32 = vpop.xlane.xlu0 %5741  ;;  %v5838_v9 = vmul.f32 %v12133_v17, %v15817_v24  ;;  %v5837_v18 = vmul.f32 %v12133_v17, %v15815_v35  ;;  %v18622_v26 = vld [vmem:[#allocation89_spill] sm:$0xff] }
 0x87f   : > { %12138 = vrcp.f32 %v5742_v32  ;;  %9619 = vst [vmem:[%s14153_s3 + $0x518] sm:$0xff] %v5840_v42  ;;  %9618 = vst [vmem:[%s14153_s3 + $0x510] sm:$0xff] %v5839_v14  ;;  %v7077_v16 = vsub.f32 %v18622_v26, %v16066_v27 }
 0x880   : > { %12140 = vrcp.f32 %v5739_v2  ;;  %9617 = vst [vmem:[%s14153_s3 + $0x508] sm:$0xff] %v5838_v9  ;;  %v5951_v60 = vpack.c.bf16 %v5840_v42, %v5838_v9  ;;  %9616 = vst [vmem:[%s14153_s3 + $0x500] sm:$0xff] %v5837_v18  ;;  %v5950_v61 = vpack.c.bf16 %v5839_v14, %v5837_v18  ;;  %v18624_v18 = vld [vmem:[#allocation99_spill] sm:$0xff] }
 0x881   : > { %v16157_v3 = vpop.xlane.xlu1 %7014 }
 0x882   : > { %v16160_v11 = vpop.xlane.xlu0 %7017  ;;  %6222 = vmatprep.mubr.bf16.mxu0 %v5951_v60  ;;  %v7079_v60 = vsub.f32 %v18624_v18, %v16068_v38 }
 0x883   : > { %7680 = vrot.lane.b32.xlu0 %v11541_v23, %s12809_s26  ;;  %v7145_v23 = vmul.f32 1.442695, %v7077_v16 }
 0x884   : > { %v12135_v47 = vpop.eup %12134 }
 0x885   : > { %v5745_v24 = vpop.xlane.xlu1 %5744  ;;  %v12137_v20 = vpop.eup %12136  ;;  %v5844_v12 = vmul.f32 %v12135_v47, %v15871_v7  ;;  %v5843_v37 = vmul.f32 %v12135_v47, %v15861_v63  ;;  %v18623_v7 = vld [vmem:[#allocation93_spill] sm:$0xff] }
 0x886   : > { %6223 = vmatmul.mubr.bf16.gmra.mxu0 %v5950_v61  ;;  %v5748_v35 = vpop.xlane.xlu0 %5747  ;;  %v5842_v2 = vmul.f32 %v12137_v20, %v15847_v4  ;;  %v5841_v32 = vmul.f32 %v12137_v20, %v15841_v45  ;;  %v7078_v63 = vsub.f32 %v18623_v7, %v16066_v27 }
 0x887   : > { %12142 = vrcp.f32 %v5748_v35  ;;  %9623 = vst [vmem:[%s14153_s3 + $0x538] sm:$0xff] %v5844_v12  ;;  %9622 = vst [vmem:[%s14153_s3 + $0x530] sm:$0xff] %v5843_v37 }
 0x888   : > { %12144 = vrcp.f32 %v5745_v24  ;;  %9621 = vst [vmem:[%s14153_s3 + $0x528] sm:$0xff] %v5842_v2  ;;  %v5953_v42 = vpack.c.bf16 %v5844_v12, %v5842_v2  ;;  %9620 = vst [vmem:[%s14153_s3 + $0x520] sm:$0xff] %v5841_v32  ;;  %v5952_v14 = vpack.c.bf16 %v5843_v37, %v5841_v32  ;;  %v18625_v24 = vld [vmem:[#allocation100_spill] sm:$0xff]  ;;  %v7147_v47 = vmul.f32 1.442695, %v7078_v63  ;;  %v16188_v12 = vpop.f32.mrf.mxu1 }
 0x889   : > { %v16172_v50 = vpop.xlane.xlu1 %7020  ;;  %v7080_v35 = vsub.f32 %v18625_v24, %v16068_v38  ;;  %12146 = vpow2.f32 %v7145_v23  ;;  %v7149_v38 = vmul.f32 1.442695, %v7079_v60 }
 0x88a   : > { %v16175_v17 = vpop.xlane.xlu0 %7023  ;;  %6230 = vmatprep.mubr.bf16.mxu0 %v5953_v42  ;;  %v16200_v42 = vpop.f32.mrf.mxu1 }
 0x88c   : > { %v12139_v9 = vpop.eup %12138 }
 0x88d   : > { %v5751_v4 = vpop.xlane.xlu1 %5750  ;;  %v12141_v61 = vpop.eup %12140  ;;  %v5848_v27 = vmul.f32 %v12139_v9, %v15913_v54  ;;  %v5847_v20 = vmul.f32 %v12139_v9, %v15909_v59  ;;  %v7151_v59 = vmul.f32 1.442695, %v7080_v35 }
 0x88e   : > { %6231 = vmatmul.mubr.bf16.gmra.mxu0 %v5952_v14  ;;  %v5754_v45 = vpop.xlane.xlu0 %5753  ;;  %v5846_v37 = vmul.f32 %v12141_v61, %v15905_v34  ;;  %v5845_v26 = vmul.f32 %v12141_v61, %v15903_v44 }
 0x88f   : > { %12148 = vrcp.f32 %v5754_v45  ;;  %9627 = vst [vmem:[%s14153_s3 + $0x558] sm:$0xff] %v5848_v27  ;;  %9626 = vst [vmem:[%s14153_s3 + $0x550] sm:$0xff] %v5847_v20 }
 0x890   : > { %12150 = vrcp.f32 %v5751_v4  ;;  %9625 = vst [vmem:[%s14153_s3 + $0x548] sm:$0xff] %v5846_v37  ;;  %v5955_v54 = vpack.c.bf16 %v5848_v27, %v5846_v37  ;;  %9624 = vst [vmem:[%s14153_s3 + $0x540] sm:$0xff] %v5845_v26  ;;  %v5954_v32 = vpack.c.bf16 %v5847_v20, %v5845_v26  ;;  %v16204_v4 = vpop.f32.mrf.mxu1 }
 0x891   : > { %v16196_v2 = vpop.xlane.xlu1 %7026  ;;  %12152 = vpow2.f32 %v7147_v47 }
 0x892   : > { %v16193_v16 = vpop.xlane.xlu0 %7029  ;;  %6238 = vmatprep.mubr.bf16.mxu0 %v5955_v54  ;;  %12154 = vpow2.f32 %v7149_v38  ;;  %v16212_v61 = vpop.f32.mrf.mxu1 }
 0x893   : > { %12156 = vpow2.f32 %v7151_v59  ;;  %v7052_v24 = vmax.f32 %v16204_v4, %v16212_v61 }
 0x894   : > { %v12143_v44 = vpop.eup %12142 }
 0x895   : > { %v12145_v7 = vpop.eup %12144  ;;  %v5757_v63 = vpop.xlane.xlu1 %5756  ;;  %v5852_v14 = vmul.f32 %v12143_v44, %v15943_v40  ;;  %v5851_v23 = vmul.f32 %v12143_v44, %v15931_v43  ;;  %v7049_v40 = vmax.f32 %v16188_v12, %v16200_v42 }
 0x896   : > { %6239 = vmatmul.mubr.bf16.gmra.mxu0 %v5954_v32  ;;  %v5760_v34 = vpop.xlane.xlu0 %5759  ;;  %v5850_v45 = vmul.f32 %v12145_v7, %v15939_v56  ;;  %v5849_v9 = vmul.f32 %v12145_v7, %v15933_v6  ;;  %v16214_v43 = vpop.eup %12146 }
 0x897   : > { %12158 = vrcp.f32 %v5760_v34  ;;  %9631 = vst [vmem:[%s14153_s3 + $0x578] sm:$0xff] %v5852_v14  ;;  %9630 = vst [vmem:[%s14153_s3 + $0x570] sm:$0xff] %v5851_v23 }
 0x898   : > { %12160 = vrcp.f32 %v5757_v63  ;;  %9629 = vst [vmem:[%s14153_s3 + $0x568] sm:$0xff] %v5850_v45  ;;  %v5957_v18 = vpack.c.bf16 %v5852_v14, %v5850_v45  ;;  %9628 = vst [vmem:[%s14153_s3 + $0x560] sm:$0xff] %v5849_v9  ;;  %v5956_v60 = vpack.c.bf16 %v5851_v23, %v5849_v9 }
 0x899   : > { %v16242_v7 = vpop.xlane.xlu1 %7032 }
 0x89a   : > { %6246 = vmatprep.mubr.bf16.mxu0 %v5957_v18  ;;  %v16236_v59 = vpop.xlane.xlu0 %7035 }
 0x89c   : > { %v12149_v56 = vpop.eup %12148 }
 0x89d   : > { %v12151_v6 = vpop.eup %12150  ;;  %v5856_v35 = vmul.f32 %v12149_v56, %v15963_v25  ;;  %v5855_v47 = vmul.f32 %v12149_v56, %v15953_v30 }
 0x89e   : > { %6247 = vmatmul.mubr.bf16.gmra.mxu0 %v5956_v60  ;;  %v16222_v27 = vpop.eup %12152  ;;  %v5854_v20 = vmul.f32 %v12151_v6, %v15959_v49  ;;  %v5853_v37 = vmul.f32 %v12151_v6, %v15951_v13 }
 0x89f   : > { %9635 = vst [vmem:[%s14153_s3 + $0x598] sm:$0xff] %v5856_v35  ;;  %9634 = vst [vmem:[%s14153_s3 + $0x590] sm:$0xff] %v5855_v47  ;;  %v16230_v54 = vpop.eup %12154  ;;  %v7271_v30 = vadd.f32 %v16222_v27, %v16214_v43 }
 0x8a0   : > { %9633 = vst [vmem:[%s14153_s3 + $0x588] sm:$0xff] %v5854_v20  ;;  %v5959_v26 = vpack.c.bf16 %v5856_v35, %v5854_v20  ;;  %9632 = vst [vmem:[%s14153_s3 + $0x580] sm:$0xff] %v5853_v37  ;;  %v5958_v38 = vpack.c.bf16 %v5855_v47, %v5853_v37  ;;  %v16234_v25 = vpop.eup %12156  ;;  %v18627_v35 = vld [vmem:[#allocation38_spill] sm:$0xff]  ;;  %v11545_v20 = vld [vmem:[#allocation3 + $0x28] sm:$0xff]  }
 0x8a1   : > { %v7274_v32 = vadd.f32 %v16234_v25, %v16230_v54 }
 0x8a2   : > { %7050 = vmax.xlane.f32.xlu1 %v7049_v40  ;;  %7053 = vmax.xlane.f32.xlu0 %v7052_v24  ;;  %v18626_v40 = vld [vmem:[#allocation82_spill] sm:$0xff] }
 0x8a3   : > { %6254 = vmatprep.mubr.bf16.mxu0 %v5959_v26 }
 0x8a4   : > { %v12159_v13 = vpop.eup %12158 }
 0x8a5   : > { %v12161_v49 = vpop.eup %12160  ;;  %v5860_v44 = vmul.f32 %v12159_v13, %v15983_v15  ;;  %v5859_v34 = vmul.f32 %v12159_v13, %v15975_v53  ;;  %v11542_v53 = vld [vmem:[#allocation3 + $0x68] sm:$0xff]  }
 0x8a6   : > { %6255 = vmatmul.mubr.bf16.gmra.mxu0 %v5958_v38  ;;  %7272 = vadd.xlane.f32.xlu0 %v7271_v30  ;;  %v5858_v63 = vmul.f32 %v12161_v49, %v15979_v41  ;;  %v5857_v14 = vmul.f32 %v12161_v49, %v15973_v29  ;;  %v11543_v29 = vld [vmem:[#allocation3 + $0x60] sm:$0xff]  }
 0x8a7   : > { %9639 = vst [vmem:[%s14153_s3 + $0x5b8] sm:$0xff] %v5860_v44  ;;  %9638 = vst [vmem:[%s14153_s3 + $0x5b0] sm:$0xff] %v5859_v34  ;;  %v11544_v41 = vld [vmem:[#allocation3 + $0x20] sm:$0xff]  }
 0x8a8   : > { %9637 = vst [vmem:[%s14153_s3 + $0x5a8] sm:$0xff] %v5858_v63  ;;  %v5961_v23 = vpack.c.bf16 %v5860_v44, %v5858_v63  ;;  %9636 = vst [vmem:[%s14153_s3 + $0x5a0] sm:$0xff] %v5857_v14  ;;  %v5960_v45 = vpack.c.bf16 %v5859_v34, %v5857_v14  ;;  %v18628_v38 = vld [vmem:[#allocation103_spill] sm:$0xff]  ;;  %v18630_v13 = vld [vmem:[#allocation108_spill] sm:$0xff]  ;;  %v16270_v14 = vpop.f32.mrf.mxu1 }
 0x8a9   : > { %v7083_v49 = vsub.f32 %v18630_v13, %v16095_v0  ;;  %v18631_v44 = vld [vmem:[#allocation110_spill] sm:$0xff] }
 0x8aa   : > { %7275 = vadd.xlane.f32.xlu0 %v7274_v32  ;;  %6262 = vmatprep.mubr.bf16.mxu0 %v5961_v23  ;;  %v7084_v34 = vsub.f32 %v18631_v44, %v16095_v0 }
 0x8ab   : > { %v7157_v23 = vmul.f32 1.442695, %v7083_v49 }
 0x8ac   : > { %v5766_v9 = vpop.xlane.xlu0 %5765 }
 0x8ad   : > { %12162 = vrcp.f32 %v5766_v9  ;;  %v5763_v15 = vpop.xlane.xlu1 %5762  ;;  %v16272_v9 = vpop.f32.mrf.mxu1 }
 0x8ae   : > { %6263 = vmatmul.mubr.bf16.gmra.mxu0 %v5960_v45  ;;  %12164 = vrcp.f32 %v5763_v15  ;;  %v7159_v45 = vmul.f32 1.442695, %v7084_v34  ;;  %v7055_v0 = vmax.f32 %v16270_v14, %v16272_v9  ;;  %v11546_v34 = vld [vmem:[#allocation3 + $0x58] sm:$0xff]  }
 0x8af   : > { %v16274_v15 = vpop.f32.mrf.mxu1 }
 0x8b3   : > { %7692 = vrot.lane.b32.xlu1 %v11542_v53, %s12809_s26  ;;  %v16278_v53 = vpop.f32.mrf.mxu0 }
 0x8b4   : > { %18632 = vst [vmem:[#allocation88_spill] sm:$0xff] %v16278_v53 }
 0x8b7   : > { %7690 = vrot.lane.b32.xlu1 %v11543_v29, %s12809_s26 }
 0x8ba   : > { %v12163_v18 = vpop.eup %12162 }
 0x8bb   : > { %v12165_v60 = vpop.eup %12164  ;;  %7674 = vrot.lane.b32.xlu1 %v11544_v41, %s12809_s26  ;;  %v5864_v56 = vmul.f32 %v12163_v18, %v16013_v31  ;;  %v5863_v6 = vmul.f32 %v12163_v18, %v16009_v58  ;;  %v7081_v31 = vsub.f32 %v18628_v38, %v16090_v57  ;;  %v18629_v58 = vld [vmem:[#allocation105_spill] sm:$0xff] }
 0x8bc   : > { %v5862_v24 = vmul.f32 %v12165_v60, %v18626_v40  ;;  %v5861_v47 = vmul.f32 %v12165_v60, %v18627_v35  ;;  %v7082_v30 = vsub.f32 %v18629_v58, %v16090_v57  ;;  %v16276_v57 = vpop.f32.mrf.mxu1  ;;  %v16288_v60 = vpop.f32.mrf.mxu0 }
 0x8bd   : > { %9643 = vst [vmem:[%s14153_s3 + $0x5d8] sm:$0xff] %v5864_v56  ;;  %9642 = vst [vmem:[%s14153_s3 + $0x5d0] sm:$0xff] %v5863_v6  ;;  %v7153_v32 = vmul.f32 1.442695, %v7081_v31  ;;  %v7058_v41 = vmax.f32 %v16274_v15, %v16276_v57 }
 0x8be   : > { %9641 = vst [vmem:[%s14153_s3 + $0x5c8] sm:$0xff] %v5862_v24  ;;  %v5963_v37 = vpack.c.bf16 %v5864_v56, %v5862_v24  ;;  %9640 = vst [vmem:[%s14153_s3 + $0x5c0] sm:$0xff] %v5861_v47  ;;  %v5962_v26 = vpack.c.bf16 %v5863_v6, %v5861_v47  ;;  %v7155_v63 = vmul.f32 1.442695, %v7082_v30  ;;  %v16300_v47 = vpop.xlane.xlu0 %7041 }
 0x8bf   : > { %12166 = vpow2.f32 %v7153_v32  ;;  %18633 = vst [vmem:[#allocation60_spill] sm:$0xff] %v16288_v60  ;;  %v11548_v60 = vld [vmem:[#allocation3 + $0x10] sm:$0xff]  }
 0x8c0   : > { %7676 = vrot.lane.b32.xlu0 %v11545_v20, %s12809_s26  ;;  %6270 = vmatprep.mubr.bf16.mxu0 %v5963_v37  ;;  %12168 = vpow2.f32 %v7155_v63 }
 0x8c1   : > { %6271 = vmatmul.mubr.bf16.gmra.mxu0 %v5962_v26  ;;  %12170 = vpow2.f32 %v7157_v23  ;;  %v16306_v26 = vpop.xlane.xlu1 %7038 }
 0x8c2   : > { %12172 = vpow2.f32 %v7159_v45 }
 0x8cc   : > { %v16280_v29 = vpop.eup %12166 }
 0x8cd   : > { %v16286_v18 = vpop.eup %12168 }
 0x8ce   : > { %v16290_v56 = vpop.eup %12170  ;;  %v7277_v40 = vadd.f32 %v16286_v18, %v16280_v29 }
 0x8cf   : > { %v16296_v24 = vpop.eup %12172 }
 0x8d0   : > { %v7280_v37 = vadd.f32 %v16296_v24, %v16290_v56 }
 0x8df   : > { %7056 = vmax.xlane.f32.xlu1 %v7055_v0  ;;  %7059 = vmax.xlane.f32.xlu0 %v7058_v41  ;;  %v11547_v41 = vld [vmem:[#allocation3 + $0x50] sm:$0xff]  }
 0x8e1   : > { %v16292_v6 = vpop.f32.mrf.mxu0 }
 0x8e2   : > { %18634 = vst [vmem:[#allocation59_spill] sm:$0xff] %v16292_v6 }
 0x8e3   : > { %7278 = vadd.xlane.f32.xlu0 %v7277_v40  ;;  %v16298_v35 = vpop.f32.mrf.mxu0 }
 0x8e4   : > { %18635 = vst [vmem:[#allocation48_spill] sm:$0xff] %v16298_v35 }
 0x8e5   : > { %v16302_v20 = vpop.f32.mrf.mxu0 }
 0x8e6   : > { %18636 = vst [vmem:[#allocation85_spill] sm:$0xff] %v16302_v20 }
 0x8e7   : > { %7281 = vadd.xlane.f32.xlu0 %v7280_v37  ;;  %v16308_v38 = vpop.f32.mrf.mxu0 }
 0x8e8   : > { %18637 = vst [vmem:[#allocation69_spill] sm:$0xff] %v16308_v38 }
 0x8e9   : > { %v5772_v31 = vpop.xlane.xlu0 %5771  ;;  %v16310_v58 = vpop.f32.mrf.mxu0 }
 0x8ea   : > { %18638 = vst [vmem:[#allocation46_spill] sm:$0xff] %v16310_v58  ;;  %12174 = vrcp.f32 %v5772_v31  ;;  %v5769_v30 = vpop.xlane.xlu1 %5768 }
 0x8eb   : > { %12176 = vrcp.f32 %v5769_v30  ;;  %v16312_v13 = vpop.f32.mrf.mxu0 }
 0x8ec   : > { %18639 = vst [vmem:[#allocation120_spill] sm:$0xff] %v16312_v13 }
 0x8ed   : > { %v16314_v49 = vpop.xlane.xlu0 %7047  ;;  %v16316_v32 = vpop.f32.mrf.mxu0 }
 0x8ee   : > { %18640 = vst [vmem:[#allocation118_spill] sm:$0xff] %v16316_v32  ;;  %v16318_v44 = vpop.xlane.xlu1 %7044 }
 0x8ef   : > { %v16320_v63 = vpop.f32.mrf.mxu0 }
 0x8f0   : > { %18641 = vst [vmem:[#allocation116_spill] sm:$0xff] %v16320_v63  ;;  %7688 = vrot.lane.b32.xlu1 %v11546_v34, %s12809_s26 }
 0x8f1   : > { %v10729_v23 = vpop.f32.mrf.mxu0 }
 0x8f2   : > { %v7267_v45 = vpop.xlane.xlu0 %7266  ;;  %v7697_v0 = vpop.permute.xlu1 %7696 }
 0x8f3   : > { %10861 = vmatprep.subr.bf16.mxu0 %v7697_v0  ;;  %v10730_v40 = vpop.f32.mrf.mxu0  ;;  %12178 = vrcp.f32 %v7267_v45 }
 0x8f4   : > { %7686 = vrot.lane.b32.xlu1 %v11547_v41, %s12809_s26  ;;  %v16324_v37 = vadd.f32 %v10730_v40, %v10729_v23 }
 0x8f5   : > { %v16326_v31 = vpop.f32.mrf.mxu0 }
 0x8f6   : > { %18642 = vst [vmem:[#allocation66_spill] sm:$0xff] %v16324_v37  ;;  %18643 = vst [vmem:[#allocation121_spill] sm:$0xff] %v16326_v31  ;;  %v7270_v30 = vpop.xlane.xlu0 %7269  ;;  %v7695_v0 = vpop.permute.xlu1 %7694 }
 0x8f7   : > { %v12175_v53 = vpop.eup %12174  ;;  %12180 = vrcp.f32 %v7270_v30  ;;  %v16328_v34 = vpop.f32.mrf.mxu0 }
 0x8f8   : > { %18644 = vst [vmem:[#allocation68_spill] sm:$0xff] %v16328_v34  ;;  %v12177_v63 = vpop.eup %12176  ;;  %7670 = vrot.lane.b32.xlu1 %v11548_v60, %s12809_s26  ;;  %v5868_v23 = vmul.f32 %v12175_v53, %v16076_v22  ;;  %v5867_v41 = vmul.f32 %v12175_v53, %v16074_v51  ;;  %v11549_v34 = vld [vmem:[#allocation3 + $0x18] sm:$0xff]  }
 0x8f9   : > { %v10735_v40 = vpop.f32.mrf.mxu0  ;;  %v5866_v45 = vmul.f32 %v12177_v63, %v16078_v52  ;;  %v5865_v31 = vmul.f32 %v12177_v63, %v16070_v10  ;;  %v18646_v63 = vld [vmem:[#allocation62_spill] sm:$0xff] }
 0x8fa   : > { %v7681_v37 = vpop.permute.xlu0 %7680  ;;  %9647 = vst [vmem:[%s14153_s3 + $0x5f8] sm:$0xff] %v5868_v23  ;;  %9646 = vst [vmem:[%s14153_s3 + $0x5f0] sm:$0xff] %v5867_v41  ;;  %v7679_v10 = vpop.permute.xlu1 %7678 }
 0x8fb   : > { %10862 = vmatpush3.bf16.msra.mxu0 %v7681_v37  ;;  %v10736_v30 = vpop.f32.mrf.mxu0  ;;  %9645 = vst [vmem:[%s14153_s3 + $0x5e8] sm:$0xff] %v5866_v45  ;;  %v5965_v32 = vpack.c.bf16 %v5868_v23, %v5866_v45  ;;  %9644 = vst [vmem:[%s14153_s3 + $0x5e0] sm:$0xff] %v5865_v31  ;;  %v5964_v13 = vpack.c.bf16 %v5867_v41, %v5865_v31  ;;  %v7085_v37 = vsub.f32 %v18646_v63, %v16116_v36 }
 0x8fc   : > { %10863 = vmatprep.subr.bf16.mxu0 %v7695_v0  ;;  %v16339_v22 = vadd.f32 %v10736_v30, %v10735_v40 }
 0x8fd   : > { %7672 = vrot.lane.b32.xlu0 %v11549_v34, %s12809_s26  ;;  %6278 = vmatprep.mubr.bf16.mxu0 %v5965_v32  ;;  %v18647_v32 = vld [vmem:[#allocation114_spill] sm:$0xff] }
 0x8fe   : > { %18645 = vst [vmem:[#allocation91_spill] sm:$0xff] %v16339_v22  ;;  %6279 = vmatmul.mubr.bf16.gmra.mxu0 %v5964_v13  ;;  %v7086_v0 = vsub.f32 %v18647_v32, %v16116_v36  ;;  %v18648_v13 = vld [vmem:[#allocation61_spill] sm:$0xff]  ;;  %v16366_v36 = vpop.f32.mrf.mxu1 }
 0x8ff   : > { %10864 = vmatpush3.bf16.msra.mxu0 %v7679_v10  ;;  %v7087_v23 = vsub.f32 %v18648_v13, %v16119_v62 }
 0x900   : > { %v12179_v51 = vpop.eup %12178  ;;  %v7163_v40 = vmul.f32 1.442695, %v7086_v0  ;;  %v16368_v10 = vpop.f32.mrf.mxu1 }
 0x901   : > { %v16343_v53 = vmul.f32 %v12179_v51, %v16098_v28  ;;  %v7394_v60 = vmul.f32 %v12179_v51, %v16108_v21  ;;  %v7165_v45 = vmul.f32 1.442695, %v7087_v23 }
 0x902   : > { %v16370_v51 = vpop.f32.mrf.mxu1 }
 0x903   : > { %9728 = vst [vmem:[%s14153_s3 + $0x600] sm:$0xff] %v16343_v53  ;;  %9729 = vst [vmem:[%s14153_s3 + $0x608] sm:$0xff] %v7394_v60 }
 0x904   : > { %v12181_v52 = vpop.eup %12180 }
 0x905   : > { %v16349_v31 = vmul.f32 %v12181_v52, %v16104_v46  ;;  %v7396_v34 = vmul.f32 %v12181_v52, %v16106_v19  ;;  %v7161_v46 = vmul.f32 1.442695, %v7085_v37  ;;  %v18649_v19 = vld [vmem:[#allocation115_spill] sm:$0xff]  ;;  %v16372_v52 = vpop.f32.mrf.mxu1 }
 0x906   : > { %v7088_v41 = vsub.f32 %v18649_v19, %v16119_v62  ;;  %v7061_v62 = vmax.f32 %v16366_v36, %v16368_v10  ;;  %v7064_v63 = vmax.f32 %v16370_v51, %v16372_v52 }
 0x907   : > { %9730 = vst [vmem:[%s14153_s3 + $0x610] sm:$0xff] %v16349_v31  ;;  %9731 = vst [vmem:[%s14153_s3 + $0x618] sm:$0xff] %v7396_v34  ;;  %v7523_v28 = vpack.c.bf16 %v7396_v34, %v7394_v60  ;;  %12182 = vpow2.f32 %v7161_v46 }
 0x908   : > { %v7167_v30 = vmul.f32 1.442695, %v7088_v41  ;;  %12184 = vpow2.f32 %v7163_v40 }
 0x909   : > { %7746 = vmatprep.mubr.bf16.mxu0 %v7523_v28  ;;  %12186 = vpow2.f32 %v7165_v45  ;;  %v16388_v28 = vpop.f32.mrf.mxu0 }
 0x90a   : > { %12188 = vpow2.f32 %v7167_v30  ;;  %18651 = vst [vmem:[#allocation89_spill] sm:$0xff] %v16388_v28 }
 0x90b   : > { %v16392_v23 = vpop.f32.mrf.mxu0 }
 0x90c   : > { %18652 = vst [vmem:[#allocation93_spill] sm:$0xff] %v16392_v23  ;;  %v11551_v23 = vld [vmem:[#allocation3 + $0x40] sm:$0xff]  }
 0x914   : > { %v16374_v60 = vpop.eup %12182 }
 0x915   : > { %v16380_v37 = vpop.eup %12184 }
 0x916   : > { %v16382_v34 = vpop.eup %12186  ;;  %v7283_v32 = vadd.f32 %v16380_v37, %v16374_v60 }
 0x917   : > { %18650 = vst [vmem:[#allocation125_spill] sm:$0xff] %v16382_v34  ;;  %v16386_v0 = vpop.eup %12188 }
 0x918   : > { %v7286_v13 = vadd.f32 %v16386_v0, %v16382_v34 }
 0x91c   : > { %7062 = vmax.xlane.f32.xlu1 %v7061_v62  ;;  %7065 = vmax.xlane.f32.xlu0 %v7064_v63  ;;  %v11550_v62 = vld [vmem:[#allocation3 + $0x48] sm:$0xff]  }
 0x920   : > { %7284 = vadd.xlane.f32.xlu0 %v7283_v32 }
 0x924   : > { %7287 = vadd.xlane.f32.xlu0 %v7286_v13 }
 0x926   : > { %v10741_v46 = vpop.f32.mrf.mxu0 }
 0x928   : > { %v10742_v19 = vpop.f32.mrf.mxu0 }
 0x929   : > { %v16394_v41 = vadd.f32 %v10742_v19, %v10741_v46 }
 0x92a   : > { %v10744_v40 = vpop.f32.mrf.mxu0 }
 0x92b   : > { %18653 = vst [vmem:[#allocation99_spill] sm:$0xff] %v16394_v41  ;;  %v16396_v45 = vpop.xlane.xlu0 %7053  ;;  %v16398_v30 = vpop.xlane.xlu1 %7050  ;;  %v11552_v41 = vld [vmem:[#allocation3] sm:$0xff]  }
 0x92c   : > { %v10745_v63 = vpop.f32.mrf.mxu0 }
 0x92d   : > { %v16400_v21 = vadd.f32 %v10745_v63, %v10744_v40  ;;  %7684 = vrot.lane.b32.xlu1 %v11550_v62, %s12809_s26 }
 0x92e   : > { %v10747_v32 = vpop.f32.mrf.mxu0 }
 0x92f   : > { %18654 = vst [vmem:[#allocation100_spill] sm:$0xff] %v16400_v21  ;;  %v7273_v28 = vpop.xlane.xlu0 %7272  ;;  %v7693_v22 = vpop.permute.xlu1 %7692 }
 0x930   : > { %v10748_v13 = vpop.f32.mrf.mxu0  ;;  %10865 = vmatprep.subr.bf16.mxu0 %v7693_v22  ;;  %12190 = vrcp.f32 %v7273_v28  ;;  %v11553_v22 = vld [vmem:[#allocation3 + $0x8] sm:$0xff]  }
 0x931   : > { %v16403_v58 = vadd.f32 %v10748_v13, %v10747_v32  ;;  %7682 = vrot.lane.b32.xlu1 %v11551_v23, %s12809_s26 }
 0x932   : > { %v10750_v46 = vpop.f32.mrf.mxu0 }
 0x933   : > { %18655 = vst [vmem:[#allocation82_spill] sm:$0xff] %v16403_v58  ;;  %v7276_v19 = vpop.xlane.xlu0 %7275  ;;  %v7691_v40 = vpop.permute.xlu1 %7690 }
 0x934   : > { %v10751_v38 = vpop.f32.mrf.mxu0  ;;  %12192 = vrcp.f32 %v7276_v19  ;;  %v18659_v19 = vld [vmem:[#allocation52_spill] sm:$0xff] }
 0x935   : > { %v16406_v20 = vadd.f32 %v10751_v38, %v10750_v46  ;;  %7666 = vrot.lane.b32.xlu1 %v11552_v41, %s12809_s26  ;;  %v7091_v41 = vsub.f32 %v18659_v19, %v16133_v8 }
 0x936   : > { %v10753_v62 = vpop.f32.mrf.mxu0 }
 0x937   : > { %18656 = vst [vmem:[#allocation38_spill] sm:$0xff] %v16406_v20  ;;  %v7677_v63 = vpop.permute.xlu0 %7676  ;;  %v7675_v13 = vpop.permute.xlu1 %7674  ;;  %v18660_v20 = vld [vmem:[#allocation40_spill] sm:$0xff] }
 0x938   : > { %v10754_v21 = vpop.f32.mrf.mxu0  ;;  %10866 = vmatpush3.bf16.msra.mxu0 %v7677_v63  ;;  %v7089_v58 = vsub.f32 %v18660_v20, %v16130_v39  ;;  %v18664_v20 = vld [vmem:[#allocation117_spill] sm:$0xff] }
 0x939   : > { %v16409_v32 = vadd.f32 %v10754_v21, %v10753_v62  ;;  %10867 = vmatprep.subr.bf16.mxu0 %v7691_v40 }
 0x93a   : > { %v10756_v23 = vpop.f32.mrf.mxu0  ;;  %7668 = vrot.lane.b32.xlu0 %v11553_v22, %s12809_s26  ;;  %v18662_v22 = vld [vmem:[#allocation122_spill] sm:$0xff] }
 0x93b   : > { %18657 = vst [vmem:[#allocation103_spill] sm:$0xff] %v16409_v32 }
 0x93c   : > { %v10757_v28 = vpop.f32.mrf.mxu0  ;;  %10868 = vmatpush3.bf16.msra.mxu0 %v7675_v13  ;;  %v7092_v13 = vsub.f32 %v18662_v22, %v16133_v8  ;;  %v18665_v8 = vld [vmem:[#allocation124_spill] sm:$0xff] }
 0x93d   : > { %v16412_v38 = vadd.f32 %v10757_v28, %v10756_v23  ;;  %v12191_v21 = vpop.eup %12190  ;;  %v7093_v22 = vsub.f32 %v18665_v8, %v16143_v33  ;;  %v18669_v8 = vld [vmem:[#allocation36_spill] sm:$0xff] }
 0x93e   : > { %v10759_v46 = vpop.f32.mrf.mxu0  ;;  %v16423_v28 = vmul.f32 %v12191_v21, %v16222_v27  ;;  %v16426_v19 = vmul.f32 %v12191_v21, %v16214_v43  ;;  %v18666_v43 = vld [vmem:[#allocation57_spill] sm:$0xff] }
 0x93f   : > { %18658 = vst [vmem:[#allocation105_spill] sm:$0xff] %v16412_v38  ;;  %v7090_v38 = vsub.f32 %v18664_v20, %v16130_v39  ;;  %v7095_v27 = vsub.f32 %v18666_v43, %v16147_v1  ;;  %v7177_v43 = vmul.f32 1.442695, %v7093_v22  ;;  %v18674_v22 = vld [vmem:[#allocation71_spill] sm:$0xff] }
 0x940   : > { %v10760_v63 = vpop.f32.mrf.mxu0  ;;  %18663 = vst [vmem:[#allocation110_spill] sm:$0xff] %v16426_v19  ;;  %9733 = vst [vmem:[%s14153_s3 + $0x628] sm:$0xff] %v16423_v28 }
 0x941   : > { %v16418_v40 = vadd.f32 %v10760_v63, %v10759_v46  ;;  %v12193_v62 = vpop.eup %12192  ;;  %v7173_v63 = vmul.f32 1.442695, %v7091_v41  ;;  %9732 = vst [vmem:[%s14153_s3 + $0x620] sm:$0xff] %v16426_v19  ;;  %v18668_v41 = vld [vmem:[#allocation56_spill] sm:$0xff]  ;;  %v7171_v20 = vmul.f32 1.442695, %v7090_v38 }
 0x942   : > { %v10762_v23 = vpop.f32.mrf.mxu0  ;;  %v16431_v32 = vmul.f32 %v12193_v62, %v16234_v25  ;;  %v16434_v46 = vmul.f32 %v12193_v62, %v16230_v54  ;;  %v7096_v21 = vsub.f32 %v18668_v41, %v16147_v1  ;;  %v18670_v54 = vld [vmem:[#allocation127_spill] sm:$0xff]  ;;  %v7181_v34 = vmul.f32 1.442695, %v7095_v27  ;;  %v18673_v38 = vld [vmem:[#allocation45_spill] sm:$0xff] }
 0x943   : > { %18661 = vst [vmem:[#allocation108_spill] sm:$0xff] %v16418_v40  ;;  %v7169_v40 = vmul.f32 1.442695, %v7089_v58  ;;  %v7175_v58 = vmul.f32 1.442695, %v7092_v13  ;;  %v18671_v13 = vld [vmem:[#allocation72_spill] sm:$0xff] }
 0x944   : > { %v10763_v35 = vpop.f32.mrf.mxu0  ;;  %9735 = vst [vmem:[%s14153_s3 + $0x638] sm:$0xff] %v16431_v32  ;;  %9734 = vst [vmem:[%s14153_s3 + $0x630] sm:$0xff] %v16434_v46  ;;  %v7099_v25 = vsub.f32 %v18671_v13, %v16160_v11  ;;  %v7183_v1 = vmul.f32 1.442695, %v7096_v21  ;;  %v18675_v27 = vld [vmem:[#allocation73_spill] sm:$0xff]  ;;  %v18676_v21 = vld [vmem:[#allocation131_spill] sm:$0xff] }
 0x945   : > { %v16444_v39 = vadd.f32 %v10763_v35, %v10762_v23  ;;  %v7094_v35 = vsub.f32 %v18669_v8, %v16143_v33  ;;  %v16458_v23 = vpop.f32.mrf.mxu1  ;;  %12194 = vpow2.f32 %v7169_v40  ;;  %v7100_v33 = vsub.f32 %v18673_v38, %v16160_v11 }
 0x946   : > { %v10765_v62 = vpop.f32.mrf.mxu0  ;;  %12196 = vpow2.f32 %v7173_v63  ;;  %v7098_v8 = vsub.f32 %v18674_v22, %v16157_v3  ;;  %v7101_v13 = vsub.f32 %v18675_v27, %v16172_v50 }
 0x947   : > { %18667 = vst [vmem:[#allocation62_spill] sm:$0xff] %v16444_v39  ;;  %v7097_v39 = vsub.f32 %v18670_v54, %v16157_v3  ;;  %12198 = vpow2.f32 %v7175_v58  ;;  %v7179_v40 = vmul.f32 1.442695, %v7094_v35  ;;  %v16470_v54 = vpop.f32.mrf.mxu1  ;;  %v7189_v58 = vmul.f32 1.442695, %v7099_v25  ;;  %v18678_v35 = vld [vmem:[#allocation132_spill] sm:$0xff] }
 0x948   : > { %v10766_v6 = vpop.f32.mrf.mxu0  ;;  %12200 = vpow2.f32 %v7171_v20  ;;  %v7191_v20 = vmul.f32 1.442695, %v7100_v33  ;;  %v7104_v3 = vsub.f32 %v18678_v35, %v16175_v17  ;;  %v18680_v25 = vld [vmem:[#allocation133_spill] sm:$0xff]  ;;  %v18681_v33 = vld [vmem:[#allocation134_spill] sm:$0xff] }
 0x949   : > { %v16464_v19 = vadd.f32 %v10766_v6, %v10765_v62  ;;  %12202 = vpow2.f32 %v7177_v43  ;;  %v7185_v63 = vmul.f32 1.442695, %v7097_v39  ;;  %v7103_v62 = vsub.f32 %v18676_v21, %v16175_v17  ;;  %v18679_v39 = vld [vmem:[#allocation129_spill] sm:$0xff]  ;;  %v16482_v27 = vpop.f32.mrf.mxu1 }
 0x94a   : > { %v10768_v41 = vpop.f32.mrf.mxu0  ;;  %12204 = vpow2.f32 %v7181_v34  ;;  %v7187_v43 = vmul.f32 1.442695, %v7098_v8  ;;  %v7102_v22 = vsub.f32 %v18679_v39, %v16172_v50  ;;  %v7193_v34 = vmul.f32 1.442695, %v7101_v13  ;;  %v18683_v8 = vld [vmem:[#allocation135_spill] sm:$0xff]  ;;  %v18684_v13 = vld [vmem:[#allocation77_spill] sm:$0xff] }
 0x94b   : > { %18672 = vst [vmem:[#allocation114_spill] sm:$0xff] %v16464_v19  ;;  %12206 = vpow2.f32 %v7183_v1  ;;  %v7105_v21 = vsub.f32 %v18680_v25, %v16196_v2  ;;  %v7197_v1 = vmul.f32 1.442695, %v7103_v62  ;;  %v7108_v50 = vsub.f32 %v18683_v8, %v16193_v16  ;;  %v16494_v25 = vpop.f32.mrf.mxu1  ;;  %v18685_v62 = vld [vmem:[#allocation136_spill] sm:$0xff] }
 0x94c   : > { %v10769_v6 = vpop.f32.mrf.mxu0  ;;  %12208 = vpow2.f32 %v7179_v40  ;;  %v7199_v40 = vmul.f32 1.442695, %v7104_v3  ;;  %v7106_v39 = vsub.f32 %v18684_v13, %v16196_v2  ;;  %v7067_v2 = vmax.f32 %v16458_v23, %v16470_v54 }
 0x94d   : > { %v16476_v11 = vadd.f32 %v10769_v6, %v10768_v41  ;;  %12210 = vpow2.f32 %v7185_v63  ;;  %v7107_v6 = vsub.f32 %v18681_v33, %v16193_v16  ;;  %v7195_v63 = vmul.f32 1.442695, %v7102_v22  ;;  %v18686_v16 = vld [vmem:[#allocation138_spill] sm:$0xff] }
 0x94e   : > { %v10771_v38 = vpop.f32.mrf.mxu0  ;;  %12212 = vpow2.f32 %v7189_v58  ;;  %v7201_v58 = vmul.f32 1.442695, %v7105_v21  ;;  %v7109_v33 = vsub.f32 %v18685_v62, %v16242_v7  ;;  %v7111_v3 = vsub.f32 %v18686_v16, %v16236_v59  ;;  %v18688_v21 = vld [vmem:[#allocation139_spill] sm:$0xff] }
 0x94f   : > { %18677 = vst [vmem:[#allocation61_spill] sm:$0xff] %v16476_v11  ;;  %12214 = vpow2.f32 %v7191_v20  ;;  %v7205_v20 = vmul.f32 1.442695, %v7107_v6  ;;  %v7112_v8 = vsub.f32 %v18688_v21, %v16236_v59  ;;  %v7203_v6 = vmul.f32 1.442695, %v7106_v39 }
 0x950   : > { %v10772_v41 = vpop.f32.mrf.mxu0  ;;  %12216 = vpow2.f32 %v7187_v43  ;;  %v7213_v21 = vmul.f32 1.442695, %v7111_v3 }
 0x951   : > { %v16488_v17 = vadd.f32 %v10772_v41, %v10771_v38  ;;  %12218 = vpow2.f32 %v7193_v34  ;;  %v7207_v34 = vmul.f32 1.442695, %v7108_v50  ;;  %v7215_v39 = vmul.f32 1.442695, %v7112_v8 }
 0x952   : > { %v10774_v35 = vpop.f32.mrf.mxu0  ;;  %v16498_v41 = vpop.eup %12194  ;;  %12220 = vpow2.f32 %v7197_v1  ;;  %v7070_v1 = vmax.f32 %v16482_v27, %v16494_v25 }
 0x953   : > { %18682 = vst [vmem:[#allocation115_spill] sm:$0xff] %v16488_v17  ;;  %v16504_v22 = vpop.eup %12196  ;;  %12222 = vpow2.f32 %v7199_v40  ;;  %v7115_v40 = vsub.f32 %v16007_v55, %v16300_v47  ;;  %v7116_v17 = vsub.f32 %v16022_v48, %v16300_v47  ;;  %v18691_v48 = vld [vmem:[#allocation95_spill] sm:$0xff] }
 0x954   : > { %v10775_v38 = vpop.f32.mrf.mxu0  ;;  %v16510_v62 = vpop.eup %12198  ;;  %12224 = vpow2.f32 %v7195_v63  ;;  %v7114_v47 = vsub.f32 %v18691_v48, %v16306_v26 }
 0x955   : > { %v16502_v43 = vadd.f32 %v10775_v38, %v10774_v35  ;;  %v18689_v35 = vld [vmem:[#allocation137_spill] sm:$0xff]  ;;  %v16516_v16 = vpop.eup %12200  ;;  %12226 = vpow2.f32 %v7201_v58  ;;  %v7113_v58 = vsub.f32 %v16001_v5, %v16306_v26  ;;  %v18692_v5 = vld [vmem:[#allocation86_spill] sm:$0xff] }
 0x956   : > { %v10777_v13 = vpop.f32.mrf.mxu0  ;;  %v7110_v38 = vsub.f32 %v18689_v35, %v16242_v7  ;;  %v16520_v59 = vpop.eup %12202  ;;  %12228 = vpow2.f32 %v7205_v20  ;;  %v7119_v8 = vsub.f32 %v18692_v5, %v16314_v49 }
 0x957   : > { %18687 = vst [vmem:[#allocation52_spill] sm:$0xff] %v16502_v43  ;;  %v7209_v43 = vmul.f32 1.442695, %v7109_v33  ;;  %v16526_v7 = vpop.eup %12204  ;;  %12230 = vpow2.f32 %v7207_v34  ;;  %v7292_v33 = vadd.f32 %v16510_v62, %v16504_v22  ;;  %v7221_v34 = vmul.f32 1.442695, %v7115_v40  ;;  %v18695_v40 = vld [vmem:[#allocation58_spill] sm:$0xff] }
 0x958   : > { %v10778_v50 = vpop.f32.mrf.mxu0  ;;  %v16532_v20 = vpop.eup %12206  ;;  %12232 = vpow2.f32 %v7203_v6  ;;  %v7211_v3 = vmul.f32 1.442695, %v7110_v38  ;;  %v18693_v6 = vld [vmem:[#allocation47_spill] sm:$0xff]  ;;  %v7117_v48 = vsub.f32 %v18695_v40, %v16318_v44 }
 0x959   : > { %v16524_v63 = vadd.f32 %v10778_v50, %v10777_v13  ;;  %7068 = vmax.xlane.f32.xlu1 %v7067_v2  ;;  %7071 = vmax.xlane.f32.xlu0 %v7070_v1  ;;  %v7289_v2 = vadd.f32 %v16516_v16, %v16498_v41  ;;  %v16538_v13 = vpop.eup %12208  ;;  %12234 = vpow2.f32 %v7209_v43  ;;  %v7223_v50 = vmul.f32 1.442695, %v7116_v17 }
 0x95a   : > { %v10780_v55 = vpop.f32.mrf.mxu0  ;;  %v16542_v35 = vpop.eup %12210  ;;  %12236 = vpow2.f32 %v7213_v21  ;;  %v7120_v38 = vsub.f32 %v18693_v6, %v16314_v49  ;;  %v7217_v43 = vmul.f32 1.442695, %v7113_v58  ;;  %v7298_v11 = vadd.f32 %v16532_v20, %v16526_v7  ;;  %v18696_v49 = vld [vmem:[#allocation87_spill] sm:$0xff] }
 0x95b   : > { %18690 = vst [vmem:[#allocation40_spill] sm:$0xff] %v16524_v63  ;;  %v16548_v26 = vpop.eup %12212  ;;  %12238 = vpow2.f32 %v7215_v39  ;;  %v7219_v17 = vmul.f32 1.442695, %v7114_v47  ;;  %v7229_v39 = vmul.f32 1.442695, %v7119_v8  ;;  %v7123_v58 = vsub.f32 %v16204_v4, %v16396_v45 }
 0x95c   : > { %v10781_v1 = vpop.f32.mrf.mxu0  ;;  %v16554_v21 = vpop.eup %12214  ;;  %12240 = vpow2.f32 %v7211_v3  ;;  %v7231_v40 = vmul.f32 1.442695, %v7120_v38  ;;  %v7124_v3 = vsub.f32 %v16212_v61, %v16396_v45  ;;  %v7121_v8 = vsub.f32 %v16188_v12, %v16398_v30 }
 0x95d   : > { %v16546_v63 = vadd.f32 %v10781_v1, %v10780_v55  ;;  %7293 = vadd.xlane.f32.xlu0 %v7292_v33  ;;  %7290 = vadd.xlane.f32.xlu1 %v7289_v2  ;;  %v7118_v55 = vsub.f32 %v18696_v49, %v16318_v44  ;;  %v7295_v33 = vadd.f32 %v16538_v13, %v16520_v59  ;;  %v16560_v2 = vpop.eup %12216  ;;  %12242 = vpow2.f32 %v7221_v34 }
 0x95e   : > { %v10783_v5 = vpop.f32.mrf.mxu0  ;;  %v16564_v6 = vpop.eup %12218  ;;  %12244 = vpow2.f32 %v7223_v50  ;;  %v7225_v34 = vmul.f32 1.442695, %v7117_v48  ;;  %v7304_v49 = vadd.f32 %v16554_v21, %v16548_v26  ;;  %v7122_v61 = vsub.f32 %v16200_v42, %v16398_v30 }
 0x95f   : > { %18694 = vst [vmem:[#allocation122_spill] sm:$0xff] %v16546_v63  ;;  %v16570_v44 = vpop.eup %12220  ;;  %12246 = vpow2.f32 %v7217_v43  ;;  %v7227_v38 = vmul.f32 1.442695, %v7118_v55  ;;  %v7301_v45 = vadd.f32 %v16560_v2, %v16542_v35  ;;  %v7237_v43 = vmul.f32 1.442695, %v7123_v58 }
 0x960   : > { %v10784_v1 = vpop.f32.mrf.mxu0  ;;  %v16576_v50 = vpop.eup %12222  ;;  %12248 = vpow2.f32 %v7219_v17  ;;  %v7233_v42 = vmul.f32 1.442695, %v7121_v8 }
 0x961   : > { %v16568_v47 = vadd.f32 %v10784_v1, %v10783_v5  ;;  %7299 = vadd.xlane.f32.xlu0 %v7298_v11  ;;  %7296 = vadd.xlane.f32.xlu1 %v7295_v33  ;;  %v16582_v11 = vpop.eup %12224  ;;  %12250 = vpow2.f32 %v7229_v39  ;;  %v7239_v5 = vmul.f32 1.442695, %v7124_v3  ;;  %v7235_v1 = vmul.f32 1.442695, %v7122_v61 }
 0x962   : > { %v10786_v4 = vpop.f32.mrf.mxu0  ;;  %v16584_v12 = vpop.eup %12226  ;;  %12252 = vpow2.f32 %v7231_v40  ;;  %v7310_v39 = vadd.f32 %v16576_v50, %v16570_v44  ;;  %v7307_v58 = vadd.f32 %v16582_v11, %v16564_v6 }
 0x963   : > { %18697 = vst [vmem:[#allocation117_spill] sm:$0xff] %v16568_v47  ;;  %v16588_v17 = vpop.eup %12228  ;;  %12254 = vpow2.f32 %v7225_v34 }
 0x964   : > { %v10787_v48 = vpop.f32.mrf.mxu0  ;;  %v16590_v55 = vpop.eup %12230  ;;  %12256 = vpow2.f32 %v7227_v38 }
 0x965   : > { %v16586_v33 = vadd.f32 %v10787_v48, %v10786_v4  ;;  %7305 = vadd.xlane.f32.xlu0 %v7304_v49  ;;  %7302 = vadd.xlane.f32.xlu1 %v7301_v45  ;;  %v16596_v40 = vpop.eup %12232  ;;  %12258 = vpow2.f32 %v7237_v43 }
 0x966   : > { %v10789_v30 = vpop.f32.mrf.mxu0  ;;  %v16598_v49 = vpop.eup %12234  ;;  %12260 = vpow2.f32 %v7239_v5  ;;  %v7316_v5 = vadd.f32 %v16590_v55, %v16588_v17 }
 0x967   : > { %18698 = vst [vmem:[#allocation124_spill] sm:$0xff] %v16586_v33  ;;  %v16604_v45 = vpop.eup %12236  ;;  %12262 = vpow2.f32 %v7233_v42 }
 0x968   : > { %v10790_v3 = vpop.f32.mrf.mxu0  ;;  %v7060_v4 = vpop.xlane.xlu0 %7059  ;;  %12264 = vpow2.f32 %v7235_v1 }
 0x969   : > { %v16600_v34 = vadd.f32 %v10790_v3, %v10789_v30  ;;  %v7127_v8 = vsub.f32 %v16274_v15, %v7060_v4  ;;  %v7128_v38 = vsub.f32 %v16276_v57, %v7060_v4  ;;  %v7057_v61 = vpop.xlane.xlu1 %7056  ;;  %7311 = vadd.xlane.f32.xlu0 %v7310_v39  ;;  %7308 = vadd.xlane.f32.xlu1 %v7307_v58  ;;  %v16610_v30 = vpop.eup %12238 }
 0x96a   : > { %v10792_v48 = vpop.f32.mrf.mxu0  ;;  %v7125_v43 = vsub.f32 %v16270_v14, %v7057_v61  ;;  %v7126_v33 = vsub.f32 %v16272_v9, %v7057_v61  ;;  %v7313_v57 = vadd.f32 %v16596_v40, %v16584_v12  ;;  %v16614_v39 = vpop.eup %12240 }
 0x96b   : > { %18699 = vst [vmem:[#allocation57_spill] sm:$0xff] %v16600_v34  ;;  %v7245_v15 = vmul.f32 1.442695, %v7127_v8  ;;  %v7247_v3 = vmul.f32 1.442695, %v7128_v38  ;;  %v16616_v14 = vpop.eup %12242 }
 0x96c   : > { %v7241_v58 = vmul.f32 1.442695, %v7125_v43  ;;  %v7243_v42 = vmul.f32 1.442695, %v7126_v33  ;;  %v10793_v4 = vpop.f32.mrf.mxu0  ;;  %v7279_v34 = vpop.xlane.xlu0 %7278  ;;  %v7322_v33 = vadd.f32 %v16610_v30, %v16604_v45  ;;  %v7319_v43 = vadd.f32 %v16614_v39, %v16598_v49 }
 0x96d   : > { %12266 = vpow2.f32 %v7245_v15  ;;  %v16618_v9 = vadd.f32 %v10793_v4, %v10792_v48  ;;  %v7689_v61 = vpop.permute.xlu1 %7688  ;;  %7317 = vadd.xlane.f32.xlu0 %v7316_v5  ;;  %7314 = vadd.xlane.f32.xlu1 %v7313_v57  ;;  %v16620_v1 = vpop.eup %12244 }
 0x96e   : > { %12268 = vpow2.f32 %v7247_v3  ;;  %v10795_v8 = vpop.f32.mrf.mxu0  ;;  %10869 = vmatprep.subr.bf16.mxu0 %v7689_v61  ;;  %v16622_v38 = vpop.eup %12246  ;;  %v7328_v47 = vadd.f32 %v16620_v1, %v16616_v14 }
 0x96f   : > { %18700 = vst [vmem:[#allocation56_spill] sm:$0xff] %v16618_v9  ;;  %18701 = vst [vmem:[#allocation36_spill] sm:$0xff] %v16622_v38  ;;  %12270 = vpow2.f32 %v7241_v58  ;;  %v16628_v15 = vpop.eup %12248 }
 0x970   : > { %18702 = vst [vmem:[#allocation127_spill] sm:$0xff] %v16628_v15  ;;  %12272 = vpow2.f32 %v7243_v42  ;;  %v10796_v48 = vpop.f32.mrf.mxu0  ;;  %v7282_v5 = vpop.xlane.xlu0 %7281  ;;  %v7325_v42 = vadd.f32 %v16628_v15, %v16622_v38 }
 0x971   : > { %v16630_v57 = vpop.eup %12250  ;;  %12274 = vrcp.f32 %v7279_v34  ;;  %v16632_v3 = vadd.f32 %v10796_v48, %v10795_v8  ;;  %7323 = vadd.xlane.f32.xlu0 %v7322_v33  ;;  %7320 = vadd.xlane.f32.xlu1 %v7319_v43  ;;  %v7687_v9 = vpop.permute.xlu1 %7686 }
 0x972   : > { %v16634_v4 = vpop.eup %12252  ;;  %12276 = vrcp.f32 %v7282_v5  ;;  %v10798_v58 = vpop.f32.mrf.mxu0 }
 0x973   : > { %18703 = vst [vmem:[#allocation72_spill] sm:$0xff] %v16632_v3  ;;  %v16636_v61 = vpop.eup %12254  ;;  %v7334_v3 = vadd.f32 %v16634_v4, %v16630_v57 }
 0x974   : > { %18704 = vst [vmem:[#allocation45_spill] sm:$0xff] %v16636_v61  ;;  %v16642_v63 = vpop.eup %12256  ;;  %v10799_v34 = vpop.f32.mrf.mxu0 }
 0x975   : > { %v7673_v8 = vpop.permute.xlu0 %7672  ;;  %v16644_v48 = vpop.eup %12258  ;;  %v16646_v33 = vadd.f32 %v10799_v34, %v10798_v58  ;;  %7329 = vadd.xlane.f32.xlu0 %v7328_v47  ;;  %7326 = vadd.xlane.f32.xlu1 %v7325_v42  ;;  %v7331_v19 = vadd.f32 %v16642_v63, %v16636_v61 }
 0x976   : > { %18705 = vst [vmem:[#allocation71_spill] sm:$0xff] %v16644_v48  ;;  %v16648_v43 = vpop.eup %12260  ;;  %10870 = vmatpush3.bf16.msra.mxu0 %v7673_v8  ;;  %v7671_v15 = vpop.permute.xlu1 %7670 }
 0x977   : > { %18706 = vst [vmem:[#allocation73_spill] sm:$0xff] %v16646_v33  ;;  %18707 = vst [vmem:[#allocation131_spill] sm:$0xff] %v16648_v43  ;;  %v16650_v5 = vpop.eup %12262  ;;  %10871 = vmatprep.subr.bf16.mxu0 %v7687_v9  ;;  %v7340_v42 = vadd.f32 %v16648_v43, %v16644_v48 }
 0x978   : > { %18708 = vst [vmem:[#allocation132_spill] sm:$0xff] %v16650_v5  ;;  %v16656_v38 = vpop.eup %12264 }
 0x979   : > { %18709 = vst [vmem:[#allocation129_spill] sm:$0xff] %v16656_v38  ;;  %7335 = vadd.xlane.f32.xlu0 %v7334_v3  ;;  %7332 = vadd.xlane.f32.xlu1 %v7331_v19  ;;  %v7337_v9 = vadd.f32 %v16656_v38, %v16650_v5 }
 0x97a   : > { %v16658_v58 = vpop.eup %12266  ;;  %10872 = vmatpush3.bf16.msra.mxu0 %v7671_v15 }
 0x97b   : > { %18710 = vst [vmem:[#allocation133_spill] sm:$0xff] %v16658_v58  ;;  %v16660_v47 = vpop.eup %12268 }
 0x97c   : > { %18711 = vst [vmem:[#allocation134_spill] sm:$0xff] %v16660_v47  ;;  %v16666_v34 = vpop.eup %12270  ;;  %v7346_v3 = vadd.f32 %v16660_v47, %v16658_v58 }
 0x97d   : > { %18712 = vst [vmem:[#allocation135_spill] sm:$0xff] %v16666_v34  ;;  %v16668_v8 = vpop.eup %12272  ;;  %7341 = vadd.xlane.f32.xlu0 %v7340_v42  ;;  %7338 = vadd.xlane.f32.xlu1 %v7337_v9 }
 0x97e   : > { %18713 = vst [vmem:[#allocation77_spill] sm:$0xff] %v16668_v8  ;;  %v12275_v19 = vpop.eup %12274  ;;  %v7343_v33 = vadd.f32 %v16668_v8, %v16666_v34 }
 0x97f   : > { %v12277_v15 = vpop.eup %12276  ;;  %v16675_v5 = vmul.f32 %v12275_v19, %v16286_v18  ;;  %v16678_v38 = vmul.f32 %v12275_v19, %v16280_v29 }
 0x980   : > { %v16681_v48 = vmul.f32 %v12277_v15, %v16296_v24  ;;  %v16684_v42 = vmul.f32 %v12277_v15, %v16290_v56 }
 0x981   : > { %7347 = vadd.xlane.f32.xlu0 %v7346_v3  ;;  %v10801_v9 = vpop.f32.mrf.mxu0  ;;  %7344 = vadd.xlane.f32.xlu1 %v7343_v33  ;;  %9737 = vst [vmem:[%s14153_s3 + $0x648] sm:$0xff] %v16675_v5  ;;  %9736 = vst [vmem:[%s14153_s3 + $0x640] sm:$0xff] %v16678_v38 }
 0x982   : > { %9739 = vst [vmem:[%s14153_s3 + $0x658] sm:$0xff] %v16681_v48  ;;  %9738 = vst [vmem:[%s14153_s3 + $0x650] sm:$0xff] %v16684_v42  ;;  %v7526_v29 = vpack.c.bf16 %v16684_v42, %v16678_v38 }
 0x983   : > { %v10802_v18 = vpop.f32.mrf.mxu0 }
 0x984   : > { %v16696_v24 = vadd.f32 %v10802_v18, %v10801_v9 }
 0x985   : > { %v10804_v19 = vpop.f32.mrf.mxu0 }
 0x987   : > { %v10805_v56 = vpop.f32.mrf.mxu0 }
 0x988   : > { %v16698_v15 = vadd.f32 %v10805_v56, %v10804_v19 }
 0x9a5   : > { %v7066_v3 = vpop.xlane.xlu0 %7065  ;;  %v7063_v33 = vpop.xlane.xlu1 %7062 }
 0x9a6   : > { %v7131_v34 = vsub.f32 %v16370_v51, %v7066_v3  ;;  %v7132_v8 = vsub.f32 %v16372_v52, %v7066_v3  ;;  %v7129_v58 = vsub.f32 %v16366_v36, %v7063_v33  ;;  %v7130_v47 = vsub.f32 %v16368_v10, %v7063_v33 }
 0x9a8   : > { %v7253_v43 = vmul.f32 1.442695, %v7131_v34  ;;  %v7255_v61 = vmul.f32 1.442695, %v7132_v8  ;;  %v7249_v38 = vmul.f32 1.442695, %v7129_v58  ;;  %v18715_v8 = vpack.c.bf16 %v16431_v32, %v16423_v28 }
 0x9a9   : > { %v7251_v42 = vmul.f32 1.442695, %v7130_v47  ;;  %v7285_v9 = vpop.xlane.xlu0 %7284  ;;  %v7685_v18 = vpop.permute.xlu1 %7684  ;;  %v7527_v28 = vpack.c.bf16 %v16681_v48, %v16675_v5 }
 0x9aa   : > { %12278 = vpow2.f32 %v7253_v43  ;;  %10873 = vmatprep.subr.bf16.mxu0 %v7685_v18 }
 0x9ab   : > { %12280 = vpow2.f32 %v7255_v61  ;;  %v18714_v61 = vpack.c.bf16 %v16349_v31, %v16343_v53 }
 0x9ac   : > { %12282 = vpow2.f32 %v7249_v38 }
 0x9ad   : > { %12284 = vpow2.f32 %v7251_v42  ;;  %v7288_v19 = vpop.xlane.xlu0 %7287  ;;  %v7683_v51 = vpop.permute.xlu1 %7682  ;;  %v18716_v42 = vld [vmem:[#allocation125_spill] sm:$0xff] }
 0x9ae   : > { %12286 = vrcp.f32 %v7285_v9 }
 0x9af   : > { %12288 = vrcp.f32 %v7288_v19 }
 0x9b1   : > { %v7669_v52 = vpop.permute.xlu0 %7668  ;;  %v7667_v36 = vpop.permute.xlu1 %7666 }
 0x9b2   : > { %10874 = vmatpush3.bf16.msra.mxu0 %v7669_v52 }
 0x9b3   : > { %10875 = vmatprep.subr.bf16.mxu0 %v7683_v51 }
 0x9b6   : > { %10876 = vmatpush3.bf16.msra.mxu0 %v7667_v36 }
 0x9b7   : > { %v16704_v10 = vpop.eup %12278 }
 0x9b8   : > { %v16706_v58 = vpop.eup %12280 }
 0x9b9   : > { %v16708_v47 = vpop.eup %12282  ;;  %7747 = vmatmul.mubr.bf16.vlgmr.msra.gmra.mxu0 %v18714_v61  ;;  %v7352_v43 = vadd.f32 %v16706_v58, %v16704_v10 }
 0x9ba   : > { %v16715_v34 = vpop.eup %12284  ;;  %7754 = vmatprep.mubr.bf16.mxu0 %v18715_v8 }
 0x9bb   : > { %v12287_v56 = vpop.eup %12286  ;;  %7353 = vadd.xlane.f32.xlu0 %v7352_v43  ;;  %v7349_v3 = vadd.f32 %v16715_v34, %v16708_v47 }
 0x9bc   : > { %v12289_v33 = vpop.eup %12288  ;;  %v7406_v53 = vmul.f32 %v12287_v56, %v16380_v37  ;;  %v7405_v31 = vmul.f32 %v12287_v56, %v16374_v60  ;;  %v18717_v37 = vld [vmem:[#allocation110_spill] sm:$0xff] }
 0x9bd   : > { %7350 = vadd.xlane.f32.xlu1 %v7349_v3  ;;  %v7408_v38 = vmul.f32 %v12289_v33, %v16386_v0  ;;  %v7407_v9 = vmul.f32 %v12289_v33, %v18716_v42  ;;  %v18718_v51 = vpack.c.bf16 %v16434_v46, %v18717_v37 }
 0x9be   : > { %v10807_v18 = vpop.f32.mrf.mxu0  ;;  %9741 = vst [vmem:[%s14153_s3 + $0x668] sm:$0xff] %v7406_v53  ;;  %9740 = vst [vmem:[%s14153_s3 + $0x660] sm:$0xff] %v7405_v31 }
 0x9bf   : > { %9743 = vst [vmem:[%s14153_s3 + $0x678] sm:$0xff] %v7408_v38  ;;  %9742 = vst [vmem:[%s14153_s3 + $0x670] sm:$0xff] %v7407_v9  ;;  %v7529_v60 = vpack.c.bf16 %v7408_v38, %v7406_v53  ;;  %v7528_v0 = vpack.c.bf16 %v7407_v9, %v7405_v31 }
 0x9c0   : > { %v10808_v32 = vpop.f32.mrf.mxu0 }
 0x9c1   : > { %v16732_v19 = vadd.f32 %v10808_v32, %v10807_v18  ;;  %7755 = vmatmul.mubr.bf16.gmra.mxu0 %v18718_v51 }
 0x9c2   : > { %7762 = vmatprep.mubr.bf16.mxu0 %v7527_v28 }
 0x9c9   : > { %7763 = vmatmul.mubr.bf16.gmra.mxu0 %v7526_v29 }
 0x9ca   : > { %7770 = vmatprep.mubr.bf16.mxu0 %v7529_v60 }
 0x9d1   : > { %7771 = vmatmul.mubr.bf16.gmra.mxu0 %v7528_v0 }
 0x9e2   : > { %v7072_v52 = vpop.xlane.xlu0 %7071  ;;  %v7069_v36 = vpop.xlane.xlu1 %7068 }
 0x9e3   : > { %v7135_v61 = vsub.f32 %v16482_v27, %v7072_v52  ;;  %v7136_v43 = vsub.f32 %v16494_v25, %v7072_v52  ;;  %v7133_v48 = vsub.f32 %v16458_v23, %v7069_v36  ;;  %v7134_v5 = vsub.f32 %v16470_v54, %v7069_v36 }
 0x9e5   : > { %v7261_v8 = vmul.f32 1.442695, %v7135_v61  ;;  %v7263_v56 = vmul.f32 1.442695, %v7136_v43  ;;  %v7257_v46 = vmul.f32 1.442695, %v7133_v48 }
 0x9e6   : > { %v7259_v3 = vmul.f32 1.442695, %v7134_v5  ;;  %v7294_v33 = vpop.xlane.xlu0 %7293  ;;  %v7291_v53 = vpop.xlane.xlu1 %7290 }
 0x9e7   : > { %12290 = vpow2.f32 %v7261_v8 }
 0x9e8   : > { %12292 = vpow2.f32 %v7263_v56 }
 0x9e9   : > { %12294 = vpow2.f32 %v7257_v46 }
 0x9ea   : > { %12296 = vpow2.f32 %v7259_v3  ;;  %v7300_v29 = vpop.xlane.xlu0 %7299  ;;  %v7297_v31 = vpop.xlane.xlu1 %7296 }
 0x9eb   : > { %12298 = vrcp.f32 %v7294_v33 }
 0x9ec   : > { %12300 = vrcp.f32 %v7291_v53 }
 0x9ed   : > { %12302 = vrcp.f32 %v7300_v29 }
 0x9ee   : > { %12304 = vrcp.f32 %v7297_v31  ;;  %v7306_v27 = vpop.xlane.xlu0 %7305  ;;  %v7303_v23 = vpop.xlane.xlu1 %7302 }
 0x9ef   : > { %12306 = vrcp.f32 %v7306_v27 }
 0x9f0   : > { %12308 = vrcp.f32 %v7303_v23 }
 0x9f2   : > { %v7312_v54 = vpop.xlane.xlu0 %7311  ;;  %v7309_v25 = vpop.xlane.xlu1 %7308 }
 0x9f3   : > { %12310 = vrcp.f32 %v7312_v54 }
 0x9f4   : > { %v16741_v38 = vpop.eup %12290  ;;  %12312 = vrcp.f32 %v7309_v25 }
 0x9f5   : > { %v16743_v42 = vpop.eup %12292 }
 0x9f6   : > { %v16745_v9 = vpop.eup %12294  ;;  %v7318_v18 = vpop.xlane.xlu0 %7317  ;;  %v7358_v28 = vadd.f32 %v16743_v42, %v16741_v38 }
 0x9f7   : > { %v7315_v32 = vpop.xlane.xlu1 %7314  ;;  %v16749_v37 = vpop.eup %12296  ;;  %12314 = vrcp.f32 %v7318_v18 }
 0x9f8   : > { %v12299_v51 = vpop.eup %12298  ;;  %12316 = vrcp.f32 %v7315_v32  ;;  %7359 = vadd.xlane.f32.xlu0 %v7358_v28  ;;  %v7355_v60 = vadd.f32 %v16749_v37, %v16745_v9 }
 0x9f9   : > { %v12301_v0 = vpop.eup %12300  ;;  %v7412_v52 = vmul.f32 %v12299_v51, %v16510_v62  ;;  %v7411_v36 = vmul.f32 %v12299_v51, %v16504_v22 }
 0x9fa   : > { %v12303_v61 = vpop.eup %12302  ;;  %7356 = vadd.xlane.f32.xlu1 %v7355_v60  ;;  %v7410_v43 = vmul.f32 %v12301_v0, %v16516_v16  ;;  %v7324_v48 = vpop.xlane.xlu0 %7323  ;;  %v7409_v5 = vmul.f32 %v12301_v0, %v16498_v41 }
 0x9fb   : > { %v7321_v8 = vpop.xlane.xlu1 %7320  ;;  %v12305_v56 = vpop.eup %12304  ;;  %9747 = vst [vmem:[%s14153_s3 + $0x698] sm:$0xff] %v7412_v52  ;;  %12318 = vrcp.f32 %v7324_v48  ;;  %9746 = vst [vmem:[%s14153_s3 + $0x690] sm:$0xff] %v7411_v36  ;;  %v7416_v46 = vmul.f32 %v12303_v61, %v16532_v20  ;;  %v7415_v22 = vmul.f32 %v12303_v61, %v16526_v7  ;;  %v18720_v61 = vld [vmem:[#allocation83_spill] sm:$0xff] }
 0x9fc   : > { %v12307_v62 = vpop.eup %12306  ;;  %9745 = vst [vmem:[%s14153_s3 + $0x688] sm:$0xff] %v7410_v43  ;;  %v7531_v3 = vpack.c.bf16 %v7412_v52, %v7410_v43  ;;  %9744 = vst [vmem:[%s14153_s3 + $0x680] sm:$0xff] %v7409_v5  ;;  %v7530_v16 = vpack.c.bf16 %v7411_v36, %v7409_v5  ;;  %12320 = vrcp.f32 %v7321_v8  ;;  %v7414_v41 = vmul.f32 %v12305_v56, %v16538_v13  ;;  %v18719_v36 = vld [vmem:[#allocation81_spill] sm:$0xff] }
 0x9fd   : > { %v12309_v33 = vpop.eup %12308  ;;  %9751 = vst [vmem:[%s14153_s3 + $0x6b8] sm:$0xff] %v7416_v46  ;;  %v7413_v53 = vmul.f32 %v12305_v56, %v16520_v59  ;;  %9750 = vst [vmem:[%s14153_s3 + $0x6b0] sm:$0xff] %v7415_v22  ;;  %v7420_v20 = vmul.f32 %v12307_v62, %v16554_v21  ;;  %v16769_v7 = vmul.f32 %v12307_v62, %v16548_v26 }
 0x9fe   : > { %7778 = vmatprep.mubr.bf16.mxu0 %v7531_v3  ;;  %9749 = vst [vmem:[%s14153_s3 + $0x6a8] sm:$0xff] %v7414_v41  ;;  %v7533_v29 = vpack.c.bf16 %v7416_v46, %v7414_v41  ;;  %v7330_v31 = vpop.xlane.xlu0 %7329  ;;  %v7418_v27 = vmul.f32 %v12309_v33, %v16560_v2  ;;  %v16774_v23 = vmul.f32 %v12309_v33, %v16542_v35  ;;  %v18722_v3 = vld [vmem:[#allocation51_spill] sm:$0xff]  ;;  %v18724_v41 = vld [vmem:[#allocation48_spill] sm:$0xff]  ;;  %v18725_v33 = vld [vmem:[#allocation50_spill] sm:$0xff] }
 0x9ff   : > { %v7327_v13 = vpop.xlane.xlu1 %7326  ;;  %7779 = vmatmul.mubr.bf16.gmra.mxu0 %v7530_v16  ;;  %12322 = vrcp.f32 %v7330_v31  ;;  %9748 = vst [vmem:[%s14153_s3 + $0x6a0] sm:$0xff] %v7413_v53  ;;  %9755 = vst [vmem:[%s14153_s3 + $0x6d8] sm:$0xff] %v7420_v20  ;;  %v18723_v16 = vld [vmem:[#allocation59_spill] sm:$0xff] }
 0xa00   : > { %9754 = vst [vmem:[%s14153_s3 + $0x6d0] sm:$0xff] %v16769_v7  ;;  %v12311_v59 = vpop.eup %12310  ;;  %7786 = vmatprep.mubr.bf16.mxu0 %v7533_v29  ;;  %12324 = vrcp.f32 %v7327_v13  ;;  %9753 = vst [vmem:[%s14153_s3 + $0x6c8] sm:$0xff] %v7418_v27  ;;  %v7535_v28 = vpack.c.bf16 %v7420_v20, %v7418_v27  ;;  %v7534_v29 = vpack.c.bf16 %v16769_v7, %v16774_v23  ;;  %v18729_v7 = vld [vmem:[#allocation85_spill] sm:$0xff] }
 0xa01   : > { %9752 = vst [vmem:[%s14153_s3 + $0x6c0] sm:$0xff] %v16774_v23  ;;  %v12313_v26 = vpop.eup %12312  ;;  %v16784_v35 = vmul.f32 %v12311_v59, %v16576_v50  ;;  %v16787_v21 = vmul.f32 %v12311_v59, %v16570_v44  ;;  %v7532_v50 = vpack.c.bf16 %v7415_v22, %v7413_v53  ;;  %v18726_v53 = vld [vmem:[#allocation44_spill] sm:$0xff]  ;;  %v18727_v59 = vld [vmem:[#allocation127_spill] sm:$0xff]  ;;  %v18730_v23 = vld [vmem:[#allocation69_spill] sm:$0xff] }
 0xa02   : > { %v7336_v2 = vpop.xlane.xlu0 %7335  ;;  %v16790_v25 = vmul.f32 %v12313_v26, %v16582_v11  ;;  %v16793_v18 = vmul.f32 %v12313_v26, %v16564_v6  ;;  %v10568_v20 = vadd.f32 %v18726_v53, %v18725_v33  ;;  %v18741_v53 = vld [vmem:[#allocation133_spill] sm:$0xff] }
 0xa03   : > { %v7333_v54 = vpop.xlane.xlu1 %7332  ;;  %12326 = vrcp.f32 %v7336_v2  ;;  %9759 = vst [vmem:[%s14153_s3 + $0x6f8] sm:$0xff] %v16784_v35  ;;  %9758 = vst [vmem:[%s14153_s3 + $0x6f0] sm:$0xff] %v16787_v21  ;;  %v18728_v2 = vld [vmem:[#allocation36_spill] sm:$0xff] }
 0xa04   : > { %v12315_v32 = vpop.eup %12314  ;;  %12328 = vrcp.f32 %v7333_v54  ;;  %9757 = vst [vmem:[%s14153_s3 + $0x6e8] sm:$0xff] %v16790_v25  ;;  %9756 = vst [vmem:[%s14153_s3 + $0x6e0] sm:$0xff] %v16793_v18  ;;  %v7537_v27 = vpack.c.bf16 %v16784_v35, %v16790_v25  ;;  %v10722_v35 = vadd.f32 %v18730_v23, %v18729_v7  ;;  %v18731_v25 = vld [vmem:[#allocation46_spill] sm:$0xff] }
 0xa05   : > { %v12317_v44 = vpop.eup %12316  ;;  %v16804_v11 = vmul.f32 %v12315_v32, %v16590_v55  ;;  %v16807_v6 = vmul.f32 %v12315_v32, %v16588_v17  ;;  %v10562_v17 = vadd.f32 %v18720_v61, %v18719_v36  ;;  %v18732_v32 = vld [vmem:[#allocation120_spill] sm:$0xff]  ;;  %v18733_v36 = vld [vmem:[#allocation45_spill] sm:$0xff] }
 0xa06   : > { %v7342_v51 = vpop.xlane.xlu0 %7341  ;;  %v16810_v0 = vmul.f32 %v12317_v44, %v16596_v40  ;;  %v16813_v52 = vmul.f32 %v12317_v44, %v16584_v12  ;;  %v18721_v40 = vld [vmem:[#allocation80_spill] sm:$0xff]  ;;  %v10725_v44 = vadd.f32 %v18732_v32, %v18731_v25 }
 0xa07   : > { %v7339_v60 = vpop.xlane.xlu1 %7338  ;;  %7787 = vmatmul.mubr.bf16.gmra.mxu0 %v7532_v50  ;;  %12330 = vrcp.f32 %v7342_v51  ;;  %9763 = vst [vmem:[%s14153_s3 + $0x718] sm:$0xff] %v16804_v11  ;;  %9762 = vst [vmem:[%s14153_s3 + $0x710] sm:$0xff] %v16807_v6  ;;  %v9973_v43 = vpack.c.bf16 %v18721_v40, %v18721_v40  ;;  %v9974_v62 = vpack.c.bf16 %v10562_v17, %v10562_v17 }
 0xa08   : > { %v12319_v55 = vpop.eup %12318  ;;  %7794 = vmatprep.mubr.bf16.mxu0 %v7535_v28  ;;  %12332 = vrcp.f32 %v7339_v60  ;;  %9761 = vst [vmem:[%s14153_s3 + $0x708] sm:$0xff] %v16810_v0  ;;  %9760 = vst [vmem:[%s14153_s3 + $0x700] sm:$0xff] %v16813_v52  ;;  %v9976_v28 = vpack.c.bf16 %v10568_v20, %v10568_v20  ;;  %v10007_v40 = vpack.c.bf16 %v10725_v44, %v10725_v44 }
 0xa09   : > { %v12321_v12 = vpop.eup %12320  ;;  %v16828_v48 = vmul.f32 %v12319_v55, %v16610_v30  ;;  %v16831_v5 = vmul.f32 %v12319_v55, %v16604_v45  ;;  %v9975_v45 = vpack.c.bf16 %v18722_v3, %v18722_v3 }
 0xa0a   : > { %v7348_v8 = vpop.xlane.xlu0 %7347  ;;  %v16834_v46 = vmul.f32 %v12321_v12, %v16614_v39  ;;  %v16837_v22 = vmul.f32 %v12321_v12, %v16598_v49  ;;  %v10719_v39 = vadd.f32 %v18724_v41, %v18723_v16  ;;  %v10006_v12 = vpack.c.bf16 %v10722_v35, %v10722_v35  ;;  %v18738_v16 = vld [vmem:[#allocation129_spill] sm:$0xff] }
 0xa0b   : > { %v7345_v56 = vpop.xlane.xlu1 %7344  ;;  %4795 = vrot.lane.b32.xlu1 %v9973_v43, %s12809_s26  ;;  %12334 = vrcp.f32 %v7348_v8  ;;  %9767 = vst [vmem:[%s14153_s3 + $0x738] sm:$0xff] %v16828_v48  ;;  %9766 = vst [vmem:[%s14153_s3 + $0x730] sm:$0xff] %v16831_v5  ;;  %v18735_v43 = vld [vmem:[#allocation116_spill] sm:$0xff] }
 0xa0c   : > { %v12323_v30 = vpop.eup %12322  ;;  %12336 = vrcp.f32 %v7345_v56  ;;  %9765 = vst [vmem:[%s14153_s3 + $0x728] sm:$0xff] %v16834_v46  ;;  %9764 = vst [vmem:[%s14153_s3 + $0x720] sm:$0xff] %v16837_v22  ;;  %v18736_v56 = vld [vmem:[#allocation131_spill] sm:$0xff]  ;;  %v7540_v7 = vpack.c.bf16 %v16831_v5, %v16837_v22 }
 0xa0d   : > { %v12325_v49 = vpop.eup %12324  ;;  %v16857_v31 = vmul.f32 %v12323_v30, %v16620_v1  ;;  %v16860_v13 = vmul.f32 %v12323_v30, %v16616_v14  ;;  %v10005_v1 = vpack.c.bf16 %v10719_v39, %v10719_v39  ;;  %v18739_v39 = vld [vmem:[#allocation132_spill] sm:$0xff] }
 0xa0e   : > { %4797 = vrot.lane.b32.xlu0 %v9974_v62, %s12809_s26  ;;  %v16866_v26 = vmul.f32 %v12325_v49, %v18727_v59  ;;  %v16869_v54 = vmul.f32 %v12325_v49, %v18728_v2  ;;  %v18737_v62 = vld [vmem:[#allocation71_spill] sm:$0xff] }
 0xa0f   : > { %7795 = vmatmul.mubr.bf16.gmra.mxu0 %v7534_v29  ;;  %4799 = vrot.lane.b32.xlu1 %v9975_v45, %s12809_s26  ;;  %9771 = vst [vmem:[%s14153_s3 + $0x758] sm:$0xff] %v16857_v31  ;;  %9770 = vst [vmem:[%s14153_s3 + $0x750] sm:$0xff] %v16860_v13  ;;  %v7539_v45 = vpack.c.bf16 %v16804_v11, %v16810_v0  ;;  %v18740_v0 = vld [vmem:[#allocation134_spill] sm:$0xff]  ;;  %v18742_v29 = vld [vmem:[#allocation77_spill] sm:$0xff] }
 0xa10   : > { %v12327_v14 = vpop.eup %12326  ;;  %7802 = vmatprep.mubr.bf16.mxu0 %v7537_v27  ;;  %9769 = vst [vmem:[%s14153_s3 + $0x748] sm:$0xff] %v16866_v26  ;;  %9768 = vst [vmem:[%s14153_s3 + $0x740] sm:$0xff] %v16869_v54  ;;  %v18743_v59 = vld [vmem:[#allocation135_spill] sm:$0xff]  ;;  %v7543_v23 = vpack.c.bf16 %v16857_v31, %v16866_v26  ;;  %v7542_v35 = vpack.c.bf16 %v16860_v13, %v16869_v54 }
 0xa11   : > { %v12329_v50 = vpop.eup %12328  ;;  %v7440_v51 = vmul.f32 %v12327_v14, %v16634_v4  ;;  %v7439_v60 = vmul.f32 %v12327_v14, %v16630_v57  ;;  %v18734_v57 = vld [vmem:[#allocation118_spill] sm:$0xff]  ;;  %v7538_v14 = vpack.c.bf16 %v16807_v6, %v16813_v52 }
 0xa12   : > { %6383 = vrot.lane.b32.xlu0 %v10005_v1, %s12807_s19  ;;  %v7438_v55 = vmul.f32 %v12329_v50, %v16642_v63  ;;  %v7437_v61 = vmul.f32 %v12329_v50, %v18733_v36  ;;  %v10728_v8 = vadd.f32 %v18735_v43, %v18734_v57  ;;  %v7536_v63 = vpack.c.bf16 %v16787_v21, %v16793_v18  ;;  %v11559_v43 = vld [vmem:[#allocation16 + $0x10] sm:$0xff]  }
 0xa13   : > { %4801 = vrot.lane.b32.xlu1 %v9976_v28, %s12809_s26  ;;  %9775 = vst [vmem:[%s14153_s3 + $0x778] sm:$0xff] %v7440_v51  ;;  %9774 = vst [vmem:[%s14153_s3 + $0x770] sm:$0xff] %v7439_v60  ;;  %v7541_v1 = vpack.c.bf16 %v16828_v48, %v16834_v46 }
 0xa14   : > { %v12331_v17 = vpop.eup %12330  ;;  %9773 = vst [vmem:[%s14153_s3 + $0x768] sm:$0xff] %v7438_v55  ;;  %9772 = vst [vmem:[%s14153_s3 + $0x760] sm:$0xff] %v7437_v61  ;;  %v10008_v11 = vpack.c.bf16 %v10728_v8, %v10728_v8  ;;  %v7545_v25 = vpack.c.bf16 %v7440_v51, %v7438_v55  ;;  %v7544_v6 = vpack.c.bf16 %v7439_v60, %v7437_v61  ;;  %v11554_v60 = vld [vmem:[#allocation16 + $0x38] sm:$0xff]   ;;  %v11555_v55 = vld [vmem:[#allocation16 + $0x30] sm:$0xff]  }
 0xa15   : > { %v12333_v4 = vpop.eup %12332  ;;  %v7444_v30 = vmul.f32 %v12331_v17, %v18736_v56  ;;  %v7443_v3 = vmul.f32 %v12331_v17, %v18737_v62  ;;  %11141 = vmatprep.subr.bf16.mxu1 %v11554_v60  ;;  %v11558_v17 = vld [vmem:[#allocation16 + $0x18] sm:$0xff]  }
 0xa16   : > { %6387 = vrot.lane.b32.xlu0 %v10007_v40, %s12807_s19  ;;  %v7442_v41 = vmul.f32 %v12333_v4, %v18738_v16  ;;  %v7441_v49 = vmul.f32 %v12333_v4, %v18739_v39  ;;  %11142 = vmatpush3.bf16.msra.mxu1 %v11554_v60  ;;  %v18751_v60 = vld [vmem:[#allocation121_spill] sm:$0xff] }
 0xa17   : > { %7803 = vmatmul.mubr.bf16.gmra.mxu0 %v7536_v63  ;;  %6385 = vrot.lane.b32.xlu1 %v10006_v12, %s12807_s19  ;;  %9779 = vst [vmem:[%s14153_s3 + $0x798] sm:$0xff] %v7444_v30  ;;  %9778 = vst [vmem:[%s14153_s3 + $0x790] sm:$0xff] %v7443_v3 }
 0xa18   : > { %v12335_v21 = vpop.eup %12334  ;;  %7810 = vmatprep.mubr.bf16.mxu0 %v7539_v45  ;;  %9777 = vst [vmem:[%s14153_s3 + $0x788] sm:$0xff] %v7442_v41  ;;  %9776 = vst [vmem:[%s14153_s3 + $0x780] sm:$0xff] %v7441_v49  ;;  %v7547_v52 = vpack.c.bf16 %v7444_v30, %v7442_v41  ;;  %v7546_v48 = vpack.c.bf16 %v7443_v3, %v7441_v49  ;;  %11143 = vmatprep.subr.bf16.mxu1 %v11555_v55  ;;  %v11560_v45 = vld [vmem:[#allocation16 + $0x8] sm:$0xff]  }
 0xa19   : > { %v12337_v18 = vpop.eup %12336  ;;  %v7448_v33 = vmul.f32 %v12335_v21, %v18740_v0  ;;  %v7447_v20 = vmul.f32 %v12335_v21, %v18741_v53 }
 0xa1a   : > { %v7446_v27 = vmul.f32 %v12337_v18, %v18742_v29  ;;  %v7445_v2 = vmul.f32 %v12337_v18, %v18743_v59  ;;  %11144 = vmatpush3.bf16.msra.mxu1 %v11555_v55  ;;  %v18746_v59 = vld [vmem:[#allocation92_spill] sm:$0xff] }
 0xa1b   : > { %6389 = vrot.lane.b32.xlu1 %v10008_v11, %s12807_s19  ;;  %9783 = vst [vmem:[%s14153_s3 + $0x7b8] sm:$0xff] %v7448_v33  ;;  %9782 = vst [vmem:[%s14153_s3 + $0x7b0] sm:$0xff] %v7447_v20  ;;  %v11562_v11 = vld [vmem:[#allocation16] sm:$0xff]  }
 0xa1c   : > { %9781 = vst [vmem:[%s14153_s3 + $0x7a8] sm:$0xff] %v7446_v27  ;;  %9780 = vst [vmem:[%s14153_s3 + $0x7a0] sm:$0xff] %v7445_v2  ;;  %v7549_v46 = vpack.c.bf16 %v7448_v33, %v7446_v27  ;;  %v7548_v22 = vpack.c.bf16 %v7447_v20, %v7445_v2  ;;  %v18744_v20 = vld [vmem:[#allocation78_spill] sm:$0xff]  ;;  %v18745_v27 = vld [vmem:[#allocation79_spill] sm:$0xff] }
 0xa1d   : > { %v9977_v29 = vpack.c.bf16 %v18744_v20, %v18744_v20  ;;  %v10574_v2 = vadd.f32 %v18746_v59, %v18745_v27  ;;  %v18752_v55 = vld [vmem:[#allocation68_spill] sm:$0xff]  ;;  %v18759_v20 = vld [vmem:[#allocation101_spill] sm:$0xff]  ;;  %v18760_v27 = vld [vmem:[#allocation102_spill] sm:$0xff] }
 0xa1e   : > { %v18761_v59 = vld [vmem:[#allocation104_spill] sm:$0xff] }
 0xa1f   : > { %7811 = vmatmul.mubr.bf16.gmra.mxu0 %v7538_v14 }
 0xa20   : > { %7818 = vmatprep.mubr.bf16.mxu0 %v7541_v1 }
 0xa27   : > { %7819 = vmatmul.mubr.bf16.gmra.mxu0 %v7540_v7 }
 0xa28   : > { %7826 = vmatprep.mubr.bf16.mxu0 %v7543_v23  ;;  %v18747_v23 = vld [vmem:[#allocation39_spill] sm:$0xff] }
 0xa2f   : > { %7827 = vmatmul.mubr.bf16.gmra.mxu0 %v7542_v35  ;;  %v18748_v35 = vld [vmem:[#allocation75_spill] sm:$0xff] }
 0xa30   : > { %7834 = vmatprep.mubr.bf16.mxu0 %v7545_v25  ;;  %v10580_v25 = vadd.f32 %v18748_v35, %v18747_v23  ;;  %v18763_v23 = vld [vmem:[#allocation100_spill] sm:$0xff] }
 0xa31   : > { %v10014_v35 = vpack.c.bf16 %v18763_v23, %v18763_v23 }
 0xa37   : > { %7835 = vmatmul.mubr.bf16.gmra.mxu0 %v7544_v6 }
 0xa38   : > { %7842 = vmatprep.mubr.bf16.mxu0 %v7547_v52 }
 0xa3f   : > { %7843 = vmatmul.mubr.bf16.gmra.mxu0 %v7546_v48  ;;  %v9978_v48 = vpack.c.bf16 %v10574_v2, %v10574_v2  ;;  %v10592_v2 = vadd.f32 %v18761_v59, %v18760_v27 }
 0xa40   : > { %7850 = vmatprep.mubr.bf16.mxu0 %v7549_v46  ;;  %v18749_v46 = vld [vmem:[#allocation41_spill] sm:$0xff] }
 0xa44   : > { %v7354_v5 = vpop.xlane.xlu0 %7353 }
 0xa45   : > { %12338 = vrcp.f32 %v7354_v5  ;;  %v9979_v5 = vpack.c.bf16 %v18749_v46, %v18749_v46 }
 0xa46   : > { %v7351_v31 = vpop.xlane.xlu1 %7350 }
 0xa47   : > { %7851 = vmatmul.mubr.bf16.gmra.mxu0 %v7548_v22  ;;  %12340 = vrcp.f32 %v7351_v31 }
 0xa52   : > { %v12339_v13 = vpop.eup %12338 }
 0xa53   : > { %v7452_v26 = vmul.f32 %v12339_v13, %v16706_v58  ;;  %v7451_v54 = vmul.f32 %v12339_v13, %v16704_v10  ;;  %v16937_v10 = vpop.f32.mrf.mxu0  ;;  %v11556_v58 = vld [vmem:[#allocation16 + $0x28] sm:$0xff]  }
 0xa54   : > { %v12341_v32 = vpop.eup %12340  ;;  %11145 = vmatprep.subr.bf16.mxu1 %v11556_v58 }
 0xa55   : > { %v7450_v44 = vmul.f32 %v12341_v32, %v16715_v34  ;;  %9787 = vst [vmem:[%s14153_s3 + $0x7d8] sm:$0xff] %v7452_v26  ;;  %v7449_v50 = vmul.f32 %v12341_v32, %v16708_v47  ;;  %9786 = vst [vmem:[%s14153_s3 + $0x7d0] sm:$0xff] %v7451_v54  ;;  %11146 = vmatpush3.bf16.msra.mxu1 %v11556_v58  ;;  %v16939_v34 = vpop.f32.mrf.mxu0  ;;  %v11557_v47 = vld [vmem:[#allocation16 + $0x20] sm:$0xff]   ;;  %v10734_v58 = vadd.f32 %v18752_v55, %v18751_v60 }
 0xa56   : > { %11147 = vmatprep.subr.bf16.mxu1 %v11557_v47 }
 0xa57   : > { %9785 = vst [vmem:[%s14153_s3 + $0x7c8] sm:$0xff] %v7450_v44  ;;  %v7551_v28 = vpack.c.bf16 %v7452_v26, %v7450_v44  ;;  %9784 = vst [vmem:[%s14153_s3 + $0x7c0] sm:$0xff] %v7449_v50  ;;  %v7550_v51 = vpack.c.bf16 %v7451_v54, %v7449_v50  ;;  %v9980_v44 = vpack.c.bf16 %v10580_v25, %v10580_v25  ;;  %v18764_v25 = vld [vmem:[#allocation82_spill] sm:$0xff] }
 0xa59   : > { %7858 = vmatprep.mubr.bf16.mxu0 %v7551_v28  ;;  %11148 = vmatpush3.bf16.msra.mxu1 %v11557_v47  ;;  %v18750_v28 = vld [vmem:[#allocation66_spill] sm:$0xff] }
 0xa5a   : > { %7859 = vmatmul.mubr.bf16.gmra.mxu0 %v7550_v51  ;;  %11149 = vmatprep.subr.bf16.mxu1 %v11558_v17  ;;  %v10009_v51 = vpack.c.bf16 %v18750_v28, %v18750_v28 }
 0xa5d   : > { %11150 = vmatpush3.bf16.msra.mxu1 %v11558_v17 }
 0xa5e   : > { %11151 = vmatprep.subr.bf16.mxu1 %v11559_v43 }
 0xa61   : > { %11152 = vmatpush3.bf16.msra.mxu1 %v11559_v43 }
 0xa62   : > { %11153 = vmatprep.subr.bf16.mxu1 %v11560_v45 }
 0xa65   : > { %11154 = vmatpush3.bf16.msra.mxu1 %v11560_v45 }
 0xa66   : > { %11155 = vmatprep.subr.bf16.mxu1 %v11562_v11 }
 0xa69   : > { %11156 = vmatpush3.bf16.msra.mxu1 %v11562_v11  ;;  %v18758_v11 = vld [vmem:[#allocation98_spill] sm:$0xff] }
 0xa79   : > { %v10877_v36 = vpop.f32.mrf.mxu0 }
 0xa7b   : > { %v10878_v61 = vpop.f32.mrf.mxu0 }
 0xa7c   : > { %v10879_v12 = vadd.f32 %v10878_v61, %v10877_v36 }
 0xa7d   : > { %v10880_v40 = vpop.f32.mrf.mxu0 }
 0xa7e   : > { %v10037_v4 = vpack.c.bf16 %v10879_v12, %v10879_v12  ;;  %v10010_v12 = vpack.c.bf16 %v10734_v58, %v10734_v58 }
 0xa7f   : > { %v10881_v57 = vpop.f32.mrf.mxu0 }
 0xa80   : > { %v10882_v8 = vadd.f32 %v10881_v57, %v10880_v40  ;;  %7971 = vrot.lane.b32.xlu0 %v10037_v4, %s12808_s22  ;;  %v18753_v40 = vld [vmem:[#allocation91_spill] sm:$0xff]  ;;  %v18754_v4 = vld [vmem:[#allocation89_spill] sm:$0xff] }
 0xa81   : > { %v7360_v63 = vpop.xlane.xlu0 %7359  ;;  %v10883_v56 = vpop.f32.mrf.mxu0  ;;  %v18755_v57 = vld [vmem:[#allocation93_spill] sm:$0xff] }
 0xa82   : > { %v10038_v30 = vpack.c.bf16 %v10882_v8, %v10882_v8  ;;  %12342 = vrcp.f32 %v7360_v63 }
 0xa83   : > { %v7357_v62 = vpop.xlane.xlu1 %7356  ;;  %v10884_v3 = vpop.f32.mrf.mxu0 }
 0xa84   : > { %12344 = vrcp.f32 %v7357_v62  ;;  %v10885_v16 = vadd.f32 %v10884_v3, %v10883_v56  ;;  %7973 = vrot.lane.b32.xlu1 %v10038_v30, %s12808_s22 }
 0xa85   : > { %v4798_v41 = vpop.permute.xlu0 %4797  ;;  %v10886_v39 = vpop.f32.mrf.mxu0 }
 0xa86   : > { %v10039_v49 = vpack.c.bf16 %v10885_v16, %v10885_v16  ;;  %4893 = vst.msk [vmem:[#allocation4 + $0x4] sm:$0xf] %vm4891_vm2, %v4798_v41 }
 0xa87   : > { %v4796_v21 = vpop.permute.xlu1 %4795  ;;  %v10887_v18 = vpop.f32.mrf.mxu0 }
 0xa88   : > { %4892 = vst.msk [vmem:[#allocation4] sm:$0xf] %vm4891_vm2, %v4796_v21  ;;  %v10888_v0 = vadd.f32 %v10887_v18, %v10886_v39  ;;  %7975 = vrot.lane.b32.xlu0 %v10039_v49, %s12808_s22  ;;  %v18756_v49 = vld [vmem:[#allocation90_spill] sm:$0xff] }
 0xa89   : > { %v6384_v33 = vpop.permute.xlu0 %6383  ;;  %v10889_v53 = vpop.f32.mrf.mxu0  ;;  %v9981_v21 = vpack.c.bf16 %v18756_v49, %v18756_v49  ;;  %v18757_v18 = vld [vmem:[#allocation94_spill] sm:$0xff] }
 0xa8a   : > { %v10040_v14 = vpack.c.bf16 %v10888_v0, %v10888_v0  ;;  %6480 = vst.msk [vmem:[#allocation4] sm:$0xf] %vm6479_vm3, %v6384_v33  ;;  %v10586_v0 = vadd.f32 %v18758_v11, %v18757_v18 }
 0xa8b   : > { %v4800_v1 = vpop.permute.xlu1 %4799  ;;  %v10890_v7 = vpop.f32.mrf.mxu0 }
 0xa8c   : > { %4894 = vst.msk [vmem:[#allocation4 + $0x8] sm:$0xf] %vm4891_vm2, %v4800_v1  ;;  %4803 = vrot.lane.b32.xlu0 %v9977_v29, %s12809_s26  ;;  %7977 = vrot.lane.b32.xlu1 %v10040_v14, %s12808_s22  ;;  %v10891_v43 = vadd.f32 %v10890_v7, %v10889_v53  ;;  %v9982_v53 = vpack.c.bf16 %v10586_v0, %v10586_v0  ;;  %v18762_v1 = vld [vmem:[#allocation99_spill] sm:$0xff] }
 0xa8d   : > { %v6388_v6 = vpop.permute.xlu0 %6387  ;;  %v10892_v52 = vpop.f32.mrf.mxu0  ;;  %v9983_v29 = vpack.c.bf16 %v18759_v20, %v18759_v20  ;;  %v9984_v14 = vpack.c.bf16 %v10592_v2, %v10592_v2  ;;  %v10013_v7 = vpack.c.bf16 %v18762_v1, %v18762_v1 }
 0xa8e   : > { %6482 = vst.msk [vmem:[#allocation4 + $0x8] sm:$0xf] %vm6479_vm3, %v6388_v6  ;;  %v10041_v30 = vpack.c.bf16 %v10891_v43, %v10891_v43  ;;  %v10015_v6 = vpack.c.bf16 %v18764_v25, %v18764_v25  ;;  %v18770_v43 = vld [vmem:[#allocation112_spill] sm:$0xff] }
 0xa8f   : > { %v12343_v22 = vpop.eup %12342  ;;  %v4802_v31 = vpop.permute.xlu1 %4801 }
 0xa90   : > { %v10893_v13 = vpop.f32.mrf.mxu0  ;;  %4895 = vst.msk [vmem:[#allocation4 + $0xc] sm:$0xf] %vm4891_vm2, %v4802_v31  ;;  %4807 = vrot.lane.b32.xlu0 %v9979_v5, %s12809_s26  ;;  %4805 = vrot.lane.b32.xlu1 %v9978_v48, %s12809_s26  ;;  %v7456_v26 = vmul.f32 %v12343_v22, %v16743_v42  ;;  %v7455_v54 = vmul.f32 %v12343_v22, %v16741_v38 }
 0xa91   : > { %v12345_v32 = vpop.eup %12344  ;;  %v10894_v62 = vadd.f32 %v10893_v13, %v10892_v52  ;;  %v18765_v52 = vld [vmem:[#allocation38_spill] sm:$0xff] }
 0xa92   : > { %v10895_v50 = vpop.f32.mrf.mxu0  ;;  %v7454_v47 = vmul.f32 %v12345_v32, %v16749_v37  ;;  %9791 = vst [vmem:[%s14153_s3 + $0x7f8] sm:$0xff] %v7456_v26  ;;  %v7453_v36 = vmul.f32 %v12345_v32, %v16745_v9  ;;  %9790 = vst [vmem:[%s14153_s3 + $0x7f0] sm:$0xff] %v7455_v54  ;;  %v10011_v37 = vpack.c.bf16 %v18753_v40, %v18753_v40 }
 0xa93   : > { %v6386_v61 = vpop.permute.xlu1 %6385  ;;  %v10740_v9 = vadd.f32 %v18755_v57, %v18754_v4  ;;  %v10042_v16 = vpack.c.bf16 %v10894_v62, %v10894_v62  ;;  %v10016_v48 = vpack.c.bf16 %v18765_v52, %v18765_v52  ;;  %v18769_v57 = vld [vmem:[#allocation111_spill] sm:$0xff] }
 0xa94   : > { %v10896_v42 = vpop.f32.mrf.mxu0  ;;  %6481 = vst.msk [vmem:[#allocation4 + $0x4] sm:$0xf] %vm6479_vm3, %v6386_v61  ;;  %9789 = vst [vmem:[%s14153_s3 + $0x7e8] sm:$0xff] %v7454_v47  ;;  %v7553_v38 = vpack.c.bf16 %v7456_v26, %v7454_v47  ;;  %6391 = vrot.lane.b32.xlu0 %v10009_v51, %s12807_s19  ;;  %4809 = vrot.lane.b32.xlu1 %v9980_v44, %s12809_s26  ;;  %v7552_v17 = vpack.c.bf16 %v7455_v54, %v7453_v36 }
 0xa95   : > { %9788 = vst [vmem:[%s14153_s3 + $0x7e0] sm:$0xff] %v7453_v36  ;;  %v10012_v56 = vpack.c.bf16 %v10740_v9, %v10740_v9  ;;  %v10897_v3 = vadd.f32 %v10896_v42, %v10895_v50  ;;  %v18766_v36 = vld [vmem:[#allocation106_spill] sm:$0xff]  ;;  %v18767_v42 = vld [vmem:[#allocation107_spill] sm:$0xff]  ;;  %v9987_v9 = vpack.c.bf16 %v18769_v57, %v18769_v57  ;;  %v18785_v57 = vld [vmem:[#allocation52_spill] sm:$0xff] }
 0xa96   : > { %7866 = vmatprep.mubr.bf16.mxu0 %v7553_v38  ;;  %v10898_v63 = vpop.f32.mrf.mxu0  ;;  %v9985_v61 = vpack.c.bf16 %v18766_v36, %v18766_v36  ;;  %v18768_v38 = vld [vmem:[#allocation109_spill] sm:$0xff] }
 0xa97   : > { %7867 = vmatmul.mubr.bf16.gmra.mxu0 %v7552_v17  ;;  %v6390_v8 = vpop.permute.xlu1 %6389  ;;  %v10043_v41 = vpack.c.bf16 %v10897_v3, %v10897_v3  ;;  %v10598_v17 = vadd.f32 %v18768_v38, %v18767_v42  ;;  %v18772_v3 = vld [vmem:[#allocation103_spill] sm:$0xff]  ;;  %v18783_v42 = vld [vmem:[#allocation61_spill] sm:$0xff] }
 0xa98   : > { %6483 = vst.msk [vmem:[#allocation4 + $0xc] sm:$0xf] %vm6479_vm3, %v6390_v8  ;;  %6395 = vrot.lane.b32.xlu0 %v10011_v37, %s12807_s19  ;;  %6393 = vrot.lane.b32.xlu1 %v10010_v12, %s12807_s19  ;;  %v10899_v45 = vpop.f32.mrf.mxu0  ;;  %v18771_v8 = vld [vmem:[#allocation113_spill] sm:$0xff]  ;;  %v10022_v38 = vpack.c.bf16 %v18783_v42, %v18783_v42 }
 0xa99   : > { %v10900_v39 = vadd.f32 %v10899_v45, %v10898_v63  ;;  %v9986_v4 = vpack.c.bf16 %v10598_v17, %v10598_v17  ;;  %v10604_v63 = vadd.f32 %v18771_v8, %v18770_v43  ;;  %v10017_v45 = vpack.c.bf16 %v18772_v3, %v18772_v3  ;;  %v18784_v17 = vld [vmem:[#allocation115_spill] sm:$0xff] }
 0xa9b   : > { %v10044_v33 = vpack.c.bf16 %v10900_v39, %v10900_v39  ;;  %v9988_v62 = vpack.c.bf16 %v10604_v63, %v10604_v63  ;;  %v18773_v39 = vld [vmem:[#allocation105_spill] sm:$0xff] }
 0xa9c   : > { %7979 = vrot.lane.b32.xlu0 %v10041_v30, %s12808_s22  ;;  %6397 = vrot.lane.b32.xlu1 %v10012_v56, %s12807_s19  ;;  %v10018_v49 = vpack.c.bf16 %v18773_v39, %v18773_v39 }
 0xaa0   : > { %7983 = vrot.lane.b32.xlu0 %v10043_v41, %s12808_s22  ;;  %7981 = vrot.lane.b32.xlu1 %v10042_v16, %s12808_s22 }
 0xaa4   : > { %4811 = vrot.lane.b32.xlu0 %v9981_v21, %s12809_s26  ;;  %7985 = vrot.lane.b32.xlu1 %v10044_v33, %s12808_s22  ;;  %v18774_v21 = vld [vmem:[#allocation108_spill] sm:$0xff] }
 0xaa5   : > { %v10019_v18 = vpack.c.bf16 %v18774_v21, %v18774_v21  ;;  %v18786_v21 = vld [vmem:[#allocation53_spill] sm:$0xff] }
 0xaa8   : > { %4815 = vrot.lane.b32.xlu0 %v9983_v29, %s12809_s26  ;;  %4813 = vrot.lane.b32.xlu1 %v9982_v53, %s12809_s26  ;;  %v18775_v53 = vld [vmem:[#allocation62_spill] sm:$0xff] }
 0xaa9   : > { %v10020_v20 = vpack.c.bf16 %v18775_v53, %v18775_v53 }
 0xaac   : > { %6399 = vrot.lane.b32.xlu0 %v10013_v7, %s12807_s19  ;;  %4817 = vrot.lane.b32.xlu1 %v9984_v14, %s12809_s26 }
 0xab0   : > { %6403 = vrot.lane.b32.xlu0 %v10015_v6, %s12807_s19  ;;  %6401 = vrot.lane.b32.xlu1 %v10014_v35, %s12807_s19  ;;  %v18776_v6 = vld [vmem:[#allocation64_spill] sm:$0xff] }
 0xab1   : > { %v9989_v52 = vpack.c.bf16 %v18776_v6, %v18776_v6 }
 0xab4   : > { %6405 = vrot.lane.b32.xlu1 %v10016_v48, %s12807_s19  ;;  %v18777_v48 = vld [vmem:[#allocation42_spill] sm:$0xff] }
 0xabf   : > { %v10901_v46 = vpop.f32.mrf.mxu0 }
 0xac1   : > { %v10902_v5 = vpop.f32.mrf.mxu0 }
 0xac2   : > { %v10903_v22 = vadd.f32 %v10902_v5, %v10901_v46  ;;  %v18778_v46 = vld [vmem:[#allocation63_spill] sm:$0xff] }
 0xac3   : > { %v10904_v31 = vpop.f32.mrf.mxu0  ;;  %v10610_v5 = vadd.f32 %v18778_v46, %v18777_v48  ;;  %v18792_v46 = vld [vmem:[#allocation40_spill] sm:$0xff] }
 0xac4   : > { %v10045_v13 = vpack.c.bf16 %v10903_v22, %v10903_v22 }
 0xac5   : > { %v10905_v26 = vpop.f32.mrf.mxu0 }
 0xac6   : > { %v10906_v54 = vadd.f32 %v10905_v26, %v10904_v31  ;;  %7987 = vrot.lane.b32.xlu0 %v10045_v13, %s12808_s22  ;;  %v9990_v26 = vpack.c.bf16 %v10610_v5, %v10610_v5  ;;  %v10025_v5 = vpack.c.bf16 %v18792_v46, %v18792_v46 }
 0xac7   : > { %v10907_v32 = vpop.f32.mrf.mxu0 }
 0xac8   : > { %v10046_v44 = vpack.c.bf16 %v10906_v54, %v10906_v54  ;;  %v18779_v54 = vld [vmem:[#allocation65_spill] sm:$0xff] }
 0xac9   : > { %v10908_v50 = vpop.f32.mrf.mxu0 }
 0xaca   : > { %v10909_v28 = vadd.f32 %v10908_v50, %v10907_v32  ;;  %7989 = vrot.lane.b32.xlu1 %v10046_v44, %s12808_s22  ;;  %v9991_v32 = vpack.c.bf16 %v18779_v54, %v18779_v54  ;;  %v18780_v44 = vld [vmem:[#allocation55_spill] sm:$0xff] }
 0xacb   : > { %v10910_v51 = vpop.f32.mrf.mxu0  ;;  %v18781_v50 = vld [vmem:[#allocation119_spill] sm:$0xff] }
 0xacc   : > { %v10047_v60 = vpack.c.bf16 %v10909_v28, %v10909_v28  ;;  %v10616_v28 = vadd.f32 %v18781_v50, %v18780_v44 }
 0xacd   : > { %v10911_v55 = vpop.f32.mrf.mxu0 }
 0xace   : > { %v10912_v58 = vadd.f32 %v10911_v55, %v10910_v51  ;;  %7991 = vrot.lane.b32.xlu0 %v10047_v60, %s12808_s22  ;;  %v9992_v55 = vpack.c.bf16 %v10616_v28, %v10616_v28 }
 0xacf   : > { %v10913_v47 = vpop.f32.mrf.mxu0 }
 0xad0   : > { %v10048_v12 = vpack.c.bf16 %v10912_v58, %v10912_v58  ;;  %v18782_v58 = vld [vmem:[#allocation114_spill] sm:$0xff] }
 0xad1   : > { %v10914_v40 = vpop.f32.mrf.mxu0 }
 0xad2   : > { %7993 = vrot.lane.b32.xlu1 %v10048_v12, %s12808_s22  ;;  %4819 = vrot.lane.b32.xlu0 %v9985_v61, %s12809_s26  ;;  %v10915_v11 = vadd.f32 %v10914_v40, %v10913_v47  ;;  %v10021_v47 = vpack.c.bf16 %v18782_v58, %v18782_v58  ;;  %v10023_v12 = vpack.c.bf16 %v18784_v17, %v18784_v17  ;;  %v18795_v58 = vld [vmem:[#allocation124_spill] sm:$0xff] }
 0xad3   : > { %v10916_v37 = vpop.f32.mrf.mxu0 }
 0xad4   : > { %v10049_v29 = vpack.c.bf16 %v10915_v11, %v10915_v11  ;;  %v18787_v11 = vld [vmem:[#allocation43_spill] sm:$0xff] }
 0xad5   : > { %v10917_v56 = vpop.f32.mrf.mxu0 }
 0xad6   : > { %4821 = vrot.lane.b32.xlu1 %v9986_v4, %s12809_s26  ;;  %4823 = vrot.lane.b32.xlu0 %v9987_v9, %s12809_s26  ;;  %v10918_v27 = vadd.f32 %v10917_v56, %v10916_v37  ;;  %v10024_v9 = vpack.c.bf16 %v18785_v57, %v18785_v57 }
 0xad7   : > { %v10919_v30 = vpop.f32.mrf.mxu0 }
 0xad8   : > { %v10050_v1 = vpack.c.bf16 %v10918_v27, %v10918_v27 }
 0xad9   : > { %v10920_v16 = vpop.f32.mrf.mxu0 }
 0xada   : > { %4825 = vrot.lane.b32.xlu1 %v9988_v62, %s12809_s26  ;;  %6407 = vrot.lane.b32.xlu0 %v10017_v45, %s12807_s19  ;;  %v10921_v59 = vadd.f32 %v10920_v16, %v10919_v30 }
 0xadb   : > { %v10922_v41 = vpop.f32.mrf.mxu0 }
 0xadc   : > { %v10051_v7 = vpack.c.bf16 %v10921_v59, %v10921_v59 }
 0xadd   : > { %v10923_v0 = vpop.f32.mrf.mxu0 }
 0xade   : > { %6409 = vrot.lane.b32.xlu1 %v10018_v49, %s12807_s19  ;;  %6411 = vrot.lane.b32.xlu0 %v10019_v18, %s12807_s19  ;;  %v10924_v23 = vadd.f32 %v10923_v0, %v10922_v41  ;;  %v9993_v18 = vpack.c.bf16 %v18786_v21, %v18786_v21  ;;  %v18788_v0 = vld [vmem:[#allocation123_spill] sm:$0xff] }
 0xadf   : > { %v10925_v33 = vpop.f32.mrf.mxu0 }
 0xae0   : > { %v10052_v22 = vpack.c.bf16 %v10924_v23, %v10924_v23 }
 0xae1   : > { %v10926_v2 = vpop.f32.mrf.mxu0 }
 0xae2   : > { %6413 = vrot.lane.b32.xlu1 %v10020_v20, %s12807_s19  ;;  %7995 = vrot.lane.b32.xlu0 %v10049_v29, %s12808_s22  ;;  %v10927_v40 = vadd.f32 %v10926_v2, %v10925_v33  ;;  %v10622_v33 = vadd.f32 %v18788_v0, %v18787_v11  ;;  %v18789_v2 = vld [vmem:[#allocation67_spill] sm:$0xff]  ;;  %v18801_v11 = vld [vmem:[#allocation49_spill] sm:$0xff] }
 0xae3   : > { %v10928_v14 = vpop.f32.mrf.mxu0 }
 0xae4   : > { %v10053_v43 = vpack.c.bf16 %v10927_v40, %v10927_v40  ;;  %v9994_v59 = vpack.c.bf16 %v10622_v33, %v10622_v33 }
 0xae5   : > { %v10929_v35 = vpop.f32.mrf.mxu0 }
 0xae6   : > { %7997 = vrot.lane.b32.xlu1 %v10050_v1, %s12808_s22  ;;  %7999 = vrot.lane.b32.xlu0 %v10051_v7, %s12808_s22  ;;  %v10930_v8 = vadd.f32 %v10929_v35, %v10928_v14  ;;  %v9995_v14 = vpack.c.bf16 %v18789_v2, %v18789_v2  ;;  %v18790_v1 = vld [vmem:[#allocation54_spill] sm:$0xff]  ;;  %v18791_v7 = vld [vmem:[#allocation76_spill] sm:$0xff] }
 0xae7   : > { %v10931_v25 = vpop.f32.mrf.mxu0  ;;  %v10628_v23 = vadd.f32 %v18791_v7, %v18790_v1 }
 0xae8   : > { %v10054_v62 = vpack.c.bf16 %v10930_v8, %v10930_v8 }
 0xae9   : > { %v10932_v31 = vpop.f32.mrf.mxu0  ;;  %v9996_v48 = vpack.c.bf16 %v10628_v23, %v10628_v23  ;;  %v18803_v23 = vld [vmem:[#allocation56_spill] sm:$0xff] }
 0xaea   : > { %8001 = vrot.lane.b32.xlu1 %v10052_v22, %s12808_s22  ;;  %4827 = vrot.lane.b32.xlu0 %v9989_v52, %s12809_s26  ;;  %v10933_v63 = vadd.f32 %v10932_v31, %v10931_v25 }
 0xaeb   : > { %v10934_v13 = vpop.f32.mrf.mxu0 }
 0xaec   : > { %v10055_v3 = vpack.c.bf16 %v10933_v63, %v10933_v63  ;;  %v18797_v63 = vld [vmem:[#allocation126_spill] sm:$0xff] }
 0xaed   : > { %v10935_v51 = vpop.f32.mrf.mxu0 }
 0xaee   : > { %4829 = vrot.lane.b32.xlu1 %v9990_v26, %s12809_s26  ;;  %4831 = vrot.lane.b32.xlu0 %v9991_v32, %s12809_s26  ;;  %v10936_v45 = vadd.f32 %v10935_v51, %v10934_v13  ;;  %v18793_v26 = vld [vmem:[#allocation122_spill] sm:$0xff]  ;;  %v18794_v32 = vld [vmem:[#allocation117_spill] sm:$0xff] }
 0xaef   : > { %v17056_v60 = vpop.f32.mrf.mxu0  ;;  %v10026_v54 = vpack.c.bf16 %v18793_v26, %v18793_v26  ;;  %v10027_v44 = vpack.c.bf16 %v18794_v32, %v18794_v32 }
 0xaf0   : > { %v10056_v53 = vpack.c.bf16 %v10936_v45, %v10936_v45 }
 0xaf1   : > { %v17060_v36 = vpop.f32.mrf.mxu0 }
 0xaf2   : > { %4833 = vrot.lane.b32.xlu1 %v9992_v55, %s12809_s26  ;;  %6415 = vrot.lane.b32.xlu0 %v10021_v47, %s12807_s19  ;;  %v7972_v61 = vpop.permute.xlu0 %7971  ;;  %v10939_v50 = vadd.f32 %v17060_v36, %v17056_v60  ;;  %v10028_v47 = vpack.c.bf16 %v18795_v58, %v18795_v58  ;;  %v18808_v58 = vld [vmem:[#allocation84_spill] sm:$0xff] }
 0xaf3   : > { %8068 = vst.msk [vmem:[#allocation4] sm:$0xf] %vm8067_vm4, %v7972_v61  ;;  %v17069_v37 = vpop.f32.mrf.mxu0 }
 0xaf4   : > { %v10057_v61 = vpack.c.bf16 %v10939_v50, %v10939_v50 }
 0xaf5   : > { %v10941_v56 = vpop.f32.mrf.mxu0 }
 0xaf6   : > { %6417 = vrot.lane.b32.xlu1 %v10022_v38, %s12807_s19  ;;  %6419 = vrot.lane.b32.xlu0 %v10023_v12, %s12807_s19  ;;  %v7974_v4 = vpop.permute.xlu1 %7973  ;;  %v10942_v42 = vadd.f32 %v10941_v56, %v17069_v37  ;;  %v18798_v56 = vld [vmem:[#allocation128_spill] sm:$0xff] }
 0xaf7   : > { %8069 = vst.msk [vmem:[#allocation4 + $0x4] sm:$0xf] %vm8067_vm4, %v7974_v4  ;;  %v10943_v16 = vpop.f32.mrf.mxu0 }
 0xaf8   : > { %v10058_v12 = vpack.c.bf16 %v10942_v42, %v10942_v42 }
 0xaf9   : > { %v10944_v20 = vpop.f32.mrf.mxu0 }
 0xafa   : > { %6421 = vrot.lane.b32.xlu1 %v10024_v9, %s12807_s19  ;;  %8003 = vrot.lane.b32.xlu0 %v10053_v43, %s12808_s22  ;;  %v7976_v30 = vpop.permute.xlu0 %7975  ;;  %v10945_v38 = vadd.f32 %v10944_v20, %v10943_v16  ;;  %v18796_v43 = vld [vmem:[#allocation37_spill] sm:$0xff] }
 0xafb   : > { %8070 = vst.msk [vmem:[#allocation4 + $0x8] sm:$0xf] %vm8067_vm4, %v7976_v30  ;;  %v10946_v35 = vpop.f32.mrf.mxu0  ;;  %v9997_v8 = vpack.c.bf16 %v18796_v43, %v18796_v43  ;;  %v10634_v30 = vadd.f32 %v18798_v56, %v18797_v63  ;;  %v10035_v63 = vpack.c.bf16 %v16732_v19, %v16732_v19  ;;  %v10812_v56 = vadd.f32 %v16939_v34, %v16937_v10 }
 0xafc   : > { %v10059_v40 = vpack.c.bf16 %v10945_v38, %v10945_v38 }
 0xafd   : > { %v10947_v22 = vpop.f32.mrf.mxu0 }
 0xafe   : > { %8005 = vrot.lane.b32.xlu1 %v10054_v62, %s12808_s22  ;;  %8007 = vrot.lane.b32.xlu0 %v10055_v3, %s12808_s22  ;;  %v4804_v41 = vpop.permute.xlu0 %4803  ;;  %v7978_v39 = vpop.permute.xlu1 %7977  ;;  %v11561_v49 = vld [vmem:[#allocation4] sm:$0xff]   ;;  %v10948_v4 = vadd.f32 %v10947_v22, %v10946_v35  ;;  %v10030_v35 = vpack.c.bf16 %v18803_v23, %v18803_v23 }
 0xaff   : > { %4896 = vst.msk [vmem:[#allocation4 + $0x10] sm:$0xf] %vm4891_vm2, %v4804_v41  ;;  %11157 = vmatprep.mubr.bf16.mxu1 %v11561_v49  ;;  %v10949_v28 = vpop.f32.mrf.mxu0  ;;  %v18799_v49 = vld [vmem:[#allocation70_spill] sm:$0xff] }
 0xb00   : > { %8071 = vst.msk [vmem:[#allocation4 + $0xc] sm:$0xf] %vm8067_vm4, %v7978_v39  ;;  %v10060_v62 = vpack.c.bf16 %v10948_v4, %v10948_v4  ;;  %v9998_v39 = vpack.c.bf16 %v10634_v30, %v10634_v30  ;;  %v9999_v21 = vpack.c.bf16 %v18799_v49, %v18799_v49 }
 0xb01   : > { %v10950_v17 = vpop.f32.mrf.mxu0 }
 0xb02   : > { %8009 = vrot.lane.b32.xlu1 %v10056_v53, %s12808_s22  ;;  %4835 = vrot.lane.b32.xlu0 %v9993_v18, %s12809_s26  ;;  %v4808_v29 = vpop.permute.xlu0 %4807  ;;  %v4806_v27 = vpop.permute.xlu1 %4805  ;;  %v18800_v18 = vld [vmem:[#allocation74_spill] sm:$0xff] }
 0xb03   : > { %4898 = vst.msk [vmem:[#allocation4 + $0x18] sm:$0xf] %vm4891_vm2, %v4808_v29  ;;  %4897 = vst.msk [vmem:[#allocation4 + $0x14] sm:$0xf] %vm4891_vm2, %v4806_v27  ;;  %v10952_v57 = vpop.f32.mrf.mxu0  ;;  %v10640_v0 = vadd.f32 %v18801_v11, %v18800_v18 }
 0xb05   : > { %v10953_v3 = vpop.f32.mrf.mxu0  ;;  %v10000_v27 = vpack.c.bf16 %v10640_v0, %v10640_v0 }
 0xb06   : > { %4837 = vrot.lane.b32.xlu1 %v9994_v59, %s12809_s26  ;;  %4839 = vrot.lane.b32.xlu0 %v9995_v14, %s12809_s26  ;;  %v6392_v25 = vpop.permute.xlu0 %6391  ;;  %v4810_v6 = vpop.permute.xlu1 %4809  ;;  %v18802_v59 = vld [vmem:[#allocation57_spill] sm:$0xff] }
 0xb07   : > { %v11563_v52 = vld [vmem:[#allocation4 + $0x8] sm:$0xff]   ;;  %6484 = vst.msk [vmem:[#allocation4 + $0x10] sm:$0xf] %vm6479_vm3, %v6392_v25  ;;  %v10955_v33 = vpop.f32.mrf.mxu0  ;;  %v10029_v2 = vpack.c.bf16 %v18802_v59, %v18802_v59 }
 0xb08   : > { %4899 = vst.msk [vmem:[#allocation4 + $0x1c] sm:$0xf] %vm4891_vm2, %v4810_v6  ;;  %11158 = vmatmul.mubr.bf16.vlgmr.msra.gmra.mxu1 %v11563_v52  ;;  %v18804_v25 = vld [vmem:[#allocation72_spill] sm:$0xff]  ;;  %v10951_v52 = vadd.f32 %v10950_v17, %v10949_v28  ;;  %v18806_v28 = vld [vmem:[#allocation130_spill] sm:$0xff]  ;;  %v18809_v17 = vld [vmem:[#allocation97_spill] sm:$0xff] }
 0xb09   : > { %v10956_v14 = vpop.f32.mrf.mxu0  ;;  %v10031_v6 = vpack.c.bf16 %v18804_v25, %v18804_v25 }
 0xb0a   : > { %4841 = vrot.lane.b32.xlu1 %v9996_v48, %s12809_s26  ;;  %6423 = vrot.lane.b32.xlu0 %v10025_v5, %s12807_s19  ;;  %v6396_v31 = vpop.permute.xlu0 %6395  ;;  %v6394_v13 = vpop.permute.xlu1 %6393  ;;  %v18805_v5 = vld [vmem:[#allocation73_spill] sm:$0xff]  ;;  %v10957_v26 = vadd.f32 %v10956_v14, %v10955_v33 }
 0xb0b   : > { %6486 = vst.msk [vmem:[#allocation4 + $0x18] sm:$0xf] %vm6479_vm3, %v6396_v31  ;;  %6485 = vst.msk [vmem:[#allocation4 + $0x14] sm:$0xf] %vm6479_vm3, %v6394_v13  ;;  %v10958_v48 = vpop.f32.mrf.mxu0  ;;  %v10032_v22 = vpack.c.bf16 %v18805_v5, %v18805_v5  ;;  %v10061_v31 = vpack.c.bf16 %v10951_v52, %v10951_v52  ;;  %v10954_v13 = vadd.f32 %v10953_v3, %v10952_v57 }
 0xb0c   : > { %v10036_v3 = vpack.c.bf16 %v10812_v56, %v10812_v56 }
 0xb0d   : > { %v10062_v32 = vpack.c.bf16 %v10954_v13, %v10954_v13 }
 0xb0e   : > { %6425 = vrot.lane.b32.xlu1 %v10026_v54, %s12807_s19  ;;  %6427 = vrot.lane.b32.xlu0 %v10027_v44, %s12807_s19  ;;  %v7980_v51 = vpop.permute.xlu0 %7979  ;;  %v6398_v55 = vpop.permute.xlu1 %6397  ;;  %v10063_v44 = vpack.c.bf16 %v10957_v26, %v10957_v26 }
 0xb0f   : > { %8072 = vst.msk [vmem:[#allocation4 + $0x10] sm:$0xf] %vm8067_vm4, %v7980_v51  ;;  %v10959_v54 = vpop.f32.mrf.mxu0  ;;  %v10001_v51 = vpack.c.bf16 %v18806_v28, %v18806_v28 }
 0xb10   : > { %6487 = vst.msk [vmem:[#allocation4 + $0x1c] sm:$0xf] %vm6479_vm3, %v6398_v55  ;;  %v10960_v50 = vadd.f32 %v10959_v54, %v10958_v48  ;;  %v18807_v55 = vld [vmem:[#allocation96_spill] sm:$0xff] }
 0xb12   : > { %6429 = vrot.lane.b32.xlu1 %v10028_v47, %s12807_s19  ;;  %8011 = vrot.lane.b32.xlu0 %v10057_v61, %s12808_s22  ;;  %v7984_v60 = vpop.permute.xlu0 %7983  ;;  %v7982_v36 = vpop.permute.xlu1 %7981  ;;  %v10646_v47 = vadd.f32 %v18808_v58, %v18807_v55  ;;  %v10064_v61 = vpack.c.bf16 %v10960_v50, %v10960_v50 }
 0xb13   : > { %8074 = vst.msk [vmem:[#allocation4 + $0x18] sm:$0xf] %vm8067_vm4, %v7984_v60  ;;  %8073 = vst.msk [vmem:[#allocation4 + $0x14] sm:$0xf] %vm8067_vm4, %v7982_v36  ;;  %v10003_v60 = vpack.c.bf16 %v18809_v17, %v18809_v17  ;;  %v18810_v36 = vld [vmem:[#allocation88_spill] sm:$0xff] }
 0xb14   : > { %v10002_v38 = vpack.c.bf16 %v10646_v47, %v10646_v47 }
 0xb16   : > { %8013 = vrot.lane.b32.xlu1 %v10058_v12, %s12808_s22  ;;  %8015 = vrot.lane.b32.xlu0 %v10059_v40, %s12808_s22  ;;  %v4812_v37 = vpop.permute.xlu0 %4811  ;;  %v7986_v9 = vpop.permute.xlu1 %7985  ;;  %v18811_v12 = vld [vmem:[#allocation60_spill] sm:$0xff] }
 0xb17   : > { %4900 = vst.msk [vmem:[#allocation4 + $0x20] sm:$0xf] %vm4891_vm2, %v4812_v37  ;;  %v10652_v40 = vadd.f32 %v18811_v12, %v18810_v36  ;;  %v10033_v37 = vpack.c.bf16 %v16696_v24, %v16696_v24 }
 0xb18   : > { %8075 = vst.msk [vmem:[#allocation4 + $0x1c] sm:$0xf] %vm8067_vm4, %v7986_v9 }
 0xb19   : > { %v10004_v57 = vpack.c.bf16 %v10652_v40, %v10652_v40 }
 0xb1a   : > { %8017 = vrot.lane.b32.xlu1 %v10060_v62, %s12808_s22  ;;  %4843 = vrot.lane.b32.xlu0 %v9997_v8, %s12809_s26  ;;  %v4816_v45 = vpop.permute.xlu0 %4815  ;;  %v11564_v16 = vld [vmem:[#allocation4 + $0x10] sm:$0xff]   ;;  %v4814_v41 = vpop.permute.xlu1 %4813  ;;  %v10034_v8 = vpack.c.bf16 %v16698_v15, %v16698_v15 }
 0xb1b   : > { %4902 = vst.msk [vmem:[#allocation4 + $0x28] sm:$0xf] %vm4891_vm2, %v4816_v45  ;;  %4901 = vst.msk [vmem:[#allocation4 + $0x24] sm:$0xf] %vm4891_vm2, %v4814_v41  ;;  %11161 = vmatprep.mubr.bf16.mxu1 %v11564_v16  ;;  %v10961_v42 = vpop.f32.mrf.mxu0 }
 0xb1d   : > { %v10962_v4 = vpop.f32.mrf.mxu0 }
 0xb1e   : > { %4845 = vrot.lane.b32.xlu1 %v9998_v39, %s12809_s26  ;;  %4847 = vrot.lane.b32.xlu0 %v9999_v21, %s12809_s26  ;;  %v6400_v53 = vpop.permute.xlu0 %6399  ;;  %v4818_v29 = vpop.permute.xlu1 %4817  ;;  %v10963_v30 = vadd.f32 %v10962_v4, %v10961_v42 }
 0xb1f   : > { %v11565_v20 = vld [vmem:[#allocation4 + $0x18] sm:$0xff]   ;;  %6488 = vst.msk [vmem:[#allocation4 + $0x20] sm:$0xf] %vm6479_vm3, %v6400_v53  ;;  %v10964_v43 = vpop.f32.mrf.mxu0  ;;  %v17200_v53 = vld [vmem:[%s13078_s11] sm:$0xff] }
 0xb20   : > { %4903 = vst.msk [vmem:[#allocation4 + $0x2c] sm:$0xf] %vm4891_vm2, %v4818_v29  ;;  %11162 = vmatmul.mubr.bf16.gmra.mxu1 %v11565_v20  ;;  %v10065_v45 = vpack.c.bf16 %v10963_v30, %v10963_v30  ;;  %v17203_v20 = vld [vmem:[%s13078_s11 + $0x8] sm:$0xff] }
 0xb21   : > { %v10965_v24 = vpop.f32.mrf.mxu0  ;;  %v1635_v29 = vpack.c.bf16 %v17203_v20, %v17200_v53 }
 0xb22   : > { %4849 = vrot.lane.b32.xlu1 %v10000_v27, %s12809_s26  ;;  %6431 = vrot.lane.b32.xlu0 %v10029_v2, %s12807_s19  ;;  %v6404_v1 = vpop.permute.xlu0 %6403  ;;  %v6402_v7 = vpop.permute.xlu1 %6401  ;;  %v10966_v16 = vadd.f32 %v10965_v24, %v10964_v43 }
 0xb23   : > { %6490 = vst.msk [vmem:[#allocation4 + $0x28] sm:$0xf] %vm6479_vm3, %v6404_v1  ;;  %6489 = vst.msk [vmem:[#allocation4 + $0x24] sm:$0xf] %vm6479_vm3, %v6402_v7  ;;  %11109 = vmatprep.mubr.bf16.mxu0 %v1635_v29 }
 0xb24   : > { %v10066_v15 = vpack.c.bf16 %v10966_v16, %v10966_v16 }
 0xb26   : > { %6433 = vrot.lane.b32.xlu1 %v10030_v35, %s12807_s19  ;;  %6435 = vrot.lane.b32.xlu0 %v10031_v6, %s12807_s19  ;;  %v6406_v46 = vpop.permute.xlu1 %6405 }
 0xb27   : > { %6491 = vst.msk [vmem:[#allocation4 + $0x2c] sm:$0xf] %vm6479_vm3, %v6406_v46 }
 0xb2a   : > { %6437 = vrot.lane.b32.xlu1 %v10032_v22, %s12807_s19  ;;  %8019 = vrot.lane.b32.xlu0 %v10061_v31, %s12808_s22 }
 0xb2e   : > { %8021 = vrot.lane.b32.xlu1 %v10062_v32, %s12808_s22  ;;  %8023 = vrot.lane.b32.xlu0 %v10063_v44, %s12808_s22 }
 0xb32   : > { %8025 = vrot.lane.b32.xlu1 %v10064_v61, %s12808_s22  ;;  %4851 = vrot.lane.b32.xlu0 %v10001_v51, %s12809_s26 }
 0xb36   : > { %4853 = vrot.lane.b32.xlu1 %v10002_v38, %s12809_s26  ;;  %4855 = vrot.lane.b32.xlu0 %v10003_v60, %s12809_s26 }
 0xb38   : > { %v7988_v9 = vpop.permute.xlu0 %7987 }
 0xb39   : > { %8076 = vst.msk [vmem:[#allocation4 + $0x20] sm:$0xf] %vm8067_vm4, %v7988_v9 }
 0xb3a   : > { %4857 = vrot.lane.b32.xlu1 %v10004_v57, %s12809_s26  ;;  %6439 = vrot.lane.b32.xlu0 %v10033_v37, %s12807_s19 }
 0xb3c   : > { %v7990_v62 = vpop.permute.xlu1 %7989 }
 0xb3d   : > { %8077 = vst.msk [vmem:[#allocation4 + $0x24] sm:$0xf] %vm8067_vm4, %v7990_v62 }
 0xb3e   : > { %6441 = vrot.lane.b32.xlu1 %v10034_v8, %s12807_s19  ;;  %6443 = vrot.lane.b32.xlu0 %v10035_v63, %s12807_s19 }
 0xb40   : > { %v7992_v41 = vpop.permute.xlu0 %7991 }
 0xb41   : > { %8078 = vst.msk [vmem:[#allocation4 + $0x28] sm:$0xf] %vm8067_vm4, %v7992_v41 }
 0xb42   : > { %6445 = vrot.lane.b32.xlu1 %v10036_v3, %s12807_s19  ;;  %8027 = vrot.lane.b32.xlu0 %v10065_v45, %s12808_s22 }
 0xb44   : > { %v4820_v19 = vpop.permute.xlu0 %4819  ;;  %v7994_v10 = vpop.permute.xlu1 %7993  ;;  %v11566_v34 = vld [vmem:[#allocation4 + $0x20] sm:$0xff]  }
 0xb45   : > { %4904 = vst.msk [vmem:[#allocation4 + $0x30] sm:$0xf] %vm4891_vm2, %v4820_v19  ;;  %11165 = vmatprep.mubr.bf16.mxu1 %v11566_v34 }
 0xb46   : > { %8079 = vst.msk [vmem:[#allocation4 + $0x2c] sm:$0xf] %vm8067_vm4, %v7994_v10  ;;  %8029 = vrot.lane.b32.xlu1 %v10066_v15, %s12808_s22 }
 0xb48   : > { %v4824_v39 = vpop.permute.xlu0 %4823  ;;  %v4822_v49 = vpop.permute.xlu1 %4821 }
 0xb49   : > { %4906 = vst.msk [vmem:[#allocation4 + $0x38] sm:$0xf] %vm4891_vm2, %v4824_v39  ;;  %4905 = vst.msk [vmem:[#allocation4 + $0x34] sm:$0xf] %vm4891_vm2, %v4822_v49 }
 0xb4c   : > { %v6408_v21 = vpop.permute.xlu0 %6407  ;;  %v4826_v18 = vpop.permute.xlu1 %4825 }
 0xb4d   : > { %v11567_v11 = vld [vmem:[#allocation4 + $0x28] sm:$0xff]   ;;  %6492 = vst.msk [vmem:[#allocation4 + $0x30] sm:$0xf] %vm6479_vm3, %v6408_v21 }
 0xb4e   : > { %4907 = vst.msk [vmem:[#allocation4 + $0x3c] sm:$0xf] %vm4891_vm2, %v4826_v18  ;;  %11166 = vmatmul.mubr.bf16.gmra.mxu1 %v11567_v11 }
 0xb50   : > { %v6412_v0 = vpop.permute.xlu0 %6411  ;;  %v6410_v33 = vpop.permute.xlu1 %6409 }
 0xb51   : > { %6494 = vst.msk [vmem:[#allocation4 + $0x38] sm:$0xf] %vm6479_vm3, %v6412_v0  ;;  %6493 = vst.msk [vmem:[#allocation4 + $0x34] sm:$0xf] %vm6479_vm3, %v6410_v33 }
 0xb54   : > { %v7996_v27 = vpop.permute.xlu0 %7995  ;;  %v6414_v59 = vpop.permute.xlu1 %6413 }
 0xb55   : > { %8080 = vst.msk [vmem:[#allocation4 + $0x30] sm:$0xf] %vm8067_vm4, %v7996_v27 }
 0xb56   : > { %6495 = vst.msk [vmem:[#allocation4 + $0x3c] sm:$0xf] %vm6479_vm3, %v6414_v59 }
 0xb57   : > { %v10967_v2 = vpop.f32.mrf.mxu0 }
 0xb58   : > { %v8000_v14 = vpop.permute.xlu0 %7999  ;;  %v7998_v1 = vpop.permute.xlu1 %7997 }
 0xb59   : > { %8082 = vst.msk [vmem:[#allocation4 + $0x38] sm:$0xf] %vm8067_vm4, %v8000_v14  ;;  %8081 = vst.msk [vmem:[#allocation4 + $0x34] sm:$0xf] %vm8067_vm4, %v7998_v1  ;;  %v10968_v7 = vpop.f32.mrf.mxu0 }
 0xb5a   : > { %v10969_v23 = vadd.f32 %v10968_v7, %v10967_v2 }
 0xb5b   : > { %v10970_v35 = vpop.f32.mrf.mxu0 }
 0xb5c   : > { %v10067_v25 = vpack.c.bf16 %v10969_v23, %v10969_v23  ;;  %v4828_v6 = vpop.permute.xlu0 %4827  ;;  %v8002_v52 = vpop.permute.xlu1 %8001 }
 0xb5d   : > { %4908 = vst.msk [vmem:[#allocation4 + $0x40] sm:$0xf] %vm4891_vm2, %v4828_v6  ;;  %v10971_v48 = vpop.f32.mrf.mxu0 }
 0xb5e   : > { %8083 = vst.msk [vmem:[#allocation4 + $0x3c] sm:$0xf] %vm8067_vm4, %v8002_v52  ;;  %v10972_v46 = vadd.f32 %v10971_v48, %v10970_v35  ;;  %8031 = vrot.lane.b32.xlu0 %v10067_v25, %s12808_s22  ;;  %v12410_v48 = vld [vmem:[%s13078_s11 + $0x10] sm:$0xff] }
 0xb60   : > { %v10068_v5 = vpack.c.bf16 %v10972_v46, %v10972_v46  ;;  %v4832_v22 = vpop.permute.xlu0 %4831  ;;  %v4830_v31 = vpop.permute.xlu1 %4829  ;;  %v11568_v13 = vld [vmem:[#allocation4 + $0x30] sm:$0xff]  }
 0xb61   : > { %4910 = vst.msk [vmem:[#allocation4 + $0x48] sm:$0xf] %vm4891_vm2, %v4832_v22  ;;  %4909 = vst.msk [vmem:[#allocation4 + $0x44] sm:$0xf] %vm4891_vm2, %v4830_v31  ;;  %11169 = vmatprep.mubr.bf16.mxu1 %v11568_v13 }
 0xb62   : > { %8033 = vrot.lane.b32.xlu1 %v10068_v5, %s12808_s22 }
 0xb64   : > { %v6416_v26 = vpop.permute.xlu0 %6415  ;;  %v4834_v54 = vpop.permute.xlu1 %4833 }
 0xb65   : > { %v11569_v32 = vld [vmem:[#allocation4 + $0x38] sm:$0xff]   ;;  %6496 = vst.msk [vmem:[#allocation4 + $0x40] sm:$0xf] %vm6479_vm3, %v6416_v26 }
 0xb66   : > { %4911 = vst.msk [vmem:[#allocation4 + $0x4c] sm:$0xf] %vm4891_vm2, %v4834_v54  ;;  %11170 = vmatmul.mubr.bf16.gmra.mxu1 %v11569_v32  ;;  %v17279_v54 = vld [vmem:[%s13078_s11 + $0x20] sm:$0xff] }
 0xb68   : > { %v6420_v44 = vpop.permute.xlu0 %6419  ;;  %v6418_v50 = vpop.permute.xlu1 %6417 }
 0xb69   : > { %6498 = vst.msk [vmem:[#allocation4 + $0x48] sm:$0xf] %vm6479_vm3, %v6420_v44  ;;  %6497 = vst.msk [vmem:[#allocation4 + $0x44] sm:$0xf] %vm6479_vm3, %v6418_v50 }
 0xb6c   : > { %v8004_v28 = vpop.permute.xlu0 %8003  ;;  %v6422_v51 = vpop.permute.xlu1 %6421 }
 0xb6d   : > { %8084 = vst.msk [vmem:[#allocation4 + $0x40] sm:$0xf] %vm8067_vm4, %v8004_v28  ;;  %v17285_v28 = vld [vmem:[%s13078_s11 + $0x28] sm:$0xff] }
 0xb6e   : > { %6499 = vst.msk [vmem:[#allocation4 + $0x4c] sm:$0xf] %vm6479_vm3, %v6422_v51 }
 0xb70   : > { %v8008_v55 = vpop.permute.xlu0 %8007  ;;  %v8006_v58 = vpop.permute.xlu1 %8005 }
 0xb71   : > { %8086 = vst.msk [vmem:[#allocation4 + $0x48] sm:$0xf] %vm8067_vm4, %v8008_v55  ;;  %8085 = vst.msk [vmem:[#allocation4 + $0x44] sm:$0xf] %vm8067_vm4, %v8006_v58  ;;  %v12412_v55 = vld [vmem:[%s13078_s11 + $0x30] sm:$0xff] }
 0xb74   : > { %v4836_v47 = vpop.permute.xlu0 %4835  ;;  %v8010_v61 = vpop.permute.xlu1 %8009 }
 0xb75   : > { %4912 = vst.msk [vmem:[#allocation4 + $0x50] sm:$0xf] %vm4891_vm2, %v4836_v47 }
 0xb76   : > { %8087 = vst.msk [vmem:[#allocation4 + $0x4c] sm:$0xf] %vm8067_vm4, %v8010_v61  ;;  %v12413_v61 = vld [vmem:[%s13078_s11 + $0x38] sm:$0xff] }
 0xb78   : > { %v4840_v42 = vpop.permute.xlu0 %4839  ;;  %v4838_v38 = vpop.permute.xlu1 %4837  ;;  %v11570_v17 = vld [vmem:[#allocation4 + $0x40] sm:$0xff]  }
 0xb79   : > { %4914 = vst.msk [vmem:[#allocation4 + $0x58] sm:$0xf] %vm4891_vm2, %v4840_v42  ;;  %4913 = vst.msk [vmem:[#allocation4 + $0x54] sm:$0xf] %vm4891_vm2, %v4838_v38  ;;  %11173 = vmatprep.mubr.bf16.mxu1 %v11570_v17  ;;  %v17301_v17 = vld [vmem:[%s13078_s11 + $0x40] sm:$0xff] }
 0xb7c   : > { %v6424_v60 = vpop.permute.xlu0 %6423  ;;  %v4842_v36 = vpop.permute.xlu1 %4841 }
 0xb7d   : > { %v11571_v12 = vld [vmem:[#allocation4 + $0x48] sm:$0xff]   ;;  %6500 = vst.msk [vmem:[#allocation4 + $0x50] sm:$0xf] %vm6479_vm3, %v6424_v60 }
 0xb7e   : > { %4915 = vst.msk [vmem:[#allocation4 + $0x5c] sm:$0xf] %vm4891_vm2, %v4842_v36  ;;  %11174 = vmatmul.mubr.bf16.gmra.mxu1 %v11571_v12 }
 0xb80   : > { %v6428_v40 = vpop.permute.xlu0 %6427  ;;  %v6426_v4 = vpop.permute.xlu1 %6425 }
 0xb81   : > { %6502 = vst.msk [vmem:[#allocation4 + $0x58] sm:$0xf] %vm6479_vm3, %v6428_v40  ;;  %6501 = vst.msk [vmem:[#allocation4 + $0x54] sm:$0xf] %vm6479_vm3, %v6426_v4  ;;  %v17307_v40 = vld [vmem:[%s13078_s11 + $0x48] sm:$0xff] }
 0xb84   : > { %v8012_v57 = vpop.permute.xlu0 %8011  ;;  %v6430_v37 = vpop.permute.xlu1 %6429 }
 0xb85   : > { %8088 = vst.msk [vmem:[#allocation4 + $0x50] sm:$0xf] %vm8067_vm4, %v8012_v57  ;;  %v12414_v57 = vld [vmem:[%s13078_s11 + $0x50] sm:$0xff] }
 0xb86   : > { %6503 = vst.msk [vmem:[#allocation4 + $0x5c] sm:$0xf] %vm6479_vm3, %v6430_v37 }
 0xb88   : > { %v8016_v9 = vpop.permute.xlu0 %8015  ;;  %v8014_v43 = vpop.permute.xlu1 %8013 }
 0xb89   : > { %8090 = vst.msk [vmem:[#allocation4 + $0x58] sm:$0xf] %vm8067_vm4, %v8016_v9  ;;  %8089 = vst.msk [vmem:[#allocation4 + $0x54] sm:$0xf] %vm8067_vm4, %v8014_v43  ;;  %v12415_v43 = vld [vmem:[%s13078_s11 + $0x58] sm:$0xff] }
 0xb8c   : > { %v4844_v8 = vpop.permute.xlu0 %4843  ;;  %v8018_v63 = vpop.permute.xlu1 %8017 }
 0xb8d   : > { %4916 = vst.msk [vmem:[#allocation4 + $0x60] sm:$0xf] %vm4891_vm2, %v4844_v8 }
 0xb8e   : > { %8091 = vst.msk [vmem:[#allocation4 + $0x5c] sm:$0xf] %vm8067_vm4, %v8018_v63 }
 0xb90   : > { %v4848_v56 = vpop.permute.xlu0 %4847  ;;  %v4846_v30 = vpop.permute.xlu1 %4845  ;;  %v11572_v62 = vld [vmem:[#allocation4 + $0x50] sm:$0xff]  }
 0xb91   : > { %4918 = vst.msk [vmem:[#allocation4 + $0x68] sm:$0xf] %vm4891_vm2, %v4848_v56  ;;  %4917 = vst.msk [vmem:[#allocation4 + $0x64] sm:$0xf] %vm4891_vm2, %v4846_v30  ;;  %11177 = vmatprep.mubr.bf16.mxu1 %v11572_v62  ;;  %v17323_v56 = vld [vmem:[%s13078_s11 + $0x60] sm:$0xff] }
 0xb94   : > { %v6432_v24 = vpop.permute.xlu0 %6431  ;;  %v4850_v3 = vpop.permute.xlu1 %4849 }
 0xb95   : > { %v11573_v45 = vld [vmem:[#allocation4 + $0x58] sm:$0xff]   ;;  %6504 = vst.msk [vmem:[#allocation4 + $0x60] sm:$0xf] %vm6479_vm3, %v6432_v24 }
 0xb96   : > { %4919 = vst.msk [vmem:[#allocation4 + $0x6c] sm:$0xf] %vm4891_vm2, %v4850_v3  ;;  %11178 = vmatmul.mubr.bf16.gmra.mxu1 %v11573_v45  ;;  %v17329_v3 = vld [vmem:[%s13078_s11 + $0x68] sm:$0xff] }
 0xb98   : > { %v6436_v16 = vpop.permute.xlu0 %6435  ;;  %v6434_v41 = vpop.permute.xlu1 %6433 }
 0xb99   : > { %6506 = vst.msk [vmem:[#allocation4 + $0x68] sm:$0xf] %vm6479_vm3, %v6436_v16  ;;  %6505 = vst.msk [vmem:[#allocation4 + $0x64] sm:$0xf] %vm6479_vm3, %v6434_v41  ;;  %v12416_v16 = vld [vmem:[%s13078_s11 + $0x70] sm:$0xff] }
 0xb9c   : > { %v8020_v15 = vpop.permute.xlu0 %8019  ;;  %v6438_v19 = vpop.permute.xlu1 %6437 }
 0xb9d   : > { %8092 = vst.msk [vmem:[#allocation4 + $0x60] sm:$0xf] %vm8067_vm4, %v8020_v15 }
 0xb9e   : > { %6507 = vst.msk [vmem:[#allocation4 + $0x6c] sm:$0xf] %vm6479_vm3, %v6438_v19  ;;  %v12417_v19 = vld [vmem:[%s13078_s11 + $0x78] sm:$0xff] }
 0xba0   : > { %v8024_v10 = vpop.permute.xlu0 %8023  ;;  %v8022_v34 = vpop.permute.xlu1 %8021 }
 0xba1   : > { %8094 = vst.msk [vmem:[#allocation4 + $0x68] sm:$0xf] %vm8067_vm4, %v8024_v10  ;;  %8093 = vst.msk [vmem:[#allocation4 + $0x64] sm:$0xf] %vm8067_vm4, %v8022_v34 }
 0xba4   : > { %v4852_v39 = vpop.permute.xlu0 %4851  ;;  %v8026_v49 = vpop.permute.xlu1 %8025 }
 0xba5   : > { %4920 = vst.msk [vmem:[#allocation4 + $0x70] sm:$0xf] %vm4891_vm2, %v4852_v39  ;;  %v17345_v39 = vld [vmem:[%s13078_s11 + $0x80] sm:$0xff] }
 0xba6   : > { %8095 = vst.msk [vmem:[#allocation4 + $0x6c] sm:$0xf] %vm8067_vm4, %v8026_v49 }
 0xba8   : > { %v4856_v21 = vpop.permute.xlu0 %4855  ;;  %v4854_v18 = vpop.permute.xlu1 %4853  ;;  %v11574_v11 = vld [vmem:[#allocation4 + $0x60] sm:$0xff]  }
 0xba9   : > { %4922 = vst.msk [vmem:[#allocation4 + $0x78] sm:$0xf] %vm4891_vm2, %v4856_v21  ;;  %4921 = vst.msk [vmem:[#allocation4 + $0x74] sm:$0xf] %vm4891_vm2, %v4854_v18  ;;  %11181 = vmatprep.mubr.bf16.mxu1 %v11574_v11  ;;  %v17351_v11 = vld [vmem:[%s13078_s11 + $0x88] sm:$0xff] }
 0xbac   : > { %v6440_v0 = vpop.permute.xlu0 %6439  ;;  %v4858_v33 = vpop.permute.xlu1 %4857 }
 0xbad   : > { %v11575_v29 = vld [vmem:[#allocation4 + $0x68] sm:$0xff]   ;;  %6508 = vst.msk [vmem:[#allocation4 + $0x70] sm:$0xf] %vm6479_vm3, %v6440_v0 }
 0xbae   : > { %4923 = vst.msk [vmem:[#allocation4 + $0x7c] sm:$0xf] %vm4891_vm2, %v4858_v33  ;;  %11182 = vmatmul.mubr.bf16.gmra.mxu1 %v11575_v29  ;;  %v12418_v33 = vld [vmem:[%s13078_s11 + $0x90] sm:$0xff] }
 0xbb0   : > { %v6444_v27 = vpop.permute.xlu0 %6443  ;;  %v6442_v59 = vpop.permute.xlu1 %6441 }
 0xbb1   : > { %6510 = vst.msk [vmem:[#allocation4 + $0x78] sm:$0xf] %vm6479_vm3, %v6444_v27  ;;  %6509 = vst.msk [vmem:[#allocation4 + $0x74] sm:$0xf] %vm6479_vm3, %v6442_v59  ;;  %v12419_v59 = vld [vmem:[%s13078_s11 + $0x98] sm:$0xff] }
 0xbb4   : > { %v8028_v2 = vpop.permute.xlu0 %8027  ;;  %v6446_v14 = vpop.permute.xlu1 %6445 }
 0xbb5   : > { %8096 = vst.msk [vmem:[#allocation4 + $0x70] sm:$0xf] %vm8067_vm4, %v8028_v2 }
 0xbb6   : > { %6511 = vst.msk [vmem:[#allocation4 + $0x7c] sm:$0xf] %vm6479_vm3, %v6446_v14 }
 0xbb8   : > { %v8030_v1 = vpop.permute.xlu1 %8029 }
 0xbb9   : > { %8097 = vst.msk [vmem:[#allocation4 + $0x74] sm:$0xf] %vm8067_vm4, %v8030_v1  ;;  %v17367_v1 = vld [vmem:[%s13078_s11 + $0xa0] sm:$0xff] }
 0xbc0   : > { %v11576_v7 = vld [vmem:[#allocation4 + $0x70] sm:$0xff]  }
 0xbc1   : > { %11185 = vmatprep.mubr.bf16.mxu1 %v11576_v7 }
 0xbc8   : > { %v11159_v23 = vpop.f32.mrf.mxu1 }
 0xbc9   : > { %v17265_v46 = vadd.f32 %v12410_v48, %v11159_v23  ;;  %v12420_v48 = vld [vmem:[%s13078_s11 + $0xb0] sm:$0xff] }
 0xbca   : > { %v8326_v35 = vpop.f32.mrf.mxu1 }
 0xbcb   : > { %v17261_v25 = vadd.f32 %v8326_v35, %v17200_v53  ;;  %v12411_v53 = vld [vmem:[%s13078_s11 + $0x18] sm:$0xff] }
 0xbcc   : > { %v11160_v6 = vpop.f32.mrf.mxu1 }
 0xbcd   : > { %8453 = vadd.xlane.f32.xlu0 %v17261_v25  ;;  %v17274_v31 = vadd.f32 %v12411_v53, %v11160_v6  ;;  %v17373_v6 = vld [vmem:[%s13078_s11 + $0xa8] sm:$0xff] }
 0xbce   : > { %v8329_v52 = vpop.f32.mrf.mxu1 }
 0xbcf   : > { %v17268_v5 = vadd.f32 %v8329_v52, %v17203_v20 }
 0xbd0   : > { %v8032_v22 = vpop.permute.xlu0 %8031 }
 0xbd1   : > { %8098 = vst.msk [vmem:[#allocation4 + $0x78] sm:$0xf] %vm8067_vm4, %v8032_v22  ;;  %8455 = vadd.xlane.f32.xlu1 %v17268_v5  ;;  %8457 = vadd.xlane.f32.xlu0 %v17265_v46 }
 0xbd4   : > { %v8034_v13 = vpop.permute.xlu1 %8033 }
 0xbd5   : > { %8099 = vst.msk [vmem:[#allocation4 + $0x7c] sm:$0xf] %vm8067_vm4, %v8034_v13  ;;  %8459 = vadd.xlane.f32.xlu0 %v17274_v31  ;;  %v12421_v13 = vld [vmem:[%s13078_s11 + $0xb8] sm:$0xff] }
 0xbdc   : > { %v11577_v20 = vld [vmem:[#allocation4 + $0x78] sm:$0xff]  }
 0xbdd   : > { %11186 = vmatmul.mubr.bf16.gmra.mxu1 %v11577_v20 }
 0xbe0   : > { %v11163_v26 = vpop.f32.mrf.mxu1 }
 0xbe1   : > { %v17289_v58 = vadd.f32 %v12412_v55, %v11163_v26 }
 0xbe2   : > { %v8342_v32 = vpop.f32.mrf.mxu1 }
 0xbe3   : > { %v17282_v44 = vadd.f32 %v8342_v32, %v17279_v54  ;;  %v17389_v32 = vld [vmem:[%s13078_s11 + $0xc0] sm:$0xff] }
 0xbe4   : > { %v11164_v50 = vpop.f32.mrf.mxu1 }
 0xbe5   : > { %8461 = vadd.xlane.f32.xlu1 %v17282_v44  ;;  %v17297_v42 = vadd.f32 %v12413_v61, %v11164_v50  ;;  %v17395_v61 = vld [vmem:[%s13078_s11 + $0xc8] sm:$0xff] }
 0xbe6   : > { %v8345_v51 = vpop.f32.mrf.mxu1 }
 0xbe7   : > { %v17292_v47 = vadd.f32 %v8345_v51, %v17285_v28 }
 0xbe9   : > { %8463 = vadd.xlane.f32.xlu0 %v17292_v47  ;;  %8465 = vadd.xlane.f32.xlu1 %v17289_v58 }
 0xbed   : > { %8467 = vadd.xlane.f32.xlu0 %v17297_v42 }
 0xc0e   : > { %v11167_v38 = vpop.f32.mrf.mxu1 }
 0xc0f   : > { %v17311_v37 = vadd.f32 %v12414_v57, %v11167_v38  ;;  %v12423_v57 = vld [vmem:[%s13078_s11 + $0xd8] sm:$0xff] }
 0xc10   : > { %v8358_v60 = vpop.f32.mrf.mxu1 }
 0xc11   : > { %v17304_v36 = vadd.f32 %v8358_v60, %v17301_v17  ;;  %v12422_v60 = vld [vmem:[%s13078_s11 + $0xd0] sm:$0xff] }
 0xc12   : > { %v11168_v12 = vpop.f32.mrf.mxu1 }
 0xc13   : > { %8469 = vadd.xlane.f32.xlu1 %v17304_v36  ;;  %v17319_v8 = vadd.f32 %v12415_v43, %v11168_v12 }
 0xc14   : > { %v8361_v4 = vpop.f32.mrf.mxu1 }
 0xc15   : > { %v17314_v9 = vadd.f32 %v8361_v4, %v17307_v40 }
 0xc17   : > { %8471 = vadd.xlane.f32.xlu0 %v17314_v9  ;;  %8473 = vadd.xlane.f32.xlu1 %v17311_v37 }
 0xc1b   : > { %8475 = vadd.xlane.f32.xlu0 %v17319_v8 }
 0xc26   : > { %v11171_v63 = vpop.f32.mrf.mxu1 }
 0xc27   : > { %v17333_v41 = vadd.f32 %v12416_v16, %v11171_v63  ;;  %v17411_v16 = vld [vmem:[%s13078_s11 + $0xe0] sm:$0xff] }
 0xc28   : > { %v8374_v30 = vpop.f32.mrf.mxu1 }
 0xc29   : > { %v17326_v62 = vadd.f32 %v8374_v30, %v17323_v56 }
 0xc2a   : > { %v11172_v24 = vpop.f32.mrf.mxu1 }
 0xc2b   : > { %8477 = vadd.xlane.f32.xlu1 %v17326_v62  ;;  %v17341_v10 = vadd.f32 %v12417_v19, %v11172_v24 }
 0xc2c   : > { %v8377_v45 = vpop.f32.mrf.mxu1 }
 0xc2d   : > { %v17336_v15 = vadd.f32 %v8377_v45, %v17329_v3 }
 0xc2f   : > { %8479 = vadd.xlane.f32.xlu0 %v17336_v15  ;;  %8481 = vadd.xlane.f32.xlu1 %v17333_v41 }
 0xc33   : > { %8483 = vadd.xlane.f32.xlu0 %v17341_v10 }
 0xc3e   : > { %v11175_v34 = vpop.f32.mrf.mxu1 }
 0xc3f   : > { %v17355_v29 = vadd.f32 %v12418_v33, %v11175_v34 }
 0xc40   : > { %v8390_v49 = vpop.f32.mrf.mxu1 }
 0xc41   : > { %v17348_v21 = vadd.f32 %v8390_v49, %v17345_v39 }
 0xc42   : > { %v11176_v18 = vpop.f32.mrf.mxu1 }
 0xc43   : > { %8485 = vadd.xlane.f32.xlu1 %v17348_v21  ;;  %v17363_v2 = vadd.f32 %v12419_v59, %v11176_v18  ;;  %v17417_v59 = vld [vmem:[%s13078_s11 + $0xe8] sm:$0xff] }
 0xc44   : > { %v8393_v0 = vpop.f32.mrf.mxu1 }
 0xc45   : > { %v17358_v27 = vadd.f32 %v8393_v0, %v17351_v11 }
 0xc47   : > { %8487 = vadd.xlane.f32.xlu0 %v17358_v27  ;;  %8489 = vadd.xlane.f32.xlu1 %v17355_v29 }
 0xc4b   : > { %8491 = vadd.xlane.f32.xlu0 %v17363_v2 }
 0xc56   : > { %v11179_v14 = vpop.f32.mrf.mxu1  ;;  %v8454_v63 = vpop.xlane.xlu0 %8453 }
 0xc57   : > { %v17377_v22 = vadd.f32 %v12420_v48, %v11179_v14  ;;  %v8517_v34 = vmul.f32 0.0078125, %v8454_v63 }
 0xc58   : > { %v8406_v7 = vpop.f32.mrf.mxu1 }
 0xc59   : > { %v17370_v23 = vadd.f32 %v8406_v7, %v17367_v1  ;;  %v17421_v14 = vsub.f32 %v17261_v25, %v8517_v34 }
 0xc5a   : > { %v11180_v35 = vpop.f32.mrf.mxu1  ;;  %v8458_v30 = vpop.xlane.xlu0 %8457 }
 0xc5b   : > { %8493 = vadd.xlane.f32.xlu1 %v17370_v23  ;;  %v17385_v20 = vadd.f32 %v12421_v13, %v11180_v35  ;;  %v8456_v24 = vpop.xlane.xlu1 %8455  ;;  %v12424_v13 = vld [vmem:[%s13078_s11 + $0xf0] sm:$0xff]  ;;  %v8581_v25 = vmul.f32 %v17421_v14, %v17421_v14 }
 0xc5c   : > { %v8409_v52 = vpop.f32.mrf.mxu1  ;;  %v8518_v48 = vmul.f32 0.0078125, %v8456_v24 }
 0xc5d   : > { %v17380_v53 = vadd.f32 %v8409_v52, %v17373_v6  ;;  %v8519_v52 = vmul.f32 0.0078125, %v8458_v30  ;;  %v12425_v30 = vld [vmem:[%s13078_s11 + $0xf8] sm:$0xff]  ;;  %s12672_s11 = scalar_lea.vmem %s12671_s13, 65536 }
 0xc5e   : > { %v8460_v19 = vpop.xlane.xlu0 %8459  ;;  %p12674_p3 = scmp.lt.s32.totalorder %s12672_s11, %s12666_s25 }
 0xc5f   : > { %8495 = vadd.xlane.f32.xlu0 %v17380_v53  ;;  %8497 = vadd.xlane.f32.xlu1 %v17377_v22 }
 0xc60   : > { %p12675_p2 = por %p12674_p3, %p12673_p6 }
 0xc62   : > { %p12676_p13 = pnand %p12675_p2, %p12669_p1 }
 0xc63   : > { %8499 = vadd.xlane.f32.xlu0 %v17385_v20 }
 0xc6e   : > { %v11183_v26 = vpop.f32.mrf.mxu1  ;;  %v8462_v49 = vpop.xlane.xlu1 %8461 }
 0xc6f   : > { %v17399_v12 = vadd.f32 %v12422_v60, %v11183_v26  ;;  %v17434_v60 = vsub.f32 %v17265_v46, %v8519_v52  ;;  %v8521_v63 = vmul.f32 0.0078125, %v8462_v49 }
 0xc70   : > { %v8422_v50 = vpop.f32.mrf.mxu1 }
 0xc71   : > { %v17392_v51 = vadd.f32 %v8422_v50, %v17389_v32 }
 0xc72   : > { %v11184_v55 = vpop.f32.mrf.mxu1  ;;  %v8464_v7 = vpop.xlane.xlu0 %8463 }
 0xc73   : > { %8501 = vadd.xlane.f32.xlu1 %v17392_v51  ;;  %v17407_v43 = vadd.f32 %v12423_v57, %v11184_v55  ;;  %v8466_v55 = vpop.xlane.xlu1 %8465  ;;  %v17437_v57 = vsub.f32 %v17268_v5, %v8518_v48  ;;  %v8583_v5 = vmul.f32 %v17434_v60, %v17434_v60 }
 0xc74   : > { %v8425_v38 = vpop.f32.mrf.mxu1  ;;  %v8523_v46 = vmul.f32 0.0078125, %v8466_v55 }
 0xc75   : > { %v17402_v4 = vadd.f32 %v8425_v38, %v17395_v61  ;;  %v8520_v38 = vmul.f32 0.0078125, %v8460_v19  ;;  %v8582_v49 = vmul.f32 %v17437_v57, %v17437_v57 }
 0xc77   : > { %8503 = vadd.xlane.f32.xlu0 %v17402_v4  ;;  %8505 = vadd.xlane.f32.xlu1 %v17399_v12  ;;  %v17444_v19 = vsub.f32 %v17274_v31, %v8520_v38 }
 0xc79   : > { %v8584_v31 = vmul.f32 %v17444_v19, %v17444_v19 }
 0xc7b   : > { %8507 = vadd.xlane.f32.xlu0 %v17407_v43 }
 0xc9c   : > { %v8470_v34 = vpop.xlane.xlu1 %8469 }
 0xc9d   : > { %v11187_v45 = vpop.f32.mrf.mxu1 }
 0xc9e   : > { %v17424_v26 = vadd.f32 %v12424_v13, %v11187_v45  ;;  %v8468_v45 = vpop.xlane.xlu0 %8467  ;;  %v8525_v13 = vmul.f32 0.0078125, %v8470_v34 }
 0xc9f   : > { %v8438_v18 = vpop.f32.mrf.mxu1 }
 0xca0   : > { %v17414_v0 = vadd.f32 %v8438_v18, %v17411_v16  ;;  %v8522_v18 = vmul.f32 0.0078125, %v8464_v7  ;;  %v8474_v48 = vpop.xlane.xlu1 %8473  ;;  %v8524_v7 = vmul.f32 0.0078125, %v8468_v45 }
 0xca1   : > { %v11188_v33 = vpop.f32.mrf.mxu1 }
 0xca2   : > { %8509 = vadd.xlane.f32.xlu1 %v17414_v0  ;;  %v17440_v24 = vadd.f32 %v12425_v30, %v11188_v33  ;;  %v8472_v33 = vpop.xlane.xlu0 %8471  ;;  %v17454_v52 = vsub.f32 %v17292_v47, %v8522_v18  ;;  %v17466_v30 = vsub.f32 %v17297_v42, %v8524_v7  ;;  %v17469_v18 = vsub.f32 %v17304_v36, %v8525_v13 }
 0xca3   : > { %v8441_v35 = vpop.f32.mrf.mxu1  ;;  %v8526_v38 = vmul.f32 0.0078125, %v8472_v33 }
 0xca4   : > { %v17427_v50 = vadd.f32 %v8441_v35, %v17417_v59  ;;  %v17447_v35 = vsub.f32 %v17282_v44, %v8521_v63  ;;  %v17459_v44 = vsub.f32 %v17289_v58, %v8523_v46  ;;  %v8586_v47 = vmul.f32 %v17454_v52, %v17454_v52 }
 0xca5   : > { %v8527_v58 = vmul.f32 0.0078125, %v8474_v48  ;;  %v17474_v34 = vsub.f32 %v17314_v9, %v8526_v38  ;;  %v8588_v42 = vmul.f32 %v17466_v30, %v17466_v30  ;;  %v8589_v36 = vmul.f32 %v17469_v18, %v17469_v18 }
 0xca6   : > { %8511 = vadd.xlane.f32.xlu0 %v17427_v50  ;;  %8513 = vadd.xlane.f32.xlu1 %v17424_v26  ;;  %v8585_v55 = vmul.f32 %v17447_v35, %v17447_v35  ;;  %v8587_v45 = vmul.f32 %v17459_v44, %v17459_v44 }
 0xca7   : > { %v8590_v9 = vmul.f32 %v17474_v34, %v17474_v34 }
 0xcaa   : > { %8515 = vadd.xlane.f32.xlu0 %v17440_v24  ;;  %8613 = vadd.xlane.f32.xlu1 %v8581_v25  ;;  %v8476_v25 = vpop.xlane.xlu0 %8475 }
 0xcab   : > { %v8528_v46 = vmul.f32 0.0078125, %v8476_v25 }
 0xcae   : > { %8617 = vadd.xlane.f32.xlu1 %v8583_v5  ;;  %8615 = vadd.xlane.f32.xlu0 %v8582_v49  ;;  %v17477_v49 = vsub.f32 %v17311_v37, %v8527_v58 }
 0xcb2   : > { %8619 = vadd.xlane.f32.xlu0 %v8584_v31  ;;  %8621 = vadd.xlane.f32.xlu1 %v8585_v55  ;;  %v17484_v31 = vsub.f32 %v17319_v8, %v8528_v46  ;;  %v8591_v55 = vmul.f32 %v17477_v49, %v17477_v49 }
 0xcb4   : > { %v8478_v63 = vpop.xlane.xlu1 %8477  ;;  %v8592_v25 = vmul.f32 %v17484_v31, %v17484_v31 }
 0xcb5   : > { %v8529_v33 = vmul.f32 0.0078125, %v8478_v63 }
 0xcb6   : > { %8623 = vadd.xlane.f32.xlu0 %v8586_v47  ;;  %8625 = vadd.xlane.f32.xlu1 %v8587_v45 }
 0xcb7   : > { %v17489_v7 = vsub.f32 %v17326_v62, %v8529_v33 }
 0xcb8   : > { %v8480_v5 = vpop.xlane.xlu0 %8479  ;;  %v8482_v48 = vpop.xlane.xlu1 %8481 }
 0xcb9   : > { %v8530_v37 = vmul.f32 0.0078125, %v8480_v5  ;;  %v8531_v13 = vmul.f32 0.0078125, %v8482_v48  ;;  %v8593_v62 = vmul.f32 %v17489_v7, %v17489_v7 }
 0xcba   : > { %8627 = vadd.xlane.f32.xlu0 %v8588_v42  ;;  %8629 = vadd.xlane.f32.xlu1 %v8589_v36 }
 0xcbb   : > { %v17496_v8 = vsub.f32 %v17336_v15, %v8530_v37  ;;  %v17499_v63 = vsub.f32 %v17333_v41, %v8531_v13 }
 0xcbc   : > { %v8484_v38 = vpop.xlane.xlu0 %8483 }
 0xcbd   : > { %v8532_v47 = vmul.f32 0.0078125, %v8484_v38  ;;  %v8594_v45 = vmul.f32 %v17496_v8, %v17496_v8  ;;  %v8595_v46 = vmul.f32 %v17499_v63, %v17499_v63 }
 0xcbe   : > { %8631 = vadd.xlane.f32.xlu0 %v8590_v9  ;;  %8633 = vadd.xlane.f32.xlu1 %v8591_v55 }
 0xcbf   : > { %v17504_v58 = vsub.f32 %v17341_v10, %v8532_v47 }
 0xcc1   : > { %v8596_v41 = vmul.f32 %v17504_v58, %v17504_v58 }
 0xcc2   : > { %8635 = vadd.xlane.f32.xlu0 %v8592_v25  ;;  %8637 = vadd.xlane.f32.xlu1 %v8593_v62 }
 0xcc6   : > { %8639 = vadd.xlane.f32.xlu0 %v8594_v45  ;;  %8641 = vadd.xlane.f32.xlu1 %v8595_v46 }
 0xcca   : > { %8643 = vadd.xlane.f32.xlu0 %v8596_v41 }
 0xccc   : > { %v8486_v15 = vpop.xlane.xlu1 %8485 }
 0xccd   : > { %v8533_v5 = vmul.f32 0.0078125, %v8486_v15 }
 0xccf   : > { %v17513_v33 = vsub.f32 %v17348_v21, %v8533_v5 }
 0xcd0   : > { %v8488_v42 = vpop.xlane.xlu0 %8487  ;;  %v8490_v10 = vpop.xlane.xlu1 %8489 }
 0xcd1   : > { %v8534_v36 = vmul.f32 0.0078125, %v8488_v42  ;;  %v8535_v48 = vmul.f32 0.0078125, %v8490_v10  ;;  %v8597_v9 = vmul.f32 %v17513_v33, %v17513_v33 }
 0xcd3   : > { %v17518_v37 = vsub.f32 %v17358_v27, %v8534_v36  ;;  %v17521_v13 = vsub.f32 %v17355_v29, %v8535_v48  ;;  %8645 = vadd.xlane.f32.xlu1 %v8597_v9 }
 0xcd4   : > { %v8492_v55 = vpop.xlane.xlu0 %8491 }
 0xcd5   : > { %v8536_v38 = vmul.f32 0.0078125, %v8492_v55  ;;  %v8598_v21 = vmul.f32 %v17518_v37, %v17518_v37  ;;  %v8599_v25 = vmul.f32 %v17521_v13, %v17521_v13 }
 0xcd7   : > { %v17528_v47 = vsub.f32 %v17363_v2, %v8536_v38  ;;  %8647 = vadd.xlane.f32.xlu0 %v8598_v21  ;;  %8649 = vadd.xlane.f32.xlu1 %v8599_v25 }
 0xcd9   : > { %v8600_v27 = vmul.f32 %v17528_v47, %v17528_v47 }
 0xcdb   : > { %8651 = vadd.xlane.f32.xlu0 %v8600_v27 }
 0xce4   : > { %v8494_v29 = vpop.xlane.xlu1 %8493 }
 0xce5   : > { %v8537_v62 = vmul.f32 0.0078125, %v8494_v29 }
 0xce7   : > { %v17533_v45 = vsub.f32 %v17370_v23, %v8537_v62 }
 0xce8   : > { %v8496_v46 = vpop.xlane.xlu0 %8495  ;;  %v8498_v41 = vpop.xlane.xlu1 %8497 }
 0xce9   : > { %v8538_v15 = vmul.f32 0.0078125, %v8496_v46  ;;  %v8539_v5 = vmul.f32 0.0078125, %v8498_v41  ;;  %v8601_v42 = vmul.f32 %v17533_v45, %v17533_v45 }
 0xceb   : > { %v17538_v2 = vsub.f32 %v17380_v53, %v8538_v15  ;;  %v17541_v10 = vsub.f32 %v17377_v22, %v8539_v5  ;;  %8653 = vadd.xlane.f32.xlu1 %v8601_v42 }
 0xcec   : > { %v8500_v36 = vpop.xlane.xlu0 %8499 }
 0xced   : > { %v8540_v48 = vmul.f32 0.0078125, %v8500_v36  ;;  %v8602_v23 = vmul.f32 %v17538_v2, %v17538_v2  ;;  %v8603_v9 = vmul.f32 %v17541_v10, %v17541_v10 }
 0xcef   : > { %v17548_v55 = vsub.f32 %v17385_v20, %v8540_v48  ;;  %8655 = vadd.xlane.f32.xlu0 %v8602_v23  ;;  %8657 = vadd.xlane.f32.xlu1 %v8603_v9 }
 0xcf1   : > { %v8604_v53 = vmul.f32 %v17548_v55, %v17548_v55 }
 0xcf3   : > { %8659 = vadd.xlane.f32.xlu0 %v8604_v53 }
 0xcfc   : > { %v8502_v22 = vpop.xlane.xlu1 %8501 }
 0xcfd   : > { %v8541_v38 = vmul.f32 0.0078125, %v8502_v22 }
 0xcff   : > { %v17553_v21 = vsub.f32 %v17392_v51, %v8541_v38 }
 0xd00   : > { %v8504_v25 = vpop.xlane.xlu0 %8503  ;;  %v8506_v27 = vpop.xlane.xlu1 %8505 }
 0xd01   : > { %v8542_v29 = vmul.f32 0.0078125, %v8504_v25  ;;  %v8543_v62 = vmul.f32 0.0078125, %v8506_v27  ;;  %v8605_v46 = vmul.f32 %v17553_v21, %v17553_v21 }
 0xd03   : > { %v17558_v20 = vsub.f32 %v17402_v4, %v8542_v29  ;;  %v17561_v41 = vsub.f32 %v17399_v12, %v8543_v62  ;;  %8661 = vadd.xlane.f32.xlu1 %v8605_v46 }
 0xd04   : > { %v8508_v15 = vpop.xlane.xlu0 %8507 }
 0xd05   : > { %v8544_v5 = vmul.f32 0.0078125, %v8508_v15  ;;  %v8606_v51 = vmul.f32 %v17558_v20, %v17558_v20  ;;  %v8607_v42 = vmul.f32 %v17561_v41, %v17561_v41 }
 0xd07   : > { %v17568_v36 = vsub.f32 %v17407_v43, %v8544_v5  ;;  %8663 = vadd.xlane.f32.xlu0 %v8606_v51  ;;  %8665 = vadd.xlane.f32.xlu1 %v8607_v42 }
 0xd09   : > { %v8608_v4 = vmul.f32 %v17568_v36, %v17568_v36 }
 0xd0b   : > { %8667 = vadd.xlane.f32.xlu0 %v8608_v4 }
 0xd2b   : > { %v8510_v12 = vpop.xlane.xlu1 %8509 }
 0xd2c   : > { %v8545_v48 = vmul.f32 0.0078125, %v8510_v12 }
 0xd2e   : > { %v17573_v23 = vsub.f32 %v17414_v0, %v8545_v48 }
 0xd2f   : > { %v8512_v9 = vpop.xlane.xlu0 %8511  ;;  %v8514_v53 = vpop.xlane.xlu1 %8513 }
 0xd30   : > { %v8546_v22 = vmul.f32 0.0078125, %v8512_v9  ;;  %v8547_v38 = vmul.f32 0.0078125, %v8514_v53  ;;  %v8609_v25 = vmul.f32 %v17573_v23, %v17573_v23 }
 0xd32   : > { %v17578_v43 = vsub.f32 %v17427_v50, %v8546_v22  ;;  %v17581_v27 = vsub.f32 %v17424_v26, %v8547_v38  ;;  %8669 = vadd.xlane.f32.xlu1 %v8609_v25 }
 0xd33   : > { %v8516_v29 = vpop.xlane.xlu0 %8515  ;;  %v8614_v62 = vpop.xlane.xlu1 %8613 }
 0xd34   : > { %v8548_v46 = vmul.f32 0.0078125, %v8516_v29  ;;  %v8677_v15 = vmul.f32 0.0078125, %v8614_v62  ;;  %v8610_v0 = vmul.f32 %v17578_v43, %v17578_v43  ;;  %v8611_v5 = vmul.f32 %v17581_v27, %v17581_v27 }
 0xd36   : > { %v17588_v51 = vsub.f32 %v17440_v24, %v8548_v46  ;;  %v8709_v42 = vadd.f32 1e-06, %v8677_v15  ;;  %8671 = vadd.xlane.f32.xlu0 %v8610_v0  ;;  %8673 = vadd.xlane.f32.xlu1 %v8611_v5 }
 0xd37   : > { %v8616_v50 = vpop.xlane.xlu0 %8615  ;;  %v8618_v26 = vpop.xlane.xlu1 %8617 }
 0xd38   : > { %18812 = vst [vmem:[#allocation136_spill] sm:$0xff] %v17588_v51  ;;  %12346 = vrsqrt.f32 %v8709_v42  ;;  %v8678_v4 = vmul.f32 0.0078125, %v8616_v50  ;;  %v8679_v12 = vmul.f32 0.0078125, %v8618_v26  ;;  %v8612_v48 = vmul.f32 %v17588_v51, %v17588_v51 }
 0xd3a   : > { %v8710_v9 = vadd.f32 1e-06, %v8678_v4  ;;  %v8711_v53 = vadd.f32 1e-06, %v8679_v12  ;;  %8675 = vadd.xlane.f32.xlu0 %v8612_v48 }
 0xd3b   : > { %v8620_v22 = vpop.xlane.xlu0 %8619  ;;  %v8622_v38 = vpop.xlane.xlu1 %8621 }
 0xd3c   : > { %12348 = vrsqrt.f32 %v8710_v9  ;;  %v8680_v25 = vmul.f32 0.0078125, %v8620_v22  ;;  %v8681_v24 = vmul.f32 0.0078125, %v8622_v38  ;;  %v17592_v9 = vld [vmem:[#allocation17] ss:$0 sm:$0xff] }
 0xd3d   : > { %12350 = vrsqrt.f32 %v8711_v53 }
 0xd3e   : > { %v8712_v29 = vadd.f32 1e-06, %v8680_v25  ;;  %v8713_v62 = vadd.f32 1e-06, %v8681_v24  ;;  %v17595_v25 = vld [vmem:[#allocation19] ss:$0 sm:$0xff] }
 0xd3f   : > { %v8624_v46 = vpop.xlane.xlu0 %8623  ;;  %v8626_v15 = vpop.xlane.xlu1 %8625 }
 0xd40   : > { %12352 = vrsqrt.f32 %v8712_v29  ;;  %v8682_v0 = vmul.f32 0.0078125, %v8624_v46  ;;  %v8683_v5 = vmul.f32 0.0078125, %v8626_v15 }
 0xd41   : > { %12354 = vrsqrt.f32 %v8713_v62 }
 0xd42   : > { %v8714_v42 = vadd.f32 1e-06, %v8682_v0  ;;  %v8715_v50 = vadd.f32 1e-06, %v8683_v5 }
 0xd43   : > { %v8628_v26 = vpop.xlane.xlu0 %8627  ;;  %v8630_v4 = vpop.xlane.xlu1 %8629 }
 0xd44   : > { %12356 = vrsqrt.f32 %v8714_v42  ;;  %v8684_v12 = vmul.f32 0.0078125, %v8628_v26  ;;  %v8685_v48 = vmul.f32 0.0078125, %v8630_v4 }
 0xd45   : > { %v12347_v51 = vpop.eup %12346  ;;  %12358 = vrsqrt.f32 %v8715_v50 }
 0xd46   : > { %v8773_v53 = vmul.f32 %v12347_v51, %v17421_v14  ;;  %v8716_v22 = vadd.f32 1e-06, %v8684_v12  ;;  %v8717_v38 = vadd.f32 1e-06, %v8685_v48 }
 0xd47   : > { %v8632_v24 = vpop.xlane.xlu0 %8631  ;;  %v8634_v29 = vpop.xlane.xlu1 %8633 }
 0xd48   : > { %v8812_v62 = vmul.f32 %v17592_v9, %v8773_v53  ;;  %12360 = vrsqrt.f32 %v8716_v22  ;;  %v8686_v46 = vmul.f32 0.0078125, %v8632_v24  ;;  %v8687_v15 = vmul.f32 0.0078125, %v8634_v29 }
 0xd49   : > { %v12349_v0 = vpop.eup %12348  ;;  %12362 = vrsqrt.f32 %v8717_v38 }
 0xd4a   : > { %v12351_v5 = vpop.eup %12350  ;;  %v8851_v42 = vadd.f32 %v17595_v25, %v8812_v62  ;;  %v8774_v50 = vmul.f32 %v12349_v0, %v17437_v57  ;;  %v8718_v14 = vadd.f32 1e-06, %v8686_v46  ;;  %v8719_v51 = vadd.f32 1e-06, %v8687_v15 }
 0xd4b   : > { %v8775_v26 = vmul.f32 %v12351_v5, %v17434_v60  ;;  %v8636_v4 = vpop.xlane.xlu0 %8635  ;;  %v8638_v12 = vpop.xlane.xlu1 %8637 }
 0xd4c   : > { %8883 = vst [vmem:[%s17603_s23] sm:$0xff] %v8851_v42  ;;  %v8813_v48 = vmul.f32 %v17592_v9, %v8774_v50  ;;  %12364 = vrsqrt.f32 %v8718_v14  ;;  %v8688_v53 = vmul.f32 0.0078125, %v8636_v4  ;;  %v8689_v22 = vmul.f32 0.0078125, %v8638_v12 }
 0xd4d   : > { %v12353_v38 = vpop.eup %12352  ;;  %v8814_v57 = vmul.f32 %v17592_v9, %v8775_v26  ;;  %12366 = vrsqrt.f32 %v8719_v51 }
 0xd4e   : > { %v12355_v24 = vpop.eup %12354  ;;  %v8852_v60 = vadd.f32 %v17595_v25, %v8813_v48  ;;  %v8776_v29 = vmul.f32 %v12353_v38, %v17444_v19  ;;  %v8720_v62 = vadd.f32 1e-06, %v8688_v53  ;;  %v8721_v46 = vadd.f32 1e-06, %v8689_v22 }
 0xd4f   : > { %v8853_v15 = vadd.f32 %v17595_v25, %v8814_v57  ;;  %v8777_v0 = vmul.f32 %v12355_v24, %v17447_v35  ;;  %v8640_v5 = vpop.xlane.xlu0 %8639  ;;  %v8642_v42 = vpop.xlane.xlu1 %8641 }
 0xd50   : > { %8884 = vst [vmem:[%s17603_s23 + $0x8] sm:$0xff] %v8852_v60  ;;  %v8815_v50 = vmul.f32 %v17592_v9, %v8776_v29  ;;  %12368 = vrsqrt.f32 %v8720_v62  ;;  %v8690_v14 = vmul.f32 0.0078125, %v8640_v5  ;;  %v8691_v51 = vmul.f32 0.0078125, %v8642_v42 }
 0xd51   : > { %v12357_v26 = vpop.eup %12356  ;;  %8885 = vst [vmem:[%s17603_s23 + $0x10] sm:$0xff] %v8853_v15  ;;  %v8816_v19 = vmul.f32 %v17592_v9, %v8777_v0  ;;  %12370 = vrsqrt.f32 %v8721_v46  ;;  %v1637_v42 = vpack.c.bf16 %v17285_v28, %v17279_v54 }
 0xd52   : > { %v12359_v4 = vpop.eup %12358  ;;  %v8854_v12 = vadd.f32 %v17595_v25, %v8815_v50  ;;  %v8778_v35 = vmul.f32 %v12357_v26, %v17454_v52  ;;  %v8722_v48 = vadd.f32 1e-06, %v8690_v14  ;;  %v8723_v53 = vadd.f32 1e-06, %v8691_v51 }
 0xd53   : > { %v8855_v22 = vadd.f32 %v17595_v25, %v8816_v19  ;;  %v8779_v38 = vmul.f32 %v12359_v4, %v17459_v44  ;;  %v8644_v57 = vpop.xlane.xlu0 %8643  ;;  %v1639_v14 = vpack.c.bf16 %v17307_v40, %v17301_v17  ;;  %11113 = vmatprep.mubr.bf16.mxu0 %v1637_v42  ;;  %v1641_v26 = vpack.c.bf16 %v17329_v3, %v17323_v56 }
 0xd54   : > { %8886 = vst [vmem:[%s17603_s23 + $0x18] sm:$0xff] %v8854_v12  ;;  %v8817_v24 = vmul.f32 %v17592_v9, %v8778_v35  ;;  %12372 = vrsqrt.f32 %v8722_v48  ;;  %v8692_v60 = vmul.f32 0.0078125, %v8644_v57  ;;  %v1643_v17 = vpack.c.bf16 %v17351_v11, %v17345_v39 }
 0xd55   : > { %v12361_v29 = vpop.eup %12360  ;;  %8887 = vst [vmem:[%s17603_s23 + $0x20] sm:$0xff] %v8855_v22  ;;  %v8818_v62 = vmul.f32 %v17592_v9, %v8779_v38  ;;  %12374 = vrsqrt.f32 %v8723_v53  ;;  %11117 = vmatprep.mubr.bf16.mxu0 %v1639_v14  ;;  %v1645_v56 = vpack.c.bf16 %v17373_v6, %v17367_v1  ;;  %v1649_v35 = vpack.c.bf16 %v17417_v59, %v17411_v16 }
 0xd56   : > { %v12363_v52 = vpop.eup %12362  ;;  %v8856_v46 = vadd.f32 %v17595_v25, %v8817_v24  ;;  %v8780_v15 = vmul.f32 %v12361_v29, %v17466_v30  ;;  %v8724_v0 = vadd.f32 1e-06, %v8692_v60  ;;  %11121 = vmatprep.mubr.bf16.mxu0 %v1641_v26 }
 0xd57   : > { %v8857_v44 = vadd.f32 %v17595_v25, %v8818_v62  ;;  %v8781_v5 = vmul.f32 %v12363_v52, %v17469_v18  ;;  %11125 = vmatprep.mubr.bf16.mxu0 %v1643_v17 }
 0xd58   : > { %8888 = vst [vmem:[%s17603_s23 + $0x28] sm:$0xff] %v8856_v46  ;;  %v8819_v50 = vmul.f32 %v17592_v9, %v8780_v15  ;;  %12376 = vrsqrt.f32 %v8724_v0  ;;  %11129 = vmatprep.mubr.bf16.mxu0 %v1645_v56 }
 0xd59   : > { %v12365_v51 = vpop.eup %12364  ;;  %8889 = vst [vmem:[%s17603_s23 + $0x30] sm:$0xff] %v8857_v44  ;;  %v8820_v30 = vmul.f32 %v17592_v9, %v8781_v5 }
 0xd5a   : > { %v12367_v18 = vpop.eup %12366  ;;  %v8858_v19 = vadd.f32 %v17595_v25, %v8819_v50  ;;  %v8782_v54 = vmul.f32 %v12365_v51, %v17474_v34  ;;  %v1647_v34 = vpack.c.bf16 %v17395_v61, %v17389_v32 }
 0xd5b   : > { %v8859_v40 = vadd.f32 %v17595_v25, %v8820_v30  ;;  %v8783_v4 = vmul.f32 %v12367_v18, %v17477_v49 }
 0xd5c   : > { %v8646_v28 = vpop.xlane.xlu1 %8645  ;;  %8890 = vst [vmem:[%s17603_s23 + $0x38] sm:$0xff] %v8858_v19  ;;  %v8821_v3 = vmul.f32 %v17592_v9, %v8782_v54  ;;  %11133 = vmatprep.mubr.bf16.mxu0 %v1647_v34 }
 0xd5d   : > { %v8693_v12 = vmul.f32 0.0078125, %v8646_v28  ;;  %v12369_v39 = vpop.eup %12368  ;;  %8891 = vst [vmem:[%s17603_s23 + $0x40] sm:$0xff] %v8859_v40  ;;  %v8822_v11 = vmul.f32 %v17592_v9, %v8783_v4  ;;  %11137 = vmatprep.mubr.bf16.mxu0 %v1649_v35 }
 0xd5e   : > { %v12371_v1 = vpop.eup %12370  ;;  %v8860_v6 = vadd.f32 %v17595_v25, %v8821_v3  ;;  %v8784_v48 = vmul.f32 %v12369_v39, %v17484_v31 }
 0xd5f   : > { %v8725_v49 = vadd.f32 1e-06, %v8693_v12  ;;  %v8861_v61 = vadd.f32 %v17595_v25, %v8822_v11  ;;  %v8785_v16 = vmul.f32 %v12371_v1, %v17489_v7 }
 0xd60   : > { %v8648_v53 = vpop.xlane.xlu0 %8647  ;;  %v8650_v32 = vpop.xlane.xlu1 %8649  ;;  %8892 = vst [vmem:[%s17603_s23 + $0x48] sm:$0xff] %v8860_v6  ;;  %v8823_v22 = vmul.f32 %v17592_v9, %v8784_v48 }
 0xd61   : > { %12378 = vrsqrt.f32 %v8725_v49  ;;  %v8694_v59 = vmul.f32 0.0078125, %v8648_v53  ;;  %v8695_v38 = vmul.f32 0.0078125, %v8650_v32  ;;  %v12373_v57 = vpop.eup %12372  ;;  %8893 = vst [vmem:[%s17603_s23 + $0x50] sm:$0xff] %v8861_v61  ;;  %v8824_v31 = vmul.f32 %v17592_v9, %v8785_v16 }
 0xd62   : > { %v12375_v7 = vpop.eup %12374  ;;  %v8862_v60 = vadd.f32 %v17595_v25, %v8823_v22  ;;  %v8786_v29 = vmul.f32 %v12373_v57, %v17496_v8 }
 0xd63   : > { %v8726_v24 = vadd.f32 1e-06, %v8694_v59  ;;  %v8727_v62 = vadd.f32 1e-06, %v8695_v38  ;;  %v8863_v46 = vadd.f32 %v17595_v25, %v8824_v31  ;;  %v8787_v15 = vmul.f32 %v12375_v7, %v17499_v63 }
 0xd64   : > { %v8652_v52 = vpop.xlane.xlu0 %8651 }
 0xd65   : > { %12380 = vrsqrt.f32 %v8726_v24  ;;  %v8696_v0 = vmul.f32 0.0078125, %v8652_v52 }
 0xd66   : > { %12679 = shalt.err (!%p12676_p13)
}
 0xd67   : > { %s12680_s1 = scalar_lea.hbm %s17667_s28, 32768  ;;  %s12684_s24 = scalar_lea.hbm %s18813_s27, 65536 }
 0xd68   : > { %p12681_p0 = scmp.ne.s32.totalorder %s17667_s28, %s12680_s1  ;;  %p12685_p7 = scmp.lt.s32.totalorder %s17667_s28, %s18813_s27 }
 0xd69   : > { %p12686_p12 = scmp.lt.s32.totalorder %s12684_s24, %s12680_s1 }
 0xd6a   : > { %p12682_p8 = pnand %p12681_p0, %p12972_p5 }
 0xd6b   : > { %p12687_p4 = por %p12686_p12, %p12685_p7 }
 0xd6c   : > { %p12683_p9 = pneg %p12682_p8 }
 0xd6e   : > { %p12688_p10 = pnand %p12687_p4, %p12683_p9 }
 0xd70   : > { %12691 = shalt.err (!%p12688_p10)
}
 0xd71   : > { %s12811_s22 = smov 256   ;;  %s12812_s26 = smov 16   ;;  %8894 = vst [vmem:[%s17603_s23 + $0x58] sm:$0xff] %v8862_v60  ;;  %v8825_v8 = vmul.f32 %v17592_v9, %v8786_v29  ;;  %12382 = vrsqrt.f32 %v8727_v62  ;;  %v12377_v63 = vpop.eup %12376  ;;  %8895 = vst [vmem:[%s17603_s23 + $0x60] sm:$0xff] %v8863_v46  ;;  %v8826_v44 = vmul.f32 %v17592_v9, %v8787_v15  ;;  %v8728_v5 = vadd.f32 1e-06, %v8696_v0 }
 0xd72   : > { %11252 = dma.vmem_to_hbm [thread:$0]  (%p12972_p5), %s17669_s29, 32768, %s17667_s28, %s8921_s2, %s12811_s22, %s12811_s22, %s12812_s26   ;;  %v8788_v50 = vmul.f32 %v12377_v63, %v17504_v58  ;;  %v12379_v26 = vpop.eup %12378 }
 0xd73   : > { %v8864_v42 = vadd.f32 %v17595_v25, %v8825_v8  ;;  %v8865_v14 = vadd.f32 %v17595_v25, %v8826_v44  ;;  %12384 = vrsqrt.f32 %v8728_v5  ;;  %v8789_v18 = vmul.f32 %v12379_v26, %v17513_v33  ;;  %v12381_v54 = vpop.eup %12380  ;;  %s10069_s15 = sshll.u32 %s12784_s16, 12  ;;  %s8936_s3 = sshll.u32 %s17603_s23, 4  ;;  %s17779_s3 = int_to_ptr.vmem [resolvable:$true] %s8936_s3 }
 0xd74   : > { %v8827_v51 = vmul.f32 %v17592_v9, %v8788_v50  ;;  %v8790_v17 = vmul.f32 %v12381_v54, %v17518_v37  ;;  %v8654_v4 = vpop.xlane.xlu1 %8653  ;;  %s18815_s21 = sld [smem:[#allocation145_spill]]  ;;  %s8916_s16 = scalar_lea.sflag [#allocation7], %s13072_s18 }
 0xd75   : > { %8896 = vst [vmem:[%s17603_s23 + $0x68] sm:$0xff] %v8864_v42  ;;  %8897 = vst [vmem:[%s17603_s23 + $0x70] sm:$0xff] %v8865_v14  ;;  %v8828_v19 = vmul.f32 %v17592_v9, %v8789_v18  ;;  %v8697_v56 = vmul.f32 0.0078125, %v8654_v4  ;;  %s12692_s28 = scalar_lea.vmem %s17779_s3, 4096  ;;  %s12813_s2 = smov [#allocation20]  }
 0xd76   : > { %v8866_v30 = vadd.f32 %v17595_v25, %v8827_v51  ;;  %v8829_v12 = vmul.f32 %v17592_v9, %v8790_v17  ;;  %p12693_p1 = scmp.ne.s32.totalorder %s17779_s3, %s12692_s28  ;;  %s12696_s25 = sshll.u32 %s12813_s2, 4  ;;  %s12697_s25 = int_to_ptr.vmem [resolvable:$false] %s12696_s25 }
 0xd77   : > { %v8867_v58 = vadd.f32 %v17595_v25, %v8828_v19  ;;  %v8729_v39 = vadd.f32 1e-06, %v8697_v56  ;;  %s12698_s9 = scalar_lea.vmem %s12697_s25, 8192  ;;  %p12699_p2 = scmp.lt.s32.totalorder %s17779_s3, %s12697_s25 }
 0xd78   : > { %8898 = vst [vmem:[%s17603_s23 + $0x78] sm:$0xff] %v8866_v30  ;;  %v8868_v34 = vadd.f32 %v17595_v25, %v8829_v12  ;;  %v8656_v37 = vpop.xlane.xlu0 %8655  ;;  %v8658_v49 = vpop.xlane.xlu1 %8657  ;;  %p12694_p6 = pnand %p12693_p1, %p12972_p5  ;;  %p12700_p13 = scmp.lt.s32.totalorder %s12698_s9, %s12692_s28 }
 0xd79   : > { %8899 = vst [vmem:[%s17603_s23 + $0x80] sm:$0xff] %v8867_v58  ;;  %12386 = vrsqrt.f32 %v8729_v39  ;;  %v8698_v1 = vmul.f32 0.0078125, %v8656_v37  ;;  %v8699_v6 = vmul.f32 0.0078125, %v8658_v49 }
 0xd7a   : > { %8900 = vst [vmem:[%s17603_s23 + $0x88] sm:$0xff] %v8868_v34  ;;  %s17777_s30 = scalar_lea.hbm %s18815_s21, %s10069_s15  ;;  %p12695_p3 = pneg %p12694_p6 }
 0xd7b   : > { %v8730_v53 = vadd.f32 1e-06, %v8698_v1  ;;  %v8731_v32 = vadd.f32 1e-06, %v8699_v6  ;;  %p12701_p0 = por %p12700_p13, %p12699_p2 }
 0xd7c   : > { %v8660_v61 = vpop.xlane.xlu0 %8659 }
 0xd7d   : > { %12388 = vrsqrt.f32 %v8730_v53  ;;  %p12702_p8 = pnand %p12701_p0, %p12695_p3 }
 0xd7e   : > { %v12383_v28 = vpop.eup %12382  ;;  %12390 = vrsqrt.f32 %v8731_v32 }
 0xd7f   : > { %v8791_v40 = vmul.f32 %v12383_v28, %v17521_v13 }
 0xd80   : > { %v12385_v3 = vpop.eup %12384 }
 0xd81   : > { %v8830_v33 = vmul.f32 %v17592_v9, %v8791_v40  ;;  %v8792_v35 = vmul.f32 %v12385_v3, %v17528_v47  ;;  %v8700_v47 = vmul.f32 0.0078125, %v8660_v61 }
 0xd83   : > { %v8869_v11 = vadd.f32 %v17595_v25, %v8830_v33  ;;  %v8831_v13 = vmul.f32 %v17592_v9, %v8792_v35  ;;  %v8732_v16 = vadd.f32 1e-06, %v8700_v47 }
 0xd85   : > { %8901 = vst [vmem:[%s17603_s23 + $0x90] sm:$0xff] %v8869_v11  ;;  %v8870_v48 = vadd.f32 %v17595_v25, %v8831_v13  ;;  %12392 = vrsqrt.f32 %v8732_v16 }
 0xd86   : > { %v12387_v59 = vpop.eup %12386 }
 0xd87   : > { %8902 = vst [vmem:[%s17603_s23 + $0x98] sm:$0xff] %v8870_v48  ;;  %v8793_v22 = vmul.f32 %v12387_v59, %v17533_v45 }
 0xd89   : > { %v8832_v38 = vmul.f32 %v17592_v9, %v8793_v22 }
 0xd8a   : > { %v12389_v57 = vpop.eup %12388 }
 0xd8b   : > { %v12391_v31 = vpop.eup %12390  ;;  %v8871_v24 = vadd.f32 %v17595_v25, %v8832_v38  ;;  %v8794_v7 = vmul.f32 %v12389_v57, %v17538_v2 }
 0xd8c   : > { %v8795_v60 = vmul.f32 %v12391_v31, %v17541_v10  ;;  %v8662_v29 = vpop.xlane.xlu1 %8661 }
 0xd8d   : > { %8903 = vst [vmem:[%s17603_s23 + $0xa0] sm:$0xff] %v8871_v24  ;;  %v8833_v62 = vmul.f32 %v17592_v9, %v8794_v7  ;;  %v8701_v52 = vmul.f32 0.0078125, %v8662_v29  ;;  %v18814_v29 = vld [vmem:[#allocation136_spill] sm:$0xff] }
 0xd8e   : > { %v8834_v45 = vmul.f32 %v17592_v9, %v8795_v60 }
 0xd8f   : > { %v8872_v15 = vadd.f32 %v17595_v25, %v8833_v62  ;;  %v8733_v8 = vadd.f32 1e-06, %v8701_v52 }
 0xd90   : > { %v8873_v63 = vadd.f32 %v17595_v25, %v8834_v45  ;;  %v8664_v2 = vpop.xlane.xlu0 %8663  ;;  %v8666_v44 = vpop.xlane.xlu1 %8665 }
 0xd91   : > { %8904 = vst [vmem:[%s17603_s23 + $0xa8] sm:$0xff] %v8872_v15  ;;  %12394 = vrsqrt.f32 %v8733_v8  ;;  %v8702_v5 = vmul.f32 0.0078125, %v8664_v2  ;;  %v8703_v42 = vmul.f32 0.0078125, %v8666_v44 }
 0xd92   : > { %v12393_v46 = vpop.eup %12392  ;;  %8905 = vst [vmem:[%s17603_s23 + $0xb0] sm:$0xff] %v8873_v63 }
 0xd93   : > { %v8796_v0 = vmul.f32 %v12393_v46, %v17548_v55  ;;  %v8734_v14 = vadd.f32 1e-06, %v8702_v5  ;;  %v8735_v51 = vadd.f32 1e-06, %v8703_v42 }
 0xd94   : > { %v8668_v30 = vpop.xlane.xlu0 %8667 }
 0xd95   : > { %v8835_v10 = vmul.f32 %v17592_v9, %v8796_v0  ;;  %12396 = vrsqrt.f32 %v8734_v14  ;;  %v8704_v55 = vmul.f32 0.0078125, %v8668_v30 }
 0xd96   : > { %12398 = vrsqrt.f32 %v8735_v51 }
 0xd97   : > { %v8874_v50 = vadd.f32 %v17595_v25, %v8835_v10  ;;  %v8736_v26 = vadd.f32 1e-06, %v8704_v55 }
 0xd99   : > { %8906 = vst [vmem:[%s17603_s23 + $0xb8] sm:$0xff] %v8874_v50  ;;  %12400 = vrsqrt.f32 %v8736_v26 }
 0xd9e   : > { %v12395_v18 = vpop.eup %12394 }
 0xd9f   : > { %v8797_v19 = vmul.f32 %v12395_v18, %v17553_v21 }
 0xda1   : > { %v8836_v54 = vmul.f32 %v17592_v9, %v8797_v19 }
 0xda2   : > { %v12397_v28 = vpop.eup %12396 }
 0xda3   : > { %v12399_v58 = vpop.eup %12398  ;;  %v8875_v17 = vadd.f32 %v17595_v25, %v8836_v54  ;;  %v8798_v40 = vmul.f32 %v12397_v28, %v17558_v20 }
 0xda4   : > { %v8799_v4 = vmul.f32 %v12399_v58, %v17561_v41 }
 0xda5   : > { %8907 = vst [vmem:[%s17603_s23 + $0xc0] sm:$0xff] %v8875_v17  ;;  %v8837_v12 = vmul.f32 %v17592_v9, %v8798_v40 }
 0xda6   : > { %v12401_v56 = vpop.eup %12400  ;;  %v8838_v3 = vmul.f32 %v17592_v9, %v8799_v4 }
 0xda7   : > { %v8876_v21 = vadd.f32 %v17595_v25, %v8837_v12  ;;  %v8800_v33 = vmul.f32 %v12401_v56, %v17568_v36 }
 0xda8   : > { %v8877_v34 = vadd.f32 %v17595_v25, %v8838_v3 }
 0xda9   : > { %8908 = vst [vmem:[%s17603_s23 + $0xc8] sm:$0xff] %v8876_v21  ;;  %v8839_v35 = vmul.f32 %v17592_v9, %v8800_v33 }
 0xdaa   : > { %8909 = vst [vmem:[%s17603_s23 + $0xd0] sm:$0xff] %v8877_v34 }
 0xdab   : > { %v8878_v20 = vadd.f32 %v17595_v25, %v8839_v35 }
 0xdad   : > { %8910 = vst [vmem:[%s17603_s23 + $0xd8] sm:$0xff] %v8878_v20 }
 0xdbb   : > { %v8670_v41 = vpop.xlane.xlu1 %8669 }
 0xdbc   : > { %v8705_v39 = vmul.f32 0.0078125, %v8670_v41 }
 0xdbe   : > { %v8737_v11 = vadd.f32 1e-06, %v8705_v39 }
 0xdbf   : > { %v8672_v37 = vpop.xlane.xlu0 %8671  ;;  %v8674_v49 = vpop.xlane.xlu1 %8673 }
 0xdc0   : > { %12402 = vrsqrt.f32 %v8737_v11  ;;  %v8706_v13 = vmul.f32 0.0078125, %v8672_v37  ;;  %v8707_v1 = vmul.f32 0.0078125, %v8674_v49 }
 0xdc2   : > { %v8738_v6 = vadd.f32 1e-06, %v8706_v13  ;;  %v8739_v36 = vadd.f32 1e-06, %v8707_v1 }
 0xdc3   : > { %v8676_v48 = vpop.xlane.xlu0 %8675 }
 0xdc4   : > { %12404 = vrsqrt.f32 %v8738_v6  ;;  %v8708_v53 = vmul.f32 0.0078125, %v8676_v48 }
 0xdc5   : > { %12406 = vrsqrt.f32 %v8739_v36 }
 0xdc6   : > { %v8740_v32 = vadd.f32 1e-06, %v8708_v53 }
 0xdc8   : > { %12408 = vrsqrt.f32 %v8740_v32 }
 0xdcd   : > { %v12403_v61 = vpop.eup %12402 }
 0xdce   : > { %v8801_v47 = vmul.f32 %v12403_v61, %v17573_v23 }
 0xdd0   : > { %v8840_v16 = vmul.f32 %v17592_v9, %v8801_v47 }
 0xdd1   : > { %v12405_v59 = vpop.eup %12404 }
 0xdd2   : > { %v12407_v22 = vpop.eup %12406  ;;  %v8879_v38 = vadd.f32 %v17595_v25, %v8840_v16  ;;  %v8802_v57 = vmul.f32 %v12405_v59, %v17578_v43 }
 0xdd3   : > { %v8803_v31 = vmul.f32 %v12407_v22, %v17581_v27 }
 0xdd4   : > { %8911 = vst [vmem:[%s17603_s23 + $0xe0] sm:$0xff] %v8879_v38  ;;  %v8841_v24 = vmul.f32 %v17592_v9, %v8802_v57 }
 0xdd5   : > { %v12409_v7 = vpop.eup %12408  ;;  %v8842_v23 = vmul.f32 %v17592_v9, %v8803_v31 }
 0xdd6   : > { %v8880_v60 = vadd.f32 %v17595_v25, %v8841_v24  ;;  %v8804_v62 = vmul.f32 %v12409_v7, %v18814_v29 }
 0xdd7   : > { %v8881_v52 = vadd.f32 %v17595_v25, %v8842_v23 }
 0xdd8   : > { %8912 = vst [vmem:[%s17603_s23 + $0xe8] sm:$0xff] %v8880_v60  ;;  %v8843_v43 = vmul.f32 %v17592_v9, %v8804_v62 }
 0xdd9   : > { %8913 = vst [vmem:[%s17603_s23 + $0xf0] sm:$0xff] %v8881_v52 }
 0xdda   : > { %v8882_v27 = vadd.f32 %v17595_v25, %v8843_v43 }
 0xddc   : > { %8914 = vst [vmem:[%s17603_s23 + $0xf8] sm:$0xff] %v8882_v27 }
 0xddd   : > { %12705 = shalt.err (!%p12702_p8)
}
 0xdde   : > { %s12706_s23 = scalar_lea.hbm %s17777_s30, 4096  ;;  %s12710_s1 = scalar_lea.hbm %s18815_s21, 8192 }
 0xddf   : > { %p12707_p9 = scmp.ne.s32.totalorder %s17777_s30, %s12706_s23  ;;  %p12711_p4 = scmp.lt.s32.totalorder %s17777_s30, %s18815_s21 }
 0xde0   : > { %p12712_p10 = scmp.lt.s32.totalorder %s12710_s1, %s12706_s23 }
 0xde1   : > { %p12708_p7 = pnand %p12707_p9, %p12972_p5 }
 0xde2   : > { %p12713_p1 = por %p12712_p10, %p12711_p4 }
 0xde3   : > { %p12709_p12 = pneg %p12708_p7 }
 0xde5   : > { %p12714_p6 = pnand %p12713_p1, %p12709_p12 }
 0xde7   : > { %12717 = shalt.err (!%p12714_p6)
}
 0xde8   : > { %s12814_s24 = smov 128   ;;  %s12815_s5 = smov 8  }
 0xde9   : > { %11251 = dma.vmem_to_hbm [thread:$0]  (%p12972_p5), %s17779_s3, 4096, %s17777_s30, %s8916_s16, %s12814_s24, %s12814_s24, %s12815_s5  }
 0xdea PF: > { %s18816_s19 = sld [smem:[#allocation30_spill]] }
 0xdeb   : > { %s18818_s26 = sld [smem:[#allocation32_spill]] }
 0xdf0   : > { %s8970_s15 = sand.u32 1, %s18816_s19  }
 0xdf1   : > { %p18819_p3 = scmp.ge.s32.totalorder %s18818_s26, 2  ;;  %s8971_s7 = scalar_lea.sflag [#allocation7], %s8970_s15 }
 0xdf3   : > { %p11285_p2 = pnand %p18819_p3, %p12980_p11 }
 0xdf5   : > { %p11286_p13 = pneg %p11285_p2 }
 0xdf7   : > { %12763 = dma.done.wait (%p11286_p13), %s8971_s7, 4096  }
 0xdf8   : > { %12765 = vsyncadd (%p11286_p13), %s8971_s7, 4294963200  ;;  %s8980_s29 = scalar_lea.sflag [#allocation22], %s8970_s15 }
 0xdf9   : > { %12767 = dma.done.wait (%p11286_p13), %s8980_s29, 32768  }
 0xdfa   : > { %12769 = vsyncadd (%p11286_p13), %s8980_s29, 4294934528  ;;  %s36_s18 = sadd.s32 1, %s18818_s26   ;;  %s18820_s12 = sld [smem:[#allocation31_spill]] }
 0xdfb   : > { %p33_p0 = scmp.ge.s32.totalorder %s36_s18, 4   ;;  %s18821_s15 = sld [smem:[#allocation34_spill]] }
 0xdfc   : > { %s18822_s3 = sld [smem:[#allocation33_spill]]  ;;  %s18823_s13 = smov %s12776_s14 }
 0xdfd   : > { %s18825_s16 = smov %s12788_s17 }
 0xdfe   :  { %35 = sbr.rel (!%p33_p0) target bundleno = 21 (0x15), region = 173 }
 0xe00   : > { %s18824_s14 = smov %s18820_s12 }
 0xe02   : > { %s18826_s17 = smov %s18822_s3 }
 0xe03   :  { %8985 = vsyncpa [#allocation6], 1 }
 0xe04   :  { %8987 = vsyncpa [#allocation6 + $0x1], 1 }
 0xe05   :  { %8988 = vsyncpa [#allocation9], 1 }
 0xe06   :  { %8990 = vsyncpa [#allocation9 + $0x1], 1 }
 0xe07   :  { %8991 = vsyncpa [#allocation12], 1 }
 0xe08   :  { %8992 = vsyncpa [#allocation15], 1 }
 0xe09   :  { %8993 = vsyncpa [#allocation18], 1 }
 0xe0a   :  { %8994 = vsyncpa [#allocation7], 1 }
 0xe0b   :  { %8996 = vsyncpa [#allocation7 + $0x1], 1 }
 0xe0c   :  { %8997 = vsyncpa [#allocation22], 1 }
 0xe0d   :  { %8999 = vsyncpa [#allocation22 + $0x1], 1 }

</bundles_post_ra>
